<compile_context>
chip_gen: v6e
topology: v6e:2x2x1
jax: 0.10.0
libtpu: 0.0.40
codegen_flags: <defaults>
</compile_context>

<pallas_src>
import jax
import jax.numpy as jnp
from jax import lax
from jax.experimental import pallas as pl
from jax.experimental.pallas import tpu as pltpu


def _vq_kernel(x_ref, e_ref, en2t_ref, e2_ref,
               q_ref, enc_ref, sse_ref, encsum_ref, dwt_ref):
    """Per-tile vector quantization.

    x_ref      : (TN, D)  flat input tile (f32)
    e_ref      : (K, D)   codebook (for the quantized lookup matmul)
    en2t_ref   : (D, K)   pre-scaled, pre-transposed codebook  (-2 * E).T
    e2_ref     : (1, K)   precomputed |e_k|^2
    q_ref      : (TN, D)  quantized output tile
    enc_ref    : (TN, K)  one-hot encodings output tile (lane-dense, K = 128)
    sse_ref    : (1, 1)   per-chunk sum-of-squared-error accumulator
    encsum_ref : (1, K)   per-chunk code-count accumulator
    dwt_ref    : (D, K)   per-chunk x^T @ enc accumulator (dw transposed)
    """
    t = pl.program_id(1)   # tile axis within chunk ("arbitrary": carried accs)

    @pl.when(t == 0)
    def _():
        sse_ref[...] = jnp.zeros_like(sse_ref)
        encsum_ref[...] = jnp.zeros_like(encsum_ref)
        dwt_ref[...] = jnp.zeros_like(dwt_ref)

    x = x_ref[...]                                                  # (TN, D)

    # Distance up to a per-row constant (|x|^2 doesn't change the argmin).
    # Codebook arrives pre-scaled by -2 and pre-transposed, so there is no
    # per-tile transpose and no (TN, K) elementwise multiply.
    d = jnp.dot(x, en2t_ref[...],
                preferred_element_type=jnp.float32) + e2_ref[...]   # (TN, K)

    # argmin over codes, first-min tie break (matches torch.argmin).
    # NOTE: the two lane reductions could be fused into one argmin-style
    # reduce; left as-is since the MXU is the likely binding unit here.
    dmin = jnp.min(d, axis=1, keepdims=True)                        # (TN, 1)
    iota_k = lax.broadcasted_iota(jnp.int32, d.shape, 1)            # (TN, K)
    big = jnp.iinfo(jnp.int32).max
    idx = jnp.min(jnp.where(d == dmin, iota_k, big), axis=1)        # (TN,)

    # One-hot encodings (kept in VMEM *and* emitted directly: the reference
    # module returns them) and codebook lookup via MXU matmul.
    enc = (iota_k == idx[:, None]).astype(jnp.float32)              # (TN, K)
    q = jnp.dot(enc, e_ref[...], preferred_element_type=jnp.float32)  # (TN, D)

    q_ref[...] = q
    enc_ref[...] = enc

    # Statistics.  Padded rows (x == 0) are NOT masked here: their dw
    # contribution is exactly zero and their sse / count contributions are
    # corrected analytically in the wrapper (all map to argmin(|e|^2)).
    diff = q - x
    sse_ref[...] += jnp.sum(diff * diff)
    encsum_ref[...] += jnp.sum(enc, axis=0, keepdims=True)
    # dw^T = x^T @ enc  -> (D, K) lane-dense accumulator, no enc^T transpose.
    dwt_ref[...] += lax.dot_general(
        x, enc, (((0,), (0,)), ((), ())),
        preferred_element_type=jnp.float32)


def _default_num_chunks():
    """One leading 'parallel' chunk per TensorCore (1 on v5e/v6e, 2 on v7x)."""
    try:
        info = pltpu.get_tpu_info()
        for attr in ("num_cores", "core_count", "num_tensorcores",
                     "tensor_core_count"):
            v = getattr(info, attr, None)
            if v:
                return max(1, min(2, int(v)))
    except Exception:
        pass
    return 1


def _vq_pallas(flat_input, embedding, e2, *, tile_n=1024, max_chunks=None):
    """Returns (q_pad, enc_pad, sse_chunks, encsum_chunks, dwT_chunks).

    tile_n: keep <= 2048 on v7x (64 MiB VMEM per TC); 1024 fits all chips.
    """
    N, D = flat_input.shape
    K = embedding.shape[0]

    if max_chunks is None:
        max_chunks = _default_num_chunks()

    num_tiles = pl.cdiv(N, tile_n)
    num_chunks = max(1, min(max_chunks, num_tiles))
    tiles_per_chunk = pl.cdiv(num_tiles, num_chunks)
    n_pad = num_chunks * tiles_per_chunk * tile_n

    flat_input = flat_input.astype(jnp.float32)
    if n_pad != N:
        flat_input = jnp.pad(flat_input, ((0, n_pad - N), (0, 0)))

    embedding = embedding.astype(jnp.float32)
    # Pre-scaled / pre-transposed codebook and |e|^2, hoisted out of the grid.
    e_neg2t = (-2.0 * embedding).T              # (D, K)
    e2_row = e2.astype(jnp.float32)[None, :]    # (1, K)

    row_map = lambda c, t: (c * tiles_per_chunk + t, 0)
    chunk_map = lambda c, t: (c, 0, 0)

    q, enc, sse, encsum, dwt = pl.pallas_call(
        _vq_kernel,
        out_shape=(
            jax.ShapeDtypeStruct((n_pad, D), jnp.float32),           # quantized
            jax.ShapeDtypeStruct((n_pad, K), jnp.float32),           # one-hot
            jax.ShapeDtypeStruct((num_chunks, 1, 1), jnp.float32),   # sse partials
            jax.ShapeDtypeStruct((num_chunks, 1, K), jnp.float32),   # count partials
            jax.ShapeDtypeStruct((num_chunks, D, K), jnp.float32),   # dw^T partials
        ),
        grid_spec=pltpu.PrefetchScalarGridSpec(
            num_scalar_prefetch=0,
            grid=(num_chunks, tiles_per_chunk),
            in_specs=[
                pl.BlockSpec((tile_n, D), row_map),
                pl.BlockSpec((K, D), lambda c, t: (0, 0)),
                pl.BlockSpec((D, K), lambda c, t: (0, 0)),
                pl.BlockSpec((1, K), lambda c, t: (0, 0)),
            ],
            out_specs=[
                pl.BlockSpec((tile_n, D), row_map),
                pl.BlockSpec((tile_n, K), row_map),
                pl.BlockSpec((None, 1, 1), chunk_map),
                pl.BlockSpec((None, 1, K), chunk_map),
                pl.BlockSpec((None, D, K), chunk_map),
            ],
        ),
        compiler_params=pltpu.CompilerParams(
            dimension_semantics=("parallel", "arbitrary"),
            vmem_limit_bytes=48 * 1024 * 1024,
        ),
    )(flat_input, embedding, e_neg2t, e2_row)
    return q, enc, sse, encsum, dwt


class VectorQuantizerEMA:
    """JAX/Pallas reimplementation of the PyTorch VectorQuantizerEMA forward."""

    def __init__(self, num_embeddings, embedding_dim, commitment_cost, decay,
                 epsilon=1e-5, key=None):
        self._embedding_dim = embedding_dim
        self._num_embeddings = num_embeddings
        self._commitment_cost = commitment_cost
        self._decay = decay
        self._epsilon = epsilon

        key = jax.random.PRNGKey(0) if key is None else key
        k1, k2 = jax.random.split(key)
        # deterministic stand-ins for .normal_() init
        self.embedding = jax.random.normal(
            k1, (num_embeddings, embedding_dim), dtype=jnp.float32)
        self.ema_w = jax.random.normal(
            k2, (num_embeddings, embedding_dim), dtype=jnp.float32)
        self.ema_cluster_size = jnp.zeros((num_embeddings,), dtype=jnp.float32)
        self.training = True

    def __call__(self, inputs):
        # inputs: (B, H, W, D) channel-last, D == embedding_dim
        # NOTE: EMA state is updated via Python attribute mutation (matches the
        # PyTorch module's buffer mutation); not jit/scan-compatible by design.
        input_shape = inputs.shape
        flat_input = inputs.reshape(-1, self._embedding_dim).astype(jnp.float32)
        N = flat_input.shape[0]
        D = self._embedding_dim
        K = self._num_embeddings

        emb32 = self.embedding.astype(jnp.float32)
        e2 = jnp.sum(emb32 * emb32, axis=1)        # (K,) — shared with the kernel

        q_pad, enc_pad, sse_c, encsum_c, dwt_c = _vq_pallas(flat_input, emb32, e2)
        n_pad = q_pad.shape[0]

        q_flat = q_pad[:N]
        encodings = enc_pad[:N]                    # dense one-hot, straight from HBM
        sse = jnp.sum(sse_c)                       # total squared error (incl. pad)
        enc_sum = jnp.sum(encsum_c, axis=(0, 1))   # (K,) per-code counts (incl. pad)
        dw = jnp.sum(dwt_c, axis=0).T              # (K, D) = enc^T @ x (pad rows = 0)

        # Analytic padding correction: every zero-padded row quantizes to
        # j* = argmin(|e|^2) (d == |e|^2 bit-for-bit for x == 0), so it adds 1
        # to enc_sum[j*] and |e_{j*}|^2 to sse.  dw is unaffected.
        n_extra = n_pad - N
        if n_extra > 0:
            j_star = jnp.argmin(e2)
            enc_sum = enc_sum.at[j_star].add(-jnp.float32(n_extra))
            sse = sse - jnp.float32(n_extra) * e2[j_star]

        quantized = q_flat.reshape(input_shape)

        if self.training:
            # EMA buffer updates (do not affect this call's return values,
            # matching the PyTorch forward); uses in-kernel accumulators.
            cluster = self.ema_cluster_size * self._decay + (1.0 - self._decay) * enc_sum
            n = jnp.sum(cluster)
            cluster = (cluster + self._epsilon) / (n + K * self._epsilon) * n
            self.ema_w = self.ema_w * self._decay + (1.0 - self._decay) * dw
            self.ema_cluster_size = cluster
            self.embedding = self.ema_w / cluster[:, None]

        # e_latent_loss = mean((quantized - inputs)^2) over the unpadded elements
        e_latent_loss = sse / jnp.float32(N * D)
        loss = self._commitment_cost * e_latent_loss

        # straight-through estimator: forward value equals `quantized`
        quantized_st = inputs + lax.stop_gradient(quantized - inputs)

        avg_probs = enc_sum / jnp.float32(N)
        perplexity = jnp.exp(-jnp.sum(avg_probs * jnp.log(avg_probs + 1e-10)))

        return loss, quantized_st, perplexity, encodings


def _reference_forward(inputs, embedding, commitment_cost):
    """Pure-JAX reference of the PyTorch forward (no EMA state)."""
    D = embedding.shape[1]
    flat = inputs.reshape(-1, D).astype(jnp.float32)
    d = (jnp.sum(flat * flat, axis=1, keepdims=True)
         + jnp.sum(embedding * embedding, axis=1)[None, :]
         - 2.0 * flat @ embedding.T)
    idx = jnp.argmin(d, axis=1)
    enc = jax.nn.one_hot(idx, embedding.shape[0], dtype=jnp.float32)
    q = (enc @ embedding).reshape(inputs.shape)
    e_latent_loss = jnp.mean((q - inputs) ** 2)
    loss = commitment_cost * e_latent_loss
    avg = jnp.mean(enc, axis=0)
    perplexity = jnp.exp(-jnp.sum(avg * jnp.log(avg + 1e-10)))
    return loss, q, perplexity, enc


if __name__ == "__main__":
    embedding_dim = 32
    num_embeddings = 128

    key = jax.random.PRNGKey(0)
    k_in, k_mod, k_in2 = jax.random.split(key, 3)

    # Case 1: training path.  N = 2*16*16 = 512 < tile_n=1024 -> exercises the
    # zero-padding + analytic-correction path together with the EMA update.
    x = jax.random.normal(k_in, (2, 16, 16, embedding_dim), dtype=jnp.float32)
    vq = VectorQuantizerEMA(num_embeddings, embedding_dim,
                            commitment_cost=0.25, decay=0.99, key=k_mod)
    emb_before = vq.embedding

    loss, quantized, perplexity, encodings = vq(x)
    jax.block_until_ready((loss, quantized, perplexity, encodings))

    assert quantized.shape == x.shape
    assert encodings.shape == (2 * 16 * 16, num_embeddings)
    assert bool(jnp.isfinite(loss)) and bool(jnp.isfinite(perplexity))
    assert bool(jnp.all(jnp.isfinite(vq.embedding)))

    ref_loss, ref_q, ref_perp, ref_enc = _reference_forward(x, emb_before, 0.25)
    assert bool(jnp.allclose(loss, ref_loss, rtol=1e-4, atol=1e-6))
    assert bool(jnp.allclose(perplexity, ref_perp, rtol=1e-4, atol=1e-4))
    assert bool(jnp.allclose(quantized, ref_q, rtol=1e-4, atol=1e-5))
    assert bool(jnp.allclose(encodings, ref_enc))

    # Case 2: eval path, N = 2*15*16 = 480 (another non-multiple of tile_n).
    vq2 = VectorQuantizerEMA(num_embeddings, embedding_dim,
                             commitment_cost=0.25, decay=0.99, key=k_mod)
    vq2.training = False
    x2 = jax.random.normal(k_in2, (2, 15, 16, embedding_dim), dtype=jnp.float32)
    loss2, q2, perp2, enc2 = vq2(x2)
    jax.block_until_ready((loss2, q2, perp2, enc2))

    ref_loss2, ref_q2, ref_perp2, ref_enc2 = _reference_forward(x2, vq2.embedding, 0.25)
    assert enc2.shape == (2 * 15 * 16, num_embeddings)
    assert bool(jnp.allclose(loss2, ref_loss2, rtol=1e-4, atol=1e-6))
    assert bool(jnp.allclose(perp2, ref_perp2, rtol=1e-4, atol=1e-4))
    assert bool(jnp.allclose(q2, ref_q2, rtol=1e-4, atol=1e-5))
    assert bool(jnp.allclose(enc2, ref_enc2))

    print("KERNEL_OK")
</pallas_src>

<mosaic_0001>
module attributes {stable_mosaic.version = 11 : i64} {
  func.func @_vq_kernel(%arg0: i32, %arg1: i32, %arg2: memref<1024x32xf32, #tpu.memory_space<vmem>>, %arg3: memref<128x32xf32, #tpu.memory_space<vmem>>, %arg4: memref<32x128xf32, #tpu.memory_space<vmem>>, %arg5: memref<1x128xf32, #tpu.memory_space<vmem>>, %arg6: memref<1024x32xf32, #tpu.memory_space<vmem>>, %arg7: memref<1024x128xf32, #tpu.memory_space<vmem>>, %arg8: memref<1x1x1xf32, #tpu.memory_space<vmem>>, %arg9: memref<1x1x128xf32, #tpu.memory_space<vmem>>, %arg10: memref<1x32x128xf32, #tpu.memory_space<vmem>>) attributes {dimension_semantics = [#tpu.dimension_semantics<parallel>, #tpu.dimension_semantics<arbitrary>], iteration_bounds = array<i64: 1, 1>, scalar_prefetch = 0 : i64, scratch_operands = 0 : i64, tpu.core_type = #tpu.core_type<tc>, window_params = [{transform_indices = @transform_0, window_bounds = array<i64: 1024, 32>}, {pipeline_mode = #tpu.pipeline_mode<synchronous>, transform_indices = @transform_1, window_bounds = array<i64: 128, 32>}, {pipeline_mode = #tpu.pipeline_mode<synchronous>, transform_indices = @transform_2, window_bounds = array<i64: 32, 128>}, {pipeline_mode = #tpu.pipeline_mode<synchronous>, transform_indices = @transform_3, window_bounds = array<i64: 1, 128>}, {transform_indices = @transform_4, window_bounds = array<i64: 1024, 32>}, {transform_indices = @transform_5, window_bounds = array<i64: 1024, 128>}, {transform_indices = @transform_6, window_bounds = array<i64: 1, 1, 1>}, {transform_indices = @transform_7, window_bounds = array<i64: 1, 1, 128>}, {transform_indices = @transform_8, window_bounds = array<i64: 1, 32, 128>}]} {
    %c0_i32 = arith.constant 0 : i32
    %0 = arith.cmpi eq, %arg1, %c0_i32 : i32
    %1 = arith.extui %0 : i1 to i32
    %c0_i32_0 = arith.constant 0 : i32
    %2 = arith.cmpi ne, %1, %c0_i32_0 : i32
    scf.if %2 {
      %cst_36 = arith.constant 0.000000e+00 : f32
      %54 = vector.broadcast %cst_36 : f32 to vector<1x1xf32>
      %c0_37 = arith.constant 0 : index
      %c0_38 = arith.constant 0 : index
      %c0_39 = arith.constant 0 : index
      %55 = vector.load %arg8[%c0_37, %c0_38, %c0_39] : memref<1x1x1xf32, #tpu.memory_space<vmem>>, vector<1x1x1xf32>
      %56 = vector.shape_cast %55 : vector<1x1x1xf32> to vector<1x1xf32>
      %57 = vector.shape_cast %54 : vector<1x1xf32> to vector<1x1x1xf32>
      tpu.vector_store %arg8[%c0_37, %c0_38, %c0_39], %57 {strides = array<i32>} : memref<1x1x1xf32, #tpu.memory_space<vmem>>, vector<1x1x1xf32>,
      %cst_40 = arith.constant 0.000000e+00 : f32
      %58 = vector.broadcast %cst_40 : f32 to vector<1x128xf32>
      %c0_41 = arith.constant 0 : index
      %c0_42 = arith.constant 0 : index
      %c0_43 = arith.constant 0 : index
      %59 = vector.load %arg9[%c0_41, %c0_42, %c0_43] : memref<1x1x128xf32, #tpu.memory_space<vmem>>, vector<1x1x128xf32>
      %60 = vector.shape_cast %59 : vector<1x1x128xf32> to vector<1x128xf32>
      %61 = vector.shape_cast %58 : vector<1x128xf32> to vector<1x1x128xf32>
      tpu.vector_store %arg9[%c0_41, %c0_42, %c0_43], %61 {strides = array<i32>} : memref<1x1x128xf32, #tpu.memory_space<vmem>>, vector<1x1x128xf32>,
      %cst_44 = arith.constant 0.000000e+00 : f32
      %62 = vector.broadcast %cst_44 : f32 to vector<32x128xf32>
      %c0_45 = arith.constant 0 : index
      %c0_46 = arith.constant 0 : index
      %c0_47 = arith.constant 0 : index
      %63 = vector.load %arg10[%c0_45, %c0_46, %c0_47] : memref<1x32x128xf32, #tpu.memory_space<vmem>>, vector<1x32x128xf32>
      %64 = vector.shape_cast %63 : vector<1x32x128xf32> to vector<32x128xf32>
      %65 = vector.shape_cast %62 : vector<32x128xf32> to vector<1x32x128xf32>
      tpu.vector_store %arg10[%c0_45, %c0_46, %c0_47], %65 {strides = array<i32>} : memref<1x32x128xf32, #tpu.memory_space<vmem>>, vector<1x32x128xf32>,
    } else {
    }
    %c0 = arith.constant 0 : index
    %c0_1 = arith.constant 0 : index
    %3 = vector.load %arg2[%c0, %c0_1] : memref<1024x32xf32, #tpu.memory_space<vmem>>, vector<1024x32xf32>
    %c0_2 = arith.constant 0 : index
    %c0_3 = arith.constant 0 : index
    %4 = vector.load %arg4[%c0_2, %c0_3] : memref<32x128xf32, #tpu.memory_space<vmem>>, vector<32x128xf32>
    %cst = arith.constant dense<0.000000e+00> : vector<1024x128xf32>
    %5 = tpu.matmul %3, %4, %cst {dimension_numbers = #tpu.dot_dimension_numbers<[1], [0], [0], [1], [0, 0, 1, 1], [], []>} : vector<1024x32xf32>, vector<32x128xf32>, vector<1024x128xf32> -> vector<1024x128xf32>
    %c0_4 = arith.constant 0 : index
    %c0_5 = arith.constant 0 : index
    %6 = vector.load %arg5[%c0_4, %c0_5] : memref<1x128xf32, #tpu.memory_space<vmem>>, vector<1x128xf32>
    %7 = vector.broadcast %6 : vector<1x128xf32> to vector<1024x128xf32>
    %8 = arith.addf %5, %7 : vector<1024x128xf32>
    %cst_6 = arith.constant dense<0x7F800000> : vector<1024xf32>
    %9 = vector.multi_reduction <minimumf>, %8, %cst_6 [1] : vector<1024x128xf32> to vector<1024xf32>
    %10 = vector.shape_cast %9 : vector<1024xf32> to vector<1024x1xf32>
    %11 = tpu.iota {dimensions = array<i32: 1>} : vector<1024x128xi32>
    %12 = vector.broadcast %10 : vector<1024x1xf32> to vector<1024x128xf32>
    %13 = arith.cmpf oeq, %8, %12 : vector<1024x128xf32>
    %c2147483647_i32 = arith.constant 2147483647 : i32
    %14 = vector.broadcast %c2147483647_i32 : i32 to vector<1024x128xi32>
    %15 = arith.select %13, %11, %14 : vector<1024x128xi1>, vector<1024x128xi32>
    %cst_7 = arith.constant dense<2147483647> : vector<1024xi32>
    %16 = vector.multi_reduction <minsi>, %15, %cst_7 [1] : vector<1024x128xi32> to vector<1024xi32>
    %17 = vector.shape_cast %16 : vector<1024xi32> to vector<1024x1xi32>
    %18 = vector.broadcast %17 : vector<1024x1xi32> to vector<1024x128xi32>
    %19 = arith.cmpi eq, %11, %18 : vector<1024x128xi32>
    %20 = arith.extui %19 : vector<1024x128xi1> to vector<1024x128xi32>
    %21 = arith.sitofp %20 : vector<1024x128xi32> to vector<1024x128xf32>
    %c0_8 = arith.constant 0 : index
    %c0_9 = arith.constant 0 : index
    %22 = vector.load %arg3[%c0_8, %c0_9] : memref<128x32xf32, #tpu.memory_space<vmem>>, vector<128x32xf32>
    %cst_10 = arith.constant dense<0.000000e+00> : vector<1024x32xf32>
    %23 = tpu.matmul %21, %22, %cst_10 {dimension_numbers = #tpu.dot_dimension_numbers<[1], [0], [0], [1], [0, 0, 1, 1], [], []>} : vector<1024x128xf32>, vector<128x32xf32>, vector<1024x32xf32> -> vector<1024x32xf32>
    %c0_11 = arith.constant 0 : index
    %c0_12 = arith.constant 0 : index
    %24 = vector.load %arg6[%c0_11, %c0_12] : memref<1024x32xf32, #tpu.memory_space<vmem>>, vector<1024x32xf32>
    tpu.vector_store %arg6[%c0_11, %c0_12], %23 {strides = array<i32>} : memref<1024x32xf32, #tpu.memory_space<vmem>>, vector<1024x32xf32>,
    %c0_13 = arith.constant 0 : index
    %c0_14 = arith.constant 0 : index
    %25 = vector.load %arg7[%c0_13, %c0_14] : memref<1024x128xf32, #tpu.memory_space<vmem>>, vector<1024x128xf32>
    tpu.vector_store %arg7[%c0_13, %c0_14], %21 {strides = array<i32>} : memref<1024x128xf32, #tpu.memory_space<vmem>>, vector<1024x128xf32>,
    %26 = arith.subf %23, %3 : vector<1024x32xf32>
    %c0_15 = arith.constant 0 : index
    %c0_16 = arith.constant 0 : index
    %c0_17 = arith.constant 0 : index
    %27 = vector.load %arg8[%c0_15, %c0_16, %c0_17] : memref<1x1x1xf32, #tpu.memory_space<vmem>>, vector<1x1x1xf32>
    %28 = vector.shape_cast %27 : vector<1x1x1xf32> to vector<1x1xf32>
    %29 = arith.mulf %26, %26 : vector<1024x32xf32>
    %30 = vector.shape_cast %29 : vector<1024x32xf32> to vector<1x1024x32xf32>
    %cst_18 = arith.constant dense<0.000000e+00> : vector<1xf32>
    %31 = vector.multi_reduction <add>, %30, %cst_18 [1, 2] : vector<1x1024x32xf32> to vector<1xf32>
    %32 = vector.shape_cast %31 : vector<1xf32> to vector<1x1x1xf32>
    %33 = vector.extract %32[0, 0, 0] : f32 from vector<1x1x1xf32>
    %34 = vector.broadcast %33 : f32 to vector<1x1xf32>
    %35 = arith.addf %28, %34 : vector<1x1xf32>
    %c0_19 = arith.constant 0 : index
    %c0_20 = arith.constant 0 : index
    %c0_21 = arith.constant 0 : index
    %36 = vector.load %arg8[%c0_19, %c0_20, %c0_21] : memref<1x1x1xf32, #tpu.memory_space<vmem>>, vector<1x1x1xf32>
    %37 = vector.shape_cast %36 : vector<1x1x1xf32> to vector<1x1xf32>
    %38 = vector.shape_cast %35 : vector<1x1xf32> to vector<1x1x1xf32>
    tpu.vector_store %arg8[%c0_19, %c0_20, %c0_21], %38 {strides = array<i32>} : memref<1x1x1xf32, #tpu.memory_space<vmem>>, vector<1x1x1xf32>,
    %c0_22 = arith.constant 0 : index
    %c0_23 = arith.constant 0 : index
    %c0_24 = arith.constant 0 : index
    %39 = vector.load %arg9[%c0_22, %c0_23, %c0_24] : memref<1x1x128xf32, #tpu.memory_space<vmem>>, vector<1x1x128xf32>
    %40 = vector.shape_cast %39 : vector<1x1x128xf32> to vector<1x128xf32>
    %cst_25 = arith.constant dense<0.000000e+00> : vector<128xf32>
    %41 = vector.multi_reduction <add>, %21, %cst_25 [0] : vector<1024x128xf32> to vector<128xf32>
    %42 = vector.shape_cast %41 : vector<128xf32> to vector<1x128xf32>
    %43 = arith.addf %40, %42 : vector<1x128xf32>
    %c0_26 = arith.constant 0 : index
    %c0_27 = arith.constant 0 : index
    %c0_28 = arith.constant 0 : index
    %44 = vector.load %arg9[%c0_26, %c0_27, %c0_28] : memref<1x1x128xf32, #tpu.memory_space<vmem>>, vector<1x1x128xf32>
    %45 = vector.shape_cast %44 : vector<1x1x128xf32> to vector<1x128xf32>
    %46 = vector.shape_cast %43 : vector<1x128xf32> to vector<1x1x128xf32>
    tpu.vector_store %arg9[%c0_26, %c0_27, %c0_28], %46 {strides = array<i32>} : memref<1x1x128xf32, #tpu.memory_space<vmem>>, vector<1x1x128xf32>,
    %c0_29 = arith.constant 0 : index
    %c0_30 = arith.constant 0 : index
    %c0_31 = arith.constant 0 : index
    %47 = vector.load %arg10[%c0_29, %c0_30, %c0_31] : memref<1x32x128xf32, #tpu.memory_space<vmem>>, vector<1x32x128xf32>
    %48 = vector.shape_cast %47 : vector<1x32x128xf32> to vector<32x128xf32>
    %cst_32 = arith.constant dense<0.000000e+00> : vector<32x128xf32>
    %49 = tpu.matmul %3, %21, %cst_32 {dimension_numbers = #tpu.dot_dimension_numbers<[0], [0], [1], [1], [0, 1, 1, 1], [], []>} : vector<1024x32xf32>, vector<1024x128xf32>, vector<32x128xf32> -> vector<32x128xf32>
    %50 = arith.addf %48, %49 : vector<32x128xf32>
    %c0_33 = arith.constant 0 : index
    %c0_34 = arith.constant 0 : index
    %c0_35 = arith.constant 0 : index
    %51 = vector.load %arg10[%c0_33, %c0_34, %c0_35] : memref<1x32x128xf32, #tpu.memory_space<vmem>>, vector<1x32x128xf32>
    %52 = vector.shape_cast %51 : vector<1x32x128xf32> to vector<32x128xf32>
    %53 = vector.shape_cast %50 : vector<32x128xf32> to vector<1x32x128xf32>
    tpu.vector_store %arg10[%c0_33, %c0_34, %c0_35], %53 {strides = array<i32>} : memref<1x32x128xf32, #tpu.memory_space<vmem>>, vector<1x32x128xf32>,
    return
  }
  func.func @transform_0(%arg0: i32, %arg1: i32) -> (i32, i32) {
    %c1_i32 = arith.constant 1 : i32
    %0 = arith.muli %arg0, %c1_i32 : i32
    %1 = arith.addi %0, %arg1 : i32
    %c0_i32 = arith.constant 0 : i32
    %c0_i32_0 = arith.constant 0 : i32
    return %1, %c0_i32 : i32, i32
  }
  func.func @transform_1(%arg0: i32, %arg1: i32) -> (i32, i32) {
    %c0_i32 = arith.constant 0 : i32
    %c0_i32_0 = arith.constant 0 : i32
    %c0_i32_1 = arith.constant 0 : i32
    return %c0_i32, %c0_i32_0 : i32, i32
  }
  func.func @transform_2(%arg0: i32, %arg1: i32) -> (i32, i32) {
    %c0_i32 = arith.constant 0 : i32
    %c0_i32_0 = arith.constant 0 : i32
    %c0_i32_1 = arith.constant 0 : i32
    return %c0_i32, %c0_i32_0 : i32, i32
  }
  func.func @transform_3(%arg0: i32, %arg1: i32) -> (i32, i32) {
    %c0_i32 = arith.constant 0 : i32
    %c0_i32_0 = arith.constant 0 : i32
    %c0_i32_1 = arith.constant 0 : i32
    return %c0_i32, %c0_i32_0 : i32, i32
  }
  func.func @transform_4(%arg0: i32, %arg1: i32) -> (i32, i32) {
    %c1_i32 = arith.constant 1 : i32
    %0 = arith.muli %arg0, %c1_i32 : i32
    %1 = arith.addi %0, %arg1 : i32
    %c0_i32 = arith.constant 0 : i32
    %c0_i32_0 = arith.constant 0 : i32
    return %1, %c0_i32 : i32, i32
  }
  func.func @transform_5(%arg0: i32, %arg1: i32) -> (i32, i32) {
    %c1_i32 = arith.constant 1 : i32
    %0 = arith.muli %arg0, %c1_i32 : i32
    %1 = arith.addi %0, %arg1 : i32
    %c0_i32 = arith.constant 0 : i32
    %c0_i32_0 = arith.constant 0 : i32
    return %1, %c0_i32 : i32, i32
  }
  func.func @transform_6(%arg0: i32, %arg1: i32) -> (i32, i32, i32) {
    %c0_i32 = arith.constant 0 : i32
    %c0_i32_0 = arith.constant 0 : i32
    %c0_i32_1 = arith.constant 0 : i32
    return %arg0, %c0_i32, %c0_i32_0 : i32, i32, i32
  }
  func.func @transform_7(%arg0: i32, %arg1: i32) -> (i32, i32, i32) {
    %c0_i32 = arith.constant 0 : i32
    %c0_i32_0 = arith.constant 0 : i32
    %c0_i32_1 = arith.constant 0 : i32
    return %arg0, %c0_i32, %c0_i32_0 : i32, i32, i32
  }
  func.func @transform_8(%arg0: i32, %arg1: i32) -> (i32, i32, i32) {
    %c0_i32 = arith.constant 0 : i32
    %c0_i32_0 = arith.constant 0 : i32
    %c0_i32_1 = arith.constant 0 : i32
    return %arg0, %c0_i32, %c0_i32_0 : i32, i32, i32
  }
}

</mosaic_0001>

<bundles_post_ra>
// kernel: tpu_custom_call.1
= control target key start
LH: loop header
LB: loop body
LE: loop exit
PB: predicated region body
PF: predicated region fallthrough
CT: control target
= control target key end

     0   :  { %14 = vsyncpa [#allocation3], 0  ;;  %s16082_s0 = inlined_call_operand.vmem [shape: f32[1024,32], index: 0, kind: input, shape index: {}]   ;;  %s16083_s1 = inlined_call_operand.vmem [shape: f32[128,32], index: 1, kind: input, shape index: {}]   ;;  %s16084_s2 = inlined_call_operand.vmem [shape: f32[32,128], index: 2, kind: input, shape index: {}]   ;;  %s16085_s3 = inlined_call_operand.vmem [shape: f32[1,128], index: 3, kind: input, shape index: {}]   ;;  %s16086_s4 = inlined_call_operand.vmem [shape: f32[1024,32], index: 4, kind: output, shape index: {0}]   ;;  %s16087_s5 = inlined_call_operand.hbm [shape: f32[1024,128], index: 5, kind: output, shape index: {1}]   ;;  %s16088_s6 = inlined_call_operand.hbm [shape: f32[1,1,1], index: 6, kind: output, shape index: {2}]   ;;  %s16089_s7 = inlined_call_operand.hbm [shape: f32[1,1,128], index: 7, kind: output, shape index: {3}]   ;;  %s16090_s8 = inlined_call_operand.hbm [shape: f32[1,32,128], index: 8, kind: output, shape index: {4}]  }
   0x1   :  { %15 = vsyncpa [#allocation5], 0  ;;  %v205_v0 = vld [vmem:[%s16084_s2 + $0x18] sm:$0xff]  ;;  %v204_v1 = vld [vmem:[%s16084_s2 + $0x10] sm:$0xff]  ;;  %vm16492_vm0 = vcmask 261120  }
   0x2   :  { %7299 = vmatprep.subr.mxu0 %v205_v0  ;;  %v74_v2 = vld [vmem:[%s16082_s0] sm:$0xff]  ;;  %v203_v3 = vld [vmem:[%s16084_s2 + $0x8] sm:$0xff]  ;;  %v76_v6 = vld [vmem:[%s16082_s0 + $0x10] sm:$0xff] }
   0x3   :  { %7300 = vmatpush3.msra.mxu0 %v205_v0  ;;  %7307 = vmatprep.mubr.msk.f32.mxu0 %vm16492_vm0, %v74_v2  ;;  %v202_v4 = vld [vmem:[%s16084_s2] sm:$0xff]  ;;  %v75_v5 = vld [vmem:[%s16082_s0 + $0x8] sm:$0xff]  ;;  %v77_v7 = vld [vmem:[%s16082_s0 + $0x18] sm:$0xff] }
   0x4   :  { %7301 = vmatprep.subr.mxu0 %v204_v1  ;;  %v78_v8 = vld [vmem:[%s16082_s0 + $0x20] sm:$0xff]  ;;  %v79_v9 = vld [vmem:[%s16082_s0 + $0x28] sm:$0xff]  ;;  %v80_v10 = vld [vmem:[%s16082_s0 + $0x30] sm:$0xff] }
   0x5   :  { %7302 = vmatpush3.msra.mxu0 %v204_v1  ;;  %v81_v11 = vld [vmem:[%s16082_s0 + $0x38] sm:$0xff]  ;;  %v82_v12 = vld [vmem:[%s16082_s0 + $0x40] sm:$0xff]  ;;  %v83_v13 = vld [vmem:[%s16082_s0 + $0x48] sm:$0xff] }
   0x6   :  { %7303 = vmatprep.subr.mxu0 %v203_v3  ;;  %v84_v14 = vld [vmem:[%s16082_s0 + $0x50] sm:$0xff]  ;;  %v85_v15 = vld [vmem:[%s16082_s0 + $0x58] sm:$0xff] }
   0x7   :  { %7304 = vmatpush3.msra.mxu0 %v203_v3 }
   0x8   :  { %7305 = vmatprep.subr.mxu0 %v202_v4 }
   0x9   :  { %7306 = vmatpush3.msra.mxu0 %v202_v4 }
   0xa   :  { %7308 = vmatmul.mubr.msk.f32.vlgmr.msra.gmra.mxu0 %vm16492_vm0, %v75_v5 }
   0xb   :  { %7310 = vmatprep.mubr.msk.f32.mxu0 %vm16492_vm0, %v76_v6 }
   0xe   :  { %7311 = vmatmul.mubr.msk.f32.gmra.mxu0 %vm16492_vm0, %v77_v7 }
   0xf   :  { %7313 = vmatprep.mubr.msk.f32.mxu0 %vm16492_vm0, %v78_v8 }
  0x12   :  { %7314 = vmatmul.mubr.msk.f32.gmra.mxu0 %vm16492_vm0, %v79_v9 }
  0x13   :  { %7316 = vmatprep.mubr.msk.f32.mxu0 %vm16492_vm0, %v80_v10 }
  0x16   :  { %7317 = vmatmul.mubr.msk.f32.gmra.mxu0 %vm16492_vm0, %v81_v11 }
  0x17   :  { %7319 = vmatprep.mubr.msk.f32.mxu0 %vm16492_vm0, %v82_v12 }
  0x1a   :  { %7320 = vmatmul.mubr.msk.f32.gmra.mxu0 %vm16492_vm0, %v83_v13 }
  0x1b   :  { %7322 = vmatprep.mubr.msk.f32.mxu0 %vm16492_vm0, %v84_v14 }
  0x1c   :  { %16 = vsyncpa [#allocation8], 0  ;;  %v86_v16 = vld [vmem:[%s16082_s0 + $0x60] sm:$0xff]  ;;  %v87_v17 = vld [vmem:[%s16082_s0 + $0x68] sm:$0xff] }
  0x1d   :  { %v88_v18 = vld [vmem:[%s16082_s0 + $0x70] sm:$0xff]  ;;  %v89_v19 = vld [vmem:[%s16082_s0 + $0x78] sm:$0xff]  ;;  %v90_v20 = vld [vmem:[%s16082_s0 + $0x80] sm:$0xff] }
  0x1e   :  { %7323 = vmatmul.mubr.msk.f32.gmra.mxu0 %vm16492_vm0, %v85_v15  ;;  %v91_v21 = vld [vmem:[%s16082_s0 + $0x88] sm:$0xff]  ;;  %v92_v22 = vld [vmem:[%s16082_s0 + $0x90] sm:$0xff]  ;;  %v93_v23 = vld [vmem:[%s16082_s0 + $0x98] sm:$0xff] }
  0x1f   :  { %7325 = vmatprep.mubr.msk.f32.mxu0 %vm16492_vm0, %v86_v16  ;;  %v94_v24 = vld [vmem:[%s16082_s0 + $0xa0] sm:$0xff]  ;;  %v95_v25 = vld [vmem:[%s16082_s0 + $0xa8] sm:$0xff]  ;;  %v96_v26 = vld [vmem:[%s16082_s0 + $0xb0] sm:$0xff] }
  0x20   :  { %v97_v27 = vld [vmem:[%s16082_s0 + $0xb8] sm:$0xff]  ;;  %v98_v28 = vld [vmem:[%s16082_s0 + $0xc0] sm:$0xff]  ;;  %v99_v29 = vld [vmem:[%s16082_s0 + $0xc8] sm:$0xff] }
  0x21   :  { %v100_v30 = vld [vmem:[%s16082_s0 + $0xd0] sm:$0xff]  ;;  %v101_v31 = vld [vmem:[%s16082_s0 + $0xd8] sm:$0xff]  ;;  %v102_v32 = vld [vmem:[%s16082_s0 + $0xe0] sm:$0xff] }
  0x22   :  { %7326 = vmatmul.mubr.msk.f32.gmra.mxu0 %vm16492_vm0, %v87_v17  ;;  %v103_v33 = vld [vmem:[%s16082_s0 + $0xe8] sm:$0xff]  ;;  %v104_v34 = vld [vmem:[%s16082_s0 + $0xf0] sm:$0xff]  ;;  %v105_v35 = vld [vmem:[%s16082_s0 + $0xf8] sm:$0xff] }
  0x23   :  { %7328 = vmatprep.mubr.msk.f32.mxu0 %vm16492_vm0, %v88_v18  ;;  %v106_v36 = vld [vmem:[%s16082_s0 + $0x100] sm:$0xff]  ;;  %v107_v37 = vld [vmem:[%s16082_s0 + $0x108] sm:$0xff]  ;;  %v108_v38 = vld [vmem:[%s16082_s0 + $0x110] sm:$0xff] }
  0x24   :  { %v109_v39 = vld [vmem:[%s16082_s0 + $0x118] sm:$0xff]  ;;  %v110_v40 = vld [vmem:[%s16082_s0 + $0x120] sm:$0xff]  ;;  %v111_v41 = vld [vmem:[%s16082_s0 + $0x128] sm:$0xff] }
  0x25   :  { %v112_v42 = vld [vmem:[%s16082_s0 + $0x130] sm:$0xff]  ;;  %v113_v43 = vld [vmem:[%s16082_s0 + $0x138] sm:$0xff]  ;;  %v114_v44 = vld [vmem:[%s16082_s0 + $0x140] sm:$0xff] }
  0x26   :  { %7329 = vmatmul.mubr.msk.f32.gmra.mxu0 %vm16492_vm0, %v89_v19  ;;  %v115_v45 = vld [vmem:[%s16082_s0 + $0x148] sm:$0xff]  ;;  %v116_v46 = vld [vmem:[%s16082_s0 + $0x150] sm:$0xff]  ;;  %v117_v47 = vld [vmem:[%s16082_s0 + $0x158] sm:$0xff] }
  0x27   :  { %7331 = vmatprep.mubr.msk.f32.mxu0 %vm16492_vm0, %v90_v20  ;;  %v118_v48 = vld [vmem:[%s16082_s0 + $0x160] sm:$0xff]  ;;  %v119_v49 = vld [vmem:[%s16082_s0 + $0x168] sm:$0xff]  ;;  %v120_v50 = vld [vmem:[%s16082_s0 + $0x170] sm:$0xff] }
  0x28   :  { %v121_v51 = vld [vmem:[%s16082_s0 + $0x178] sm:$0xff]  ;;  %v122_v52 = vld [vmem:[%s16082_s0 + $0x180] sm:$0xff]  ;;  %v123_v53 = vld [vmem:[%s16082_s0 + $0x188] sm:$0xff] }
  0x29   :  { %v124_v54 = vld [vmem:[%s16082_s0 + $0x190] sm:$0xff]  ;;  %v125_v55 = vld [vmem:[%s16082_s0 + $0x198] sm:$0xff]  ;;  %v126_v56 = vld [vmem:[%s16082_s0 + $0x1a0] sm:$0xff] }
  0x2a   :  { %7332 = vmatmul.mubr.msk.f32.gmra.mxu0 %vm16492_vm0, %v91_v21  ;;  %v127_v57 = vld [vmem:[%s16082_s0 + $0x1a8] sm:$0xff]  ;;  %v128_v58 = vld [vmem:[%s16082_s0 + $0x1b0] sm:$0xff]  ;;  %v129_v59 = vld [vmem:[%s16082_s0 + $0x1b8] sm:$0xff] }
  0x2b   :  { %7334 = vmatprep.mubr.msk.f32.mxu0 %vm16492_vm0, %v92_v22  ;;  %v130_v60 = vld [vmem:[%s16082_s0 + $0x1c0] sm:$0xff]  ;;  %v131_v61 = vld [vmem:[%s16082_s0 + $0x1c8] sm:$0xff]  ;;  %v132_v62 = vld [vmem:[%s16082_s0 + $0x1d0] sm:$0xff] }
  0x2c   :  { %v133_v63 = vld [vmem:[%s16082_s0 + $0x1d8] sm:$0xff]  ;;  %v134_v0 = vld [vmem:[%s16082_s0 + $0x1e0] sm:$0xff]  ;;  %v135_v1 = vld [vmem:[%s16082_s0 + $0x1e8] sm:$0xff] }
  0x2d   :  { %v136_v2 = vld [vmem:[%s16082_s0 + $0x1f0] sm:$0xff]  ;;  %v137_v3 = vld [vmem:[%s16082_s0 + $0x1f8] sm:$0xff]  ;;  %v138_v4 = vld [vmem:[%s16082_s0 + $0x200] sm:$0xff] }
  0x2e   :  { %7335 = vmatmul.mubr.msk.f32.gmra.mxu0 %vm16492_vm0, %v93_v23  ;;  %v139_v5 = vld [vmem:[%s16082_s0 + $0x208] sm:$0xff]  ;;  %v140_v6 = vld [vmem:[%s16082_s0 + $0x210] sm:$0xff]  ;;  %v141_v7 = vld [vmem:[%s16082_s0 + $0x218] sm:$0xff] }
  0x2f   :  { %7337 = vmatprep.mubr.msk.f32.mxu0 %vm16492_vm0, %v94_v24  ;;  %v142_v8 = vld [vmem:[%s16082_s0 + $0x220] sm:$0xff]  ;;  %v143_v9 = vld [vmem:[%s16082_s0 + $0x228] sm:$0xff]  ;;  %v144_v10 = vld [vmem:[%s16082_s0 + $0x230] sm:$0xff] }
  0x30   :  { %v145_v11 = vld [vmem:[%s16082_s0 + $0x238] sm:$0xff]  ;;  %v146_v12 = vld [vmem:[%s16082_s0 + $0x240] sm:$0xff]  ;;  %v147_v13 = vld [vmem:[%s16082_s0 + $0x248] sm:$0xff] }
  0x31   :  { %v148_v14 = vld [vmem:[%s16082_s0 + $0x250] sm:$0xff]  ;;  %v149_v15 = vld [vmem:[%s16082_s0 + $0x258] sm:$0xff]  ;;  %v150_v16 = vld [vmem:[%s16082_s0 + $0x260] sm:$0xff] }
  0x32   :  { %7338 = vmatmul.mubr.msk.f32.gmra.mxu0 %vm16492_vm0, %v95_v25  ;;  %v151_v17 = vld [vmem:[%s16082_s0 + $0x268] sm:$0xff]  ;;  %v152_v18 = vld [vmem:[%s16082_s0 + $0x270] sm:$0xff]  ;;  %v153_v19 = vld [vmem:[%s16082_s0 + $0x278] sm:$0xff] }
  0x33   :  { %7340 = vmatprep.mubr.msk.f32.mxu0 %vm16492_vm0, %v96_v26  ;;  %v154_v20 = vld [vmem:[%s16082_s0 + $0x280] sm:$0xff]  ;;  %v155_v21 = vld [vmem:[%s16082_s0 + $0x288] sm:$0xff]  ;;  %v156_v22 = vld [vmem:[%s16082_s0 + $0x290] sm:$0xff] }
  0x34   :  { %v157_v23 = vld [vmem:[%s16082_s0 + $0x298] sm:$0xff]  ;;  %v158_v24 = vld [vmem:[%s16082_s0 + $0x2a0] sm:$0xff]  ;;  %v159_v25 = vld [vmem:[%s16082_s0 + $0x2a8] sm:$0xff] }
  0x35   :  { %v160_v26 = vld [vmem:[%s16082_s0 + $0x2b0] sm:$0xff] }
  0x36   :  { %7341 = vmatmul.mubr.msk.f32.gmra.mxu0 %vm16492_vm0, %v97_v27  ;;  %v161_v27 = vld [vmem:[%s16082_s0 + $0x2b8] sm:$0xff] }
  0x37   :  { %7343 = vmatprep.mubr.msk.f32.mxu0 %vm16492_vm0, %v98_v28  ;;  %v162_v28 = vld [vmem:[%s16082_s0 + $0x2c0] sm:$0xff] }
  0x3a   :  { %7344 = vmatmul.mubr.msk.f32.gmra.mxu0 %vm16492_vm0, %v99_v29  ;;  %v163_v29 = vld [vmem:[%s16082_s0 + $0x2c8] sm:$0xff] }
  0x3b   :  { %7346 = vmatprep.mubr.msk.f32.mxu0 %vm16492_vm0, %v100_v30  ;;  %v164_v30 = vld [vmem:[%s16082_s0 + $0x2d0] sm:$0xff] }
  0x3e   :  { %7347 = vmatmul.mubr.msk.f32.gmra.mxu0 %vm16492_vm0, %v101_v31  ;;  %v165_v31 = vld [vmem:[%s16082_s0 + $0x2d8] sm:$0xff] }
  0x3f   :  { %7349 = vmatprep.mubr.msk.f32.mxu0 %vm16492_vm0, %v102_v32  ;;  %v166_v32 = vld [vmem:[%s16082_s0 + $0x2e0] sm:$0xff] }
  0x42   :  { %7350 = vmatmul.mubr.msk.f32.gmra.mxu0 %vm16492_vm0, %v103_v33  ;;  %v167_v33 = vld [vmem:[%s16082_s0 + $0x2e8] sm:$0xff] }
  0x43   :  { %7352 = vmatprep.mubr.msk.f32.mxu0 %vm16492_vm0, %v104_v34  ;;  %v168_v34 = vld [vmem:[%s16082_s0 + $0x2f0] sm:$0xff] }
  0x46   :  { %7353 = vmatmul.mubr.msk.f32.gmra.mxu0 %vm16492_vm0, %v105_v35  ;;  %v169_v35 = vld [vmem:[%s16082_s0 + $0x2f8] sm:$0xff] }
  0x47   :  { %7355 = vmatprep.mubr.msk.f32.mxu0 %vm16492_vm0, %v106_v36  ;;  %v170_v36 = vld [vmem:[%s16082_s0 + $0x300] sm:$0xff] }
  0x4a   :  { %7356 = vmatmul.mubr.msk.f32.gmra.mxu0 %vm16492_vm0, %v107_v37  ;;  %v171_v37 = vld [vmem:[%s16082_s0 + $0x308] sm:$0xff] }
  0x4b   :  { %7358 = vmatprep.mubr.msk.f32.mxu0 %vm16492_vm0, %v108_v38  ;;  %v8679_v38 = vld [vmem:[%s16085_s3] ss:$0 sm:$0xff] }
  0x4e   :  { %7359 = vmatmul.mubr.msk.f32.gmra.mxu0 %vm16492_vm0, %v109_v39  ;;  %v172_v39 = vld [vmem:[%s16082_s0 + $0x310] sm:$0xff] }
  0x4f   :  { %7361 = vmatprep.mubr.msk.f32.mxu0 %vm16492_vm0, %v110_v40 }
  0x52   :  { %7362 = vmatmul.mubr.msk.f32.gmra.mxu0 %vm16492_vm0, %v111_v41 }
  0x53   :  { %7364 = vmatprep.mubr.msk.f32.mxu0 %vm16492_vm0, %v112_v42  ;;  %v173_v42 = vld [vmem:[%s16082_s0 + $0x318] sm:$0xff] }
  0x56   :  { %7365 = vmatmul.mubr.msk.f32.gmra.mxu0 %vm16492_vm0, %v113_v43 }
  0x57   :  { %7367 = vmatprep.mubr.msk.f32.mxu0 %vm16492_vm0, %v114_v44  ;;  %v174_v44 = vld [vmem:[%s16082_s0 + $0x320] sm:$0xff] }
  0x5a   :  { %7368 = vmatmul.mubr.msk.f32.gmra.mxu0 %vm16492_vm0, %v115_v45 }
  0x5b   :  { %7370 = vmatprep.mubr.msk.f32.mxu0 %vm16492_vm0, %v116_v46 }
  0x5e   :  { %7371 = vmatmul.mubr.msk.f32.gmra.mxu0 %vm16492_vm0, %v117_v47 }
  0x5f   :  { %7373 = vmatprep.mubr.msk.f32.mxu0 %vm16492_vm0, %v118_v48  ;;  %v175_v48 = vld [vmem:[%s16082_s0 + $0x328] sm:$0xff] }
  0x62   :  { %7374 = vmatmul.mubr.msk.f32.gmra.mxu0 %vm16492_vm0, %v119_v49 }
  0x63   :  { %7376 = vmatprep.mubr.msk.f32.mxu0 %vm16492_vm0, %v120_v50  ;;  %v176_v50 = vld [vmem:[%s16082_s0 + $0x330] sm:$0xff] }
  0x66   :  { %7377 = vmatmul.mubr.msk.f32.gmra.mxu0 %vm16492_vm0, %v121_v51 }
  0x67   :  { %7379 = vmatprep.mubr.msk.f32.mxu0 %vm16492_vm0, %v122_v52 }
  0x6a   :  { %7380 = vmatmul.mubr.msk.f32.gmra.mxu0 %vm16492_vm0, %v123_v53  ;;  %v177_v53 = vld [vmem:[%s16082_s0 + $0x338] sm:$0xff] }
  0x6b   :  { %7382 = vmatprep.mubr.msk.f32.mxu0 %vm16492_vm0, %v124_v54 }
  0x6e   :  { %7383 = vmatmul.mubr.msk.f32.gmra.mxu0 %vm16492_vm0, %v125_v55  ;;  %v178_v55 = vld [vmem:[%s16082_s0 + $0x340] sm:$0xff] }
  0x6f   :  { %7385 = vmatprep.mubr.msk.f32.mxu0 %vm16492_vm0, %v126_v56 }
  0x72   :  { %7386 = vmatmul.mubr.msk.f32.gmra.mxu0 %vm16492_vm0, %v127_v57 }
  0x73   :  { %7388 = vmatprep.mubr.msk.f32.mxu0 %vm16492_vm0, %v128_v58 }
  0x76   :  { %7389 = vmatmul.mubr.msk.f32.gmra.mxu0 %vm16492_vm0, %v129_v59  ;;  %v179_v59 = vld [vmem:[%s16082_s0 + $0x348] sm:$0xff] }
  0x77   :  { %7391 = vmatprep.mubr.msk.f32.mxu0 %vm16492_vm0, %v130_v60 }
  0x7a   :  { %7392 = vmatmul.mubr.msk.f32.gmra.mxu0 %vm16492_vm0, %v131_v61  ;;  %v180_v61 = vld [vmem:[%s16082_s0 + $0x350] sm:$0xff] }
  0x7b   :  { %7394 = vmatprep.mubr.msk.f32.mxu0 %vm16492_vm0, %v132_v62 }
  0x7e   :  { %7395 = vmatmul.mubr.msk.f32.gmra.mxu0 %vm16492_vm0, %v133_v63 }
  0x7f   :  { %7397 = vmatprep.mubr.msk.f32.mxu0 %vm16492_vm0, %v134_v0 }
  0x82   :  { %7398 = vmatmul.mubr.msk.f32.gmra.mxu0 %vm16492_vm0, %v135_v1  ;;  %v181_v1 = vld [vmem:[%s16082_s0 + $0x358] sm:$0xff] }
  0x83   :  { %7400 = vmatprep.mubr.msk.f32.mxu0 %vm16492_vm0, %v136_v2 }
  0x86   :  { %7401 = vmatmul.mubr.msk.f32.gmra.mxu0 %vm16492_vm0, %v137_v3  ;;  %v182_v3 = vld [vmem:[%s16082_s0 + $0x360] sm:$0xff] }
  0x87   :  { %7403 = vmatprep.mubr.msk.f32.mxu0 %vm16492_vm0, %v138_v4 }
  0x8a   :  { %7404 = vmatmul.mubr.msk.f32.gmra.mxu0 %vm16492_vm0, %v139_v5 }
  0x8b   :  { %7406 = vmatprep.mubr.msk.f32.mxu0 %vm16492_vm0, %v140_v6 }
  0x8e   :  { %7407 = vmatmul.mubr.msk.f32.gmra.mxu0 %vm16492_vm0, %v141_v7  ;;  %v183_v7 = vld [vmem:[%s16082_s0 + $0x368] sm:$0xff] }
  0x8f   :  { %7409 = vmatprep.mubr.msk.f32.mxu0 %vm16492_vm0, %v142_v8 }
  0x92   :  { %7410 = vmatmul.mubr.msk.f32.gmra.mxu0 %vm16492_vm0, %v143_v9  ;;  %v184_v9 = vld [vmem:[%s16082_s0 + $0x370] sm:$0xff] }
  0x93   :  { %7412 = vmatprep.mubr.msk.f32.mxu0 %vm16492_vm0, %v144_v10 }
  0x96   :  { %7413 = vmatmul.mubr.msk.f32.gmra.mxu0 %vm16492_vm0, %v145_v11 }
  0x97   :  { %7415 = vmatprep.mubr.msk.f32.mxu0 %vm16492_vm0, %v146_v12 }
  0x9a   :  { %7416 = vmatmul.mubr.msk.f32.gmra.mxu0 %vm16492_vm0, %v147_v13  ;;  %v185_v13 = vld [vmem:[%s16082_s0 + $0x378] sm:$0xff] }
  0x9b   :  { %7418 = vmatprep.mubr.msk.f32.mxu0 %vm16492_vm0, %v148_v14 }
  0x9e   :  { %7419 = vmatmul.mubr.msk.f32.gmra.mxu0 %vm16492_vm0, %v149_v15  ;;  %v186_v15 = vld [vmem:[%s16082_s0 + $0x380] sm:$0xff] }
  0x9f   :  { %7421 = vmatprep.mubr.msk.f32.mxu0 %vm16492_vm0, %v150_v16 }
  0xa2   :  { %7422 = vmatmul.mubr.msk.f32.gmra.mxu0 %vm16492_vm0, %v151_v17 }
  0xa3   :  { %7424 = vmatprep.mubr.msk.f32.mxu0 %vm16492_vm0, %v152_v18 }
  0xa6   :  { %7425 = vmatmul.mubr.msk.f32.gmra.mxu0 %vm16492_vm0, %v153_v19  ;;  %v187_v19 = vld [vmem:[%s16082_s0 + $0x388] sm:$0xff] }
  0xa7   :  { %7427 = vmatprep.mubr.msk.f32.mxu0 %vm16492_vm0, %v154_v20 }
  0xaa   :  { %7428 = vmatmul.mubr.msk.f32.gmra.mxu0 %vm16492_vm0, %v155_v21  ;;  %v188_v21 = vld [vmem:[%s16082_s0 + $0x390] sm:$0xff] }
  0xab   :  { %7430 = vmatprep.mubr.msk.f32.mxu0 %vm16492_vm0, %v156_v22 }
  0xae   :  { %7431 = vmatmul.mubr.msk.f32.gmra.mxu0 %vm16492_vm0, %v157_v23 }
  0xaf   :  { %7433 = vmatprep.mubr.msk.f32.mxu0 %vm16492_vm0, %v158_v24 }
  0xb2   :  { %7434 = vmatmul.mubr.msk.f32.gmra.mxu0 %vm16492_vm0, %v159_v25  ;;  %v189_v25 = vld [vmem:[%s16082_s0 + $0x398] sm:$0xff] }
  0xb3   :  { %7436 = vmatprep.mubr.msk.f32.mxu0 %vm16492_vm0, %v160_v26 }
  0xb6   :  { %7437 = vmatmul.mubr.msk.f32.gmra.mxu0 %vm16492_vm0, %v161_v27  ;;  %v190_v27 = vld [vmem:[%s16082_s0 + $0x3a0] sm:$0xff] }
  0xb7   :  { %7439 = vmatprep.mubr.msk.f32.mxu0 %vm16492_vm0, %v162_v28 }
  0xba   :  { %7440 = vmatmul.mubr.msk.f32.gmra.mxu0 %vm16492_vm0, %v163_v29 }
  0xbb   :  { %7442 = vmatprep.mubr.msk.f32.mxu0 %vm16492_vm0, %v164_v30 }
  0xbe   :  { %7443 = vmatmul.mubr.msk.f32.gmra.mxu0 %vm16492_vm0, %v165_v31  ;;  %v191_v31 = vld [vmem:[%s16082_s0 + $0x3a8] sm:$0xff] }
  0xbf   :  { %7445 = vmatprep.mubr.msk.f32.mxu0 %vm16492_vm0, %v166_v32 }
  0xc2   :  { %7446 = vmatmul.mubr.msk.f32.gmra.mxu0 %vm16492_vm0, %v167_v33  ;;  %v192_v33 = vld [vmem:[%s16082_s0 + $0x3b0] sm:$0xff] }
  0xc3   :  { %7448 = vmatprep.mubr.msk.f32.mxu0 %vm16492_vm0, %v168_v34 }
  0xc6   :  { %7449 = vmatmul.mubr.msk.f32.gmra.mxu0 %vm16492_vm0, %v169_v35 }
  0xc7   :  { %7451 = vmatprep.mubr.msk.f32.mxu0 %vm16492_vm0, %v170_v36 }
  0xca   :  { %v7309_v40 = vpop.f32.mrf.mxu0  ;;  %7452 = vmatmul.mubr.msk.f32.gmra.mxu0 %vm16492_vm0, %v171_v37  ;;  %v193_v37 = vld [vmem:[%s16082_s0 + $0x3b8] sm:$0xff] }
  0xcb   :  { %v8686_v41 = vadd.f32 %v7309_v40, %v8679_v38  ;;  %7454 = vmatprep.mubr.msk.f32.mxu0 %vm16492_vm0, %v172_v39  ;;  %v194_v40 = vld [vmem:[%s16082_s0 + $0x3c0] sm:$0xff] }
  0xcc   :  { %v664_v43 = vpop.f32.mrf.mxu0 }
  0xcd   :  { %1305 = vmin.xlane.f32.xlu0 %v8686_v41  ;;  %v8701_v47 = vadd.f32 %v8679_v38, %v664_v43 }
  0xce   :  { %v7312_v45 = vpop.f32.mrf.mxu0  ;;  %7455 = vmatmul.mubr.msk.f32.gmra.mxu0 %vm16492_vm0, %v173_v42 }
  0xcf   :  { %v8698_v46 = vadd.f32 %v7312_v45, %v8679_v38  ;;  %7457 = vmatprep.mubr.msk.f32.mxu0 %vm16492_vm0, %v174_v44  ;;  %v195_v45 = vld [vmem:[%s16082_s0 + $0x3c8] sm:$0xff] }
  0xd0   :  { %v674_v49 = vpop.f32.mrf.mxu0 }
  0xd1   :  { %1309 = vmin.xlane.f32.xlu1 %v8698_v46  ;;  %1303 = vmin.xlane.f32.xlu0 %v8701_v47  ;;  %v8714_v52 = vadd.f32 %v8679_v38, %v674_v49  ;;  %v196_v49 = vld [vmem:[%s16082_s0 + $0x3d0] sm:$0xff] }
  0xd2   :  { %v7315_v51 = vpop.f32.mrf.mxu0  ;;  %7458 = vmatmul.mubr.msk.f32.gmra.mxu0 %vm16492_vm0, %v175_v48 }
  0xd3   :  { %7460 = vmatprep.mubr.msk.f32.mxu0 %vm16492_vm0, %v176_v50  ;;  %v8724_v56 = vadd.f32 %v7315_v51, %v8679_v38 }
  0xd4   :  { %v684_v54 = vpop.f32.mrf.mxu0 }
  0xd5   :  { %1307 = vmin.xlane.f32.xlu1 %v8714_v52  ;;  %v8728_v57 = vadd.f32 %v8679_v38, %v684_v54  ;;  %v197_v54 = vld [vmem:[%s16082_s0 + $0x3d8] sm:$0xff] }
  0xd6   :  { %v7318_v58 = vpop.f32.mrf.mxu0  ;;  %7461 = vmatmul.mubr.msk.f32.gmra.mxu0 %vm16492_vm0, %v177_v53 }
  0xd7   :  { %1311 = vmin.xlane.f32.xlu0 %v8728_v57  ;;  %7463 = vmatprep.mubr.msk.f32.mxu0 %vm16492_vm0, %v178_v55  ;;  %v8740_v62 = vadd.f32 %v7318_v58, %v8679_v38  ;;  %v198_v58 = vld [vmem:[%s16082_s0 + $0x3e0] sm:$0xff] }
  0xd8   :  { %v694_v60 = vpop.f32.mrf.mxu0 }
  0xd9   :  { %1313 = vmin.xlane.f32.xlu1 %v8724_v56  ;;  %v8744_v63 = vadd.f32 %v8679_v38, %v694_v60 }
  0xda   :  { %v7321_v0 = vpop.f32.mrf.mxu0  ;;  %7464 = vmatmul.mubr.msk.f32.gmra.mxu0 %vm16492_vm0, %v179_v59 }
  0xdb   :  { %1315 = vmin.xlane.f32.xlu0 %v8744_v63  ;;  %7466 = vmatprep.mubr.msk.f32.mxu0 %vm16492_vm0, %v180_v61  ;;  %v8756_v4 = vadd.f32 %v7321_v0, %v8679_v38  ;;  %v199_v0 = vld [vmem:[%s16082_s0 + $0x3e8] sm:$0xff] }
  0xdc   :  { %v704_v2 = vpop.f32.mrf.mxu0 }
  0xdd   :  { %1317 = vmin.xlane.f32.xlu1 %v8740_v62  ;;  %v8760_v5 = vadd.f32 %v8679_v38, %v704_v2  ;;  %v200_v2 = vld [vmem:[%s16082_s0 + $0x3f0] sm:$0xff] }
  0xde   :  { %v7324_v6 = vpop.f32.mrf.mxu0  ;;  %7467 = vmatmul.mubr.msk.f32.gmra.mxu0 %vm16492_vm0, %v181_v1 }
  0xdf   :  { %1319 = vmin.xlane.f32.xlu0 %v8760_v5  ;;  %7469 = vmatprep.mubr.msk.f32.mxu0 %vm16492_vm0, %v182_v3  ;;  %v8772_v10 = vadd.f32 %v7324_v6, %v8679_v38 }
  0xe0   :  { %v714_v8 = vpop.f32.mrf.mxu0 }
  0xe1   :  { %1321 = vmin.xlane.f32.xlu1 %v8756_v4  ;;  %v8776_v11 = vadd.f32 %v8679_v38, %v714_v8  ;;  %v201_v8 = vld [vmem:[%s16082_s0 + $0x3f8] sm:$0xff] }
  0xe2   :  { %v7327_v12 = vpop.f32.mrf.mxu0  ;;  %7470 = vmatmul.mubr.msk.f32.gmra.mxu0 %vm16492_vm0, %v183_v7 }
  0xe3   :  { %1323 = vmin.xlane.f32.xlu0 %v8776_v11  ;;  %7472 = vmatprep.mubr.msk.f32.mxu0 %vm16492_vm0, %v184_v9  ;;  %v8788_v16 = vadd.f32 %v7327_v12, %v8679_v38 }
  0xe4   :  { %v724_v14 = vpop.f32.mrf.mxu0 }
  0xe5   :  { %1325 = vmin.xlane.f32.xlu1 %v8772_v10  ;;  %v8792_v17 = vadd.f32 %v8679_v38, %v724_v14 }
  0xe6   :  { %v7330_v18 = vpop.f32.mrf.mxu0  ;;  %7473 = vmatmul.mubr.msk.f32.gmra.mxu0 %vm16492_vm0, %v185_v13 }
  0xe7   :  { %1327 = vmin.xlane.f32.xlu0 %v8792_v17  ;;  %7475 = vmatprep.mubr.msk.f32.mxu0 %vm16492_vm0, %v186_v15  ;;  %v8804_v22 = vadd.f32 %v7330_v18, %v8679_v38 }
  0xe8   :  { %v734_v20 = vpop.f32.mrf.mxu0 }
  0xe9   :  { %1329 = vmin.xlane.f32.xlu1 %v8788_v16  ;;  %v8808_v23 = vadd.f32 %v8679_v38, %v734_v20 }
  0xea   :  { %v7333_v24 = vpop.f32.mrf.mxu0  ;;  %7476 = vmatmul.mubr.msk.f32.gmra.mxu0 %vm16492_vm0, %v187_v19 }
  0xeb   :  { %1331 = vmin.xlane.f32.xlu0 %v8808_v23  ;;  %7478 = vmatprep.mubr.msk.f32.mxu0 %vm16492_vm0, %v188_v21  ;;  %v8820_v28 = vadd.f32 %v7333_v24, %v8679_v38 }
  0xec   :  { %v744_v26 = vpop.f32.mrf.mxu0 }
  0xed   :  { %1333 = vmin.xlane.f32.xlu1 %v8804_v22  ;;  %v8824_v29 = vadd.f32 %v8679_v38, %v744_v26 }
  0xee   :  { %v7336_v30 = vpop.f32.mrf.mxu0  ;;  %7479 = vmatmul.mubr.msk.f32.gmra.mxu0 %vm16492_vm0, %v189_v25 }
  0xef   :  { %1335 = vmin.xlane.f32.xlu0 %v8824_v29  ;;  %7481 = vmatprep.mubr.msk.f32.mxu0 %vm16492_vm0, %v190_v27  ;;  %v8836_v34 = vadd.f32 %v7336_v30, %v8679_v38 }
  0xf0   :  { %v754_v32 = vpop.f32.mrf.mxu0 }
  0xf1   :  { %1337 = vmin.xlane.f32.xlu1 %v8820_v28  ;;  %v8840_v35 = vadd.f32 %v8679_v38, %v754_v32 }
  0xf2   :  { %v7339_v36 = vpop.f32.mrf.mxu0  ;;  %7482 = vmatmul.mubr.msk.f32.gmra.mxu0 %vm16492_vm0, %v191_v31 }
  0xf3   :  { %1339 = vmin.xlane.f32.xlu0 %v8840_v35  ;;  %7484 = vmatprep.mubr.msk.f32.mxu0 %vm16492_vm0, %v192_v33  ;;  %v8852_v42 = vadd.f32 %v7339_v36, %v8679_v38 }
  0xf4   :  { %v764_v39 = vpop.f32.mrf.mxu0 }
  0xf5   :  { %1341 = vmin.xlane.f32.xlu1 %v8836_v34  ;;  %v8856_v43 = vadd.f32 %v8679_v38, %v764_v39 }
  0xf6   :  { %v7342_v44 = vpop.f32.mrf.mxu0  ;;  %7485 = vmatmul.mubr.msk.f32.gmra.mxu0 %vm16492_vm0, %v193_v37 }
  0xf7   :  { %1343 = vmin.xlane.f32.xlu0 %v8856_v43  ;;  %7487 = vmatprep.mubr.msk.f32.mxu0 %vm16492_vm0, %v194_v40  ;;  %v8868_v50 = vadd.f32 %v7342_v44, %v8679_v38 }
  0xf8   :  { %v774_v48 = vpop.f32.mrf.mxu0 }
  0xf9   :  { %1345 = vmin.xlane.f32.xlu1 %v8852_v42  ;;  %v8872_v51 = vadd.f32 %v8679_v38, %v774_v48 }
  0xfa   :  { %v7345_v53 = vpop.f32.mrf.mxu0  ;;  %7488 = vmatmul.mubr.msk.f32.gmra.mxu0 %vm16492_vm0, %v195_v45 }
  0xfb   :  { %1347 = vmin.xlane.f32.xlu0 %v8872_v51  ;;  %7490 = vmatprep.mubr.msk.f32.mxu0 %vm16492_vm0, %v196_v49  ;;  %v8884_v59 = vadd.f32 %v7345_v53, %v8679_v38 }
  0xfc   :  { %v784_v55 = vpop.f32.mrf.mxu0 }
  0xfd   :  { %1349 = vmin.xlane.f32.xlu1 %v8868_v50  ;;  %v8888_v60 = vadd.f32 %v8679_v38, %v784_v55 }
  0xfe   :  { %v7348_v61 = vpop.f32.mrf.mxu0  ;;  %7491 = vmatmul.mubr.msk.f32.gmra.mxu0 %vm16492_vm0, %v197_v54 }
  0xff   :  { %16773 = vst [vmem:[#allocation12_spill] sm:$0xff] %v8888_v60  ;;  %1351 = vmin.xlane.f32.xlu0 %v8888_v60  ;;  %7493 = vmatprep.mubr.msk.f32.mxu0 %vm16492_vm0, %v198_v58  ;;  %v8900_v3 = vadd.f32 %v7348_v61, %v8679_v38 }
 0x100   :  { %v794_v1 = vpop.f32.mrf.mxu0 }
 0x101   :  { %16774 = vst [vmem:[#allocation13_spill] sm:$0xff] %v8900_v3  ;;  %1353 = vmin.xlane.f32.xlu1 %v8884_v59  ;;  %v8904_v6 = vadd.f32 %v8679_v38, %v794_v1 }
 0x102   :  { %v7351_v7 = vpop.f32.mrf.mxu0  ;;  %7494 = vmatmul.mubr.msk.f32.gmra.mxu0 %vm16492_vm0, %v199_v0 }
 0x103   :  { %1355 = vmin.xlane.f32.xlu0 %v8904_v6  ;;  %7496 = vmatprep.mubr.msk.f32.mxu0 %vm16492_vm0, %v200_v2  ;;  %v8913_v12 = vadd.f32 %v7351_v7, %v8679_v38 }
 0x104   :  { %v804_v9 = vpop.f32.mrf.mxu0 }
 0x105   :  { %16775 = vst [vmem:[#allocation14_spill] sm:$0xff] %v8913_v12  ;;  %1357 = vmin.xlane.f32.xlu1 %v8900_v3  ;;  %v8917_v13 = vadd.f32 %v8679_v38, %v804_v9 }
 0x106   :  { %v7354_v14 = vpop.f32.mrf.mxu0  ;;  %7497 = vmatmul.mubr.msk.f32.gmra.mxu0 %vm16492_vm0, %v201_v8 }
 0x107   :  { %1359 = vmin.xlane.f32.xlu0 %v8917_v13  ;;  %v8922_v18 = vadd.f32 %v7354_v14, %v8679_v38 }
 0x108   :  { %v814_v15 = vpop.f32.mrf.mxu0 }
 0x109   :  { %16776 = vst [vmem:[#allocation15_spill] sm:$0xff] %v8922_v18  ;;  %1361 = vmin.xlane.f32.xlu1 %v8913_v12  ;;  %v8926_v19 = vadd.f32 %v8679_v38, %v814_v15 }
 0x10a   :  { %v7357_v20 = vpop.f32.mrf.mxu0 }
 0x10b   :  { %1363 = vmin.xlane.f32.xlu0 %v8926_v19  ;;  %v8930_v24 = vadd.f32 %v7357_v20, %v8679_v38 }
 0x10c   :  { %v824_v21 = vpop.f32.mrf.mxu0 }
 0x10d   :  { %16777 = vst [vmem:[#allocation16_spill] sm:$0xff] %v8930_v24  ;;  %1365 = vmin.xlane.f32.xlu1 %v8922_v18  ;;  %v8934_v25 = vadd.f32 %v8679_v38, %v824_v21 }
 0x10e   :  { %v7360_v26 = vpop.f32.mrf.mxu0 }
 0x10f   :  { %1367 = vmin.xlane.f32.xlu0 %v8934_v25  ;;  %v8938_v30 = vadd.f32 %v7360_v26, %v8679_v38 }
 0x110   :  { %v834_v27 = vpop.f32.mrf.mxu0 }
 0x111   :  { %16778 = vst [vmem:[#allocation17_spill] sm:$0xff] %v8938_v30  ;;  %v8941_v31 = vadd.f32 %v8679_v38, %v834_v27  ;;  %1369 = vmin.xlane.f32.xlu1 %v8930_v24 }
 0x112   :  { %v7363_v32 = vpop.f32.mrf.mxu0 }
 0x113   :  { %1371 = vmin.xlane.f32.xlu0 %v8941_v31  ;;  %v8946_v36 = vadd.f32 %v7363_v32, %v8679_v38 }
 0x114   :  { %v844_v33 = vpop.f32.mrf.mxu0 }
 0x115   :  { %16779 = vst [vmem:[#allocation18_spill] sm:$0xff] %v8946_v36  ;;  %v8949_v37 = vadd.f32 %v8679_v38, %v844_v33  ;;  %1373 = vmin.xlane.f32.xlu1 %v8938_v30 }
 0x116   :  { %v7366_v39 = vpop.f32.mrf.mxu0 }
 0x117   :  { %1375 = vmin.xlane.f32.xlu0 %v8949_v37  ;;  %v8954_v44 = vadd.f32 %v7366_v39, %v8679_v38 }
 0x118   :  { %v854_v40 = vpop.f32.mrf.mxu0 }
 0x119   :  { %16780 = vst [vmem:[#allocation19_spill] sm:$0xff] %v8954_v44  ;;  %v8957_v45 = vadd.f32 %v8679_v38, %v854_v40  ;;  %1377 = vmin.xlane.f32.xlu1 %v8946_v36 }
 0x11a   :  { %v7369_v48 = vpop.f32.mrf.mxu0 }
 0x11b   :  { %1379 = vmin.xlane.f32.xlu0 %v8957_v45  ;;  %v8962_v53 = vadd.f32 %v7369_v48, %v8679_v38 }
 0x11c   :  { %v864_v49 = vpop.f32.mrf.mxu0 }
 0x11d   :  { %16781 = vst [vmem:[#allocation20_spill] sm:$0xff] %v8962_v53  ;;  %v8965_v54 = vadd.f32 %v8679_v38, %v864_v49  ;;  %1381 = vmin.xlane.f32.xlu1 %v8954_v44 }
 0x11e   :  { %v7372_v55 = vpop.f32.mrf.mxu0 }
 0x11f   :  { %1383 = vmin.xlane.f32.xlu0 %v8965_v54  ;;  %v8970_v61 = vadd.f32 %v7372_v55, %v8679_v38 }
 0x120   :  { %v874_v58 = vpop.f32.mrf.mxu0 }
 0x121   :  { %16782 = vst [vmem:[#allocation21_spill] sm:$0xff] %v8970_v61  ;;  %v8973_v0 = vadd.f32 %v8679_v38, %v874_v58  ;;  %1385 = vmin.xlane.f32.xlu1 %v8962_v53 }
 0x122   :  { %v7375_v1 = vpop.f32.mrf.mxu0 }
 0x123   :  { %1387 = vmin.xlane.f32.xlu0 %v8973_v0  ;;  %v8978_v7 = vadd.f32 %v7375_v1, %v8679_v38 }
 0x124   :  { %v884_v2 = vpop.f32.mrf.mxu0 }
 0x125   :  { %16783 = vst [vmem:[#allocation22_spill] sm:$0xff] %v8978_v7  ;;  %v8981_v8 = vadd.f32 %v8679_v38, %v884_v2  ;;  %1389 = vmin.xlane.f32.xlu1 %v8970_v61 }
 0x126   :  { %v7378_v9 = vpop.f32.mrf.mxu0 }
 0x127   :  { %1391 = vmin.xlane.f32.xlu0 %v8981_v8  ;;  %v8986_v15 = vadd.f32 %v7378_v9, %v8679_v38 }
 0x128   :  { %v894_v14 = vpop.f32.mrf.mxu0 }
 0x129   :  { %16784 = vst [vmem:[#allocation23_spill] sm:$0xff] %v8986_v15  ;;  %v8989_v20 = vadd.f32 %v8679_v38, %v894_v14  ;;  %1393 = vmin.xlane.f32.xlu1 %v8978_v7 }
 0x12a   :  { %v7381_v21 = vpop.f32.mrf.mxu0 }
 0x12b   :  { %1395 = vmin.xlane.f32.xlu0 %v8989_v20  ;;  %v8994_v27 = vadd.f32 %v7381_v21, %v8679_v38 }
 0x12c   :  { %v904_v26 = vpop.f32.mrf.mxu0 }
 0x12d   :  { %16785 = vst [vmem:[#allocation24_spill] sm:$0xff] %v8994_v27  ;;  %v8997_v32 = vadd.f32 %v8679_v38, %v904_v26  ;;  %1397 = vmin.xlane.f32.xlu1 %v8986_v15 }
 0x12e   :  { %v7384_v33 = vpop.f32.mrf.mxu0 }
 0x12f   :  { %16786 = vst [vmem:[#allocation25_spill] sm:$0xff] %v8997_v32  ;;  %1399 = vmin.xlane.f32.xlu0 %v8997_v32  ;;  %v9002_v40 = vadd.f32 %v7384_v33, %v8679_v38 }
 0x130   :  { %v914_v39 = vpop.f32.mrf.mxu0 }
 0x131   :  { %16787 = vst [vmem:[#allocation26_spill] sm:$0xff] %v9002_v40  ;;  %v9005_v48 = vadd.f32 %v8679_v38, %v914_v39  ;;  %1401 = vmin.xlane.f32.xlu1 %v8994_v27 }
 0x132   :  { %v7387_v49 = vpop.f32.mrf.mxu0 }
 0x133   :  { %16788 = vst [vmem:[#allocation27_spill] sm:$0xff] %v9005_v48  ;;  %1403 = vmin.xlane.f32.xlu0 %v9005_v48  ;;  %v9010_v58 = vadd.f32 %v7387_v49, %v8679_v38 }
 0x134   :  { %v924_v55 = vpop.f32.mrf.mxu0 }
 0x135   :  { %16789 = vst [vmem:[#allocation28_spill] sm:$0xff] %v9010_v58  ;;  %v9013_v1 = vadd.f32 %v8679_v38, %v924_v55  ;;  %1405 = vmin.xlane.f32.xlu1 %v9002_v40 }
 0x136   :  { %v7390_v2 = vpop.f32.mrf.mxu0 }
 0x137   :  { %16790 = vst [vmem:[#allocation29_spill] sm:$0xff] %v9013_v1  ;;  %1407 = vmin.xlane.f32.xlu0 %v9013_v1  ;;  %v9018_v14 = vadd.f32 %v7390_v2, %v8679_v38 }
 0x138   :  { %v934_v9 = vpop.f32.mrf.mxu0 }
 0x139   :  { %16791 = vst [vmem:[#allocation30_spill] sm:$0xff] %v9018_v14  ;;  %v9021_v21 = vadd.f32 %v8679_v38, %v934_v9  ;;  %1409 = vmin.xlane.f32.xlu1 %v9010_v58 }
 0x13a   :  { %v7393_v26 = vpop.f32.mrf.mxu0 }
 0x13b   :  { %16792 = vst [vmem:[#allocation31_spill] sm:$0xff] %v9021_v21  ;;  %1411 = vmin.xlane.f32.xlu0 %v9021_v21  ;;  %v9026_v39 = vadd.f32 %v7393_v26, %v8679_v38 }
 0x13c   :  { %v944_v33 = vpop.f32.mrf.mxu0 }
 0x13d   :  { %16793 = vst [vmem:[#allocation32_spill] sm:$0xff] %v9026_v39  ;;  %v9029_v49 = vadd.f32 %v8679_v38, %v944_v33  ;;  %1413 = vmin.xlane.f32.xlu1 %v9018_v14 }
 0x13e   :  { %v7396_v55 = vpop.f32.mrf.mxu0 }
 0x13f   :  { %16794 = vst [vmem:[#allocation33_spill] sm:$0xff] %v9029_v49  ;;  %1415 = vmin.xlane.f32.xlu0 %v9029_v49  ;;  %v9034_v9 = vadd.f32 %v7396_v55, %v8679_v38 }
 0x140   :  { %v954_v2 = vpop.f32.mrf.mxu0 }
 0x141   :  { %16795 = vst [vmem:[#allocation34_spill] sm:$0xff] %v9034_v9  ;;  %v9037_v58 = vadd.f32 %v8679_v38, %v954_v2  ;;  %1417 = vmin.xlane.f32.xlu1 %v9026_v39 }
 0x142   :  { %v7399_v40 = vpop.f32.mrf.mxu0 }
 0x143   :  { %16796 = vst [vmem:[#allocation35_spill] sm:$0xff] %v9037_v58  ;;  %1419 = vmin.xlane.f32.xlu0 %v9037_v58  ;;  %v9042_v33 = vadd.f32 %v7399_v40, %v8679_v38 }
 0x144   :  { %v964_v26 = vpop.f32.mrf.mxu0 }
 0x145   :  { %16797 = vst [vmem:[#allocation36_spill] sm:$0xff] %v9042_v33  ;;  %v9045_v14 = vadd.f32 %v8679_v38, %v964_v26  ;;  %1421 = vmin.xlane.f32.xlu1 %v9034_v9 }
 0x146   :  { %v7402_v27 = vpop.f32.mrf.mxu0 }
 0x147   :  { %16798 = vst [vmem:[#allocation37_spill] sm:$0xff] %v9045_v14  ;;  %1423 = vmin.xlane.f32.xlu0 %v9045_v14  ;;  %v9050_v2 = vadd.f32 %v7402_v27, %v8679_v38 }
 0x148   :  { %v974_v55 = vpop.f32.mrf.mxu0 }
 0x149   :  { %16799 = vst [vmem:[#allocation38_spill] sm:$0xff] %v9050_v2  ;;  %v9053_v39 = vadd.f32 %v8679_v38, %v974_v55  ;;  %1425 = vmin.xlane.f32.xlu1 %v9042_v33  ;;  %v1559_v55 = vlaneseq }
 0x14a   :  { %v7405_v15 = vpop.f32.mrf.mxu0 }
 0x14b   :  { %16800 = vst [vmem:[#allocation39_spill] sm:$0xff] %v9053_v39  ;;  %1427 = vmin.xlane.f32.xlu0 %v9053_v39  ;;  %v9058_v26 = vadd.f32 %v7405_v15, %v8679_v38  ;;  %v9073_v44 = vand.u32 127, %v1559_v55 }
 0x14c   :  { %v984_v40 = vpop.f32.mrf.mxu0 }
 0x14d   :  { %16801 = vst [vmem:[#allocation40_spill] sm:$0xff] %v9058_v26  ;;  %v9061_v9 = vadd.f32 %v8679_v38, %v984_v40  ;;  %1429 = vmin.xlane.f32.xlu1 %v9050_v2 }
 0x14e   :  { %v7408_v7 = vpop.f32.mrf.mxu0 }
 0x14f   :  { %16802 = vst [vmem:[#allocation41_spill] sm:$0xff] %v9061_v9  ;;  %1431 = vmin.xlane.f32.xlu0 %v9061_v9  ;;  %v9066_v61 = vadd.f32 %v7408_v7, %v8679_v38 }
 0x150   :  { %v994_v27 = vpop.f32.mrf.mxu0 }
 0x151   :  { %16803 = vst [vmem:[#allocation42_spill] sm:$0xff] %v9066_v61  ;;  %v9069_v53 = vadd.f32 %v8679_v38, %v994_v27  ;;  %1433 = vmin.xlane.f32.xlu1 %v9058_v26 }
 0x152   :  { %v7411_v15 = vpop.f32.mrf.mxu0 }
 0x153   :  { %16804 = vst [vmem:[#allocation43_spill] sm:$0xff] %v9069_v53  ;;  %1435 = vmin.xlane.f32.xlu0 %v9069_v53  ;;  %v9076_v36 = vadd.f32 %v7411_v15, %v8679_v38 }
 0x154   :  { %v1004_v40 = vpop.f32.mrf.mxu0 }
 0x155   :  { %16805 = vst [vmem:[#allocation44_spill] sm:$0xff] %v9076_v36  ;;  %v9079_v9 = vadd.f32 %v8679_v38, %v1004_v40  ;;  %1437 = vmin.xlane.f32.xlu1 %v9066_v61 }
 0x156   :  { %v1306_v7 = vpop.xlane.xlu0 %1305  ;;  %v7414_v39 = vpop.f32.mrf.mxu0 }
 0x157   :  { %16806 = vst [vmem:[#allocation45_spill] sm:$0xff] %v9079_v9  ;;  %vm1562_vm1 = vcmp.eq.f32.partialorder %v8686_v41, %v1306_v7  ;;  %1439 = vmin.xlane.f32.xlu0 %v9079_v9  ;;  %v9088_v55 = vadd.f32 %v7414_v39, %v8679_v38 }
 0x158   :  { %v9085_v27 = vsel %vm1562_vm1, %v9073_v44, 2147483647  ;;  %v1014_v53 = vpop.f32.mrf.mxu0 }
 0x159   :  { %16807 = vst [vmem:[#allocation46_spill] sm:$0xff] %v9088_v55  ;;  %v9091_v15 = vadd.f32 %v8679_v38, %v1014_v53  ;;  %1441 = vmin.xlane.f32.xlu1 %v9076_v36  ;;  %v1832_v40 = vshra.s32 %v9085_v27, 16 }
 0x15a   :  { %v1310_v61 = vpop.xlane.xlu1 %1309  ;;  %v1304_v26 = vpop.xlane.xlu0 %1303 }
 0x15b   :  { %16808 = vst [vmem:[#allocation47_spill] sm:$0xff] %v9091_v15  ;;  %vm1561_vm2 = vcmp.eq.f32.partialorder %v8701_v47, %v1304_v26  ;;  %1443 = vmin.xlane.f32.xlu0 %v9091_v15  ;;  %v7417_v41 = vpop.f32.mrf.mxu0  ;;  %v9101_v9 = vcvt.s32.f32 %v1832_v40  ;;  %vm1564_vm3 = vcmp.eq.f32.partialorder %v8698_v46, %v1310_v61 }
 0x15c   :  { %v9098_v7 = vadd.f32 %v7417_v41, %v8679_v38  ;;  %v9104_v53 = vsel %vm1561_vm2, %v9073_v44, 2147483647  ;;  %v9117_v2 = vsel %vm1564_vm3, %v9073_v44, 2147483647 }
 0x15d   :  { %1445 = vmin.xlane.f32.xlu1 %v9088_v55  ;;  %v1024_v39 = vpop.f32.mrf.mxu0  ;;  %16810 = vst [vmem:[#allocation49_spill] sm:$0xff] %v9101_v9  ;;  %16811 = vst [vmem:[#allocation50_spill] sm:$0xff] %v9104_v53  ;;  %v1818_v55 = vshra.s32 %v9104_v53, 16 }
 0x15e   :  { %16809 = vst [vmem:[#allocation48_spill] sm:$0xff] %v9098_v7  ;;  %v1308_v36 = vpop.xlane.xlu1 %1307  ;;  %v9109_v15 = vadd.f32 %v8679_v38, %v1024_v39  ;;  %16814 = vst [vmem:[#allocation53_spill] sm:$0xff] %v9117_v2 }
 0x15f   :  { %1835 = vmin.xlane.f32.xlu0 %v9101_v9  ;;  %v7420_v47 = vpop.f32.mrf.mxu0  ;;  %v9126_v14 = vcvt.s32.f32 %v1818_v55  ;;  %vm1563_vm4 = vcmp.eq.f32.partialorder %v8714_v52, %v1308_v36 }
 0x160   :  { %v1312_v26 = vpop.xlane.xlu0 %1311  ;;  %16812 = vst [vmem:[#allocation51_spill] sm:$0xff] %v9109_v15  ;;  %v9112_v41 = vadd.f32 %v7420_v47, %v8679_v38  ;;  %v9142_v55 = vsel %vm1563_vm4, %v9073_v44, 2147483647 }
 0x161   :  { %1449 = vmin.xlane.f32.xlu1 %v9098_v7  ;;  %v1034_v40 = vpop.f32.mrf.mxu0  ;;  %16816 = vst [vmem:[#allocation55_spill] sm:$0xff] %v9126_v14  ;;  %v1860_v7 = vshra.s32 %v9117_v2, 16  ;;  %16819 = vst [vmem:[#allocation58_spill] sm:$0xff] %v9142_v55  ;;  %v1846_v18 = vshra.s32 %v9142_v55, 16  ;;  %vm1565_vm6 = vcmp.eq.f32.partialorder %v8728_v57, %v1312_v26 }
 0x162   :  { %16813 = vst [vmem:[#allocation52_spill] sm:$0xff] %v9112_v41  ;;  %v1314_v30 = vpop.xlane.xlu1 %1313 }
 0x163   :  { %1447 = vmin.xlane.f32.xlu0 %v9109_v15  ;;  %v7423_v46 = vpop.f32.mrf.mxu0  ;;  %vm1566_vm5 = vcmp.eq.f32.partialorder %v8724_v56, %v1314_v30 }
 0x164   :  { %v9120_v61 = vpop.xlane.xlu0 %1315  ;;  %v9123_v39 = vadd.f32 %v7423_v46, %v8679_v38  ;;  %v9161_v21 = vsel %vm1566_vm5, %v9073_v44, 2147483647 }
 0x165   :  { %1453 = vmin.xlane.f32.xlu1 %v9112_v41  ;;  %v1044_v47 = vpop.f32.mrf.mxu0  ;;  %v9139_v41 = vcvt.s32.f32 %v1860_v7  ;;  %16822 = vst [vmem:[#allocation61_spill] sm:$0xff] %v9161_v21  ;;  %v1888_v55 = vshra.s32 %v9161_v21, 16  ;;  %v9192_v21 = vsel %vm1565_vm6, %v9073_v44, 2147483647  ;;  %vm1567_vm8 = vcmp.eq.f32.partialorder %v8744_v63, %v9120_v61 }
 0x166   :  { %16815 = vst [vmem:[#allocation54_spill] sm:$0xff] %v9123_v39  ;;  %v1318_v33 = vpop.xlane.xlu1 %1317  ;;  %16827 = vst [vmem:[#allocation66_spill] sm:$0xff] %v9192_v21 }
 0x167   :  { %1821 = vmin.xlane.f32.xlu0 %v9126_v14  ;;  %v7426_v24 = vpop.f32.mrf.mxu0  ;;  %16818 = vst [vmem:[#allocation57_spill] sm:$0xff] %v9139_v41  ;;  %vm1568_vm7 = vcmp.eq.f32.partialorder %v8740_v62, %v1318_v33 }
 0x168   :  { %v9131_v15 = vpop.xlane.xlu0 %1319  ;;  %v9134_v58 = vadd.f32 %v7426_v24, %v8679_v38  ;;  %v9151_v24 = vadd.f32 %v8679_v38, %v1034_v40  ;;  %v9211_v2 = vsel %vm1568_vm7, %v9073_v44, 2147483647 }
 0x169   :  { %1457 = vmin.xlane.f32.xlu1 %v9123_v39  ;;  %v9137_v46 = vpop.f32.mrf.mxu0  ;;  %16830 = vst [vmem:[#allocation69_spill] sm:$0xff] %v9211_v2  ;;  %vm1569_vm10 = vcmp.eq.f32.partialorder %v8760_v5, %v9131_v15 }
 0x16a   :  { %16817 = vst [vmem:[#allocation56_spill] sm:$0xff] %v9134_v58  ;;  %v9144_v49 = vpop.xlane.xlu1 %1321  ;;  %16820 = vst [vmem:[#allocation59_spill] sm:$0xff] %v9151_v24 }
 0x16b   :  { %1863 = vmin.xlane.f32.xlu0 %v9139_v41  ;;  %v7429_v52 = vpop.f32.mrf.mxu0  ;;  %vm1570_vm9 = vcmp.eq.f32.partialorder %v8756_v4, %v9144_v49 }
 0x16c   :  { %v9148_v36 = vpop.xlane.xlu0 %1323  ;;  %v9154_v39 = vadd.f32 %v7429_v52, %v8679_v38  ;;  %v9264_v4 = vsel %vm1570_vm9, %v9073_v44, 2147483647 }
 0x16d   :  { %1461 = vmin.xlane.f32.xlu1 %v9134_v58  ;;  %v9157_v7 = vpop.f32.mrf.mxu0  ;;  %v9174_v58 = vcvt.s32.f32 %v1846_v18  ;;  %v9189_v18 = vcvt.s32.f32 %v1888_v55  ;;  %16838 = vst [vmem:[#allocation77_spill] sm:$0xff] %v9264_v4  ;;  %vm1571_vm14 = vcmp.eq.f32.partialorder %v8776_v11, %v9148_v36 }
 0x16e   :  { %16821 = vst [vmem:[#allocation60_spill] sm:$0xff] %v9154_v39  ;;  %v9163_v56 = vpop.xlane.xlu1 %1325 }
 0x16f   :  { %1451 = vmin.xlane.f32.xlu0 %v9151_v24  ;;  %v7432_v30 = vpop.f32.mrf.mxu0  ;;  %16824 = vst [vmem:[#allocation63_spill] sm:$0xff] %v9174_v58  ;;  %16826 = vst [vmem:[#allocation65_spill] sm:$0xff] %v9189_v18  ;;  %vm1572_vm12 = vcmp.eq.f32.partialorder %v8772_v10, %v9163_v56 }
 0x170   :  { %v9166_v12 = vpop.xlane.xlu0 %1327  ;;  %v9169_v40 = vadd.f32 %v7432_v30, %v8679_v38  ;;  %v9315_v10 = vsel %vm1572_vm12, %v9073_v44, 2147483647 }
 0x171   :  { %1465 = vmin.xlane.f32.xlu1 %v9154_v39  ;;  %v9172_v52 = vpop.f32.mrf.mxu0  ;;  %16847 = vst [vmem:[#allocation86_spill] sm:$0xff] %v9315_v10  ;;  %vm1573_vm2 = vcmp.eq.f32.partialorder %v8792_v17, %v9166_v12 }
 0x172   :  { %16823 = vst [vmem:[#allocation62_spill] sm:$0xff] %v9169_v40  ;;  %v9177_v41 = vpop.xlane.xlu1 %1329 }
 0x173   :  { %1849 = vmin.xlane.f32.xlu0 %v9174_v58  ;;  %v7435_v24 = vpop.f32.mrf.mxu0  ;;  %v1874_v58 = vshra.s32 %v9192_v21, 16  ;;  %v1916_v21 = vshra.s32 %v9211_v2, 16  ;;  %v9243_v2 = vsel %vm1567_vm8, %v9073_v44, 2147483647  ;;  %vm1574_vm15 = vcmp.eq.f32.partialorder %v8788_v16, %v9177_v41 }
 0x174   :  { %v9181_v1 = vpop.xlane.xlu0 %1331  ;;  %v9184_v30 = vadd.f32 %v7435_v24, %v8679_v38  ;;  %v9201_v24 = vadd.f32 %v8679_v38, %v1044_v47  ;;  %16835 = vst [vmem:[#allocation74_spill] sm:$0xff] %v9243_v2 }
 0x175   :  { %1469 = vmin.xlane.f32.xlu1 %v9169_v40  ;;  %v9187_v39 = vpop.f32.mrf.mxu0  ;;  %vm1575_vm6 = vcmp.eq.f32.partialorder %v8808_v23, %v9181_v1 }
 0x176   :  { %16825 = vst [vmem:[#allocation64_spill] sm:$0xff] %v9184_v30  ;;  %v9194_v14 = vpop.xlane.xlu1 %1333  ;;  %16828 = vst [vmem:[#allocation67_spill] sm:$0xff] %v9201_v24 }
 0x177   :  { %1891 = vmin.xlane.f32.xlu0 %v9189_v18  ;;  %v7438_v57 = vpop.f32.mrf.mxu0  ;;  %vm1576_vm4 = vcmp.eq.f32.partialorder %v8804_v22, %v9194_v14 }
 0x178   :  { %v9198_v26 = vpop.xlane.xlu0 %1335  ;;  %v9204_v40 = vadd.f32 %v7438_v57, %v8679_v38  ;;  %v9421_v22 = vsel %vm1576_vm4, %v9073_v44, 2147483647 }
 0x179   :  { %1473 = vmin.xlane.f32.xlu1 %v9184_v30  ;;  %v9207_v55 = vpop.f32.mrf.mxu0  ;;  %v9224_v30 = vcvt.s32.f32 %v1874_v58  ;;  %v9240_v58 = vcvt.s32.f32 %v1916_v21  ;;  %16865 = vst [vmem:[#allocation104_spill] sm:$0xff] %v9421_v22  ;;  %vm1577_vm9 = vcmp.eq.f32.partialorder %v8824_v29, %v9198_v26 }
 0x17a   :  { %16829 = vst [vmem:[#allocation68_spill] sm:$0xff] %v9204_v40  ;;  %v9213_v62 = vpop.xlane.xlu1 %1337 }
 0x17b   :  { %1455 = vmin.xlane.f32.xlu0 %v9201_v24  ;;  %v7441_v33 = vpop.f32.mrf.mxu0  ;;  %16832 = vst [vmem:[#allocation71_spill] sm:$0xff] %v9224_v30  ;;  %16834 = vst [vmem:[#allocation73_spill] sm:$0xff] %v9240_v58  ;;  %vm1578_vm7 = vcmp.eq.f32.partialorder %v8820_v28, %v9213_v62 }
 0x17c   :  { %v9216_v18 = vpop.xlane.xlu0 %1339  ;;  %v9219_v47 = vadd.f32 %v7441_v33, %v8679_v38  ;;  %v9479_v28 = vsel %vm1578_vm7, %v9073_v44, 2147483647 }
 0x17d   :  { %1477 = vmin.xlane.f32.xlu1 %v9204_v40  ;;  %v9222_v57 = vpop.f32.mrf.mxu0  ;;  %16872 = vst [vmem:[#allocation111_spill] sm:$0xff] %v9479_v28 }
 0x17e   :  { %16831 = vst [vmem:[#allocation70_spill] sm:$0xff] %v9219_v47  ;;  %v9227_v3 = vpop.xlane.xlu1 %1341 }
 0x17f   :  { %1877 = vmin.xlane.f32.xlu0 %v9224_v30  ;;  %v7444_v24 = vpop.f32.mrf.mxu0  ;;  %v1902_v30 = vshra.s32 %v9243_v2, 16  ;;  %v1944_v2 = vshra.s32 %v9264_v4, 16  ;;  %v9295_v4 = vsel %vm1569_vm10, %v9073_v44, 2147483647 }
 0x180   :  { %v9232_v48 = vpop.xlane.xlu0 %1343  ;;  %v9235_v33 = vadd.f32 %v7444_v24, %v8679_v38  ;;  %v9254_v24 = vadd.f32 %v8679_v38, %v9137_v46  ;;  %16843 = vst [vmem:[#allocation82_spill] sm:$0xff] %v9295_v4  ;;  %v1930_v15 = vshra.s32 %v9295_v4, 16  ;;  %v1972_v4 = vshra.s32 %v9315_v10, 16 }
 0x181   :  { %1481 = vmin.xlane.f32.xlu1 %v9219_v47  ;;  %v9238_v40 = vpop.f32.mrf.mxu0 }
 0x182   :  { %16833 = vst [vmem:[#allocation72_spill] sm:$0xff] %v9235_v33  ;;  %v9245_v53 = vpop.xlane.xlu1 %1345  ;;  %16836 = vst [vmem:[#allocation75_spill] sm:$0xff] %v9254_v24 }
 0x183   :  { %1919 = vmin.xlane.f32.xlu0 %v9240_v58  ;;  %v7447_v63 = vpop.f32.mrf.mxu0 }
 0x184   :  { %v9250_v61 = vpop.xlane.xlu0 %1347  ;;  %v9257_v21 = vadd.f32 %v7447_v63, %v8679_v38 }
 0x185   :  { %1485 = vmin.xlane.f32.xlu1 %v9235_v33  ;;  %v9260_v47 = vpop.f32.mrf.mxu0  ;;  %v9277_v33 = vcvt.s32.f32 %v1902_v30 }
 0x186   :  { %16837 = vst [vmem:[#allocation76_spill] sm:$0xff] %v9257_v21  ;;  %v9266_v49 = vpop.xlane.xlu1 %1349 }
 0x187   :  { %1459 = vmin.xlane.f32.xlu0 %v9254_v24  ;;  %v7450_v58 = vpop.f32.mrf.mxu0 }
 0x188   :  { %v9269_v60 = vpop.xlane.xlu0 %1351  ;;  %v9272_v46 = vadd.f32 %v7450_v58, %v8679_v38 }
 0x189   :  { %16839 = vst [vmem:[#allocation78_spill] sm:$0xff] %v9269_v60  ;;  %1489 = vmin.xlane.f32.xlu1 %v9257_v21  ;;  %v9275_v63 = vpop.f32.mrf.mxu0  ;;  %v9292_v21 = vcvt.s32.f32 %v1944_v2  ;;  %v9308_v2 = vadd.f32 %v8679_v38, %v9157_v7  ;;  %v9324_v7 = vcvt.s32.f32 %v1930_v15  ;;  %v9342_v15 = vcvt.s32.f32 %v1972_v4 }
 0x18a   :  { %16840 = vst [vmem:[#allocation79_spill] sm:$0xff] %v9272_v46  ;;  %v9280_v9 = vpop.xlane.xlu1 %1353  ;;  %v9361_v4 = vsel %vm1574_vm15, %v9073_v44, 2147483647 }
 0x18b   :  { %1905 = vmin.xlane.f32.xlu0 %v9277_v33  ;;  %v7453_v24 = vpop.f32.mrf.mxu0  ;;  %16842 = vst [vmem:[#allocation81_spill] sm:$0xff] %v9292_v21  ;;  %16845 = vst [vmem:[#allocation84_spill] sm:$0xff] %v9308_v2 }
 0x18c   :  { %v1356_v60 = vpop.xlane.xlu0 %1355  ;;  %v9286_v58 = vadd.f32 %v7453_v24, %v8679_v38  ;;  %16848 = vst [vmem:[#allocation87_spill] sm:$0xff] %v9324_v7  ;;  %16852 = vst [vmem:[#allocation91_spill] sm:$0xff] %v9342_v15 }
 0x18d   :  { %vm1587_vm11 = vcmp.eq.f32.partialorder %v8904_v6, %v1356_v60  ;;  %1493 = vmin.xlane.f32.xlu1 %v9272_v46  ;;  %v9290_v30 = vpop.f32.mrf.mxu0  ;;  %16855 = vst [vmem:[#allocation94_spill] sm:$0xff] %v9361_v4 }
 0x18e   :  { %16841 = vst [vmem:[#allocation80_spill] sm:$0xff] %v9286_v58  ;;  %v9297_v32 = vpop.xlane.xlu1 %1357  ;;  %v9303_v5 = vsel %vm1587_vm11, %v9073_v44, 2147483647  ;;  %vm1580_vm11 = vcmp.eq.f32.partialorder %v8836_v34, %v9227_v3 }
 0x18f   :  { %1947 = vmin.xlane.f32.xlu0 %v9292_v21  ;;  %16844 = vst [vmem:[#allocation83_spill] sm:$0xff] %v9303_v5  ;;  %v7456_v60 = vpop.f32.mrf.mxu0  ;;  %v2182_v46 = vshra.s32 %v9303_v5, 16  ;;  %v9540_v34 = vsel %vm1580_vm11, %v9073_v44, 2147483647 }
 0x190   :  { %v1360_v6 = vpop.xlane.xlu0 %1359  ;;  %v9311_v24 = vadd.f32 %v7456_v60, %v8679_v38  ;;  %16883 = vst [vmem:[#allocation122_spill] sm:$0xff] %v9540_v34 }
 0x191   :  { %1497 = vmin.xlane.f32.xlu1 %v9286_v58  ;;  %vm1589_vm13 = vcmp.eq.f32.partialorder %v8917_v13, %v1360_v6  ;;  %v9326_v60 = vpop.f32.mrf.mxu0  ;;  %v9333_v5 = vcvt.s32.f32 %v2182_v46 }
 0x192   :  { %16846 = vst [vmem:[#allocation85_spill] sm:$0xff] %v9311_v24  ;;  %v9317_v56 = vpop.xlane.xlu1 %1361 }
 0x193   :  { %1463 = vmin.xlane.f32.xlu0 %v9308_v2  ;;  %16849 = vst [vmem:[#allocation88_spill] sm:$0xff] %v9333_v5  ;;  %v9336_v2 = vsel %vm1589_vm13, %v9073_v44, 2147483647  ;;  %v7459_v10 = vpop.f32.mrf.mxu0  ;;  %vm1579_vm13 = vcmp.eq.f32.partialorder %v8840_v35, %v9216_v18 }
 0x194   :  { %v1364_v21 = vpop.xlane.xlu0 %1363  ;;  %16850 = vst [vmem:[#allocation89_spill] sm:$0xff] %v9336_v2  ;;  %v9339_v6 = vadd.f32 %v7459_v10, %v8679_v38  ;;  %v2210_v36 = vshra.s32 %v9336_v2, 16 }
 0x195   :  { %1501 = vmin.xlane.f32.xlu1 %v9311_v24  ;;  %v9345_v24 = vsel %vm1571_vm14, %v9073_v44, 2147483647  ;;  %vm1591_vm1 = vcmp.eq.f32.partialorder %v8926_v19, %v1364_v21  ;;  %v2000_v19 = vshra.s32 %v9361_v4, 16  ;;  %vm1582_vm14 = vcmp.eq.f32.partialorder %v8852_v42, %v9245_v53 }
 0x196   :  { %v9328_v58 = vpop.xlane.xlu1 %1365  ;;  %16851 = vst [vmem:[#allocation90_spill] sm:$0xff] %v9339_v6  ;;  %16853 = vst [vmem:[#allocation92_spill] sm:$0xff] %v9345_v24  ;;  %v1958_v10 = vshra.s32 %v9345_v24, 16  ;;  %v9368_v41 = vcvt.s32.f32 %v2210_v36  ;;  %v9371_v24 = vsel %vm1591_vm1, %v9073_v44, 2147483647  ;;  %vm1581_vm1 = vcmp.eq.f32.partialorder %v8856_v43, %v9232_v48 }
 0x197   :  { %1933 = vmin.xlane.f32.xlu0 %v9324_v7  ;;  %v9363_v7 = vpop.f32.mrf.mxu0  ;;  %16857 = vst [vmem:[#allocation96_spill] sm:$0xff] %v9371_v24  ;;  %v2238_v36 = vshra.s32 %v9371_v24, 16 }
 0x198   :  { %v1368_v13 = vpop.xlane.xlu0 %1367  ;;  %16856 = vst [vmem:[#allocation95_spill] sm:$0xff] %v9368_v41 }
 0x199   :  { %2185 = vmin.xlane.f32.xlu1 %v9333_v5  ;;  %v9356_v5 = vadd.f32 %v8679_v38, %v9172_v52  ;;  %v7462_v52 = vpop.f32.mrf.mxu0  ;;  %vm1593_vm3 = vcmp.eq.f32.partialorder %v8934_v25, %v1368_v13  ;;  %v9404_v17 = vcvt.s32.f32 %v2238_v36 }
 0x19a   :  { %v9347_v11 = vpop.xlane.xlu1 %1369  ;;  %v9377_v21 = vadd.f32 %v7462_v52, %v8679_v38  ;;  %v9392_v52 = vcvt.s32.f32 %v2000_v19  ;;  %v9407_v12 = vsel %vm1593_vm3, %v9073_v44, 2147483647  ;;  %vm1584_vm3 = vcmp.eq.f32.partialorder %v8868_v50, %v9266_v49 }
 0x19b   :  { %1975 = vmin.xlane.f32.xlu0 %v9342_v15  ;;  %16854 = vst [vmem:[#allocation93_spill] sm:$0xff] %v9356_v5  ;;  %v9397_v4 = vpop.f32.mrf.mxu0  ;;  %16861 = vst [vmem:[#allocation100_spill] sm:$0xff] %v9404_v17  ;;  %v2266_v36 = vshra.s32 %v9407_v12, 16  ;;  %v9655_v50 = vsel %vm1584_vm3, %v9073_v44, 2147483647 }
 0x19c   :  { %v1372_v46 = vpop.xlane.xlu0 %1371  ;;  %16858 = vst [vmem:[#allocation97_spill] sm:$0xff] %v9377_v21  ;;  %16859 = vst [vmem:[#allocation98_spill] sm:$0xff] %v9392_v52 }
 0x19d   :  { %1505 = vmin.xlane.f32.xlu1 %v9339_v6  ;;  %v9380_v6 = vcvt.s32.f32 %v1958_v10  ;;  %v9395_v10 = vsel %vm1573_vm2, %v9073_v44, 2147483647  ;;  %16862 = vst [vmem:[#allocation101_spill] sm:$0xff] %v9407_v12  ;;  %v7465_v25 = vpop.f32.mrf.mxu0  ;;  %vm1595_vm5 = vcmp.eq.f32.partialorder %v8941_v31, %v1372_v46  ;;  %16906 = vst [vmem:[#allocation145_spill] sm:$0xff] %v9655_v50 }
 0x19e   :  { %v9365_v16 = vpop.xlane.xlu1 %1373  ;;  %16860 = vst [vmem:[#allocation99_spill] sm:$0xff] %v9395_v10  ;;  %v1986_v19 = vshra.s32 %v9395_v10, 16  ;;  %v9417_v24 = vadd.f32 %v7465_v25, %v8679_v38  ;;  %v2028_v10 = vshra.s32 %v9421_v22, 16  ;;  %v9444_v12 = vsel %vm1595_vm5, %v9073_v44, 2147483647 }
 0x19f   :  { %1467 = vmin.xlane.f32.xlu0 %v9356_v5  ;;  %v9434_v25 = vpop.f32.mrf.mxu0  ;;  %16867 = vst [vmem:[#allocation106_spill] sm:$0xff] %v9444_v12  ;;  %v2294_v1 = vshra.s32 %v9444_v12, 16  ;;  %vm1583_vm5 = vcmp.eq.f32.partialorder %v8872_v51, %v9250_v61 }
 0x1a0   :  { %v9373_v2 = vpop.xlane.xlu0 %1375  ;;  %16864 = vst [vmem:[#allocation103_spill] sm:$0xff] %v9417_v24 }
 0x1a1   :  { %2213 = vmin.xlane.f32.xlu1 %v9368_v41  ;;  %v7468_v22 = vpop.f32.mrf.mxu0  ;;  %vm1597_vm8 = vcmp.eq.f32.partialorder %v8949_v37, %v9373_v2  ;;  %v9486_v12 = vcvt.s32.f32 %v2294_v1  ;;  %v2056_v37 = vshra.s32 %v9479_v28, 16 }
 0x1a2   :  { %v9382_v15 = vpop.xlane.xlu1 %1377  ;;  %v9449_v46 = vadd.f32 %v7468_v22, %v8679_v38 }
 0x1a3   :  { %1961 = vmin.xlane.f32.xlu0 %v9380_v6  ;;  %v9481_v62 = vpop.f32.mrf.mxu0 }
 0x1a4   :  { %v9388_v5 = vpop.xlane.xlu0 %1379  ;;  %16868 = vst [vmem:[#allocation107_spill] sm:$0xff] %v9449_v46 }
 0x1a5   :  { %1509 = vmin.xlane.f32.xlu1 %v9377_v21  ;;  %v9414_v21 = vadd.f32 %v8679_v38, %v9187_v39  ;;  %v9432_v39 = vcvt.s32.f32 %v1986_v19  ;;  %v9452_v19 = vcvt.s32.f32 %v2028_v10  ;;  %v9469_v10 = vld [vmem:[%s16085_s3] ss:$0 sm:$0xff]  ;;  %vm1599_vm10 = vcmp.eq.f32.partialorder %v8957_v45, %v9388_v5 }
 0x1a6   :  { %v9399_v41 = vpop.xlane.xlu1 %1381  ;;  %v9473_v22 = vadd.f32 %v9469_v10, %v9207_v55  ;;  %v7471_v55 = vpop.f32.mrf.mxu0  ;;  %v9526_v45 = vsel %vm1599_vm10, %v9073_v44, 2147483647 }
 0x1a7   :  { %2003 = vmin.xlane.f32.xlu0 %v9392_v52  ;;  %16863 = vst [vmem:[#allocation102_spill] sm:$0xff] %v9414_v21  ;;  %16869 = vst [vmem:[#allocation108_spill] sm:$0xff] %v9452_v19  ;;  %v9495_v2 = vadd.f32 %v9469_v10, %v7471_v55  ;;  %v9511_v55 = vcvt.s32.f32 %v2056_v37 }
 0x1a8   :  { %v9409_v13 = vpop.xlane.xlu0 %1383  ;;  %16871 = vst [vmem:[#allocation110_spill] sm:$0xff] %v9473_v22  ;;  %v9516_v28 = vpop.f32.mrf.mxu0  ;;  %16880 = vst [vmem:[#allocation119_spill] sm:$0xff] %v9526_v45 }
 0x1a9   :  { %2241 = vmin.xlane.f32.xlu1 %v9404_v17  ;;  %16874 = vst [vmem:[#allocation113_spill] sm:$0xff] %v9495_v2  ;;  %16877 = vst [vmem:[#allocation116_spill] sm:$0xff] %v9511_v55  ;;  %vm1601_vm12 = vcmp.eq.f32.partialorder %v8965_v54, %v9409_v13 }
 0x1aa   :  { %v9423_v14 = vpop.xlane.xlu1 %1385  ;;  %v7474_v26 = vpop.f32.mrf.mxu0 }
 0x1ab   :  { %1471 = vmin.xlane.f32.xlu0 %v9414_v21  ;;  %v9441_v21 = vcvt.s32.f32 %v2266_v36 }
 0x1ac   :  { %v9427_v52 = vpop.xlane.xlu0 %1387 }
 0x1ad   :  { %1513 = vmin.xlane.f32.xlu1 %v9417_v24  ;;  %16866 = vst [vmem:[#allocation105_spill] sm:$0xff] %v9441_v21  ;;  %v9455_v24 = vsel %vm1575_vm6, %v9073_v44, 2147483647  ;;  %vm1603_vm15 = vcmp.eq.f32.partialorder %v8973_v0, %v9427_v52  ;;  %vm1586_vm6 = vcmp.eq.f32.partialorder %v8884_v59, %v9280_v9 }
 0x1ae   :  { %v9436_v17 = vpop.xlane.xlu1 %1389  ;;  %16870 = vst [vmem:[#allocation109_spill] sm:$0xff] %v9455_v24  ;;  %v2014_v38 = vshra.s32 %v9455_v24, 16  ;;  %v9710_v59 = vsel %vm1586_vm6, %v9073_v44, 2147483647 }
 0x1af   :  { %1989 = vmin.xlane.f32.xlu0 %v9432_v39 }
 0x1b0   :  { %v9446_v31 = vpop.xlane.xlu0 %1391 }
 0x1b1   :  { %2269 = vmin.xlane.f32.xlu1 %v9441_v21  ;;  %vm1605_vm2 = vcmp.eq.f32.partialorder %v8981_v8, %v9446_v31 }
 0x1b2   :  { %v9457_v23 = vpop.xlane.xlu1 %1393  ;;  %v9641_v8 = vsel %vm1605_vm2, %v9073_v44, 2147483647 }
 0x1b3   :  { %2031 = vmin.xlane.f32.xlu0 %v9452_v19  ;;  %v9489_v19 = vsel %vm1597_vm8, %v9073_v44, 2147483647  ;;  %16903 = vst [vmem:[#allocation142_spill] sm:$0xff] %v9641_v8 }
 0x1b4   :  { %v9463_v36 = vpop.xlane.xlu0 %1395  ;;  %v2322_v1 = vshra.s32 %v9489_v19, 16 }
 0x1b5   :  { %1517 = vmin.xlane.f32.xlu1 %v9449_v46  ;;  %v9498_v46 = vcvt.s32.f32 %v2014_v38  ;;  %v9514_v38 = vsel %vm1577_vm9, %v9073_v44, 2147483647  ;;  %vm1607_vm4 = vcmp.eq.f32.partialorder %v8989_v20, %v9463_v36 }
 0x1b6   :  { %v9483_v24 = vpop.xlane.xlu1 %1397  ;;  %16878 = vst [vmem:[#allocation117_spill] sm:$0xff] %v9514_v38  ;;  %v9523_v29 = vcvt.s32.f32 %v2322_v1  ;;  %v2042_v37 = vshra.s32 %v9514_v38, 16  ;;  %v2350_v1 = vshra.s32 %v9526_v45, 16  ;;  %v2084_v38 = vshra.s32 %v9540_v34, 16 }
 0x1b7   :  { %16873 = vst [vmem:[#allocation112_spill] sm:$0xff] %v9483_v24  ;;  %1475 = vmin.xlane.f32.xlu0 %v9473_v22  ;;  %16875 = vst [vmem:[#allocation114_spill] sm:$0xff] %v9498_v46  ;;  %v9564_v34 = vsel %vm1601_vm12, %v9073_v44, 2147483647 }
 0x1b8   :  { %v9491_v21 = vpop.xlane.xlu0 %1399  ;;  %16888 = vst [vmem:[#allocation127_spill] sm:$0xff] %v9564_v34  ;;  %v2378_v18 = vshra.s32 %v9564_v34, 16  ;;  %v16922_v34 = vld [vmem:[#allocation78_spill] sm:$0xff] }
 0x1b9   :  { %2297 = vmin.xlane.f32.xlu1 %v9486_v12 }
 0x1ba   :  { %v9500_v24 = vpop.xlane.xlu1 %1401 }
 0x1bb   :  { %16876 = vst [vmem:[#allocation115_spill] sm:$0xff] %v9500_v24  ;;  %2017 = vmin.xlane.f32.xlu0 %v9498_v46  ;;  %v9536_v46 = vadd.f32 %v9469_v10, %v7474_v26  ;;  %v9554_v26 = vpop.f32.mrf.mxu0 }
 0x1bc   :  { %v9506_v22 = vpop.xlane.xlu0 %1403 }
 0x1bd   :  { %1521 = vmin.xlane.f32.xlu1 %v9495_v2  ;;  %v9533_v2 = vadd.f32 %v9469_v10, %v9222_v57  ;;  %16882 = vst [vmem:[#allocation121_spill] sm:$0xff] %v9536_v46  ;;  %v9552_v57 = vcvt.s32.f32 %v2042_v37  ;;  %v9572_v37 = vcvt.s32.f32 %v2084_v38  ;;  %v9588_v38 = vadd.f32 %v9469_v10, %v9238_v40 }
 0x1be   :  { %v9518_v24 = vpop.xlane.xlu1 %1405 }
 0x1bf   :  { %16879 = vst [vmem:[#allocation118_spill] sm:$0xff] %v9518_v24  ;;  %2059 = vmin.xlane.f32.xlu0 %v9511_v55  ;;  %16881 = vst [vmem:[#allocation120_spill] sm:$0xff] %v9533_v2 }
 0x1c0   :  { %v9528_v5 = vpop.xlane.xlu0 %1407  ;;  %16885 = vst [vmem:[#allocation124_spill] sm:$0xff] %v9552_v57  ;;  %16890 = vst [vmem:[#allocation129_spill] sm:$0xff] %v9572_v37 }
 0x1c1   :  { %2325 = vmin.xlane.f32.xlu1 %v9523_v29  ;;  %16893 = vst [vmem:[#allocation132_spill] sm:$0xff] %v9588_v38 }
 0x1c2   :  { %v9542_v3 = vpop.xlane.xlu1 %1409 }
 0x1c3   :  { %16884 = vst [vmem:[#allocation123_spill] sm:$0xff] %v9542_v3  ;;  %1479 = vmin.xlane.f32.xlu0 %v9533_v2  ;;  %v9561_v2 = vcvt.s32.f32 %v2350_v1  ;;  %v7477_v3 = vpop.f32.mrf.mxu0 }
 0x1c4   :  { %v9546_v55 = vpop.xlane.xlu0 %1411  ;;  %v9569_v13 = vadd.f32 %v9469_v10, %v7477_v3 }
 0x1c5   :  { %1525 = vmin.xlane.f32.xlu1 %v9536_v46  ;;  %16887 = vst [vmem:[#allocation126_spill] sm:$0xff] %v9561_v2  ;;  %v9575_v46 = vsel %vm1579_vm13, %v9073_v44, 2147483647  ;;  %v9596_v42 = vpop.f32.mrf.mxu0 }
 0x1c6   :  { %v9556_v24 = vpop.xlane.xlu1 %1413  ;;  %16889 = vst [vmem:[#allocation128_spill] sm:$0xff] %v9569_v13  ;;  %16891 = vst [vmem:[#allocation130_spill] sm:$0xff] %v9575_v46  ;;  %v2070_v3 = vshra.s32 %v9575_v46, 16  ;;  %v9604_v46 = vsel %vm1603_vm15, %v9073_v44, 2147483647 }
 0x1c7   :  { %16886 = vst [vmem:[#allocation125_spill] sm:$0xff] %v9556_v24  ;;  %2045 = vmin.xlane.f32.xlu0 %v9552_v57  ;;  %v9594_v57 = vsel %vm1582_vm14, %v9073_v44, 2147483647  ;;  %16897 = vst [vmem:[#allocation136_spill] sm:$0xff] %v9604_v46  ;;  %v7480_v40 = vpop.f32.mrf.mxu0 }
 0x1c8   :  { %v9566_v54 = vpop.xlane.xlu0 %1415  ;;  %16894 = vst [vmem:[#allocation133_spill] sm:$0xff] %v9594_v57  ;;  %v2112_v0 = vshra.s32 %v9594_v57, 16  ;;  %v9610_v52 = vadd.f32 %v9469_v10, %v7480_v40 }
 0x1c9   :  { %2353 = vmin.xlane.f32.xlu1 %v9561_v2  ;;  %v9631_v57 = vpop.f32.mrf.mxu0  ;;  %v16923_v2 = vld [vmem:[#allocation12_spill] sm:$0xff] }
 0x1ca   :  { %v9577_v35 = vpop.xlane.xlu1 %1417  ;;  %16898 = vst [vmem:[#allocation137_spill] sm:$0xff] %v9610_v52  ;;  %v9626_v40 = vcvt.s32.f32 %v2112_v0  ;;  %vm1585_vm9 = vcmp.eq.f32.partialorder %v16923_v2, %v16922_v34  ;;  %v16929_v34 = vld [vmem:[#allocation13_spill] sm:$0xff] }
 0x1cb   :  { %16892 = vst [vmem:[#allocation131_spill] sm:$0xff] %v9577_v35  ;;  %2087 = vmin.xlane.f32.xlu0 %v9572_v37  ;;  %v9601_v37 = vcvt.s32.f32 %v2378_v18  ;;  %v2406_v18 = vshra.s32 %v9604_v46, 16  ;;  %v7483_v48 = vpop.f32.mrf.mxu0  ;;  %vm1588_vm11 = vcmp.eq.f32.partialorder %v16929_v34, %v9297_v32 }
 0x1cc   :  { %v9583_v1 = vpop.xlane.xlu0 %1419  ;;  %16900 = vst [vmem:[#allocation139_spill] sm:$0xff] %v9626_v40 }
 0x1cd   :  { %1529 = vmin.xlane.f32.xlu1 %v9569_v13  ;;  %16896 = vst [vmem:[#allocation135_spill] sm:$0xff] %v9601_v37  ;;  %v9613_v13 = vcvt.s32.f32 %v2070_v3  ;;  %v9629_v3 = vsel %vm1581_vm1, %v9073_v44, 2147483647  ;;  %v9638_v43 = vcvt.s32.f32 %v2406_v18  ;;  %v2434_v18 = vshra.s32 %v9641_v8, 16 }
 0x1ce   :  { %v9598_v53 = vpop.xlane.xlu1 %1421  ;;  %16901 = vst [vmem:[#allocation140_spill] sm:$0xff] %v9629_v3  ;;  %v2098_v0 = vshra.s32 %v9629_v3, 16  ;;  %v2140_v3 = vshra.s32 %v9655_v50, 16  ;;  %v9679_v50 = vsel %vm1607_vm4, %v9073_v44, 2147483647 }
 0x1cf   :  { %16895 = vst [vmem:[#allocation134_spill] sm:$0xff] %v9598_v53  ;;  %1483 = vmin.xlane.f32.xlu0 %v9588_v38  ;;  %16899 = vst [vmem:[#allocation138_spill] sm:$0xff] %v9613_v13  ;;  %v2462_v61 = vshra.s32 %v9679_v50, 16 }
 0x1d0   :  { %v9606_v35 = vpop.xlane.xlu0 %1423  ;;  %16902 = vst [vmem:[#allocation141_spill] sm:$0xff] %v9638_v43  ;;  %16909 = vst [vmem:[#allocation148_spill] sm:$0xff] %v9679_v50 }
 0x1d1   :  { %2381 = vmin.xlane.f32.xlu1 %v9601_v37 }
 0x1d2   :  { %v9615_v53 = vpop.xlane.xlu1 %1425 }
 0x1d3   :  { %2073 = vmin.xlane.f32.xlu0 %v9613_v13  ;;  %v9651_v13 = vadd.f32 %v9469_v10, %v7483_v48  ;;  %v9669_v48 = vpop.f32.mrf.mxu0 }
 0x1d4   :  { %v9621_v38 = vpop.xlane.xlu0 %1427 }
 0x1d5   :  { %1533 = vmin.xlane.f32.xlu1 %v9610_v52  ;;  %v9648_v52 = vadd.f32 %v9469_v10, %v9260_v47  ;;  %16905 = vst [vmem:[#allocation144_spill] sm:$0xff] %v9651_v13  ;;  %v9667_v47 = vcvt.s32.f32 %v2098_v0  ;;  %v7486_v8 = vpop.f32.mrf.mxu0  ;;  %v9687_v0 = vcvt.s32.f32 %v2140_v3  ;;  %v9704_v3 = vadd.f32 %v9469_v10, %v9275_v63 }
 0x1d6   :  { %v9633_v24 = vpop.xlane.xlu1 %1429  ;;  %v9684_v36 = vadd.f32 %v9469_v10, %v7486_v8 }
 0x1d7   :  { %2115 = vmin.xlane.f32.xlu0 %v9626_v40  ;;  %16904 = vst [vmem:[#allocation143_spill] sm:$0xff] %v9648_v52  ;;  %16907 = vst [vmem:[#allocation146_spill] sm:$0xff] %v9667_v47  ;;  %v9712_v9 = vpop.f32.mrf.mxu0 }
 0x1d8   :  { %v9643_v31 = vpop.xlane.xlu0 %1431  ;;  %16910 = vst [vmem:[#allocation149_spill] sm:$0xff] %v9684_v36  ;;  %16911 = vst [vmem:[#allocation150_spill] sm:$0xff] %v9687_v0 }
 0x1d9   :  { %2409 = vmin.xlane.f32.xlu1 %v9638_v43  ;;  %16913 = vst [vmem:[#allocation152_spill] sm:$0xff] %v9704_v3  ;;  %v7489_v63 = vpop.f32.mrf.mxu0 }
 0x1da   :  { %v9657_v49 = vpop.xlane.xlu1 %1433 }
 0x1db   :  { %1487 = vmin.xlane.f32.xlu0 %v9648_v52  ;;  %v9676_v52 = vcvt.s32.f32 %v2434_v18  ;;  %v1831_v18 = vand.u32 65535, %v9085_v27  ;;  %v9717_v27 = vcvt.s32.f32 %v2462_v61 }
 0x1dc   :  { %v9661_v40 = vpop.xlane.xlu0 %1435 }
 0x1dd   :  { %1537 = vmin.xlane.f32.xlu1 %v9651_v13  ;;  %16908 = vst [vmem:[#allocation147_spill] sm:$0xff] %v9676_v52  ;;  %v9690_v13 = vsel %vm1583_vm5, %v9073_v44, 2147483647  ;;  %16916 = vst [vmem:[#allocation153_spill] sm:$0xff] %v9717_v27 }
 0x1de   :  { %v9671_v43 = vpop.xlane.xlu1 %1437  ;;  %16912 = vst [vmem:[#allocation151_spill] sm:$0xff] %v9690_v13 }
 0x1df   :  { %2101 = vmin.xlane.f32.xlu0 %v9667_v47  ;;  %v2126_v47 = vshra.s32 %v9690_v13, 16 }
 0x1e0   :  { %v9681_v20 = vpop.xlane.xlu0 %1439 }
 0x1e1   :  { %2437 = vmin.xlane.f32.xlu1 %v9676_v52  ;;  %v16914_v52 = vld [vmem:[#allocation25_spill] sm:$0xff]  ;;  %v9729_v46 = vcvt.s32.f32 %v2126_v47  ;;  %v16925_v47 = vld [vmem:[#allocation27_spill] sm:$0xff] }
 0x1e2   :  { %v9692_v51 = vpop.xlane.xlu1 %1441  ;;  %vm1609_vm7 = vcmp.eq.f32.partialorder %v16914_v52, %v9491_v21  ;;  %16915 = vst [vmem:[#allocation25_spill] sm:$0xff] %v9710_v59  ;;  %v1833_v21 = vcvt.s32.f32 %v1831_v18  ;;  %v2168_v52 = vshra.s32 %v9710_v59, 16  ;;  %vm1611_vm10 = vcmp.eq.f32.partialorder %v16925_v47, %v9506_v22 }
 0x1e3   :  { %2143 = vmin.xlane.f32.xlu0 %v9687_v0  ;;  %v9720_v13 = vsel %vm1609_vm7, %v9073_v44, 2147483647  ;;  %16920 = vst [vmem:[#allocation157_spill] sm:$0xff] %v9729_v46  ;;  %v9763_v47 = vsel %vm1611_vm10, %v9073_v44, 2147483647 }
 0x1e4   :  { %v9699_v8 = vpop.xlane.xlu0 %1443  ;;  %16917 = vst [vmem:[#allocation154_spill] sm:$0xff] %v9720_v13  ;;  %v2490_v18 = vshra.s32 %v9720_v13, 16  ;;  %16932 = vst [vmem:[#allocation27_spill] sm:$0xff] %v9763_v47 }
 0x1e5   :  { %1541 = vmin.xlane.f32.xlu1 %v9684_v36  ;;  %v9726_v36 = vadd.f32 %v9469_v10, %v7489_v63  ;;  %v16924_v63 = vld [vmem:[#allocation50_spill] sm:$0xff] }
 0x1e6   :  { %v9714_v0 = vpop.xlane.xlu1 %1445  ;;  %v1817_v59 = vand.u32 65535, %v16924_v63  ;;  %v9759_v63 = vcvt.s32.f32 %v2490_v18  ;;  %v9779_v18 = vsel %vm1588_vm11, %v9073_v44, 2147483647 }
 0x1e7   :  { %1491 = vmin.xlane.f32.xlu0 %v9704_v3  ;;  %16919 = vst [vmem:[#allocation156_spill] sm:$0xff] %v9726_v36  ;;  %v16921_v3 = vld [vmem:[#allocation49_spill] sm:$0xff] }
 0x1e8   :  { %v9722_v50 = vpop.xlane.xlu0 %1835  ;;  %16930 = vst [vmem:[#allocation50_spill] sm:$0xff] %v9759_v63  ;;  %v1819_v13 = vcvt.s32.f32 %v1817_v59 }
 0x1e9   :  { %16918 = vst [vmem:[#allocation155_spill] sm:$0xff] %v9722_v50  ;;  %2465 = vmin.xlane.f32.xlu1 %v9717_v27  ;;  %vm1837_vm8 = vcmp.eq.f32.partialorder %v16921_v3, %v9722_v50  ;;  %v9747_v3 = vcvt.s32.f32 %v2168_v52  ;;  %v9752_v50 = vpop.f32.mrf.mxu0 }
 0x1ea   :  { %v9733_v61 = vpop.xlane.xlu1 %1449  ;;  %v9735_v37 = vsel %vm1837_vm8, %v1833_v21, inf  ;;  %v9750_v21 = vsel %vm1585_vm9, %v9073_v44, 2147483647 }
 0x1eb   :  { %2129 = vmin.xlane.f32.xlu0 %v9729_v46  ;;  %16926 = vst [vmem:[#allocation49_spill] sm:$0xff] %v9747_v3  ;;  %16927 = vst [vmem:[#allocation78_spill] sm:$0xff] %v9750_v21  ;;  %v16931_v46 = vld [vmem:[#allocation53_spill] sm:$0xff]  ;;  %v7492_v52 = vpop.f32.mrf.mxu0  ;;  %v2154_v27 = vshra.s32 %v9750_v21, 16  ;;  %v2518_v21 = vshra.s32 %v9763_v47, 16 }
 0x1ec   :  { %v9742_v45 = vpop.xlane.xlu0 %1447  ;;  %v1859_v22 = vand.u32 65535, %v16931_v46  ;;  %v9773_v32 = vadd.f32 %v9469_v10, %v7492_v52  ;;  %v16936_v46 = vld [vmem:[#allocation55_spill] sm:$0xff] }
 0x1ed   :  { %1545 = vmin.xlane.f32.xlu1 %v9726_v36  ;;  %16937 = vst [vmem:[#allocation55_spill] sm:$0xff] %v9779_v18 }
 0x1ee   :  { %v9754_v2 = vpop.xlane.xlu1 %1453  ;;  %16935 = vst [vmem:[#allocation158_spill] sm:$0xff] %v9773_v32  ;;  %v1861_v52 = vcvt.s32.f32 %v1859_v22  ;;  %v16944_v22 = vld [vmem:[#allocation14_spill] sm:$0xff] }
 0x1ef   :  { %16928 = vst [vmem:[#allocation12_spill] sm:$0xff] %v9754_v2  ;;  %2171 = vmin.xlane.f32.xlu0 %v9747_v3  ;;  %v9770_v2 = vadd.f32 %v9469_v10, %v9290_v30  ;;  %v2196_v3 = vshra.s32 %v9779_v18, 16  ;;  %vm1590_vm15 = vcmp.eq.f32.partialorder %v16944_v22, %v9317_v56  ;;  %v9806_v18 = vcvt.s32.f32 %v2518_v21 }
 0x1f0   :  { %v9765_v36 = vpop.xlane.xlu0 %1821  ;;  %v9821_v56 = vsel %vm1590_vm15, %v9073_v44, 2147483647 }
 0x1f1   :  { %16933 = vst [vmem:[#allocation13_spill] sm:$0xff] %v9765_v36  ;;  %16934 = vst [vmem:[#allocation53_spill] sm:$0xff] %v9770_v2  ;;  %2493 = vmin.xlane.f32.xlu1 %v9759_v63  ;;  %vm1823_vm12 = vcmp.eq.f32.partialorder %v16936_v46, %v9765_v36  ;;  %v16940_v63 = vld [vmem:[#allocation29_spill] sm:$0xff]  ;;  %v9793_v46 = vcvt.s32.f32 %v2154_v27 }
 0x1f2   :  { %v9781_v34 = vpop.xlane.xlu1 %1457  ;;  %v9783_v59 = vsel %vm1823_vm12, %v1819_v13, inf  ;;  %vm1613_vm13 = vcmp.eq.f32.partialorder %v16940_v63, %v9528_v5  ;;  %v16942_v36 = vld [vmem:[#allocation57_spill] sm:$0xff]  ;;  %v9797_v13 = vpop.f32.mrf.mxu0  ;;  %16945 = vst [vmem:[#allocation14_spill] sm:$0xff] %v9806_v18  ;;  %v16946_v5 = vld [vmem:[#allocation58_spill] sm:$0xff]  ;;  %16950 = vst [vmem:[#allocation163_spill] sm:$0xff] %v9821_v56 }
 0x1f3   :  { %16938 = vst [vmem:[#allocation159_spill] sm:$0xff] %v9781_v34  ;;  %1495 = vmin.xlane.f32.xlu0 %v9770_v2  ;;  %16941 = vst [vmem:[#allocation29_spill] sm:$0xff] %v9793_v46  ;;  %v1845_v63 = vand.u32 65535, %v16946_v5  ;;  %v9810_v27 = vsel %vm1613_vm13, %v9073_v44, 2147483647  ;;  %v16952_v5 = vld [vmem:[#allocation61_spill] sm:$0xff] }
 0x1f4   :  { %v9787_v30 = vpop.xlane.xlu0 %1863  ;;  %16947 = vst [vmem:[#allocation58_spill] sm:$0xff] %v9810_v27  ;;  %v2546_v22 = vshra.s32 %v9810_v27, 16  ;;  %v16956_v27 = vld [vmem:[#allocation63_spill] sm:$0xff] }
 0x1f5   :  { %16939 = vst [vmem:[#allocation160_spill] sm:$0xff] %v9787_v30  ;;  %1549 = vmin.xlane.f32.xlu1 %v9773_v32  ;;  %vm1865_vm14 = vcmp.eq.f32.partialorder %v16942_v36, %v9787_v30  ;;  %v7495_v32 = vpop.f32.mrf.mxu0  ;;  %v1847_v34 = vcvt.s32.f32 %v1845_v63  ;;  %v16958_v63 = vld [vmem:[#allocation15_spill] sm:$0xff] }
 0x1f6   :  { %v9799_v47 = vpop.xlane.xlu1 %1461  ;;  %v9801_v2 = vsel %vm1865_vm14, %v1861_v52, inf  ;;  %v9815_v30 = vadd.f32 %v9469_v10, %v7495_v32  ;;  %v9818_v52 = vcvt.s32.f32 %v2196_v3  ;;  %v9832_v32 = vadd.f32 %v9469_v10, %v9326_v60 }
 0x1f7   :  { %16943 = vst [vmem:[#allocation57_spill] sm:$0xff] %v9799_v47  ;;  %2157 = vmin.xlane.f32.xlu0 %v9793_v46  ;;  %v1887_v46 = vand.u32 65535, %v16952_v5  ;;  %v2224_v3 = vshra.s32 %v9821_v56, 16  ;;  %vm1592_vm3 = vcmp.eq.f32.partialorder %v16958_v63, %v9328_v58  ;;  %v9849_v60 = vcvt.s32.f32 %v2546_v22  ;;  %v16965_v22 = vld [vmem:[#allocation65_spill] sm:$0xff] }
 0x1f8   :  { %v9812_v36 = vpop.xlane.xlu0 %1451  ;;  %16948 = vst [vmem:[#allocation161_spill] sm:$0xff] %v9815_v30  ;;  %16949 = vst [vmem:[#allocation162_spill] sm:$0xff] %v9818_v52  ;;  %v9867_v63 = vsel %vm1592_vm3, %v9073_v44, 2147483647 }
 0x1f9   :  { %2521 = vmin.xlane.f32.xlu1 %v9806_v18  ;;  %16954 = vst [vmem:[#allocation165_spill] sm:$0xff] %v9832_v32  ;;  %v16955_v18 = vld [vmem:[#allocation31_spill] sm:$0xff]  ;;  %16959 = vst [vmem:[#allocation63_spill] sm:$0xff] %v9849_v60  ;;  %v9862_v58 = vcvt.s32.f32 %v2224_v3 }
 0x1fa   :  { %v9823_v21 = vpop.xlane.xlu1 %1465  ;;  %vm1615_vm1 = vcmp.eq.f32.partialorder %v16955_v18, %v9546_v55  ;;  %16966 = vst [vmem:[#allocation65_spill] sm:$0xff] %v9867_v63 }
 0x1fb   :  { %16951 = vst [vmem:[#allocation164_spill] sm:$0xff] %v9823_v21  ;;  %2199 = vmin.xlane.f32.xlu0 %v9818_v52  ;;  %v9840_v52 = vpop.f32.mrf.mxu0  ;;  %v9852_v55 = vsel %vm1615_vm1, %v9073_v44, 2147483647  ;;  %16964 = vst [vmem:[#allocation167_spill] sm:$0xff] %v9862_v58 }
 0x1fc   :  { %v9828_v47 = vpop.xlane.xlu0 %1849  ;;  %16960 = vst [vmem:[#allocation15_spill] sm:$0xff] %v9852_v55 }
 0x1fd   :  { %16953 = vst [vmem:[#allocation61_spill] sm:$0xff] %v9828_v47  ;;  %1553 = vmin.xlane.f32.xlu1 %v9815_v30  ;;  %vm1851_vm2 = vcmp.eq.f32.partialorder %v16956_v27, %v9828_v47  ;;  %v7498_v18 = vpop.f32.mrf.mxu0  ;;  %v1889_v27 = vcvt.s32.f32 %v1887_v46  ;;  %v16962_v47 = vld [vmem:[#allocation33_spill] sm:$0xff]  ;;  %v2574_v46 = vshra.s32 %v9852_v55, 16 }
 0x1fe   :  { %v9842_v5 = vpop.xlane.xlu1 %1469  ;;  %v9844_v21 = vsel %vm1851_vm2, %v1847_v34, inf  ;;  %vm1617_vm4 = vcmp.eq.f32.partialorder %v16962_v47, %v9566_v54  ;;  %v9859_v34 = vadd.f32 %v9469_v10, %v7498_v18  ;;  %v16968_v54 = vld [vmem:[#allocation66_spill] sm:$0xff] }
 0x1ff   :  { %16957 = vst [vmem:[#allocation31_spill] sm:$0xff] %v9842_v5  ;;  %1499 = vmin.xlane.f32.xlu0 %v9832_v32  ;;  %v1873_v47 = vand.u32 65535, %v16968_v54  ;;  %v9877_v18 = vsel %vm1617_vm4, %v9073_v44, 2147483647  ;;  %v16972_v54 = vld [vmem:[#allocation16_spill] sm:$0xff] }
 0x200   :  { %v9854_v30 = vpop.xlane.xlu0 %1891  ;;  %16963 = vst [vmem:[#allocation33_spill] sm:$0xff] %v9859_v34  ;;  %vm1594_vm7 = vcmp.eq.f32.partialorder %v16972_v54, %v9347_v11  ;;  %v2602_v55 = vshra.s32 %v9877_v18, 16  ;;  %v16977_v54 = vld [vmem:[#allocation71_spill] sm:$0xff] }
 0x201   :  { %16961 = vst [vmem:[#allocation166_spill] sm:$0xff] %v9854_v30  ;;  %2549 = vmin.xlane.f32.xlu1 %v9849_v60  ;;  %vm1893_vm5 = vcmp.eq.f32.partialorder %v16965_v22, %v9854_v30  ;;  %v2252_v22 = vshra.s32 %v9867_v63, 16  ;;  %v9884_v30 = vadd.f32 %v9469_v10, %v9363_v7  ;;  %v16973_v63 = vld [vmem:[#allocation69_spill] sm:$0xff] }
 0x202   :  { %v9869_v32 = vpop.xlane.xlu1 %1473  ;;  %v9871_v5 = vsel %vm1893_vm5, %v1889_v27, inf  ;;  %v16970_v27 = vld [vmem:[#allocation35_spill] sm:$0xff]  ;;  %v1915_v60 = vand.u32 65535, %v16973_v63 }
 0x203   :  { %16967 = vst [vmem:[#allocation168_spill] sm:$0xff] %v9869_v32  ;;  %2227 = vmin.xlane.f32.xlu0 %v9862_v58  ;;  %16969 = vst [vmem:[#allocation66_spill] sm:$0xff] %v9884_v30  ;;  %vm1619_vm6 = vcmp.eq.f32.partialorder %v16970_v27, %v9583_v1  ;;  %v9895_v58 = vcvt.s32.f32 %v2574_v46  ;;  %v1875_v1 = vcvt.s32.f32 %v1873_v47  ;;  %v16976_v27 = vld [vmem:[#allocation36_spill] sm:$0xff]  ;;  %v9906_v11 = vcvt.s32.f32 %v2252_v22 }
 0x204   :  { %v9879_v3 = vpop.xlane.xlu0 %1455  ;;  %v9899_v7 = vsel %vm1619_vm6, %v9073_v44, 2147483647  ;;  %vm1622_vm8 = vcmp.eq.f32.partialorder %v16976_v27, %v9615_v53  ;;  %v9911_v46 = vsel %vm1594_vm7, %v9073_v44, 2147483647  ;;  %v9919_v47 = vcvt.s32.f32 %v2602_v55  ;;  %v16984_v55 = vld [vmem:[#allocation73_spill] sm:$0xff] }
 0x205   :  { %1557 = vmin.xlane.f32.xlu1 %v9859_v34  ;;  %16974 = vst [vmem:[#allocation16_spill] sm:$0xff] %v9899_v7  ;;  %16978 = vst [vmem:[#allocation36_spill] sm:$0xff] %v9911_v46  ;;  %v9922_v53 = vsel %vm1622_vm8, %v9073_v44, 2147483647  ;;  %v1917_v27 = vcvt.s32.f32 %v1915_v60  ;;  %v16986_v60 = vld [vmem:[#allocation17_spill] sm:$0xff] }
 0x206   :  { %v9889_v32 = vpop.xlane.xlu1 %1477  ;;  %16980 = vst [vmem:[#allocation169_spill] sm:$0xff] %v9919_v47  ;;  %vm1596_vm12 = vcmp.eq.f32.partialorder %v16986_v60, %v9365_v16 }
 0x207   :  { %16971 = vst [vmem:[#allocation35_spill] sm:$0xff] %v9889_v32  ;;  %1503 = vmin.xlane.f32.xlu0 %v9884_v30  ;;  %v2630_v30 = vshra.s32 %v9899_v7, 16  ;;  %v16988_v7 = vld [vmem:[#allocation74_spill] sm:$0xff]  ;;  %v9958_v16 = vsel %vm1596_vm12, %v9073_v44, 2147483647 }
 0x208   :  { %v9901_v56 = vpop.xlane.xlu0 %1877  ;;  %16990 = vst [vmem:[#allocation17_spill] sm:$0xff] %v9958_v16 }
 0x209   :  { %16975 = vst [vmem:[#allocation69_spill] sm:$0xff] %v9901_v56  ;;  %2577 = vmin.xlane.f32.xlu1 %v9895_v58  ;;  %vm1879_vm9 = vcmp.eq.f32.partialorder %v16977_v54, %v9901_v56  ;;  %v2280_v54 = vshra.s32 %v9911_v46, 16  ;;  %v9929_v56 = vadd.f32 %v9469_v10, %v9397_v4  ;;  %v2672_v46 = vshra.s32 %v9922_v53, 16 }
 0x20a   :  { %v9913_v63 = vpop.xlane.xlu1 %1481  ;;  %v9915_v34 = vsel %vm1879_vm9, %v1875_v1, inf  ;;  %v16983_v1 = vld [vmem:[#allocation37_spill] sm:$0xff]  ;;  %v9944_v4 = vcvt.s32.f32 %v2630_v30 }
 0x20b   :  { %16979 = vst [vmem:[#allocation71_spill] sm:$0xff] %v9913_v63  ;;  %2255 = vmin.xlane.f32.xlu0 %v9906_v11  ;;  %16982 = vst [vmem:[#allocation171_spill] sm:$0xff] %v9929_v56  ;;  %vm1621_vm10 = vcmp.eq.f32.partialorder %v16983_v1, %v9606_v35  ;;  %v1901_v35 = vand.u32 65535, %v16988_v7  ;;  %v9964_v7 = vcvt.s32.f32 %v2672_v46 }
 0x20c   :  { %v9924_v22 = vpop.xlane.xlu0 %1919  ;;  %16987 = vst [vmem:[#allocation73_spill] sm:$0xff] %v9944_v4  ;;  %v9948_v1 = vsel %vm1621_vm10, %v9073_v44, 2147483647 }
 0x20d   :  { %16981 = vst [vmem:[#allocation170_spill] sm:$0xff] %v9924_v22  ;;  %2605 = vmin.xlane.f32.xlu1 %v9919_v47  ;;  %vm1921_vm11 = vcmp.eq.f32.partialorder %v16984_v55, %v9924_v22  ;;  %v16989_v55 = vld [vmem:[#allocation38_spill] sm:$0xff]  ;;  %v2658_v30 = vshra.s32 %v9948_v1, 16 }
 0x20e   :  { %v9936_v63 = vpop.xlane.xlu1 %1485  ;;  %v9938_v32 = vsel %vm1921_vm11, %v1917_v27, inf  ;;  %vm1624_vm13 = vcmp.eq.f32.partialorder %v16989_v55, %v9633_v24  ;;  %v9955_v27 = vcvt.s32.f32 %v2280_v54  ;;  %16992 = vst [vmem:[#allocation38_spill] sm:$0xff] %v9964_v7  ;;  %v1903_v54 = vcvt.s32.f32 %v1901_v35  ;;  %v16999_v35 = vld [vmem:[#allocation18_spill] sm:$0xff] }
 0x20f   :  { %16985 = vst [vmem:[#allocation37_spill] sm:$0xff] %v9936_v63  ;;  %1507 = vmin.xlane.f32.xlu0 %v9929_v56  ;;  %v16993_v56 = vld [vmem:[#allocation77_spill] sm:$0xff]  ;;  %v9968_v63 = vsel %vm1624_vm13, %v9073_v44, 2147483647  ;;  %v2308_v55 = vshra.s32 %v9958_v16, 16  ;;  %vm1598_vm1 = vcmp.eq.f32.partialorder %v16999_v35, %v9382_v15 }
 0x210   :  { %v9950_v47 = vpop.xlane.xlu0 %1459  ;;  %v1943_v22 = vand.u32 65535, %v16993_v56  ;;  %16994 = vst [vmem:[#allocation77_spill] sm:$0xff] %v9968_v63  ;;  %v2700_v16 = vshra.s32 %v9968_v63, 16  ;;  %v17005_v15 = vld [vmem:[#allocation81_spill] sm:$0xff]  ;;  %v10005_v35 = vsel %vm1598_vm1, %v9073_v44, 2147483647 }
 0x211   :  { %2633 = vmin.xlane.f32.xlu1 %v9944_v4  ;;  %v9975_v4 = vadd.f32 %v9469_v10, %v9434_v25  ;;  %v9990_v25 = vcvt.s32.f32 %v2658_v30  ;;  %17006 = vst [vmem:[#allocation81_spill] sm:$0xff] %v10005_v35 }
 0x212   :  { %v9960_v60 = vpop.xlane.xlu1 %1489 }
 0x213   :  { %16991 = vst [vmem:[#allocation74_spill] sm:$0xff] %v9960_v60  ;;  %2283 = vmin.xlane.f32.xlu0 %v9955_v27  ;;  %16996 = vst [vmem:[#allocation173_spill] sm:$0xff] %v9975_v4  ;;  %v16997_v60 = vld [vmem:[#allocation39_spill] sm:$0xff] }
 0x214   :  { %v9970_v24 = vpop.xlane.xlu0 %1905  ;;  %vm1623_vm14 = vcmp.eq.f32.partialorder %v16997_v60, %v9621_v38  ;;  %17000 = vst [vmem:[#allocation18_spill] sm:$0xff] %v9990_v25 }
 0x215   :  { %16995 = vst [vmem:[#allocation172_spill] sm:$0xff] %v9970_v24  ;;  %2675 = vmin.xlane.f32.xlu1 %v9964_v7  ;;  %vm1907_vm15 = vcmp.eq.f32.partialorder %v9277_v33, %v9970_v24  ;;  %v9993_v38 = vsel %vm1623_vm14, %v9073_v44, 2147483647  ;;  %v1945_v7 = vcvt.s32.f32 %v1943_v22  ;;  %v17003_v33 = vld [vmem:[#allocation40_spill] sm:$0xff]  ;;  %v10013_v22 = vcvt.s32.f32 %v2700_v16  ;;  %v17011_v16 = vld [vmem:[#allocation83_spill] sm:$0xff] }
 0x216   :  { %v9982_v56 = vpop.xlane.xlu1 %1493  ;;  %v9984_v46 = vsel %vm1907_vm15, %v1903_v54, inf  ;;  %17001 = vst [vmem:[#allocation174_spill] sm:$0xff] %v9993_v38  ;;  %vm1626_vm2 = vcmp.eq.f32.partialorder %v17003_v33, %v9657_v49  ;;  %v10000_v54 = vcvt.s32.f32 %v2308_v55  ;;  %v2686_v24 = vshra.s32 %v9993_v38, 16  ;;  %v17008_v49 = vld [vmem:[#allocation82_spill] sm:$0xff] }
 0x217   :  { %16998 = vst [vmem:[#allocation39_spill] sm:$0xff] %v9982_v56  ;;  %1511 = vmin.xlane.f32.xlu0 %v9975_v4  ;;  %v1929_v33 = vand.u32 65535, %v17008_v49  ;;  %v10017_v55 = vsel %vm1626_vm2, %v9073_v44, 2147483647  ;;  %v17013_v49 = vld [vmem:[#allocation19_spill] sm:$0xff] }
 0x218   :  { %v9995_v60 = vpop.xlane.xlu0 %1947  ;;  %17004 = vst [vmem:[#allocation40_spill] sm:$0xff] %v10000_v54  ;;  %vm1600_vm5 = vcmp.eq.f32.partialorder %v17013_v49, %v9399_v41  ;;  %v17020_v49 = vld [vmem:[#allocation87_spill] sm:$0xff] }
 0x219   :  { %17002 = vst [vmem:[#allocation175_spill] sm:$0xff] %v9995_v60  ;;  %2661 = vmin.xlane.f32.xlu1 %v9990_v25  ;;  %vm1949_vm3 = vcmp.eq.f32.partialorder %v17005_v15, %v9995_v60  ;;  %v2336_v15 = vshra.s32 %v10005_v35, 16  ;;  %v10024_v60 = vadd.f32 %v9469_v10, %v9481_v62  ;;  %v10036_v35 = vcvt.s32.f32 %v2686_v24  ;;  %v17015_v62 = vld [vmem:[#allocation86_spill] sm:$0xff] }
 0x21a   :  { %v10007_v30 = vpop.xlane.xlu1 %1497  ;;  %v10009_v4 = vsel %vm1949_vm3, %v1945_v7, inf  ;;  %v17010_v7 = vld [vmem:[#allocation41_spill] sm:$0xff]  ;;  %v1971_v25 = vand.u32 65535, %v17015_v62  ;;  %v10052_v24 = vsel %vm1600_vm5, %v9073_v44, 2147483647 }
 0x21b   :  { %17007 = vst [vmem:[#allocation176_spill] sm:$0xff] %v10007_v30  ;;  %2311 = vmin.xlane.f32.xlu0 %v10000_v54  ;;  %17009 = vst [vmem:[#allocation82_spill] sm:$0xff] %v10024_v60  ;;  %vm1625_vm4 = vcmp.eq.f32.partialorder %v17010_v7, %v9643_v31  ;;  %v2181_v30 = vand.u32 65535, %v17011_v16  ;;  %v2728_v54 = vshra.s32 %v10017_v55, 16  ;;  %v1931_v7 = vcvt.s32.f32 %v1929_v33  ;;  %v17018_v16 = vld [vmem:[#allocation42_spill] sm:$0xff] }
 0x21c   :  { %v10019_v56 = vpop.xlane.xlu0 %1463  ;;  %17014 = vst [vmem:[#allocation83_spill] sm:$0xff] %v10036_v35  ;;  %v10040_v63 = vsel %vm1625_vm4, %v9073_v44, 2147483647  ;;  %vm1628_vm6 = vcmp.eq.f32.partialorder %v17018_v16, %v9671_v43  ;;  %v10047_v41 = vcvt.s32.f32 %v2336_v15  ;;  %17021 = vst [vmem:[#allocation87_spill] sm:$0xff] %v10052_v24  ;;  %v17024_v15 = vld [vmem:[#allocation88_spill] sm:$0xff] }
 0x21d   :  { %2703 = vmin.xlane.f32.xlu1 %v10013_v22  ;;  %17016 = vst [vmem:[#allocation19_spill] sm:$0xff] %v10040_v63  ;;  %v2714_v33 = vshra.s32 %v10040_v63, 16  ;;  %v10060_v43 = vcvt.s32.f32 %v2728_v54  ;;  %v10065_v16 = vsel %vm1628_vm6, %v9073_v44, 2147483647  ;;  %v17028_v54 = vld [vmem:[#allocation43_spill] sm:$0xff] }
 0x21e   :  { %v10030_v38 = vpop.xlane.xlu1 %1501  ;;  %17019 = vst [vmem:[#allocation42_spill] sm:$0xff] %v10047_v41  ;;  %17025 = vst [vmem:[#allocation88_spill] sm:$0xff] %v10065_v16  ;;  %vm1627_vm9 = vcmp.eq.f32.partialorder %v17028_v54, %v9661_v40  ;;  %v17034_v40 = vld [vmem:[#allocation92_spill] sm:$0xff] }
 0x21f   :  { %17012 = vst [vmem:[#allocation41_spill] sm:$0xff] %v10030_v38  ;;  %1515 = vmin.xlane.f32.xlu0 %v10024_v60  ;;  %v2183_v38 = vcvt.s32.f32 %v2181_v30  ;;  %17023 = vst [vmem:[#allocation178_spill] sm:$0xff] %v10060_v43  ;;  %v10074_v30 = vadd.f32 %v9469_v10, %v9516_v28  ;;  %v2756_v28 = vshra.s32 %v10065_v16, 16  ;;  %v1957_v54 = vand.u32 65535, %v17034_v40 }
 0x220   :  { %v10042_v31 = vpop.xlane.xlu0 %1933 }
 0x221   :  { %17017 = vst [vmem:[#allocation86_spill] sm:$0xff] %v10042_v31  ;;  %2689 = vmin.xlane.f32.xlu1 %v10036_v35  ;;  %vm1935_vm7 = vcmp.eq.f32.partialorder %v17020_v49, %v10042_v31  ;;  %v1973_v35 = vcvt.s32.f32 %v1971_v25  ;;  %17027 = vst [vmem:[#allocation180_spill] sm:$0xff] %v10074_v30  ;;  %v17032_v25 = vld [vmem:[#allocation20_spill] sm:$0xff]  ;;  %v1959_v16 = vcvt.s32.f32 %v1957_v54  ;;  %v17047_v54 = vld [vmem:[#allocation21_spill] sm:$0xff] }
 0x222   :  { %v10054_v62 = vpop.xlane.xlu1 %2185  ;;  %v10056_v60 = vsel %vm1935_vm7, %v1931_v7, inf  ;;  %v2364_v7 = vshra.s32 %v10052_v24, 16  ;;  %vm1602_vm11 = vcmp.eq.f32.partialorder %v17032_v25, %v9423_v14  ;;  %v10090_v24 = vcvt.s32.f32 %v2714_v33 }
 0x223   :  { %17022 = vst [vmem:[#allocation177_spill] sm:$0xff] %v10054_v62  ;;  %2339 = vmin.xlane.f32.xlu0 %v10047_v41  ;;  %vm2187_vm8 = vcmp.eq.f32.partialorder %v17024_v15, %v10054_v62  ;;  %v17029_v15 = vld [vmem:[#allocation91_spill] sm:$0xff]  ;;  %v17030_v62 = vld [vmem:[#allocation89_spill] sm:$0xff]  ;;  %v10104_v14 = vsel %vm1602_vm11, %v9073_v44, 2147483647  ;;  %vm1604_vm1 = vcmp.eq.f32.partialorder %v17047_v54, %v9436_v17 }
 0x224   :  { %v10067_v49 = vpop.xlane.xlu0 %1975  ;;  %v10069_v31 = vsel %vm2187_vm8, %v2183_v38, inf  ;;  %v2209_v63 = vand.u32 65535, %v17030_v62  ;;  %17033 = vst [vmem:[#allocation91_spill] sm:$0xff] %v10090_v24  ;;  %v17036_v62 = vld [vmem:[#allocation44_spill] sm:$0xff]  ;;  %17037 = vst [vmem:[#allocation20_spill] sm:$0xff] %v10104_v14 }
 0x225   :  { %17026 = vst [vmem:[#allocation179_spill] sm:$0xff] %v10067_v49  ;;  %2731 = vmin.xlane.f32.xlu1 %v10060_v43  ;;  %vm1977_vm10 = vcmp.eq.f32.partialorder %v17029_v15, %v10067_v49  ;;  %v10094_v43 = vsel %vm1627_vm9, %v9073_v44, 2147483647  ;;  %vm1630_vm12 = vcmp.eq.f32.partialorder %v17036_v62, %v9692_v51  ;;  %v17039_v49 = vld [vmem:[#allocation95_spill] sm:$0xff]  ;;  %v17040_v51 = vld [vmem:[#allocation94_spill] sm:$0xff] }
 0x226   :  { %v10082_v41 = vpop.xlane.xlu1 %1505  ;;  %v10084_v38 = vsel %vm1977_vm10, %v1973_v35, inf  ;;  %17035 = vst [vmem:[#allocation89_spill] sm:$0xff] %v10094_v43  ;;  %v10101_v35 = vcvt.s32.f32 %v2364_v7  ;;  %v2211_v33 = vcvt.s32.f32 %v2209_v63  ;;  %v2742_v40 = vshra.s32 %v10094_v43, 16 }
 0x227   :  { %17031 = vst [vmem:[#allocation43_spill] sm:$0xff] %v10082_v41  ;;  %1519 = vmin.xlane.f32.xlu0 %v10074_v30  ;;  %v10110_v30 = vcvt.s32.f32 %v2756_v28  ;;  %v1999_v62 = vand.u32 65535, %v17040_v51  ;;  %v10116_v7 = vsel %vm1630_vm12, %v9073_v44, 2147483647  ;;  %v2392_v63 = vshra.s32 %v10104_v14, 16  ;;  %v17044_v28 = vld [vmem:[#allocation45_spill] sm:$0xff] }
 0x228   :  { %v10096_v15 = vpop.xlane.xlu0 %1467  ;;  %17041 = vst [vmem:[#allocation44_spill] sm:$0xff] %v10116_v7  ;;  %v10125_v43 = vadd.f32 %v9469_v10, %v9554_v26  ;;  %vm1629_vm14 = vcmp.eq.f32.partialorder %v17044_v28, %v9681_v20  ;;  %v2784_v26 = vshra.s32 %v10116_v7, 16  ;;  %v10141_v14 = vcvt.s32.f32 %v2742_v40 }
 0x229   :  { %2717 = vmin.xlane.f32.xlu1 %v10090_v24  ;;  %v10144_v20 = vsel %vm1629_vm14, %v9073_v44, 2147483647  ;;  %v10154_v17 = vsel %vm1604_vm1, %v9073_v44, 2147483647 }
 0x22a   :  { %v10106_v25 = vpop.xlane.xlu1 %2213  ;;  %17043 = vst [vmem:[#allocation94_spill] sm:$0xff] %v10125_v43  ;;  %v2420_v7 = vshra.s32 %v10154_v17, 16 }
 0x22b   :  { %17038 = vst [vmem:[#allocation92_spill] sm:$0xff] %v10106_v25  ;;  %2367 = vmin.xlane.f32.xlu0 %v10101_v35  ;;  %vm2215_vm13 = vcmp.eq.f32.partialorder %v17039_v49, %v10106_v25  ;;  %v17045_v49 = vld [vmem:[#allocation96_spill] sm:$0xff] }
 0x22c   :  { %v10118_v41 = vpop.xlane.xlu0 %1961  ;;  %v10120_v24 = vsel %vm2215_vm13, %v2211_v33, inf  ;;  %v2237_v51 = vand.u32 65535, %v17045_v49  ;;  %17048 = vst [vmem:[#allocation96_spill] sm:$0xff] %v10141_v14  ;;  %v10149_v49 = vcvt.s32.f32 %v2392_v63  ;;  %v17054_v63 = vld [vmem:[#allocation100_spill] sm:$0xff] }
 0x22d   :  { %17042 = vst [vmem:[#allocation95_spill] sm:$0xff] %v10118_v41  ;;  %2759 = vmin.xlane.f32.xlu1 %v10110_v30  ;;  %vm1963_vm15 = vcmp.eq.f32.partialorder %v9380_v6, %v10118_v41  ;;  %v2001_v6 = vcvt.s32.f32 %v1999_v62  ;;  %v2770_v41 = vshra.s32 %v10144_v20, 16  ;;  %v10162_v62 = vcvt.s32.f32 %v2784_v26  ;;  %v4008_v26 = vld [vmem:[%s16083_s1 + $0x78] sm:$0xff] }
 0x22e   :  { %v10133_v25 = vpop.xlane.xlu1 %1509  ;;  %v10135_v33 = vsel %vm1963_vm15, %v1959_v16, inf  ;;  %v17050_v16 = vld [vmem:[#allocation98_spill] sm:$0xff]  ;;  %v2239_v40 = vcvt.s32.f32 %v2237_v51  ;;  %v10174_v51 = vadd.f32 %v9469_v10, %v9596_v42  ;;  %7499 = vmatprep.subr.mxu1 %v4008_v26 }
 0x22f   :  { %17046 = vst [vmem:[#allocation45_spill] sm:$0xff] %v10133_v25  ;;  %1523 = vmin.xlane.f32.xlu0 %v10125_v43  ;;  %17051 = vst [vmem:[#allocation98_spill] sm:$0xff] %v10154_v17  ;;  %v17055_v25 = vld [vmem:[#allocation99_spill] sm:$0xff]  ;;  %v10188_v42 = vcvt.s32.f32 %v2770_v41  ;;  %7500 = vmatpush3.msra.mxu1 %v4008_v26  ;;  %v4006_v41 = vld [vmem:[%s16083_s1 + $0x68] sm:$0xff] }
 0x230   :  { %v10146_v28 = vpop.xlane.xlu0 %2003  ;;  %17053 = vst [vmem:[#allocation182_spill] sm:$0xff] %v10162_v62  ;;  %17056 = vst [vmem:[#allocation100_spill] sm:$0xff] %v10174_v51 }
 0x231   :  { %17049 = vst [vmem:[#allocation21_spill] sm:$0xff] %v10146_v28  ;;  %2745 = vmin.xlane.f32.xlu1 %v10141_v14  ;;  %vm2005_vm2 = vcmp.eq.f32.partialorder %v17050_v16, %v10146_v28  ;;  %v1985_v14 = vand.u32 65535, %v17055_v25  ;;  %v17058_v25 = vld [vmem:[#allocation101_spill] sm:$0xff] }
 0x232   :  { %v10156_v54 = vpop.xlane.xlu1 %2241  ;;  %v10158_v43 = vsel %vm2005_vm2, %v2001_v6, inf  ;;  %v17057_v6 = vld [vmem:[#allocation46_spill] sm:$0xff] }
 0x233   :  { %17052 = vst [vmem:[#allocation181_spill] sm:$0xff] %v10156_v54  ;;  %2395 = vmin.xlane.f32.xlu0 %v10149_v49  ;;  %vm2243_vm3 = vcmp.eq.f32.partialorder %v17054_v63, %v10156_v54  ;;  %vm1632_vm4 = vcmp.eq.f32.partialorder %v17057_v6, %v9714_v0  ;;  %v2265_v63 = vand.u32 65535, %v17058_v25  ;;  %17061 = vst [vmem:[#allocation46_spill] sm:$0xff] %v10188_v42  ;;  %v4007_v0 = vld [vmem:[%s16083_s1 + $0x70] sm:$0xff]  ;;  %v17062_v6 = vld [vmem:[#allocation104_spill] sm:$0xff] }
 0x234   :  { %v10167_v16 = vpop.xlane.xlu0 %1471  ;;  %v10169_v28 = vsel %vm2243_vm3, %v2239_v40, inf  ;;  %v17060_v40 = vld [vmem:[#allocation22_spill] sm:$0xff]  ;;  %v2027_v17 = vand.u32 65535, %v17062_v6  ;;  %7501 = vmatprep.subr.mxu1 %v4007_v0 }
 0x235   :  { %2787 = vmin.xlane.f32.xlu1 %v10162_v62  ;;  %vm1606_vm5 = vcmp.eq.f32.partialorder %v17060_v40, %v9457_v23  ;;  %v10195_v62 = vsel %vm1632_vm4, %v9073_v44, 2147483647  ;;  %v10200_v23 = vcvt.s32.f32 %v2420_v7  ;;  %7502 = vmatpush3.msra.mxu1 %v4007_v0  ;;  %v2267_v6 = vcvt.s32.f32 %v2265_v63  ;;  %v4005_v0 = vld [vmem:[%s16083_s1 + $0x60] sm:$0xff] }
 0x236   :  { %v10183_v54 = vpop.xlane.xlu1 %1513  ;;  %17063 = vst [vmem:[#allocation101_spill] sm:$0xff] %v10195_v62  ;;  %v10208_v26 = vsel %vm1606_vm5, %v9073_v44, 2147483647  ;;  %7503 = vmatprep.subr.mxu1 %v4006_v41  ;;  %v2812_v7 = vshra.s32 %v10195_v62, 16  ;;  %v2029_v63 = vcvt.s32.f32 %v2027_v17  ;;  %v10228_v62 = vadd.f32 %v9469_v10, %v9631_v57  ;;  %v4004_v17 = vld [vmem:[%s16083_s1 + $0x58] sm:$0xff]  ;;  %v17075_v57 = vld [vmem:[#allocation112_spill] sm:$0xff] }
 0x237   :  { %17059 = vst [vmem:[#allocation99_spill] sm:$0xff] %v10183_v54  ;;  %1527 = vmin.xlane.f32.xlu0 %v10174_v51  ;;  %v1987_v54 = vcvt.s32.f32 %v1985_v14  ;;  %17065 = vst [vmem:[#allocation104_spill] sm:$0xff] %v10200_v23  ;;  %7504 = vmatpush3.msra.mxu1 %v4006_v41  ;;  %v17072_v41 = vld [vmem:[#allocation108_spill] sm:$0xff] }
 0x238   :  { %v10197_v25 = vpop.xlane.xlu0 %1989  ;;  %17066 = vst [vmem:[#allocation183_spill] sm:$0xff] %v10208_v26  ;;  %7505 = vmatprep.subr.mxu1 %v4005_v0  ;;  %17070 = vst [vmem:[#allocation185_spill] sm:$0xff] %v10228_v62 }
 0x239   :  { %17064 = vst [vmem:[#allocation22_spill] sm:$0xff] %v10197_v25  ;;  %2773 = vmin.xlane.f32.xlu1 %v10188_v42  ;;  %vm1991_vm6 = vcmp.eq.f32.partialorder %v9432_v39, %v10197_v25  ;;  %v17068_v39 = vld [vmem:[#allocation105_spill] sm:$0xff]  ;;  %7506 = vmatpush3.msra.mxu1 %v4005_v0  ;;  %v17076_v42 = vld [vmem:[#allocation23_spill] sm:$0xff] }
 0x23a   :  { %v10210_v40 = vpop.xlane.xlu1 %2269  ;;  %v10212_v14 = vsel %vm1991_vm6, %v1987_v54, inf  ;;  %v2448_v54 = vshra.s32 %v10208_v26, 16  ;;  %7507 = vmatprep.subr.mxu1 %v4004_v17  ;;  %vm1608_vm10 = vcmp.eq.f32.partialorder %v17076_v42, %v17075_v57  ;;  %v4002_v42 = vld [vmem:[%s16083_s1 + $0x48] sm:$0xff] }
 0x23b   :  { %17067 = vst [vmem:[#allocation184_spill] sm:$0xff] %v10210_v40  ;;  %2423 = vmin.xlane.f32.xlu0 %v10200_v23  ;;  %vm2271_vm7 = vcmp.eq.f32.partialorder %v17068_v39, %v10210_v40  ;;  %v17071_v23 = vld [vmem:[#allocation47_spill] sm:$0xff]  ;;  %7508 = vmatpush3.msra.mxu1 %v4004_v17 }
 0x23c   :  { %v10221_v51 = vpop.xlane.xlu0 %2031  ;;  %v10223_v25 = vsel %vm2271_vm7, %v2267_v6, inf  ;;  %vm1631_vm8 = vcmp.eq.f32.partialorder %v17071_v23, %v9699_v8  ;;  %v17073_v6 = vld [vmem:[#allocation106_spill] sm:$0xff] }
 0x23d   :  { %17069 = vst [vmem:[#allocation105_spill] sm:$0xff] %v10221_v51  ;;  %1839 = vmin.xlane.f32.xlu1 %v9735_v37  ;;  %vm2033_vm9 = vcmp.eq.f32.partialorder %v17072_v41, %v10221_v51  ;;  %v2293_v39 = vand.u32 65535, %v17073_v6  ;;  %v10246_v37 = vcvt.s32.f32 %v2812_v7  ;;  %v4003_v8 = vld [vmem:[%s16083_s1 + $0x50] sm:$0xff]  ;;  %v10252_v23 = vsel %vm1631_vm8, %v9073_v44, 2147483647  ;;  %v17081_v51 = vld [vmem:[#allocation48_spill] sm:$0xff] }
 0x23e   :  { %v10239_v40 = vpop.xlane.xlu1 %1517  ;;  %v10241_v26 = vsel %vm2033_vm9, %v2029_v63, inf  ;;  %17077 = vst [vmem:[#allocation108_spill] sm:$0xff] %v10252_v23  ;;  %7509 = vmatprep.subr.mxu1 %v4003_v8  ;;  %v10257_v63 = vcvt.s32.f32 %v2448_v54  ;;  %v10263_v7 = vsel %vm1608_vm10, %v9073_v44, 2147483647  ;;  %v2798_v6 = vshra.s32 %v10252_v23, 16  ;;  %v4001_v54 = vld [vmem:[%s16083_s1 + $0x40] sm:$0xff] }
 0x23f   :  { %17074 = vst [vmem:[#allocation47_spill] sm:$0xff] %v10239_v40  ;;  %1531 = vmin.xlane.f32.xlu0 %v10228_v62  ;;  %7510 = vmatpush3.msra.mxu1 %v4003_v8  ;;  %v2295_v17 = vcvt.s32.f32 %v2293_v39  ;;  %v2476_v39 = vshra.s32 %v10263_v7, 16  ;;  %v10281_v62 = vadd.f32 %v9469_v10, %v9669_v48  ;;  %vm1634_vm12 = vcmp.eq.f32.partialorder %v17081_v51, %v9733_v61  ;;  %v17084_v40 = vld [vmem:[#allocation24_spill] sm:$0xff]  ;;  %v3999_v61 = vld [vmem:[%s16083_s1 + $0x30] sm:$0xff] }
 0x240   :  { %v10254_v0 = vpop.xlane.xlu0 %1475  ;;  %7511 = vmatprep.subr.mxu1 %v4002_v42  ;;  %v10295_v48 = vcvt.s32.f32 %v2798_v6 }
 0x241   :  { %2815 = vmin.xlane.f32.xlu1 %v10246_v37  ;;  %7512 = vmatpush3.msra.mxu1 %v4002_v42  ;;  %17080 = vst [vmem:[#allocation23_spill] sm:$0xff] %v10281_v62  ;;  %v2321_v42 = vand.u32 65535, %v9489_v19  ;;  %v10306_v19 = vcvt.s32.f32 %v2476_v39  ;;  %v3997_v39 = vld [vmem:[%s16083_s1 + $0x20] sm:$0xff] }
 0x242   :  { %v10265_v41 = vpop.xlane.xlu1 %2297  ;;  %7513 = vmatprep.subr.mxu1 %v4001_v54 }
 0x243   :  { %17078 = vst [vmem:[#allocation106_spill] sm:$0xff] %v10265_v41  ;;  %2451 = vmin.xlane.f32.xlu0 %v10257_v63  ;;  %vm2299_vm11 = vcmp.eq.f32.partialorder %v9486_v12, %v10265_v41  ;;  %7514 = vmatpush3.msra.mxu1 %v4001_v54  ;;  %v4000_v12 = vld [vmem:[%s16083_s1 + $0x38] sm:$0xff]  ;;  %17088 = vst [vmem:[#allocation187_spill] sm:$0xff] %v10306_v19  ;;  %v2323_v54 = vcvt.s32.f32 %v2321_v42 }
 0x244   :  { %v10274_v57 = vpop.xlane.xlu0 %2017  ;;  %v10276_v8 = vsel %vm2299_vm11, %v2295_v17, inf  ;;  %7515 = vmatprep.subr.mxu1 %v4000_v12  ;;  %v17083_v41 = vld [vmem:[#allocation115_spill] sm:$0xff] }
 0x245   :  { %17079 = vst [vmem:[#allocation112_spill] sm:$0xff] %v10274_v57  ;;  %1825 = vmin.xlane.f32.xlu1 %v9783_v59  ;;  %vm1610_vm13 = vcmp.eq.f32.partialorder %v17084_v40, %v17083_v41  ;;  %17085 = vst [vmem:[#allocation115_spill] sm:$0xff] %v10295_v48  ;;  %7516 = vmatpush3.msra.mxu1 %v4000_v12  ;;  %v10301_v59 = vsel %vm1634_vm12, %v9073_v44, 2147483647  ;;  %v3998_v40 = vld [vmem:[%s16083_s1 + $0x28] sm:$0xff] }
 0x246   :  { %v10290_v17 = vpop.xlane.xlu1 %1521  ;;  %17086 = vst [vmem:[#allocation24_spill] sm:$0xff] %v10301_v59  ;;  %7517 = vmatprep.subr.mxu1 %v3999_v61  ;;  %v10312_v41 = vsel %vm1610_vm13, %v9073_v44, 2147483647  ;;  %v2840_v12 = vshra.s32 %v10301_v59, 16  ;;  %v17092_v59 = vld [vmem:[#allocation51_spill] sm:$0xff] }
 0x247   :  { %17082 = vst [vmem:[#allocation48_spill] sm:$0xff] %v10290_v17  ;;  %1535 = vmin.xlane.f32.xlu0 %v10281_v62  ;;  %7518 = vmatpush3.msra.mxu1 %v3999_v61  ;;  %17089 = vst [vmem:[#allocation188_spill] sm:$0xff] %v10312_v41  ;;  %v2504_v42 = vshra.s32 %v10312_v41, 16  ;;  %v10330_v17 = vadd.f32 %v9469_v10, %v9712_v9  ;;  %vm1633_vm15 = vcmp.eq.f32.partialorder %v17092_v59, %v9742_v45  ;;  %v17095_v10 = vld [vmem:[#allocation118_spill] sm:$0xff] }
 0x248   :  { %v10303_v51 = vpop.xlane.xlu0 %2059  ;;  %7519 = vmatprep.subr.mxu1 %v3998_v40  ;;  %v17096_v9 = vld [vmem:[#allocation26_spill] sm:$0xff]  ;;  %v10345_v45 = vcvt.s32.f32 %v2840_v12  ;;  %v10351_v59 = vsel %vm1633_vm15, %v9073_v44, 2147483647  ;;  %v3994_v12 = vld [vmem:[%s16083_s1 + $0x8] sm:$0xff] }
 0x249   :  { %17087 = vst [vmem:[#allocation186_spill] sm:$0xff] %v10303_v51  ;;  %2801 = vmin.xlane.f32.xlu1 %v10295_v48  ;;  %7520 = vmatpush3.msra.mxu1 %v3998_v40  ;;  %17091 = vst [vmem:[#allocation190_spill] sm:$0xff] %v10330_v17  ;;  %v16328_v40 = vmov 0.0   ;;  %vm1612_vm1 = vcmp.eq.f32.partialorder %v17096_v9, %v17095_v10 }
 0x24a   :  { %v10314_v6 = vpop.xlane.xlu1 %2325  ;;  %7521 = vmatprep.subr.mxu1 %v3997_v39  ;;  %69 = vst [vmem:[#allocation6] sm:$0x1] %v16328_v40  ;;  %17098 = vst [vmem:[#allocation118_spill] sm:$0xff] %v10351_v59  ;;  %v2826_v40 = vshra.s32 %v10351_v59, 16  ;;  %v10381_v59 = vld [vmem:[%s16085_s3] ss:$0 sm:$0xff] }
 0x24b   :  { %17090 = vst [vmem:[#allocation189_spill] sm:$0xff] %v10314_v6  ;;  %2479 = vmin.xlane.f32.xlu0 %v10306_v19  ;;  %vm2327_vm14 = vcmp.eq.f32.partialorder %v9523_v29, %v10314_v6  ;;  %7522 = vmatpush3.msra.mxu1 %v3997_v39  ;;  %v3996_v29 = vld [vmem:[%s16083_s1 + $0x18] sm:$0xff]  ;;  %v17110_v19 = vld [vmem:[#allocation28_spill] sm:$0xff] }
 0x24c   :  { %v10323_v61 = vpop.xlane.xlu0 %1479  ;;  %v10325_v62 = vsel %vm2327_vm14, %v2323_v54, inf  ;;  %v17093_v54 = vld [vmem:[#allocation119_spill] sm:$0xff]  ;;  %7523 = vmatprep.subr.mxu1 %v3996_v29  ;;  %v10396_v48 = vcvt.s32.f32 %v2826_v40 }
 0x24d   :  { %1867 = vmin.xlane.f32.xlu1 %v9801_v2  ;;  %v2349_v6 = vand.u32 65535, %v17093_v54  ;;  %17097 = vst [vmem:[#allocation119_spill] sm:$0xff] %v10345_v45  ;;  %7524 = vmatpush3.msra.mxu1 %v3996_v29  ;;  %v3995_v2 = vld [vmem:[%s16083_s1 + $0x10] sm:$0xff]  ;;  %v10356_v54 = vcvt.s32.f32 %v2504_v42  ;;  %v10362_v29 = vsel %vm1612_vm1, %v9073_v44, 2147483647  ;;  %v3993_v42 = vld [vmem:[%s16083_s1] sm:$0xff] }
 0x24e   :  { %v10340_v41 = vpop.xlane.xlu1 %1525  ;;  %7525 = vmatprep.subr.mxu1 %v3995_v2  ;;  %17101 = vst [vmem:[#allocation192_spill] sm:$0xff] %v10362_v29  ;;  %v17117_v40 = vld [vmem:[#allocation135_spill] sm:$0xff] }
 0x24f   :  { %17094 = vst [vmem:[#allocation51_spill] sm:$0xff] %v10340_v41  ;;  %1539 = vmin.xlane.f32.xlu0 %v10330_v17  ;;  %17100 = vst [vmem:[#allocation191_spill] sm:$0xff] %v10356_v54  ;;  %7526 = vmatpush3.msra.mxu1 %v3995_v2  ;;  %v2351_v9 = vcvt.s32.f32 %v2349_v6  ;;  %v17103_v17 = vld [vmem:[#allocation126_spill] sm:$0xff]  ;;  %v2532_v6 = vshra.s32 %v10362_v29, 16  ;;  %v17109_v29 = vld [vmem:[#allocation123_spill] sm:$0xff] }
 0x250   :  { %v10353_v39 = vpop.xlane.xlu0 %2045  ;;  %7527 = vmatprep.subr.mxu1 %v3994_v12  ;;  %vm1614_vm4 = vcmp.eq.f32.partialorder %v17110_v19, %v17109_v29 }
 0x251   :  { %17099 = vst [vmem:[#allocation26_spill] sm:$0xff] %v10353_v39  ;;  %2843 = vmin.xlane.f32.xlu1 %v10345_v45  ;;  %7528 = vmatpush3.msra.mxu1 %v3994_v12  ;;  %v17105_v12 = vld [vmem:[#allocation12_spill] sm:$0xff] }
 0x252   :  { %v10364_v10 = vpop.xlane.xlu1 %2353  ;;  %7529 = vmatprep.subr.mxu1 %v3993_v42 }
 0x253   :  { %17102 = vst [vmem:[#allocation193_spill] sm:$0xff] %v10364_v10  ;;  %2507 = vmin.xlane.f32.xlu0 %v10356_v54  ;;  %vm2355_vm2 = vcmp.eq.f32.partialorder %v17103_v17, %v10364_v10  ;;  %v10385_v17 = vadd.f32 %v10381_v59, %v9752_v50  ;;  %v17106_v10 = vld [vmem:[#allocation52_spill] sm:$0xff]  ;;  %7530 = vmatpush3.msra.mxu1 %v3993_v42 }
 0x254   :  { %v10373_v2 = vpop.xlane.xlu0 %2087  ;;  %v10375_v41 = vsel %vm2355_vm2, %v2351_v9, inf  ;;  %vm1636_vm3 = vcmp.eq.f32.partialorder %v17106_v10, %v17105_v12  ;;  %v17107_v9 = vld [vmem:[#allocation127_spill] sm:$0xff]  ;;  %17111 = vst [vmem:[#allocation52_spill] sm:$0xff] %v10396_v48  ;;  %v10407_v10 = vsel %vm1614_vm4, %v9073_v44, 2147483647 }
 0x255   :  { %17104 = vst [vmem:[#allocation126_spill] sm:$0xff] %v10385_v17  ;;  %1853 = vmin.xlane.f32.xlu1 %v9844_v21  ;;  %v2377_v54 = vand.u32 65535, %v17107_v9  ;;  %v10399_v50 = vsel %vm1636_vm3, %v9073_v44, 2147483647  ;;  %v10404_v21 = vcvt.s32.f32 %v2532_v6  ;;  %17115 = vst [vmem:[#allocation194_spill] sm:$0xff] %v10407_v10  ;;  %v2560_v6 = vshra.s32 %v10407_v10, 16 }
 0x256   :  { %v10391_v45 = vpop.xlane.xlu1 %1529  ;;  %17112 = vst [vmem:[#allocation127_spill] sm:$0xff] %v10399_v50  ;;  %v2868_v19 = vshra.s32 %v10399_v50, 16 }
 0x257   :  { %17108 = vst [vmem:[#allocation12_spill] sm:$0xff] %v10391_v45  ;;  %1543 = vmin.xlane.f32.xlu0 %v10385_v17  ;;  %17114 = vst [vmem:[#allocation28_spill] sm:$0xff] %v10404_v21  ;;  %v2379_v12 = vcvt.s32.f32 %v2377_v54  ;;  %v10422_v17 = vadd.f32 %v10381_v59, %v9797_v13  ;;  %v17119_v45 = vld [vmem:[#allocation59_spill] sm:$0xff]  ;;  %v17120_v54 = vld [vmem:[#allocation136_spill] sm:$0xff] }
 0x258   :  { %v10401_v23 = vpop.xlane.xlu0 %1483  ;;  %vm1635_vm6 = vcmp.eq.f32.partialorder %v17119_v45, %v9812_v36  ;;  %v2405_v50 = vand.u32 65535, %v17120_v54  ;;  %v10441_v36 = vcvt.s32.f32 %v2560_v6 }
 0x259   :  { %17113 = vst [vmem:[#allocation123_spill] sm:$0xff] %v10401_v23  ;;  %2829 = vmin.xlane.f32.xlu1 %v10396_v48  ;;  %17118 = vst [vmem:[#allocation135_spill] sm:$0xff] %v10422_v17  ;;  %v10436_v10 = vsel %vm1635_vm6, %v9073_v44, 2147483647  ;;  %v10461_v48 = vadd.f32 %v10381_v59, %v9840_v52 }
 0x25a   :  { %v10409_v42 = vpop.xlane.xlu1 %2381  ;;  %17127 = vst [vmem:[#allocation196_spill] sm:$0xff] %v10441_v36  ;;  %v2407_v54 = vcvt.s32.f32 %v2405_v50  ;;  %v17135_v50 = vld [vmem:[#allocation142_spill] sm:$0xff] }
 0x25b   :  { %17116 = vst [vmem:[#allocation195_spill] sm:$0xff] %v10409_v42  ;;  %2535 = vmin.xlane.f32.xlu0 %v10404_v21  ;;  %vm2383_vm5 = vcmp.eq.f32.partialorder %v17117_v40, %v10409_v42  ;;  %v17122_v40 = vld [vmem:[#allocation125_spill] sm:$0xff]  ;;  %v17123_v42 = vld [vmem:[#allocation30_spill] sm:$0xff] }
 0x25c   :  { %v10415_v29 = vpop.xlane.xlu0 %2073  ;;  %v10417_v9 = vsel %vm2383_vm5, %v2379_v12, inf  ;;  %vm1616_vm7 = vcmp.eq.f32.partialorder %v17123_v42, %v17122_v40  ;;  %v10433_v12 = vcvt.s32.f32 %v2868_v19  ;;  %17125 = vst [vmem:[#allocation125_spill] sm:$0xff] %v10436_v10  ;;  %v2854_v42 = vshra.s32 %v10436_v10, 16  ;;  %v17130_v19 = vld [vmem:[#allocation141_spill] sm:$0xff] }
 0x25d   :  { %1895 = vmin.xlane.f32.xlu1 %v9871_v5  ;;  %v10444_v5 = vsel %vm1616_vm7, %v9073_v44, 2147483647  ;;  %v2433_v10 = vand.u32 65535, %v17135_v50 }
 0x25e   :  { %v10428_v21 = vpop.xlane.xlu1 %1533  ;;  %17124 = vst [vmem:[#allocation136_spill] sm:$0xff] %v10433_v12  ;;  %17128 = vst [vmem:[#allocation197_spill] sm:$0xff] %v10444_v5  ;;  %v2588_v6 = vshra.s32 %v10444_v5, 16 }
 0x25f   :  { %17121 = vst [vmem:[#allocation59_spill] sm:$0xff] %v10428_v21  ;;  %1547 = vmin.xlane.f32.xlu0 %v10422_v17  ;;  %v17132_v21 = vld [vmem:[#allocation159_spill] sm:$0xff] }
 0x260   :  { %v10438_v13 = vpop.xlane.xlu0 %2115  ;;  %17134 = vst [vmem:[#allocation159_spill] sm:$0xff] %v10461_v48  ;;  %v10478_v52 = vcvt.s32.f32 %v2588_v6 }
 0x261   :  { %17126 = vst [vmem:[#allocation30_spill] sm:$0xff] %v10438_v13  ;;  %2871 = vmin.xlane.f32.xlu1 %v10433_v12  ;;  %v17133_v12 = vld [vmem:[#allocation54_spill] sm:$0xff] }
 0x262   :  { %v10446_v45 = vpop.xlane.xlu1 %2409  ;;  %vm1638_vm9 = vcmp.eq.f32.partialorder %v17133_v12, %v17132_v21  ;;  %17142 = vst [vmem:[#allocation199_spill] sm:$0xff] %v10478_v52  ;;  %v1294_v12 = vpop.f32.mrf.mxu0 }
 0x263   :  { %17129 = vst [vmem:[#allocation198_spill] sm:$0xff] %v10446_v45  ;;  %2563 = vmin.xlane.f32.xlu0 %v10441_v36  ;;  %vm2411_vm8 = vcmp.eq.f32.partialorder %v17130_v19, %v10446_v45  ;;  %v17137_v19 = vld [vmem:[#allocation131_spill] sm:$0xff]  ;;  %v17138_v45 = vld [vmem:[#allocation32_spill] sm:$0xff]  ;;  %v10473_v5 = vsel %vm1638_vm9, %v9073_v44, 2147483647  ;;  %v10497_v23 = vadd.f32 %v10381_v59, %v1294_v12 }
 0x264   :  { %v10452_v40 = vpop.xlane.xlu0 %1487  ;;  %v10454_v17 = vsel %vm2411_vm8, %v2407_v54, inf  ;;  %vm1618_vm10 = vcmp.eq.f32.partialorder %v17138_v45, %v17137_v19  ;;  %v10470_v54 = vcvt.s32.f32 %v2854_v42  ;;  %17140 = vst [vmem:[#allocation131_spill] sm:$0xff] %v10473_v5  ;;  %v2435_v45 = vcvt.s32.f32 %v2433_v10  ;;  %v17145_v19 = vld [vmem:[#allocation134_spill] sm:$0xff]  ;;  %v17150_v10 = vld [vmem:[#allocation67_spill] sm:$0xff] }
 0x265   :  { %17131 = vst [vmem:[#allocation141_spill] sm:$0xff] %v10452_v40  ;;  %1881 = vmin.xlane.f32.xlu1 %v9915_v34  ;;  %v10481_v34 = vsel %vm1618_vm10, %v9073_v44, 2147483647  ;;  %v2896_v42 = vshra.s32 %v10473_v5, 16  ;;  %vm1637_vm13 = vcmp.eq.f32.partialorder %v17150_v10, %v9879_v3 }
 0x266   :  { %v10465_v36 = vpop.xlane.xlu1 %1537  ;;  %17139 = vst [vmem:[#allocation142_spill] sm:$0xff] %v10470_v54  ;;  %17143 = vst [vmem:[#allocation200_spill] sm:$0xff] %v10481_v34  ;;  %v2616_v40 = vshra.s32 %v10481_v34, 16 }
 0x267   :  { %17136 = vst [vmem:[#allocation54_spill] sm:$0xff] %v10465_v36  ;;  %1551 = vmin.xlane.f32.xlu0 %v10461_v48  ;;  %v17146_v48 = vld [vmem:[#allocation34_spill] sm:$0xff]  ;;  %v17147_v36 = vld [vmem:[#allocation147_spill] sm:$0xff] }
 0x268   :  { %v10475_v21 = vpop.xlane.xlu0 %2101  ;;  %vm1620_vm11 = vcmp.eq.f32.partialorder %v17146_v48, %v17145_v19  ;;  %17149 = vst [vmem:[#allocation34_spill] sm:$0xff] %v10497_v23  ;;  %v17151_v48 = vld [vmem:[#allocation148_spill] sm:$0xff] }
 0x269   :  { %17141 = vst [vmem:[#allocation32_spill] sm:$0xff] %v10475_v21  ;;  %2857 = vmin.xlane.f32.xlu1 %v10470_v54  ;;  %v2461_v19 = vand.u32 65535, %v17151_v48  ;;  %v10504_v5 = vsel %vm1620_vm11, %v9073_v44, 2147483647 }
 0x26a   :  { %v10483_v50 = vpop.xlane.xlu1 %2437  ;;  %17152 = vst [vmem:[#allocation147_spill] sm:$0xff] %v10504_v5  ;;  %v2644_v3 = vshra.s32 %v10504_v5, 16  ;;  %v17162_v5 = vld [vmem:[#allocation57_spill] sm:$0xff] }
 0x26b   :  { %17144 = vst [vmem:[#allocation201_spill] sm:$0xff] %v10483_v50  ;;  %2591 = vmin.xlane.f32.xlu0 %v10478_v52  ;;  %vm2439_vm12 = vcmp.eq.f32.partialorder %v17147_v36, %v10483_v50  ;;  %v10512_v50 = vsel %vm1637_vm13, %v9073_v44, 2147483647  ;;  %v2463_v10 = vcvt.s32.f32 %v2461_v19  ;;  %v17165_v19 = vld [vmem:[#allocation154_spill] sm:$0xff] }
 0x26c   :  { %v10491_v54 = vpop.xlane.xlu0 %2143  ;;  %v10493_v6 = vsel %vm2439_vm12, %v2435_v45, inf  ;;  %v10509_v45 = vcvt.s32.f32 %v2896_v42  ;;  %17155 = vst [vmem:[#allocation202_spill] sm:$0xff] %v10512_v50  ;;  %v2882_v48 = vshra.s32 %v10512_v50, 16  ;;  %v17159_v42 = vld [vmem:[#allocation153_spill] sm:$0xff]  ;;  %v2489_v50 = vand.u32 65535, %v17165_v19 }
 0x26d   :  { %17148 = vst [vmem:[#allocation134_spill] sm:$0xff] %v10491_v54  ;;  %1923 = vmin.xlane.f32.xlu1 %v9938_v32  ;;  %v10518_v32 = vcvt.s32.f32 %v2616_v40  ;;  %v10534_v40 = vcvt.s32.f32 %v2644_v3 }
 0x26e   :  { %v10506_v36 = vpop.xlane.xlu1 %1541  ;;  %17154 = vst [vmem:[#allocation148_spill] sm:$0xff] %v10509_v45  ;;  %v2491_v3 = vcvt.s32.f32 %v2489_v50 }
 0x26f   :  { %17153 = vst [vmem:[#allocation67_spill] sm:$0xff] %v10506_v36  ;;  %1555 = vmin.xlane.f32.xlu0 %v10497_v23  ;;  %17157 = vst [vmem:[#allocation204_spill] sm:$0xff] %v10518_v32  ;;  %v17160_v23 = vld [vmem:[#allocation25_spill] sm:$0xff] }
 0x270   :  { %v10514_v59 = vpop.xlane.xlu0 %1491  ;;  %v2167_v36 = vand.u32 65535, %v17160_v23  ;;  %17164 = vst [vmem:[#allocation25_spill] sm:$0xff] %v10534_v40 }
 0x271   :  { %17156 = vst [vmem:[#allocation203_spill] sm:$0xff] %v10514_v59  ;;  %2899 = vmin.xlane.f32.xlu1 %v10509_v45  ;;  %v17163_v45 = vld [vmem:[#allocation56_spill] sm:$0xff] }
 0x272   :  { %v10520_v12 = vpop.xlane.xlu1 %2465  ;;  %vm1640_vm15 = vcmp.eq.f32.partialorder %v17163_v45, %v17162_v5 }
 0x273   :  { %17158 = vst [vmem:[#allocation205_spill] sm:$0xff] %v10520_v12  ;;  %2619 = vmin.xlane.f32.xlu0 %v10518_v32  ;;  %vm2467_vm14 = vcmp.eq.f32.partialorder %v17159_v42, %v10520_v12  ;;  %v10540_v42 = vcvt.s32.f32 %v2882_v48  ;;  %v10543_v23 = vsel %vm1640_vm15, %v9073_v44, 2147483647  ;;  %v2169_v12 = vcvt.s32.f32 %v2167_v36  ;;  %v17172_v48 = vld [vmem:[#allocation50_spill] sm:$0xff]  ;;  %v17174_v36 = vld [vmem:[#allocation75_spill] sm:$0xff] }
 0x274   :  { %v10527_v34 = vpop.xlane.xlu0 %2129  ;;  %v10529_v52 = vsel %vm2467_vm14, %v2463_v10, inf  ;;  %17168 = vst [vmem:[#allocation154_spill] sm:$0xff] %v10543_v23  ;;  %v2924_v19 = vshra.s32 %v10543_v23, 16  ;;  %vm1639_vm3 = vcmp.eq.f32.partialorder %v17174_v36, %v9950_v47  ;;  %v17182_v36 = vld [vmem:[#allocation14_spill] sm:$0xff] }
 0x275   :  { %17161 = vst [vmem:[#allocation153_spill] sm:$0xff] %v10527_v34  ;;  %1909 = vmin.xlane.f32.xlu1 %v9984_v46  ;;  %17167 = vst [vmem:[#allocation56_spill] sm:$0xff] %v10540_v42  ;;  %v17170_v46 = vld [vmem:[#allocation49_spill] sm:$0xff]  ;;  %v10569_v23 = vsel %vm1639_vm3, %v9073_v44, 2147483647  ;;  %v17187_v32 = vld [vmem:[#allocation58_spill] sm:$0xff] }
 0x276   :  { %v10537_v59 = vpop.xlane.xlu1 %1545  ;;  %v10565_v50 = vcvt.s32.f32 %v2924_v19 }
 0x277   :  { %17166 = vst [vmem:[#allocation57_spill] sm:$0xff] %v10537_v59  ;;  %2647 = vmin.xlane.f32.xlu0 %v10534_v40 }
 0x278   :  { %v10545_v10 = vpop.xlane.xlu0 %2171 }
 0x279   :  { %17169 = vst [vmem:[#allocation206_spill] sm:$0xff] %v10545_v10  ;;  %2885 = vmin.xlane.f32.xlu1 %v10540_v42  ;;  %vm2173_vm1 = vcmp.eq.f32.partialorder %v17170_v46, %v10545_v10  ;;  %v17175_v46 = vld [vmem:[#allocation27_spill] sm:$0xff] }
 0x27a   :  { %v10550_v5 = vpop.xlane.xlu1 %2493  ;;  %v2174_v45 = vsel %vm2173_vm1, %v2169_v12, inf  ;;  %v2517_v42 = vand.u32 65535, %v17175_v46  ;;  %17177 = vst [vmem:[#allocation27_spill] sm:$0xff] %v10565_v50  ;;  %v17178_v12 = vld [vmem:[#allocation55_spill] sm:$0xff] }
 0x27b   :  { %17171 = vst [vmem:[#allocation49_spill] sm:$0xff] %v10550_v5  ;;  %2175 = vmin.xlane.f32.xlu0 %v2174_v45  ;;  %vm2495_vm2 = vcmp.eq.f32.partialorder %v17172_v48, %v10550_v5  ;;  %v2195_v45 = vand.u32 65535, %v17178_v12  ;;  %17179 = vst [vmem:[#allocation55_spill] sm:$0xff] %v10569_v23  ;;  %v17184_v12 = vld [vmem:[#allocation164_spill] sm:$0xff] }
 0x27c   :  { %v10555_v59 = vpop.xlane.xlu0 %1495  ;;  %v10557_v40 = vsel %vm2495_vm2, %v2491_v3, inf  ;;  %v2519_v47 = vcvt.s32.f32 %v2517_v42  ;;  %v2545_v42 = vand.u32 65535, %v17187_v32 }
 0x27d   :  { %17173 = vst [vmem:[#allocation50_spill] sm:$0xff] %v10555_v59  ;;  %1951 = vmin.xlane.f32.xlu1 %v10009_v4  ;;  %v2910_v4 = vshra.s32 %v10569_v23, 16  ;;  %v2197_v19 = vcvt.s32.f32 %v2195_v45 }
 0x27e   :  { %v10563_v10 = vpop.xlane.xlu1 %1549 }
 0x27f   :  { %17176 = vst [vmem:[#allocation75_spill] sm:$0xff] %v10563_v10  ;;  %v17185_v10 = vld [vmem:[#allocation60_spill] sm:$0xff] }
 0x280   :  { %v10571_v48 = vpop.xlane.xlu0 %2157  ;;  %vm1642_vm5 = vcmp.eq.f32.partialorder %v17185_v10, %v17184_v12  ;;  %v2547_v10 = vcvt.s32.f32 %v2545_v42  ;;  %v17195_v12 = vld [vmem:[#allocation167_spill] sm:$0xff] }
 0x281   :  { %17180 = vst [vmem:[#allocation207_spill] sm:$0xff] %v10571_v48  ;;  %2927 = vmin.xlane.f32.xlu1 %v10565_v50  ;;  %v17186_v50 = vld [vmem:[#allocation162_spill] sm:$0xff]  ;;  %v17196_v42 = vld [vmem:[#allocation15_spill] sm:$0xff] }
 0x282   :  { %v10574_v3 = vpop.xlane.xlu1 %2521 }
 0x283   :  { %17181 = vst [vmem:[#allocation208_spill] sm:$0xff] %v10574_v3  ;;  %vm2523_vm4 = vcmp.eq.f32.partialorder %v17182_v36, %v10574_v3  ;;  %v10591_v36 = vcvt.s32.f32 %v2910_v4  ;;  %v17190_v3 = vld [vmem:[#allocation163_spill] sm:$0xff] }
 0x284   :  { %v10579_v46 = vpop.xlane.xlu0 %2199  ;;  %v10581_v5 = vsel %vm2523_vm4, %v2519_v47, inf  ;;  %v2223_v45 = vand.u32 65535, %v17190_v3  ;;  %v10595_v47 = vsel %vm1642_vm5, %v9073_v44, 2147483647 }
 0x285   :  { %17183 = vst [vmem:[#allocation14_spill] sm:$0xff] %v10581_v5  ;;  %1937 = vmin.xlane.f32.xlu1 %v10056_v60  ;;  %vm2201_vm6 = vcmp.eq.f32.partialorder %v17186_v50, %v10579_v46  ;;  %17189 = vst [vmem:[#allocation60_spill] sm:$0xff] %v10591_v36  ;;  %v2952_v32 = vshra.s32 %v10595_v47, 16 }
 0x286   :  { %v10589_v59 = vpop.xlane.xlu1 %1553  ;;  %v2202_v23 = vsel %vm2201_vm6, %v2197_v19, inf  ;;  %17191 = vst [vmem:[#allocation162_spill] sm:$0xff] %v10595_v47  ;;  %v2225_v3 = vcvt.s32.f32 %v2223_v45  ;;  %v17194_v19 = vld [vmem:[#allocation84_spill] sm:$0xff] }
 0x287   :  { %17188 = vst [vmem:[#allocation164_spill] sm:$0xff] %v10589_v59  ;;  %2203 = vmin.xlane.f32.xlu0 %v2202_v23  ;;  %v17193_v23 = vld [vmem:[#allocation63_spill] sm:$0xff]  ;;  %vm1641_vm8 = vcmp.eq.f32.partialorder %v17194_v19, %v10019_v56  ;;  %v2573_v59 = vand.u32 65535, %v17196_v42  ;;  %v2601_v56 = vand.u32 65535, %v9877_v18  ;;  %v17203_v18 = vld [vmem:[#allocation16_spill] sm:$0xff] }
 0x288   :  { %v10597_v5 = vpop.xlane.xlu0 %1499  ;;  %v17201_v42 = vld [vmem:[#allocation31_spill] sm:$0xff] }
 0x289   :  { %2913 = vmin.xlane.f32.xlu1 %v10591_v36  ;;  %v2575_v19 = vcvt.s32.f32 %v2573_v59  ;;  %v2629_v59 = vand.u32 65535, %v17203_v18  ;;  %v17210_v18 = vld [vmem:[#allocation73_spill] sm:$0xff] }
 0x28a   :  { %v10600_v60 = vpop.xlane.xlu1 %2549 }
 0x28b   :  { %17192 = vst [vmem:[#allocation58_spill] sm:$0xff] %v10600_v60  ;;  %2189 = vmin.xlane.f32.xlu0 %v10069_v31  ;;  %vm2551_vm7 = vcmp.eq.f32.partialorder %v17193_v23, %v10600_v60  ;;  %v10618_v23 = vcvt.s32.f32 %v2952_v32  ;;  %v17198_v60 = vld [vmem:[#allocation65_spill] sm:$0xff] }
 0x28c   :  { %v10606_v50 = vpop.xlane.xlu0 %2227  ;;  %v10608_v4 = vsel %vm2551_vm7, %v2547_v10, inf  ;;  %v2251_v45 = vand.u32 65535, %v17198_v60  ;;  %v10622_v10 = vsel %vm1641_vm8, %v9073_v44, 2147483647 }
 0x28d   :  { %1979 = vmin.xlane.f32.xlu1 %v10084_v38  ;;  %vm2229_vm9 = vcmp.eq.f32.partialorder %v17195_v12, %v10606_v50  ;;  %17199 = vst [vmem:[#allocation63_spill] sm:$0xff] %v10622_v10  ;;  %v2938_v12 = vshra.s32 %v10622_v10, 16  ;;  %v2603_v10 = vcvt.s32.f32 %v2601_v56 }
 0x28e   :  { %v10616_v36 = vpop.xlane.xlu1 %1557  ;;  %v2230_v31 = vsel %vm2229_vm9, %v2225_v3, inf  ;;  %v2253_v32 = vcvt.s32.f32 %v2251_v45  ;;  %v17206_v45 = vld [vmem:[#allocation169_spill] sm:$0xff] }
 0x28f   :  { %17197 = vst [vmem:[#allocation163_spill] sm:$0xff] %v10616_v36  ;;  %2231 = vmin.xlane.f32.xlu0 %v2230_v31  ;;  %v17202_v31 = vld [vmem:[#allocation62_spill] sm:$0xff] }
 0x290   :  { %v10624_v47 = vpop.xlane.xlu0 %1503  ;;  %vm1644_vm11 = vcmp.eq.f32.partialorder %v17202_v31, %v17201_v42 }
 0x291   :  { %2955 = vmin.xlane.f32.xlu1 %v10618_v23  ;;  %v10652_v42 = vsel %vm1644_vm11, %v9073_v44, 2147483647 }
 0x292   :  { %v10628_v38 = vpop.xlane.xlu1 %2577  ;;  %17208 = vst [vmem:[#allocation65_spill] sm:$0xff] %v10652_v42  ;;  %v2980_v31 = vshra.s32 %v10652_v42, 16 }
 0x293   :  { %17200 = vst [vmem:[#allocation84_spill] sm:$0xff] %v10628_v38  ;;  %2217 = vmin.xlane.f32.xlu0 %v10120_v24  ;;  %vm2579_vm10 = vcmp.eq.f32.partialorder %v9895_v58, %v10628_v38  ;;  %v10646_v58 = vcvt.s32.f32 %v2938_v12  ;;  %v2631_v12 = vcvt.s32.f32 %v2629_v59 }
 0x294   :  { %v10634_v60 = vpop.xlane.xlu0 %2255  ;;  %v10636_v3 = vsel %vm2579_vm10, %v2575_v19, inf  ;;  %v17207_v19 = vld [vmem:[#allocation36_spill] sm:$0xff] }
 0x295   :  { %1965 = vmin.xlane.f32.xlu1 %v10135_v33  ;;  %vm2257_vm12 = vcmp.eq.f32.partialorder %v9906_v11, %v10634_v60  ;;  %17205 = vst [vmem:[#allocation15_spill] sm:$0xff] %v10646_v58  ;;  %v2279_v38 = vand.u32 65535, %v17207_v19 }
 0x296   :  { %v10644_v36 = vpop.xlane.xlu1 %2605  ;;  %v2258_v24 = vsel %vm2257_vm12, %v2253_v32, inf  ;;  %v2671_v32 = vand.u32 65535, %v9922_v53  ;;  %v2657_v53 = vand.u32 65535, %v9948_v1  ;;  %v17217_v1 = vld [vmem:[#allocation77_spill] sm:$0xff] }
 0x297   :  { %17204 = vst [vmem:[#allocation167_spill] sm:$0xff] %v10644_v36  ;;  %2259 = vmin.xlane.f32.xlu0 %v2258_v24  ;;  %vm2607_vm13 = vcmp.eq.f32.partialorder %v17206_v45, %v10644_v36  ;;  %v2281_v45 = vcvt.s32.f32 %v2279_v38  ;;  %v17214_v38 = vld [vmem:[#allocation38_spill] sm:$0xff] }
 0x298   :  { %v10654_v33 = vpop.xlane.xlu0 %1507  ;;  %v10656_v11 = vsel %vm2607_vm13, %v2603_v10, inf  ;;  %v17211_v10 = vld [vmem:[#allocation93_spill] sm:$0xff]  ;;  %v2673_v36 = vcvt.s32.f32 %v2671_v32 }
 0x299   :  { %2941 = vmin.xlane.f32.xlu1 %v10646_v58  ;;  %vm1643_vm15 = vcmp.eq.f32.partialorder %v17211_v10, %v10096_v15  ;;  %v17221_v58 = vld [vmem:[#allocation64_spill] sm:$0xff] }
 0x29a   :  { %v10660_v56 = vpop.xlane.xlu1 %2633  ;;  %v10684_v15 = vsel %vm1643_vm15, %v9073_v44, 2147483647 }
 0x29b   :  { %17209 = vst [vmem:[#allocation31_spill] sm:$0xff] %v10660_v56  ;;  %2245 = vmin.xlane.f32.xlu0 %v10169_v28  ;;  %vm2635_vm14 = vcmp.eq.f32.partialorder %v17210_v18, %v10660_v56  ;;  %v10678_v18 = vcvt.s32.f32 %v2980_v31  ;;  %17216 = vst [vmem:[#allocation169_spill] sm:$0xff] %v10684_v15  ;;  %v2659_v31 = vcvt.s32.f32 %v2657_v53  ;;  %v2966_v10 = vshra.s32 %v10684_v15, 16  ;;  %v17223_v53 = vld [vmem:[#allocation174_spill] sm:$0xff] }
 0x29c   :  { %v10666_v24 = vpop.xlane.xlu0 %2283  ;;  %v10668_v19 = vsel %vm2635_vm14, %v2631_v12, inf  ;;  %v17215_v12 = vld [vmem:[#allocation17_spill] sm:$0xff] }
 0x29d   :  { %2007 = vmin.xlane.f32.xlu1 %v10158_v43  ;;  %vm2285_vm1 = vcmp.eq.f32.partialorder %v9955_v27, %v10666_v24  ;;  %17213 = vst [vmem:[#allocation16_spill] sm:$0xff] %v10678_v18  ;;  %v2307_v56 = vand.u32 65535, %v17215_v12 }
 0x29e   :  { %v10676_v59 = vpop.xlane.xlu1 %2675  ;;  %v2286_v28 = vsel %vm2285_vm1, %v2281_v45, inf  ;;  %v2699_v45 = vand.u32 65535, %v17217_v1  ;;  %v17222_v1 = vld [vmem:[#allocation40_spill] sm:$0xff] }
 0x29f   :  { %17212 = vst [vmem:[#allocation62_spill] sm:$0xff] %v10676_v59  ;;  %2287 = vmin.xlane.f32.xlu0 %v2286_v28  ;;  %vm2677_vm2 = vcmp.eq.f32.partialorder %v17214_v38, %v10676_v59  ;;  %v17219_v28 = vld [vmem:[#allocation18_spill] sm:$0xff]  ;;  %v2309_v12 = vcvt.s32.f32 %v2307_v56  ;;  %v17226_v56 = vld [vmem:[#allocation81_spill] sm:$0xff] }
 0x2a0   :  { %v10686_v43 = vpop.xlane.xlu0 %1511  ;;  %v10688_v27 = vsel %vm2677_vm2, %v2673_v36, inf  ;;  %v17220_v36 = vld [vmem:[#allocation168_spill] sm:$0xff]  ;;  %v2701_v42 = vcvt.s32.f32 %v2699_v45 }
 0x2a1   :  { %2983 = vmin.xlane.f32.xlu1 %v10678_v18  ;;  %vm1646_vm4 = vcmp.eq.f32.partialorder %v17221_v58, %v17220_v36  ;;  %v2685_v18 = vand.u32 65535, %v17223_v53 }
 0x2a2   :  { %v10692_v32 = vpop.xlane.xlu1 %2661  ;;  %v10716_v58 = vsel %vm1646_vm4, %v9073_v44, 2147483647 }
 0x2a3   :  { %17218 = vst [vmem:[#allocation36_spill] sm:$0xff] %v10692_v32  ;;  %2273 = vmin.xlane.f32.xlu0 %v10223_v25  ;;  %vm2663_vm3 = vcmp.eq.f32.partialorder %v17219_v28, %v10692_v32  ;;  %v10710_v28 = vcvt.s32.f32 %v2966_v10  ;;  %17227 = vst [vmem:[#allocation38_spill] sm:$0xff] %v10716_v58  ;;  %v2687_v10 = vcvt.s32.f32 %v2685_v18  ;;  %v17233_v18 = vld [vmem:[#allocation109_spill] sm:$0xff]  ;;  %v17234_v32 = vld [vmem:[#allocation19_spill] sm:$0xff] }
 0x2a4   :  { %v10698_v38 = vpop.xlane.xlu0 %2311  ;;  %v10700_v59 = vsel %vm2663_vm3, %v2659_v31, inf  ;;  %v2335_v31 = vand.u32 65535, %v17226_v56 }
 0x2a5   :  { %1993 = vmin.xlane.f32.xlu1 %v10212_v14  ;;  %vm2313_vm5 = vcmp.eq.f32.partialorder %v17222_v1, %v10698_v38  ;;  %17225 = vst [vmem:[#allocation93_spill] sm:$0xff] %v10710_v28  ;;  %v3008_v1 = vshra.s32 %v10716_v58, 16 }
 0x2a6   :  { %v10708_v15 = vpop.xlane.xlu1 %2703  ;;  %v2314_v25 = vsel %vm2313_vm5, %v2309_v12, inf  ;;  %v2727_v12 = vand.u32 65535, %v10017_v55  ;;  %v17232_v55 = vld [vmem:[#allocation42_spill] sm:$0xff] }
 0x2a7   :  { %17224 = vst [vmem:[#allocation73_spill] sm:$0xff] %v10708_v15  ;;  %2315 = vmin.xlane.f32.xlu0 %v2314_v25  ;;  %vm2705_vm6 = vcmp.eq.f32.partialorder %v10013_v22, %v10708_v15  ;;  %v17229_v22 = vld [vmem:[#allocation83_spill] sm:$0xff]  ;;  %v2337_v25 = vcvt.s32.f32 %v2335_v31  ;;  %v2013_v15 = vand.u32 65535, %v17233_v18  ;;  %v10743_v31 = vcvt.s32.f32 %v3008_v1 }
 0x2a8   :  { %v10718_v14 = vpop.xlane.xlu0 %1515  ;;  %v10720_v36 = vsel %vm2705_vm6, %v2701_v42, inf  ;;  %v17231_v42 = vld [vmem:[#allocation102_spill] sm:$0xff] }
 0x2a9   :  { %2969 = vmin.xlane.f32.xlu1 %v10710_v28  ;;  %vm1645_vm8 = vcmp.eq.f32.partialorder %v17231_v42, %v10167_v16  ;;  %17236 = vst [vmem:[#allocation168_spill] sm:$0xff] %v10743_v31  ;;  %v17238_v16 = vld [vmem:[#allocation87_spill] sm:$0xff] }
 0x2aa   :  { %v10724_v45 = vpop.xlane.xlu1 %2689  ;;  %v2363_v42 = vand.u32 65535, %v17238_v16 }
 0x2ab   :  { %17228 = vst [vmem:[#allocation17_spill] sm:$0xff] %v10724_v45  ;;  %2301 = vmin.xlane.f32.xlu0 %v10276_v8  ;;  %vm2691_vm7 = vcmp.eq.f32.partialorder %v17229_v22, %v10724_v45  ;;  %v2713_v8 = vand.u32 65535, %v17234_v32  ;;  %v2729_v45 = vcvt.s32.f32 %v2727_v12  ;;  %v17240_v32 = vld [vmem:[#allocation114_spill] sm:$0xff]  ;;  %v17241_v12 = vld [vmem:[#allocation88_spill] sm:$0xff] }
 0x2ac   :  { %v10730_v53 = vpop.xlane.xlu0 %2339  ;;  %v10732_v56 = vsel %vm2691_vm7, %v2687_v10, inf  ;;  %v17237_v10 = vld [vmem:[#allocation178_spill] sm:$0xff]  ;;  %vm2019_vm11 = vcmp.eq.f32.partialorder %v17240_v32, %v10274_v57  ;;  %v2755_v1 = vand.u32 65535, %v17241_v12  ;;  %v17245_v32 = vld [vmem:[#allocation35_spill] sm:$0xff]  ;;  %v17246_v57 = vld [vmem:[#allocation68_spill] sm:$0xff] }
 0x2ad   :  { %17230 = vst [vmem:[#allocation77_spill] sm:$0xff] %v10730_v53  ;;  %2035 = vmin.xlane.f32.xlu1 %v10241_v26  ;;  %vm2341_vm9 = vcmp.eq.f32.partialorder %v17232_v55, %v10730_v53  ;;  %v10749_v26 = vsel %vm1645_vm8, %v9073_v44, 2147483647  ;;  %vm1648_vm13 = vcmp.eq.f32.partialorder %v17246_v57, %v17245_v32  ;;  %v17248_v12 = vld [vmem:[#allocation89_spill] sm:$0xff] }
 0x2ae   :  { %v10741_v28 = vpop.xlane.xlu1 %2731  ;;  %v2342_v22 = vsel %vm2341_vm9, %v2337_v25, inf  ;;  %17239 = vst [vmem:[#allocation64_spill] sm:$0xff] %v10749_v26  ;;  %v2994_v16 = vshra.s32 %v10749_v26, 16 }
 0x2af   :  { %17235 = vst [vmem:[#allocation18_spill] sm:$0xff] %v10741_v28  ;;  %2343 = vmin.xlane.f32.xlu0 %v2342_v22  ;;  %vm2733_vm10 = vcmp.eq.f32.partialorder %v17237_v10, %v10741_v28  ;;  %v2015_v22 = vcvt.s32.f32 %v2013_v15  ;;  %v2715_v10 = vcvt.s32.f32 %v2713_v8  ;;  %v17243_v28 = vld [vmem:[#allocation91_spill] sm:$0xff] }
 0x2b0   :  { %v10751_v55 = vpop.xlane.xlu0 %1519  ;;  %v10753_v18 = vsel %vm2733_vm10, %v2729_v45, inf  ;;  %v17247_v15 = vld [vmem:[#allocation111_spill] sm:$0xff] }
 0x2b1   :  { %3011 = vmin.xlane.f32.xlu1 %v10743_v31  ;;  %v2020_v53 = vsel %vm2019_vm11, %v2015_v22, inf  ;;  %v2365_v31 = vcvt.s32.f32 %v2363_v42  ;;  %v2055_v8 = vand.u32 65535, %v17247_v15  ;;  %v10777_v22 = vcvt.s32.f32 %v2994_v16  ;;  %v17251_v42 = vld [vmem:[#allocation20_spill] sm:$0xff] }
 0x2b2   :  { %v10759_v25 = vpop.xlane.xlu1 %2717  ;;  %v2391_v57 = vand.u32 65535, %v17251_v42 }
 0x2b3   :  { %17242 = vst [vmem:[#allocation40_spill] sm:$0xff] %v10759_v25  ;;  %2329 = vmin.xlane.f32.xlu0 %v10325_v62  ;;  %vm2719_vm12 = vcmp.eq.f32.partialorder %v17243_v28, %v10759_v25  ;;  %v2741_v62 = vand.u32 65535, %v17248_v12  ;;  %v2757_v25 = vcvt.s32.f32 %v2755_v1  ;;  %17250 = vst [vmem:[#allocation83_spill] sm:$0xff] %v10777_v22  ;;  %v17253_v1 = vld [vmem:[#allocation44_spill] sm:$0xff]  ;;  %v2057_v15 = vcvt.s32.f32 %v2055_v8  ;;  %v17258_v8 = vld [vmem:[#allocation117_spill] sm:$0xff] }
 0x2b4   :  { %v10765_v45 = vpop.xlane.xlu0 %2367  ;;  %v10767_v58 = vsel %vm2719_vm12, %v2715_v10, inf  ;;  %v2783_v16 = vand.u32 65535, %v17253_v1 }
 0x2b5   :  { %17244 = vst [vmem:[#allocation174_spill] sm:$0xff] %v10765_v45  ;;  %2021 = vmin.xlane.f32.xlu1 %v2020_v53  ;;  %vm2369_vm14 = vcmp.eq.f32.partialorder %v10101_v35, %v10765_v45  ;;  %v10783_v53 = vsel %vm1648_vm13, %v9073_v44, 2147483647 }
 0x2b6   :  { %v10775_v26 = vpop.xlane.xlu1 %2759  ;;  %v2370_v28 = vsel %vm2369_vm14, %v2365_v31, inf  ;;  %v17252_v31 = vld [vmem:[#allocation116_spill] sm:$0xff]  ;;  %v3036_v12 = vshra.s32 %v10783_v53, 16 }
 0x2b7   :  { %17249 = vst [vmem:[#allocation81_spill] sm:$0xff] %v10775_v26  ;;  %2371 = vmin.xlane.f32.xlu0 %v2370_v28  ;;  %vm2761_vm15 = vcmp.eq.f32.partialorder %v10110_v30, %v10775_v26  ;;  %vm2061_vm1 = vcmp.eq.f32.partialorder %v17252_v31, %v10303_v51  ;;  %v2743_v30 = vcvt.s32.f32 %v2741_v62  ;;  %v17255_v28 = vld [vmem:[#allocation96_spill] sm:$0xff]  ;;  %v2393_v26 = vcvt.s32.f32 %v2391_v57  ;;  %v17257_v31 = vld [vmem:[#allocation110_spill] sm:$0xff] }
 0x2b8   :  { %v10785_v35 = vpop.xlane.xlu0 %1523  ;;  %v10787_v10 = vsel %vm2761_vm15, %v2757_v25, inf  ;;  %v2062_v42 = vsel %vm2061_vm1, %v2057_v15, inf  ;;  %vm1647_vm3 = vcmp.eq.f32.partialorder %v17257_v31, %v10254_v0  ;;  %v2041_v62 = vand.u32 65535, %v17258_v8  ;;  %v17261_v57 = vld [vmem:[#allocation182_spill] sm:$0xff]  ;;  %v17267_v8 = vld [vmem:[#allocation155_spill] sm:$0xff] }
 0x2b9   :  { %2997 = vmin.xlane.f32.xlu1 %v10777_v22  ;;  %v10811_v15 = vcvt.s32.f32 %v3036_v12 }
 0x2ba   :  { %v10793_v32 = vpop.xlane.xlu1 %2745 }
 0x2bb   :  { %17254 = vst [vmem:[#allocation102_spill] sm:$0xff] %v10793_v32  ;;  %2357 = vmin.xlane.f32.xlu0 %v10375_v41  ;;  %vm2747_vm2 = vcmp.eq.f32.partialorder %v17255_v28, %v10793_v32  ;;  %v2769_v41 = vand.u32 65535, %v10144_v20  ;;  %v2785_v32 = vcvt.s32.f32 %v2783_v16  ;;  %17260 = vst [vmem:[#allocation19_spill] sm:$0xff] %v10811_v15  ;;  %v17265_v20 = vld [vmem:[#allocation124_spill] sm:$0xff]  ;;  %v2043_v16 = vcvt.s32.f32 %v2041_v62  ;;  %v17271_v62 = vld [vmem:[#allocation122_spill] sm:$0xff] }
 0x2bc   :  { %v10799_v25 = vpop.xlane.xlu0 %2395  ;;  %v10801_v22 = vsel %vm2747_vm2, %v2743_v30, inf  ;;  %v17262_v30 = vld [vmem:[#allocation98_spill] sm:$0xff]  ;;  %vm2047_vm6 = vcmp.eq.f32.partialorder %v17265_v20, %v10353_v39  ;;  %v17270_v20 = vld [vmem:[#allocation104_spill] sm:$0xff] }
 0x2bd   :  { %17256 = vst [vmem:[#allocation42_spill] sm:$0xff] %v10799_v25  ;;  %2063 = vmin.xlane.f32.xlu1 %v2062_v42  ;;  %vm2397_vm4 = vcmp.eq.f32.partialorder %v10149_v49, %v10799_v25  ;;  %v2419_v0 = vand.u32 65535, %v17262_v30  ;;  %v10817_v42 = vsel %vm1647_vm3, %v9073_v44, 2147483647  ;;  %v2771_v12 = vcvt.s32.f32 %v2769_v41  ;;  %v17268_v30 = vld [vmem:[#allocation46_spill] sm:$0xff] }
 0x2be   :  { %v10809_v1 = vpop.xlane.xlu1 %2787  ;;  %v2398_v28 = vsel %vm2397_vm4, %v2393_v26, inf  ;;  %17263 = vst [vmem:[#allocation178_spill] sm:$0xff] %v10817_v42  ;;  %v2083_v41 = vand.u32 65535, %v17271_v62 }
 0x2bf   :  { %17259 = vst [vmem:[#allocation109_spill] sm:$0xff] %v10809_v1  ;;  %2399 = vmin.xlane.f32.xlu0 %v2398_v28  ;;  %vm2789_vm5 = vcmp.eq.f32.partialorder %v17261_v57, %v10809_v1  ;;  %v1842_v28 = vcvt.f32.s32 %v17267_v8  ;;  %v3022_v57 = vshra.s32 %v10817_v42, 16  ;;  %v2048_v1 = vsel %vm2047_vm6, %v2043_v16, inf  ;;  %v17272_v8 = vld [vmem:[#allocation183_spill] sm:$0xff] }
 0x2c0   :  { %v10819_v49 = vpop.xlane.xlu0 %1527  ;;  %v10821_v31 = vsel %vm2789_vm5, %v2785_v32, inf  ;;  %v2447_v39 = vand.u32 65535, %v17272_v8 }
 0x2c1   :  { %17264 = vst [vmem:[#allocation87_spill] sm:$0xff] %v10819_v49  ;;  %3039 = vmin.xlane.f32.xlu1 %v10811_v15  ;;  %v2421_v15 = vcvt.s32.f32 %v2419_v0  ;;  %v1843_v45 = vshll.u32 %v1842_v28, 16 }
 0x2c2   :  { %v10826_v26 = vpop.xlane.xlu1 %2773 }
 0x2c3   :  { %17266 = vst [vmem:[#allocation114_spill] sm:$0xff] %v10826_v26  ;;  %2385 = vmin.xlane.f32.xlu0 %v10417_v9  ;;  %vm2775_vm7 = vcmp.eq.f32.partialorder %v17268_v30, %v10826_v26  ;;  %v17273_v9 = vld [vmem:[#allocation101_spill] sm:$0xff]  ;;  %v10842_v26 = vcvt.s32.f32 %v3022_v57  ;;  %v2449_v57 = vcvt.s32.f32 %v2447_v39  ;;  %v17283_v39 = vld [vmem:[#allocation138_spill] sm:$0xff] }
 0x2c4   :  { %v10833_v32 = vpop.xlane.xlu0 %2423  ;;  %v10835_v25 = vsel %vm2775_vm7, %v2771_v12, inf  ;;  %v2811_v49 = vand.u32 65535, %v17273_v9  ;;  %v17277_v12 = vld [vmem:[#allocation129_spill] sm:$0xff]  ;;  %vm2075_vm14 = vcmp.eq.f32.partialorder %v17283_v39, %v10415_v29 }
 0x2c5   :  { %17269 = vst [vmem:[#allocation88_spill] sm:$0xff] %v10833_v32  ;;  %2049 = vmin.xlane.f32.xlu1 %v2048_v1  ;;  %vm2425_vm8 = vcmp.eq.f32.partialorder %v17270_v20, %v10833_v32  ;;  %17274 = vst [vmem:[#allocation91_spill] sm:$0xff] %v10842_v26  ;;  %v17275_v1 = vld [vmem:[#allocation120_spill] sm:$0xff]  ;;  %vm2089_vm10 = vcmp.eq.f32.partialorder %v17277_v12, %v10373_v2 }
 0x2c6   :  { %v1840_v51 = vpop.xlane.xlu1 %1839  ;;  %v2426_v42 = vsel %vm2425_vm8, %v2421_v15, inf  ;;  %vm1649_vm9 = vcmp.eq.f32.partialorder %v17275_v1, %v10323_v61  ;;  %v17278_v15 = vld [vmem:[#allocation130_spill] sm:$0xff]  ;;  %v2813_v61 = vcvt.s32.f32 %v2811_v49 }
 0x2c7   :  { %v1841_v30 = vcvt.f32.s32 %v1840_v51  ;;  %2427 = vmin.xlane.f32.xlu0 %v2426_v42  ;;  %v2069_v20 = vand.u32 65535, %v17278_v15  ;;  %v2085_v51 = vcvt.s32.f32 %v2083_v41  ;;  %v17280_v42 = vld [vmem:[#allocation13_spill] sm:$0xff] }
 0x2c8   :  { %v10844_v0 = vpop.xlane.xlu0 %1531  ;;  %v1828_v28 = vcvt.f32.s32 %v17280_v42 }
 0x2c9   :  { %v10848_v16 = vadd.s32 %v1843_v45, %v1841_v30  ;;  %3025 = vmin.xlane.f32.xlu1 %v10842_v26  ;;  %v10861_v45 = vsel %vm1649_vm9, %v9073_v44, 2147483647  ;;  %v2090_v9 = vsel %vm2089_vm10, %v2085_v51, inf  ;;  %v17282_v30 = vmov 0.0  }
 0x2ca   :  { %v10854_v62 = vpop.xlane.xlu1 %2815  ;;  %v2071_v12 = vcvt.s32.f32 %v2069_v20  ;;  %v1829_v15 = vshll.u32 %v1828_v28, 16  ;;  %v3050_v51 = vshra.s32 %v10861_v45, 16  ;;  %v17289_v20 = vld [vmem:[#allocation160_spill] sm:$0xff] }
 0x2cb   :  { %17276 = vst [vmem:[#allocation35_spill] sm:$0xff] %v10848_v16  ;;  %17279 = vst [vmem:[#allocation68_spill] sm:$0xff] %v10854_v62  ;;  %2413 = vmin.xlane.f32.xlu0 %v10454_v17  ;;  %vm16495_vm11 = vcmp.eq.s32.totalorder %v9073_v44, %v10848_v16  ;;  %vm2817_vm12 = vcmp.eq.f32.partialorder %v10246_v37, %v10854_v62  ;;  %v2475_v37 = vand.u32 65535, %v10263_v7  ;;  %v1870_v28 = vcvt.f32.s32 %v17289_v20 }
 0x2cc   :  { %v10863_v8 = vpop.xlane.xlu0 %2451  ;;  %v6464_v41 = vsel %vm16495_vm11, 1.0, %v17282_v30  ;;  %v10875_v17 = vsel %vm2817_vm12, %v2813_v61, inf  ;;  %v17287_v61 = vld [vmem:[#allocation133_spill] sm:$0xff]  ;;  %v10891_v7 = vcvt.s32.f32 %v3050_v51 }
 0x2cd   :  { %17281 = vst [vmem:[#allocation111_spill] sm:$0xff] %v10863_v8  ;;  %2091 = vmin.xlane.f32.xlu1 %v2090_v9  ;;  %vm2453_vm13 = vcmp.eq.f32.partialorder %v10257_v63, %v10863_v8  ;;  %4843 = vst [vmem:[#allocation2 + $0x8] sm:$0xff] %v6464_v41  ;;  %v17284_v9 = vld [vmem:[#allocation108_spill] sm:$0xff]  ;;  %v2076_v63 = vsel %vm2075_vm14, %v2071_v12, inf  ;;  %v2111_v8 = vand.u32 65535, %v17287_v61  ;;  %v2477_v12 = vcvt.s32.f32 %v2475_v37 }
 0x2ce   :  { %v1826_v49 = vpop.xlane.xlu1 %1825  ;;  %v2454_v1 = vsel %vm2453_vm13, %v2449_v57, inf  ;;  %v2797_v62 = vand.u32 65535, %v17284_v9  ;;  %17290 = vst [vmem:[#allocation44_spill] sm:$0xff] %v10891_v7  ;;  %v17294_v9 = vld [vmem:[#allocation139_spill] sm:$0xff] }
 0x2cf   :  { %v1827_v42 = vcvt.f32.s32 %v1826_v49  ;;  %2455 = vmin.xlane.f32.xlu0 %v2454_v1  ;;  %v16431_v49 = vmov 1.0   ;;  %vm2117_vm3 = vcmp.eq.f32.partialorder %v17294_v9, %v10438_v13  ;;  %v2113_v20 = vcvt.s32.f32 %v2111_v8  ;;  %v17300_v9 = vld [vmem:[#allocation146_spill] sm:$0xff] }
 0x2d0   :  { %v10880_v26 = vpop.xlane.xlu0 %1535  ;;  %vm2103_vm4 = vcmp.eq.f32.partialorder %v17300_v9, %v10475_v21  ;;  %v17309_v9 = vld [vmem:[#allocation192_spill] sm:$0xff]  ;;  %v17310_v21 = vld [vmem:[#allocation118_spill] sm:$0xff] }
 0x2d1   :  { %17285 = vst [vmem:[#allocation89_spill] sm:$0xff] %v10880_v26  ;;  %2077 = vmin.xlane.f32.xlu1 %v2076_v63  ;;  %v10882_v39 = vadd.s32 %v1829_v15, %v1827_v42  ;;  %v17292_v15 = vld [vmem:[#allocation115_spill] sm:$0xff]  ;;  %v2825_v13 = vand.u32 65535, %v17310_v21 }
 0x2d2   :  { %v10885_v32 = vpop.xlane.xlu1 %2801  ;;  %v17293_v42 = vld [vmem:[#allocation187_spill] sm:$0xff] }
 0x2d3   :  { %17286 = vst [vmem:[#allocation20_spill] sm:$0xff] %v10882_v39  ;;  %17288 = vst [vmem:[#allocation116_spill] sm:$0xff] %v10885_v32  ;;  %2441 = vmin.xlane.f32.xlu0 %v10493_v6  ;;  %vm16493_vm15 = vcmp.eq.s32.totalorder %v9073_v44, %v10882_v39  ;;  %v2799_v6 = vcvt.s32.f32 %v2797_v62  ;;  %vm2803_vm1 = vcmp.eq.f32.partialorder %v17292_v15, %v10885_v32  ;;  %v17295_v62 = vld [vmem:[#allocation140_spill] sm:$0xff]  ;;  %v17365_v26 = vld [vmem:[#allocation79_spill] sm:$0xff] }
 0x2d4   :  { %v6463_v57 = vsel %vm16493_vm15, 1.0, %v17282_v30  ;;  %7531 = vmatprep.mubr.msk.f32.mxu1 %vm16493_vm15, %v16431_v49  ;;  %v10901_v1 = vpop.xlane.xlu0 %2479  ;;  %v2097_v37 = vand.u32 65535, %v17295_v62  ;;  %v17296_v32 = vld [vmem:[#allocation24_spill] sm:$0xff] }
 0x2d5   :  { %17291 = vst [vmem:[#allocation96_spill] sm:$0xff] %v10901_v1  ;;  %4842 = vst [vmem:[#allocation2] sm:$0xff] %v6463_v57  ;;  %7532 = vmatmul.mubr.msk.f32.vlgmr.msra.gmra.mxu1 %vm16495_vm11, %v16431_v49  ;;  %v10909_v51 = vadd.f32 %v6464_v41, %v6463_v57  ;;  %3053 = vmin.xlane.f32.xlu1 %v10891_v7  ;;  %vm2481_vm2 = vcmp.eq.f32.partialorder %v17293_v42, %v10901_v1  ;;  %v10917_v15 = vsel %vm2803_vm1, %v2799_v6, inf  ;;  %v17297_v57 = vld [vmem:[#allocation188_spill] sm:$0xff] }
 0x2d6   :  { %v1868_v63 = vpop.xlane.xlu1 %1867  ;;  %v2482_v61 = vsel %vm2481_vm2, %v2477_v12, inf  ;;  %v2839_v39 = vand.u32 65535, %v17296_v32  ;;  %v1871_v49 = vshll.u32 %v1870_v28, 16  ;;  %v2503_v16 = vand.u32 65535, %v17297_v57  ;;  %v17301_v12 = vld [vmem:[#allocation145_spill] sm:$0xff]  ;;  %v17305_v57 = vld [vmem:[#allocation119_spill] sm:$0xff] }
 0x2d7   :  { %v1869_v41 = vcvt.f32.s32 %v1868_v63  ;;  %2483 = vmin.xlane.f32.xlu0 %v2482_v61  ;;  %v2118_v42 = vsel %vm2117_vm3, %v2113_v20, inf  ;;  %v2139_v8 = vand.u32 65535, %v17301_v12  ;;  %v2099_v62 = vcvt.s32.f32 %v2097_v37  ;;  %v17303_v32 = vld [vmem:[#allocation61_spill] sm:$0xff]  ;;  %v17306_v37 = vld [vmem:[#allocation191_spill] sm:$0xff] }
 0x2d8   :  { %v10921_v7 = vpop.xlane.xlu0 %1539  ;;  %v1856_v28 = vcvt.f32.s32 %v17303_v32  ;;  %v2841_v63 = vcvt.s32.f32 %v2839_v39  ;;  %v2505_v20 = vcvt.s32.f32 %v2503_v16  ;;  %v2531_v12 = vand.u32 65535, %v17309_v9  ;;  %v17316_v9 = vld [vmem:[#allocation78_spill] sm:$0xff] }
 0x2d9   :  { %17298 = vst [vmem:[#allocation110_spill] sm:$0xff] %v10921_v7  ;;  %v10923_v1 = vadd.s32 %v1871_v49, %v1869_v41  ;;  %2119 = vmin.xlane.f32.xlu1 %v2118_v42  ;;  %v2104_v49 = vsel %vm2103_vm4, %v2099_v62, inf  ;;  %v17308_v42 = vld [vmem:[#allocation151_spill] sm:$0xff]  ;;  %v2141_v7 = vcvt.s32.f32 %v2139_v8 }
 0x2da   :  { %v10928_v6 = vpop.xlane.xlu1 %2843  ;;  %v2125_v16 = vand.u32 65535, %v17308_v42  ;;  %v17315_v42 = vld [vmem:[#allocation157_spill] sm:$0xff] }
 0x2db   :  { %17299 = vst [vmem:[#allocation117_spill] sm:$0xff] %v10923_v1  ;;  %17302 = vst [vmem:[#allocation182_spill] sm:$0xff] %v10928_v6  ;;  %2469 = vmin.xlane.f32.xlu0 %v10529_v52  ;;  %vm16500_vm5 = vcmp.eq.s32.totalorder %v9073_v44, %v10923_v1  ;;  %vm2845_vm6 = vcmp.eq.f32.partialorder %v17305_v57, %v10928_v6  ;;  %v17307_v52 = vld [vmem:[#allocation150_spill] sm:$0xff]  ;;  %v1857_v57 = vshll.u32 %v1856_v28, 16  ;;  %v17311_v6 = vld [vmem:[#allocation71_spill] sm:$0xff]  ;;  %v2533_v28 = vcvt.s32.f32 %v2531_v12 }
 0x2dc   :  { %v10934_v61 = vpop.xlane.xlu0 %2507  ;;  %v6466_v41 = vsel %vm16500_vm5, 1.0, %v17282_v30  ;;  %vm2145_vm8 = vcmp.eq.f32.partialorder %v17307_v52, %v10491_v54  ;;  %v10946_v39 = vsel %vm2845_vm6, %v2841_v63, inf  ;;  %vm2131_vm10 = vcmp.eq.f32.partialorder %v17315_v42, %v10527_v34  ;;  %v17326_v42 = vld [vmem:[#allocation29_spill] sm:$0xff] }
 0x2dd   :  { %17304 = vst [vmem:[#allocation98_spill] sm:$0xff] %v10934_v61  ;;  %2105 = vmin.xlane.f32.xlu1 %v2104_v49  ;;  %vm2509_vm7 = vcmp.eq.f32.partialorder %v17306_v37, %v10934_v61  ;;  %4845 = vst [vmem:[#allocation2 + $0x18] sm:$0xff] %v6466_v41  ;;  %v17312_v37 = vld [vmem:[#allocation70_spill] sm:$0xff]  ;;  %v2146_v52 = vsel %vm2145_vm8, %v2141_v7, inf  ;;  %v2127_v21 = vcvt.s32.f32 %v2125_v16  ;;  %v2827_v7 = vcvt.s32.f32 %v2825_v13 }
 0x2de   :  { %v1854_v62 = vpop.xlane.xlu1 %1853  ;;  %v2510_v32 = vsel %vm2509_vm7, %v2505_v20, inf  ;;  %vm1650_vm9 = vcmp.eq.f32.partialorder %v17312_v37, %v17311_v6  ;;  %v2153_v20 = vand.u32 65535, %v17316_v9  ;;  %v17320_v6 = vld [vmem:[#allocation123_spill] sm:$0xff]  ;;  %v17322_v12 = vmov 1.0   ;;  %v17324_v37 = vld [vmem:[#allocation52_spill] sm:$0xff] }
 0x2df   :  { %v1855_v49 = vcvt.f32.s32 %v1854_v62  ;;  %2511 = vmin.xlane.f32.xlu0 %v2510_v32  ;;  %v17318_v62 = vld [vmem:[#allocation166_spill] sm:$0xff]  ;;  %v10964_v54 = vsel %vm1650_vm9, %v9073_v44, 2147483647  ;;  %vm2159_vm2 = vcmp.eq.f32.partialorder %v17326_v42, %v10571_v48  ;;  %v17327_v9 = vld [vmem:[#allocation127_spill] sm:$0xff] }
 0x2e0   :  { %v10953_v61 = vpop.xlane.xlu0 %1543  ;;  %v1898_v32 = vcvt.f32.s32 %v17318_v62  ;;  %17319 = vst [vmem:[#allocation104_spill] sm:$0xff] %v10964_v54 }
 0x2e1   :  { %17313 = vst [vmem:[#allocation124_spill] sm:$0xff] %v10953_v61  ;;  %v10955_v63 = vadd.s32 %v1857_v57, %v1855_v49  ;;  %2147 = vmin.xlane.f32.xlu1 %v2146_v52  ;;  %v17321_v57 = vld [vmem:[#allocation132_spill] sm:$0xff] }
 0x2e2   :  { %v10960_v8 = vpop.xlane.xlu1 %2829  ;;  %vm1651_vm13 = vcmp.eq.f32.partialorder %v17321_v57, %v17320_v6  ;;  %v17325_v52 = vld [vmem:[#allocation28_spill] sm:$0xff] }
 0x2e3   :  { %17314 = vst [vmem:[#allocation155_spill] sm:$0xff] %v10955_v63  ;;  %17317 = vst [vmem:[#allocation46_spill] sm:$0xff] %v10960_v8  ;;  %2497 = vmin.xlane.f32.xlu0 %v10557_v40  ;;  %vm16496_vm12 = vcmp.eq.s32.totalorder %v9073_v44, %v10955_v63  ;;  %v2132_v40 = vsel %vm2131_vm10, %v2127_v21, inf  ;;  %vm2831_vm14 = vcmp.eq.f32.partialorder %v17324_v37, %v10960_v8  ;;  %v2867_v21 = vand.u32 65535, %v17327_v9 }
 0x2e4   :  { %v6465_v16 = vsel %vm16496_vm12, 1.0, %v17282_v30  ;;  %7534 = vmatprep.mubr.msk.f32.mxu1 %vm16496_vm12, %v17322_v12  ;;  %v10979_v49 = vpop.xlane.xlu0 %2535  ;;  %v2155_v37 = vcvt.s32.f32 %v2153_v20  ;;  %v10993_v8 = vsel %vm2831_vm14, %v2827_v7, inf  ;;  %v17331_v20 = vld [vmem:[#allocation37_spill] sm:$0xff]  ;;  %v17332_v7 = vld [vmem:[#allocation72_spill] sm:$0xff] }
 0x2e5   :  { %17323 = vst [vmem:[#allocation122_spill] sm:$0xff] %v10979_v49  ;;  %4844 = vst [vmem:[#allocation2 + $0x10] sm:$0xff] %v6465_v16  ;;  %v5497_v13 = vadd.f32 %v6465_v16, %v10909_v51  ;;  %7535 = vmatmul.mubr.msk.f32.gmra.mxu1 %vm16500_vm5, %v17322_v12  ;;  %2133 = vmin.xlane.f32.xlu1 %v2132_v40  ;;  %vm2537_vm1 = vcmp.eq.f32.partialorder %v17325_v52, %v10979_v49  ;;  %v1899_v51 = vshll.u32 %v1898_v32, 16  ;;  %v17328_v40 = vld [vmem:[#allocation194_spill] sm:$0xff] }
 0x2e6   :  { %v1896_v62 = vpop.xlane.xlu1 %1895  ;;  %v2538_v63 = vsel %vm2537_vm1, %v2533_v28, inf  ;;  %v3064_v16 = vshra.s32 %v10964_v54, 16  ;;  %v2559_v61 = vand.u32 65535, %v17328_v40  ;;  %v11001_v52 = vsel %vm1651_vm13, %v9073_v44, 2147483647  ;;  %v17336_v40 = vld [vmem:[#allocation14_spill] sm:$0xff] }
 0x2e7   :  { %v5498_v34 = vadd.f32 %v6466_v41, %v5497_v13  ;;  %v1897_v1 = vcvt.f32.s32 %v1896_v62  ;;  %2539 = vmin.xlane.f32.xlu0 %v2538_v63  ;;  %17329 = vst [vmem:[#allocation183_spill] sm:$0xff] %v11001_v52  ;;  %v2160_v28 = vsel %vm2159_vm2, %v2155_v37, inf  ;;  %vm1652_vm3 = vcmp.eq.f32.partialorder %v17332_v7, %v17331_v20  ;;  %v17335_v13 = vld [vmem:[#allocation69_spill] sm:$0xff]  ;;  %v17343_v20 = vld [vmem:[#allocation196_spill] sm:$0xff] }
 0x2e8   :  { %v11003_v42 = vpop.xlane.xlu0 %1547  ;;  %v2869_v63 = vcvt.s32.f32 %v2867_v21  ;;  %v1884_v9 = vcvt.f32.s32 %v17335_v13  ;;  %v3078_v62 = vshra.s32 %v11001_v52, 16  ;;  %v11014_v6 = vcvt.s32.f32 %v3064_v16  ;;  %v17342_v16 = vld [vmem:[#allocation143_spill] sm:$0xff] }
 0x2e9   :  { %17330 = vst [vmem:[#allocation101_spill] sm:$0xff] %v11003_v42  ;;  %v11007_v32 = vadd.s32 %v1899_v51, %v1897_v1  ;;  %2161 = vmin.xlane.f32.xlu1 %v2160_v28  ;;  %v11019_v57 = vsel %vm1652_vm3, %v9073_v44, 2147483647  ;;  %v2561_v37 = vcvt.s32.f32 %v2559_v61  ;;  %v17340_v51 = vld [vmem:[#allocation136_spill] sm:$0xff]  ;;  %v17341_v28 = vld [vmem:[#allocation141_spill] sm:$0xff] }
 0x2ea   :  { %v11009_v41 = vpop.xlane.xlu1 %2871  ;;  %17337 = vst [vmem:[#allocation130_spill] sm:$0xff] %v11014_v6  ;;  %17338 = vst [vmem:[#allocation13_spill] sm:$0xff] %v11019_v57  ;;  %vm1653_vm7 = vcmp.eq.f32.partialorder %v17342_v16, %v17341_v28  ;;  %v17344_v61 = vld [vmem:[#allocation197_spill] sm:$0xff]  ;;  %v1885_v54 = vshll.u32 %v1884_v9, 16  ;;  %v3092_v49 = vshra.s32 %v11019_v57, 16  ;;  %v17352_v9 = vld [vmem:[#allocation170_spill] sm:$0xff] }
 0x2eb   :  { %17333 = vst [vmem:[#allocation120_spill] sm:$0xff] %v11007_v32  ;;  %17334 = vst [vmem:[#allocation129_spill] sm:$0xff] %v11009_v41  ;;  %2525 = vmin.xlane.f32.xlu0 %v17336_v40  ;;  %vm16508_vm4 = vcmp.eq.s32.totalorder %v9073_v44, %v11007_v32  ;;  %vm2873_vm6 = vcmp.eq.f32.partialorder %v17340_v51, %v11009_v41  ;;  %v2587_v13 = vand.u32 65535, %v17344_v61  ;;  %v11038_v51 = vcvt.s32.f32 %v3078_v62  ;;  %v17346_v28 = vld [vmem:[#allocation125_spill] sm:$0xff]  ;;  %v17363_v32 = vld [vmem:[#allocation200_spill] sm:$0xff] }
 0x2ec   :  { %v11021_v1 = vpop.xlane.xlu0 %2563  ;;  %v6468_v21 = vsel %vm16508_vm4, 1.0, %v17282_v30  ;;  %v11034_v7 = vsel %vm2873_vm6, %v2869_v63, inf  ;;  %v2853_v16 = vand.u32 65535, %v17346_v28  ;;  %v11042_v41 = vsel %vm1653_vm7, %v9073_v44, 2147483647  ;;  %v17349_v63 = vld [vmem:[#allocation74_spill] sm:$0xff] }
 0x2ed   :  { %17339 = vst [vmem:[#allocation138_spill] sm:$0xff] %v11021_v1  ;;  %3067 = vmin.xlane.f32.xlu1 %v11014_v6  ;;  %vm2565_vm8 = vcmp.eq.f32.partialorder %v17343_v20, %v11021_v1  ;;  %4847 = vst [vmem:[#allocation2 + $0x28] sm:$0xff] %v6468_v21  ;;  %v17350_v6 = vld [vmem:[#allocation76_spill] sm:$0xff]  ;;  %v11058_v62 = vcvt.s32.f32 %v3092_v49  ;;  %v2589_v28 = vcvt.s32.f32 %v2587_v13  ;;  %v17357_v49 = vld [vmem:[#allocation142_spill] sm:$0xff]  ;;  %v2615_v42 = vand.u32 65535, %v17363_v32 }
 0x2ee   :  { %v1882_v40 = vpop.xlane.xlu1 %1881  ;;  %v2566_v52 = vsel %vm2565_vm8, %v2561_v37, inf  ;;  %17345 = vst [vmem:[#allocation108_spill] sm:$0xff] %v11038_v51  ;;  %17347 = vst [vmem:[#allocation133_spill] sm:$0xff] %v11042_v41  ;;  %vm1654_vm9 = vcmp.eq.f32.partialorder %v17350_v6, %v17349_v63  ;;  %v1926_v37 = vcvt.f32.s32 %v17352_v9  ;;  %v17358_v13 = vld [vmem:[#allocation203_spill] sm:$0xff]  ;;  %v17359_v63 = vld [vmem:[#allocation152_spill] sm:$0xff] }
 0x2ef   :  { %v1883_v48 = vcvt.f32.s32 %v1882_v40  ;;  %2567 = vmin.xlane.f32.xlu0 %v2566_v52  ;;  %v3106_v52 = vshra.s32 %v11042_v41, 16  ;;  %17354 = vst [vmem:[#allocation139_spill] sm:$0xff] %v11058_v62  ;;  %v11061_v6 = vsel %vm1654_vm9, %v9073_v44, 2147483647  ;;  %vm1655_vm14 = vcmp.eq.f32.partialorder %v17359_v63, %v17358_v13  ;;  %v17360_v41 = vld [vmem:[#allocation199_spill] sm:$0xff]  ;;  %v17373_v63 = vld [vmem:[#allocation148_spill] sm:$0xff] }
 0x2f0   :  { %v11044_v20 = vpop.xlane.xlu0 %1551  ;;  %17355 = vst [vmem:[#allocation140_spill] sm:$0xff] %v11061_v6  ;;  %v3120_v1 = vshra.s32 %v11061_v6, 16  ;;  %v17378_v6 = vld [vmem:[#allocation176_spill] sm:$0xff] }
 0x2f1   :  { %17348 = vst [vmem:[#allocation160_spill] sm:$0xff] %v11044_v20  ;;  %v11048_v61 = vadd.s32 %v1885_v54, %v1883_v48  ;;  %3081 = vmin.xlane.f32.xlu1 %v11038_v51  ;;  %v17361_v51 = vld [vmem:[#allocation131_spill] sm:$0xff]  ;;  %v11088_v20 = vcvt.s32.f32 %v3106_v52 }
 0x2f2   :  { %v11052_v40 = vpop.xlane.xlu1 %2857 }
 0x2f3   :  { %17351 = vst [vmem:[#allocation115_spill] sm:$0xff] %v11048_v61  ;;  %17353 = vst [vmem:[#allocation187_spill] sm:$0xff] %v11052_v40  ;;  %2553 = vmin.xlane.f32.xlu0 %v10608_v4  ;;  %vm16503_vm10 = vcmp.eq.s32.totalorder %v9073_v44, %v11048_v61  ;;  %v2855_v4 = vcvt.s32.f32 %v2853_v16  ;;  %vm2859_vm13 = vcmp.eq.f32.partialorder %v17357_v49, %v11052_v40  ;;  %v2895_v16 = vand.u32 65535, %v17361_v51 }
 0x2f4   :  { %v6467_v54 = vsel %vm16503_vm10, 1.0, %v17282_v30  ;;  %7537 = vmatprep.mubr.msk.f32.mxu1 %vm16503_vm10, %v17322_v12  ;;  %v11071_v48 = vpop.xlane.xlu0 %2591  ;;  %v1927_v61 = vshll.u32 %v1926_v37, 16  ;;  %17362 = vst [vmem:[#allocation188_spill] sm:$0xff] %v11088_v20 }
 0x2f5   :  { %17356 = vst [vmem:[#allocation24_spill] sm:$0xff] %v11071_v48  ;;  %4846 = vst [vmem:[#allocation2 + $0x20] sm:$0xff] %v6467_v54  ;;  %v5499_v9 = vadd.f32 %v6467_v54, %v5498_v34  ;;  %7538 = vmatmul.mubr.msk.f32.gmra.mxu1 %vm16508_vm4, %v17322_v12  ;;  %3095 = vmin.xlane.f32.xlu1 %v11058_v62  ;;  %vm2593_vm1 = vcmp.eq.f32.partialorder %v17360_v41, %v11071_v48  ;;  %v11085_v40 = vsel %vm2859_vm13, %v2855_v4, inf  ;;  %v17364_v62 = vld [vmem:[#allocation39_spill] sm:$0xff] }
 0x2f6   :  { %v1924_v57 = vpop.xlane.xlu1 %1923  ;;  %v2594_v49 = vsel %vm2593_vm1, %v2589_v28, inf  ;;  %vm1656_vm2 = vcmp.eq.f32.partialorder %v17365_v26, %v17364_v62  ;;  %v11097_v41 = vsel %vm1655_vm14, %v9073_v44, 2147483647  ;;  %v2897_v32 = vcvt.s32.f32 %v2895_v16  ;;  %v17375_v16 = vld [vmem:[#allocation53_spill] sm:$0xff] }
 0x2f7   :  { %v5500_v34 = vadd.f32 %v6468_v21, %v5499_v9  ;;  %v1925_v54 = vcvt.f32.s32 %v1924_v57  ;;  %2595 = vmin.xlane.f32.xlu0 %v2594_v49  ;;  %17366 = vst [vmem:[#allocation146_spill] sm:$0xff] %v11097_v41  ;;  %v17368_v57 = vld [vmem:[#allocation172_spill] sm:$0xff]  ;;  %v11108_v28 = vsel %vm1656_vm2, %v9073_v44, 2147483647  ;;  %v3134_v26 = vshra.s32 %v11097_v41, 16  ;;  %v17374_v9 = vld [vmem:[#allocation50_spill] sm:$0xff] }
 0x2f8   :  { %v11099_v51 = vpop.xlane.xlu0 %1555  ;;  %v1912_v21 = vcvt.f32.s32 %v17368_v57  ;;  %17370 = vst [vmem:[#allocation119_spill] sm:$0xff] %v11108_v28  ;;  %v11112_v62 = vcvt.s32.f32 %v3120_v1  ;;  %v2617_v4 = vcvt.s32.f32 %v2615_v42  ;;  %vm1657_vm7 = vcmp.eq.f32.partialorder %v17375_v16, %v17374_v9  ;;  %v17377_v42 = vld [vmem:[#allocation202_spill] sm:$0xff]  ;;  %v17381_v16 = vld [vmem:[#allocation147_spill] sm:$0xff] }
 0x2f9   :  { %v11101_v37 = vadd.s32 %v1927_v61, %v1925_v54  ;;  %3109 = vmin.xlane.f32.xlu1 %v11088_v20  ;;  %v2881_v49 = vand.u32 65535, %v17377_v42  ;;  %v3148_v54 = vshra.s32 %v11108_v28, 16  ;;  %v11135_v9 = vcvt.s32.f32 %v3134_v26  ;;  %v17384_v42 = vld [vmem:[#allocation206_spill] sm:$0xff] }
 0x2fa   :  { %v11105_v52 = vpop.xlane.xlu1 %2899  ;;  %17371 = vst [vmem:[#allocation191_spill] sm:$0xff] %v11112_v62  ;;  %v1913_v41 = vshll.u32 %v1912_v21, 16  ;;  %v17386_v21 = vld [vmem:[#allocation175_spill] sm:$0xff] }
 0x2fb   :  { %17367 = vst [vmem:[#allocation145_spill] sm:$0xff] %v11101_v37  ;;  %17369 = vst [vmem:[#allocation61_spill] sm:$0xff] %v11105_v52  ;;  %2581 = vmin.xlane.f32.xlu0 %v10636_v3  ;;  %vm3616_vm3 = vcmp.eq.s32.totalorder %v9073_v44, %v11101_v37  ;;  %vm2901_vm6 = vcmp.eq.f32.partialorder %v17373_v63, %v11105_v52  ;;  %v17376_v3 = vld [vmem:[#allocation204_spill] sm:$0xff]  ;;  %v11153_v26 = vcvt.s32.f32 %v3148_v54 }
 0x2fc   :  { %v11116_v61 = vpop.xlane.xlu0 %2619  ;;  %v6470_v13 = vsel %vm3616_vm3, 1.0, %v17282_v30  ;;  %v11129_v1 = vsel %vm2901_vm6, %v2897_v32, inf  ;;  %v17379_v63 = vld [vmem:[#allocation80_spill] sm:$0xff]  ;;  %17380 = vst [vmem:[#allocation151_spill] sm:$0xff] %v11135_v9 }
 0x2fd   :  { %17372 = vst [vmem:[#allocation150_spill] sm:$0xff] %v11116_v61  ;;  %3123 = vmin.xlane.f32.xlu1 %v11112_v62  ;;  %vm2621_vm8 = vcmp.eq.f32.partialorder %v17376_v3, %v11116_v61  ;;  %4849 = vst [vmem:[#allocation2 + $0x38] sm:$0xff] %v6470_v13  ;;  %vm1658_vm9 = vcmp.eq.f32.partialorder %v17379_v63, %v17378_v6  ;;  %v2643_v62 = vand.u32 65535, %v17381_v16  ;;  %v11139_v3 = vsel %vm1657_vm7, %v9073_v44, 2147483647  ;;  %v17392_v16 = vld [vmem:[#allocation154_spill] sm:$0xff] }
 0x2fe   :  { %v1910_v57 = vpop.xlane.xlu1 %1909  ;;  %v2622_v20 = vsel %vm2621_vm8, %v2617_v4, inf  ;;  %17382 = vst [vmem:[#allocation192_spill] sm:$0xff] %v11139_v3  ;;  %v2178_v61 = vcvt.f32.s32 %v17384_v42  ;;  %v1954_v4 = vcvt.f32.s32 %v17386_v21  ;;  %v11149_v6 = vsel %vm1658_vm9, %v9073_v44, 2147483647  ;;  %17389 = vst [vmem:[#allocation78_spill] sm:$0xff] %v11153_v26 }
 0x2ff   :  { %v1911_v52 = vcvt.f32.s32 %v1910_v57  ;;  %2623 = vmin.xlane.f32.xlu0 %v2622_v20  ;;  %17387 = vst [vmem:[#allocation70_spill] sm:$0xff] %v11149_v6  ;;  %v2883_v57 = vcvt.s32.f32 %v2881_v49  ;;  %v3162_v63 = vshra.s32 %v11139_v3, 16  ;;  %v2923_v42 = vand.u32 65535, %v17392_v16  ;;  %v17393_v3 = vld [vmem:[#allocation165_spill] sm:$0xff] }
 0x300   :  { %v11141_v32 = vpop.xlane.xlu0 %2647  ;;  %v2645_v54 = vcvt.s32.f32 %v2643_v62  ;;  %vm1659_vm2 = vcmp.eq.f32.partialorder %v17393_v3, %v10597_v5  ;;  %v17394_v62 = vld [vmem:[#allocation41_spill] sm:$0xff] }
 0x301   :  { %17383 = vst [vmem:[#allocation118_spill] sm:$0xff] %v11141_v32  ;;  %v11144_v28 = vadd.s32 %v1913_v41, %v1911_v52  ;;  %3137 = vmin.xlane.f32.xlu1 %v11135_v9  ;;  %v17390_v41 = vld [vmem:[#allocation25_spill] sm:$0xff]  ;;  %v17391_v52 = vld [vmem:[#allocation56_spill] sm:$0xff]  ;;  %v2179_v9 = vshll.u32 %v2178_v61, 16  ;;  %v11189_v37 = vcvt.s32.f32 %v3162_v63  ;;  %v2925_v3 = vcvt.s32.f32 %v2923_v42 }
 0x302   :  { %v11151_v20 = vpop.xlane.xlu1 %2885  ;;  %vm2649_vm14 = vcmp.eq.f32.partialorder %v17390_v41, %v11141_v32  ;;  %v2206_v42 = vcvt.f32.s32 %v10579_v46  ;;  %v17408_v46 = vld [vmem:[#allocation177_spill] sm:$0xff] }
 0x303   :  { %17385 = vst [vmem:[#allocation71_spill] sm:$0xff] %v11144_v28  ;;  %17388 = vst [vmem:[#allocation157_spill] sm:$0xff] %v11151_v20  ;;  %2609 = vmin.xlane.f32.xlu0 %v10656_v11  ;;  %vm16520_vm13 = vcmp.eq.s32.totalorder %v9073_v44, %v11144_v28  ;;  %vm2887_vm1 = vcmp.eq.f32.partialorder %v17391_v52, %v11151_v20  ;;  %v1955_v20 = vshll.u32 %v1954_v4, 16  ;;  %v3176_v28 = vshra.s32 %v11149_v6, 16  ;;  %v17470_v32 = vld [vmem:[#allocation121_spill] sm:$0xff] }
 0x304   :  { %v6469_v49 = vsel %vm16520_vm13, 1.0, %v17282_v30  ;;  %7540 = vmatprep.mubr.msk.f32.mxu1 %vm16520_vm13, %v17322_v12  ;;  %v2176_v11 = vpop.xlane.xlu0 %2175  ;;  %v11172_v21 = vsel %vm2887_vm1, %v2883_v57, inf  ;;  %v17395_v57 = vld [vmem:[#allocation85_spill] sm:$0xff]  ;;  %v2650_v48 = vsel %vm2649_vm14, %v2645_v54, inf  ;;  %17396 = vst [vmem:[#allocation166_spill] sm:$0xff] %v11189_v37  ;;  %v17402_v54 = vld [vmem:[#allocation27_spill] sm:$0xff] }
 0x305   :  { %4848 = vst [vmem:[#allocation2 + $0x30] sm:$0xff] %v6469_v49  ;;  %v5501_v52 = vadd.f32 %v6469_v49, %v5500_v34  ;;  %v2177_v16 = vcvt.f32.s32 %v2176_v11  ;;  %7541 = vmatmul.mubr.msk.f32.gmra.mxu1 %vm3616_vm3, %v17322_v12  ;;  %3151 = vmin.xlane.f32.xlu1 %v11153_v26  ;;  %vm1660_vm6 = vcmp.eq.f32.partialorder %v17395_v57, %v17394_v62  ;;  %v11195_v4 = vsel %vm1659_vm2, %v9073_v44, 2147483647 }
 0x306   :  { %v1952_v61 = vpop.xlane.xlu1 %1951  ;;  %17397 = vst [vmem:[#allocation123_spill] sm:$0xff] %v11195_v4  ;;  %v3190_v41 = vshra.s32 %v11195_v4, 16  ;;  %v2207_v4 = vshll.u32 %v2206_v42, 16 }
 0x307   :  { %v11187_v34 = vadd.s32 %v2179_v9, %v2177_v16  ;;  %v5502_v49 = vadd.f32 %v6470_v13, %v5501_v52  ;;  %v1953_v11 = vcvt.f32.s32 %v1952_v61  ;;  %2651 = vmin.xlane.f32.xlu0 %v2650_v48  ;;  %v11203_v9 = vsel %vm1660_vm6, %v9073_v44, 2147483647  ;;  %v17403_v16 = vld [vmem:[#allocation66_spill] sm:$0xff] }
 0x308   :  { %17398 = vst [vmem:[#allocation132_spill] sm:$0xff] %v11203_v9  ;;  %v11207_v48 = vcvt.s32.f32 %v3176_v28  ;;  %vm1661_vm14 = vcmp.eq.f32.partialorder %v17403_v16, %v10624_v47  ;;  %v3204_v57 = vshra.s32 %v11203_v9, 16 }
 0x309   :  { %v11197_v6 = vadd.s32 %v1955_v20, %v1953_v11  ;;  %3165 = vmin.xlane.f32.xlu1 %v11189_v37  ;;  %vm3634_vm7 = vcmp.eq.s32.totalorder %v9073_v44, %v11187_v34  ;;  %v17401_v20 = vld [vmem:[#allocation86_spill] sm:$0xff]  ;;  %v11239_v47 = vsel %vm1661_vm14, %v9073_v44, 2147483647 }
 0x30a   :  { %v11205_v13 = vpop.xlane.xlu1 %2927  ;;  %17400 = vst [vmem:[#allocation28_spill] sm:$0xff] %v11207_v48  ;;  %v6488_v5 = vsel %vm3634_vm7, 1.0, %v17282_v30  ;;  %v1940_v63 = vcvt.f32.s32 %v17401_v20  ;;  %v17406_v20 = vld [vmem:[#allocation90_spill] sm:$0xff]  ;;  %17409 = vst [vmem:[#allocation127_spill] sm:$0xff] %v11239_v47  ;;  %v3218_v37 = vshra.s32 %v11239_v47, 16 }
 0x30b   :  { %17399 = vst [vmem:[#allocation52_spill] sm:$0xff] %v11205_v13  ;;  %2637 = vmin.xlane.f32.xlu0 %v10668_v19  ;;  %vm3618_vm8 = vcmp.eq.s32.totalorder %v9073_v44, %v11197_v6  ;;  %4867 = vst [vmem:[#allocation2 + $0xc8] sm:$0xff] %v6488_v5  ;;  %vm2929_vm9 = vcmp.eq.f32.partialorder %v17402_v54, %v11205_v13  ;;  %v17404_v19 = vld [vmem:[#allocation55_spill] sm:$0xff]  ;;  %v2192_v13 = vcvt.f32.s32 %v17408_v46 }
 0x30c   :  { %v6472_v28 = vsel %vm3618_vm8, 1.0, %v17282_v30  ;;  %v11224_v52 = vsel %vm2929_vm9, %v2925_v3, inf  ;;  %v2909_v62 = vand.u32 65535, %v17404_v19  ;;  %v1941_v11 = vshll.u32 %v1940_v63, 16  ;;  %v17405_v5 = vld [vmem:[#allocation43_spill] sm:$0xff] }
 0x30d   :  { %3179 = vmin.xlane.f32.xlu1 %v11207_v48  ;;  %4851 = vst [vmem:[#allocation2 + $0x48] sm:$0xff] %v6472_v28  ;;  %vm1662_vm1 = vcmp.eq.f32.partialorder %v17406_v20, %v17405_v5  ;;  %v11235_v3 = vcvt.s32.f32 %v3190_v41  ;;  %v17410_v48 = vld [vmem:[#allocation162_spill] sm:$0xff]  ;;  %v17411_v5 = vld [vmem:[#allocation179_spill] sm:$0xff]  ;;  %v11251_v20 = vcvt.s32.f32 %v3204_v57  ;;  %v2193_v42 = vshll.u32 %v2192_v13, 16 }
 0x30e   :  { %v1938_v61 = vpop.xlane.xlu1 %1937  ;;  %v2951_v19 = vand.u32 65535, %v17410_v48  ;;  %v2911_v46 = vcvt.s32.f32 %v2909_v62  ;;  %v17415_v48 = vld [vmem:[#allocation60_spill] sm:$0xff]  ;;  %v17416_v57 = vld [vmem:[#allocation171_spill] sm:$0xff] }
 0x30f   :  { %v1939_v54 = vcvt.f32.s32 %v1938_v61  ;;  %2679 = vmin.xlane.f32.xlu0 %v10688_v27  ;;  %17407 = vst [vmem:[#allocation29_spill] sm:$0xff] %v11235_v3  ;;  %v1982_v61 = vcvt.f32.s32 %v17411_v5  ;;  %v11247_v27 = vsel %vm1662_vm1, %v9073_v44, 2147483647  ;;  %17414 = vst [vmem:[#allocation72_spill] sm:$0xff] %v11251_v20  ;;  %vm1663_vm9 = vcmp.eq.f32.partialorder %v17416_v57, %v10654_v33  ;;  %v17418_v5 = vld [vmem:[#allocation97_spill] sm:$0xff] }
 0x310   :  { %v2204_v16 = vpop.xlane.xlu0 %2203  ;;  %17412 = vst [vmem:[#allocation194_spill] sm:$0xff] %v11247_v27  ;;  %v11300_v47 = vsel %vm1663_vm9, %v9073_v44, 2147483647 }
 0x311   :  { %v11242_v9 = vadd.s32 %v1941_v11, %v1939_v54  ;;  %v2205_v63 = vcvt.f32.s32 %v2204_v16  ;;  %3193 = vmin.xlane.f32.xlu1 %v11235_v3  ;;  %v2234_v11 = vcvt.f32.s32 %v10606_v50  ;;  %v1983_v50 = vshll.u32 %v1982_v61, 16  ;;  %v17420_v61 = vld [vmem:[#allocation92_spill] sm:$0xff]  ;;  %17421 = vst [vmem:[#allocation14_spill] sm:$0xff] %v11300_v47 }
 0x312   :  { %v11249_v41 = vpop.xlane.xlu1 %2913  ;;  %v3232_v16 = vshra.s32 %v11247_v27, 16  ;;  %v2953_v3 = vcvt.s32.f32 %v2951_v19 }
 0x313   :  { %17413 = vst [vmem:[#allocation37_spill] sm:$0xff] %v11249_v41  ;;  %v11254_v26 = vadd.s32 %v2207_v4, %v2205_v63  ;;  %2665 = vmin.xlane.f32.xlu0 %v10700_v59  ;;  %vm3617_vm2 = vcmp.eq.s32.totalorder %v9073_v44, %v11242_v9  ;;  %vm2915_vm6 = vcmp.eq.f32.partialorder %v17415_v48, %v11249_v41  ;;  %v17417_v63 = vld [vmem:[#allocation45_spill] sm:$0xff]  ;;  %v11293_v41 = vcvt.s32.f32 %v3218_v37 }
 0x314   :  { %v6471_v62 = vsel %vm3617_vm2, 1.0, %v17282_v30  ;;  %7543 = vmatprep.mubr.msk.f32.mxu1 %vm3617_vm2, %v17322_v12  ;;  %v2190_v59 = vpop.xlane.xlu0 %2189  ;;  %v11270_v4 = vsel %vm2915_vm6, %v2911_v46, inf  ;;  %vm1664_vm1 = vcmp.eq.f32.partialorder %v17418_v5, %v17417_v63  ;;  %v11316_v19 = vcvt.s32.f32 %v3232_v16 }
 0x315   :  { %4850 = vst [vmem:[#allocation2 + $0x40] sm:$0xff] %v6471_v62  ;;  %v5503_v13 = vadd.f32 %v6471_v62, %v5502_v49  ;;  %v2191_v54 = vcvt.f32.s32 %v2190_v59  ;;  %7544 = vmatmul.mubr.msk.f32.gmra.mxu1 %vm3618_vm8, %v17322_v12  ;;  %3207 = vmin.xlane.f32.xlu1 %v11251_v20  ;;  %vm3636_vm14 = vcmp.eq.s32.totalorder %v9073_v44, %v11254_v26  ;;  %17419 = vst [vmem:[#allocation69_spill] sm:$0xff] %v11293_v41 }
 0x316   :  { %v1980_v46 = vpop.xlane.xlu1 %1979  ;;  %v6490_v49 = vsel %vm3636_vm14, 1.0, %v17282_v30  ;;  %v2220_v20 = vcvt.f32.s32 %v17420_v61  ;;  %v11312_v33 = vsel %vm1664_vm1, %v9073_v44, 2147483647  ;;  %17425 = vst [vmem:[#allocation143_spill] sm:$0xff] %v11316_v19 }
 0x317   :  { %v11288_v48 = vadd.s32 %v2193_v42, %v2191_v54  ;;  %v11290_v62 = vadd.f32 %v6472_v28, %v5503_v13  ;;  %v1981_v59 = vcvt.f32.s32 %v1980_v46  ;;  %2707 = vmin.xlane.f32.xlu0 %v10720_v36  ;;  %4869 = vst [vmem:[#allocation2 + $0xd8] sm:$0xff] %v6490_v49  ;;  %v2235_v42 = vshll.u32 %v2234_v11, 16  ;;  %v17422_v36 = vld [vmem:[#allocation95_spill] sm:$0xff]  ;;  %17423 = vst [vmem:[#allocation136_spill] sm:$0xff] %v11312_v33 }
 0x318   :  { %v2232_v27 = vpop.xlane.xlu0 %2231  ;;  %v1968_v37 = vcvt.f32.s32 %v17422_v36  ;;  %v3246_v11 = vshra.s32 %v11300_v47, 16  ;;  %v2262_v46 = vcvt.f32.s32 %v10634_v60  ;;  %v17469_v47 = vld [vmem:[#allocation51_spill] sm:$0xff] }
 0x319   :  { %v11302_v54 = vadd.s32 %v1983_v50, %v1981_v59  ;;  %v2233_v28 = vcvt.f32.s32 %v2232_v27  ;;  %3221 = vmin.xlane.f32.xlu1 %v11293_v41  ;;  %vm3635_vm6 = vcmp.eq.s32.totalorder %v9073_v44, %v11288_v48  ;;  %v2221_v50 = vshll.u32 %v2220_v20, 16  ;;  %v7975_v48 = vld [vmem:[#allocation2 + $0xc8] sm:$0xff] }
 0x31a   :  { %v11314_v57 = vpop.xlane.xlu1 %2955  ;;  %v6489_v27 = vsel %vm3635_vm6, 1.0, %v17282_v30  ;;  %v1969_v59 = vshll.u32 %v1968_v37, 16  ;;  %vm1672_vm13 = vcmp.eq.f32.partialorder %v17470_v32, %v17469_v47 }
 0x31b   :  { %17424 = vst [vmem:[#allocation141_spill] sm:$0xff] %v11314_v57  ;;  %v11323_v13 = vadd.s32 %v2235_v42, %v2233_v28  ;;  %2693 = vmin.xlane.f32.xlu0 %v10732_v56  ;;  %vm3620_vm9 = vcmp.eq.s32.totalorder %v9073_v44, %v11302_v54  ;;  %4868 = vst [vmem:[#allocation2 + $0xd0] sm:$0xff] %v6489_v27  ;;  %vm2957_vm1 = vcmp.eq.f32.partialorder %v10618_v23, %v11314_v57  ;;  %v17426_v56 = vld [vmem:[#allocation173_spill] sm:$0xff]  ;;  %v17429_v27 = vld [vmem:[#allocation99_spill] sm:$0xff] }
 0x31c   :  { %v2218_v16 = vpop.xlane.xlu0 %2217  ;;  %v6474_v63 = vsel %vm3620_vm9, 1.0, %v17282_v30  ;;  %v11334_v5 = vsel %vm2957_vm1, %v2953_v3, inf  ;;  %vm1665_vm0 = vcmp.eq.f32.partialorder %v17426_v56, %v10686_v43  ;;  %v3260_v23 = vshra.s32 %v11312_v33, 16  ;;  %v17428_v28 = vld [vmem:[#allocation181_spill] sm:$0xff] }
 0x31d   :  { %v2219_v49 = vcvt.f32.s32 %v2218_v16  ;;  %3235 = vmin.xlane.f32.xlu1 %v11316_v19  ;;  %4853 = vst [vmem:[#allocation2 + $0x58] sm:$0xff] %v6474_v63  ;;  %vm3638_vm15 = vcmp.eq.s32.totalorder %v9073_v44, %v11323_v13  ;;  %v11350_v42 = vcvt.s32.f32 %v3246_v11  ;;  %v2248_v36 = vcvt.f32.s32 %v17428_v28  ;;  %v17430_v16 = vld [vmem:[#allocation103_spill] sm:$0xff]  ;;  %v17453_v19 = vld [vmem:[#allocation113_spill] sm:$0xff] }
 0x31e   :  { %v1966_v20 = vpop.xlane.xlu1 %1965  ;;  %v6492_v3 = vsel %vm3638_vm15, 1.0, %v17282_v30  ;;  %vm1666_vm1 = vcmp.eq.f32.partialorder %v17430_v16, %v17429_v27  ;;  %v11359_v57 = vsel %vm1665_vm0, %v9073_v44, 2147483647  ;;  %v11369_v28 = vcvt.s32.f32 %v3260_v23 }
 0x31f   :  { %v11347_v60 = vadd.s32 %v2221_v50, %v2219_v49  ;;  %v1967_v61 = vcvt.f32.s32 %v1966_v20  ;;  %2735 = vmin.xlane.f32.xlu0 %v10753_v18  ;;  %17427 = vst [vmem:[#allocation196_spill] sm:$0xff] %v11350_v42  ;;  %4871 = vst [vmem:[#allocation2 + $0xe8] sm:$0xff] %v6492_v3  ;;  %v2263_v50 = vshll.u32 %v2262_v46, 16  ;;  %v17432_v18 = vld [vmem:[#allocation21_spill] sm:$0xff]  ;;  %v11376_v46 = vsel %vm1666_vm1, %v9073_v44, 2147483647 }
 0x320   :  { %17431 = vst [vmem:[#allocation197_spill] sm:$0xff] %v11359_v57  ;;  %v2260_v37 = vpop.xlane.xlu0 %2259  ;;  %v2010_v11 = vcvt.f32.s32 %v17432_v18  ;;  %17434 = vst [vmem:[#allocation74_spill] sm:$0xff] %v11369_v28  ;;  %v3274_v56 = vshra.s32 %v11359_v57, 16  ;;  %v2249_v23 = vshll.u32 %v2248_v36, 16  ;;  %v17440_v57 = vld [vmem:[#allocation107_spill] sm:$0xff] }
 0x321   :  { %v11361_v49 = vadd.s32 %v1969_v59, %v1967_v61  ;;  %v2261_v20 = vcvt.f32.s32 %v2260_v37  ;;  %3249 = vmin.xlane.f32.xlu1 %v11350_v42  ;;  %vm3637_vm11 = vcmp.eq.s32.totalorder %v9073_v44, %v11347_v60  ;;  %17435 = vst [vmem:[#allocation76_spill] sm:$0xff] %v11376_v46  ;;  %v2290_v61 = vcvt.f32.s32 %v10666_v24  ;;  %v17604_v60 = vld [vmem:[#allocation120_spill] sm:$0xff] }
 0x322   :  { %v11367_v3 = vpop.xlane.xlu1 %2941  ;;  %v6491_v43 = vsel %vm3637_vm11, 1.0, %v17282_v30  ;;  %v2011_v24 = vshll.u32 %v2010_v11, 16  ;;  %v11417_v11 = vcvt.s32.f32 %v3274_v56 }
 0x323   :  { %17433 = vst [vmem:[#allocation125_spill] sm:$0xff] %v11367_v3  ;;  %v11379_v59 = vadd.s32 %v2263_v50, %v2261_v20  ;;  %2721 = vmin.xlane.f32.xlu0 %v10767_v58  ;;  %vm3619_vm0 = vcmp.eq.s32.totalorder %v9073_v44, %v11361_v49  ;;  %4870 = vst [vmem:[#allocation2 + $0xe0] sm:$0xff] %v6491_v43  ;;  %v17436_v58 = vld [vmem:[#allocation82_spill] sm:$0xff]  ;;  %v3288_v50 = vshra.s32 %v11376_v46, 16 }
 0x324   :  { %v6473_v27 = vsel %vm3619_vm0, 1.0, %v17282_v30  ;;  %7546 = vmatprep.mubr.msk.f32.mxu1 %vm3619_vm0, %v17322_v12  ;;  %v2246_v16 = vpop.xlane.xlu0 %2245  ;;  %vm1667_vm1 = vcmp.eq.f32.partialorder %v17436_v58, %v10718_v14  ;;  %17437 = vst [vmem:[#allocation170_spill] sm:$0xff] %v11417_v11 }
 0x325   :  { %4852 = vst [vmem:[#allocation2 + $0x50] sm:$0xff] %v6473_v27  ;;  %v5505_v37 = vadd.f32 %v6473_v27, %v11290_v62  ;;  %v2247_v36 = vcvt.f32.s32 %v2246_v16  ;;  %7547 = vmatmul.mubr.msk.f32.gmra.mxu1 %vm3620_vm9, %v17322_v12  ;;  %3263 = vmin.xlane.f32.xlu1 %v11369_v28  ;;  %vm16502_vm12 = vcmp.eq.s32.totalorder %v9073_v44, %v11379_v59  ;;  %v17438_v16 = vld [vmem:[#allocation184_spill] sm:$0xff]  ;;  %v17439_v28 = vld [vmem:[#allocation47_spill] sm:$0xff]  ;;  %v11426_v42 = vsel %vm1667_vm1, %v9073_v44, 2147483647 }
 0x326   :  { %v2008_v20 = vpop.xlane.xlu1 %2007  ;;  %v6494_v62 = vsel %vm16502_vm12, 1.0, %v17282_v30  ;;  %7123 = vmatprep.subr.msk.mxu0 %vm16502_vm12, %v17322_v12  ;;  %v2276_v46 = vcvt.f32.s32 %v17438_v16  ;;  %vm1668_vm5 = vcmp.eq.f32.partialorder %v17440_v57, %v17439_v28  ;;  %17441 = vst [vmem:[#allocation142_spill] sm:$0xff] %v11426_v42  ;;  %v11436_v57 = vcvt.s32.f32 %v3288_v50  ;;  %v17447_v16 = vld [vmem:[#allocation180_spill] sm:$0xff] }
 0x327   :  { %v11412_v18 = vadd.s32 %v2249_v23, %v2247_v36  ;;  %v11414_v43 = vadd.f32 %v6474_v63, %v5505_v37  ;;  %v2009_v27 = vcvt.f32.s32 %v2008_v20  ;;  %4873 = vst [vmem:[#allocation2 + $0xf8] sm:$0xff] %v6494_v62  ;;  %2763 = vmin.xlane.f32.xlu0 %v10787_v10  ;;  %v2291_v63 = vshll.u32 %v2290_v61, 16  ;;  %v17442_v10 = vld [vmem:[#allocation22_spill] sm:$0xff] }
 0x328   :  { %v2288_v23 = vpop.xlane.xlu0 %2287  ;;  %v1996_v56 = vcvt.f32.s32 %v17442_v10  ;;  %17444 = vst [vmem:[#allocation152_spill] sm:$0xff] %v11436_v57  ;;  %v11443_v28 = vsel %vm1668_vm5, %v9073_v44, 2147483647  ;;  %v3302_v61 = vshra.s32 %v11426_v42, 16  ;;  %vm1669_vm5 = vcmp.eq.f32.partialorder %v17447_v16, %v10751_v55  ;;  %v17451_v42 = vld [vmem:[#allocation106_spill] sm:$0xff] }
 0x329   :  { %v11428_v37 = vadd.s32 %v2011_v24, %v2009_v27  ;;  %v2289_v36 = vcvt.f32.s32 %v2288_v23  ;;  %3277 = vmin.xlane.f32.xlu1 %v11417_v11  ;;  %vm16536_vm12 = vcmp.eq.s32.totalorder %v9073_v44, %v11412_v18  ;;  %17445 = vst [vmem:[#allocation199_spill] sm:$0xff] %v11443_v28  ;;  %v2277_v24 = vshll.u32 %v2276_v46, 16 }
 0x32a   :  { %v11434_v20 = vpop.xlane.xlu1 %2983  ;;  %v6493_v14 = vsel %vm16536_vm12, 1.0, %v17282_v30  ;;  %v2318_v27 = vcvt.f32.s32 %v10698_v38  ;;  %v1997_v10 = vshll.u32 %v1996_v56, 16  ;;  %v2304_v11 = vcvt.f32.s32 %v17451_v42 }
 0x32b   :  { %17443 = vst [vmem:[#allocation203_spill] sm:$0xff] %v11434_v20  ;;  %v11446_v58 = vadd.s32 %v2291_v63, %v2289_v36  ;;  %2749 = vmin.xlane.f32.xlu0 %v10801_v22  ;;  %vm3622_vm1 = vcmp.eq.s32.totalorder %v9073_v44, %v11428_v37  ;;  %4872 = vst [vmem:[#allocation2 + $0xf0] sm:$0xff] %v6493_v14  ;;  %v17448_v22 = vld [vmem:[#allocation65_spill] sm:$0xff]  ;;  %v3316_v63 = vshra.s32 %v11443_v28, 16  ;;  %v11479_v28 = vsel %vm1669_vm5, %v9073_v44, 2147483647 }
 0x32c   :  { %v2274_v50 = vpop.xlane.xlu0 %2273  ;;  %v6476_v62 = vsel %vm3622_vm1, 1.0, %v17282_v30  ;;  %v2979_v46 = vand.u32 65535, %v17448_v22  ;;  %v17452_v22 = vld [vmem:[#allocation48_spill] sm:$0xff]  ;;  %17454 = vst [vmem:[#allocation79_spill] sm:$0xff] %v11479_v28  ;;  %v3330_v16 = vshra.s32 %v11479_v28, 16 }
 0x32d   :  { %17446 = vst [vmem:[#allocation131_spill] sm:$0xff] %v11446_v58  ;;  %v2275_v23 = vcvt.f32.s32 %v2274_v50  ;;  %3291 = vmin.xlane.f32.xlu1 %v11436_v57  ;;  %4855 = vst [vmem:[#allocation2 + $0x68] sm:$0xff] %v6476_v62  ;;  %vm16510_vm10 = vcmp.eq.s32.totalorder %v9073_v44, %v11446_v58  ;;  %v11470_v57 = vcvt.s32.f32 %v3302_v61  ;;  %vm1670_vm4 = vcmp.eq.f32.partialorder %v17453_v19, %v17452_v22  ;;  %v17462_v22 = vld [vmem:[#allocation77_spill] sm:$0xff]  ;;  %v17485_v58 = vld [vmem:[#allocation12_spill] sm:$0xff] }
 0x32e   :  { %v1994_v36 = vpop.xlane.xlu1 %1993  ;;  %v6496_v38 = vsel %vm16510_vm10, 1.0, %v17282_v30  ;;  %v11489_v19 = vcvt.s32.f32 %v3316_v63  ;;  %v11542_v33 = vcvt.s32.f32 %v3330_v16 }
 0x32f   :  { %v11467_v14 = vadd.s32 %v2277_v24, %v2275_v23  ;;  %v1995_v50 = vcvt.f32.s32 %v1994_v36  ;;  %2791 = vmin.xlane.f32.xlu0 %v10821_v31  ;;  %17450 = vst [vmem:[#allocation39_spill] sm:$0xff] %v11470_v57  ;;  %4875 = vst [vmem:[#allocation2 + $0x108] sm:$0xff] %v6496_v38  ;;  %v2319_v24 = vshll.u32 %v2318_v27, 16  ;;  %v17455_v31 = vld [vmem:[#allocation105_spill] sm:$0xff]  ;;  %v11491_v38 = vcvt.s32.f32 %v2979_v46  ;;  %v17461_v46 = vld [vmem:[#allocation38_spill] sm:$0xff] }
 0x330   :  { %v2316_v56 = vpop.xlane.xlu0 %2315  ;;  %v2038_v42 = vcvt.f32.s32 %v17455_v31  ;;  %17457 = vst [vmem:[#allocation148_spill] sm:$0xff] %v11489_v19  ;;  %v11500_v27 = vsel %vm1670_vm4, %v9073_v44, 2147483647  ;;  %v3007_v63 = vand.u32 65535, %v17461_v46  ;;  %v3035_v46 = vand.u32 65535, %v10783_v53  ;;  %17466 = vst [vmem:[#allocation80_spill] sm:$0xff] %v11542_v33 }
 0x331   :  { %17449 = vst [vmem:[#allocation200_spill] sm:$0xff] %v11467_v14  ;;  %v11481_v23 = vadd.s32 %v1997_v10, %v1995_v50  ;;  %v2317_v36 = vcvt.f32.s32 %v2316_v56  ;;  %3305 = vmin.xlane.f32.xlu1 %v11470_v57  ;;  %vm16511_vm10 = vcmp.eq.s32.totalorder %v9073_v44, %v11467_v14  ;;  %17459 = vst [vmem:[#allocation53_spill] sm:$0xff] %v11500_v27  ;;  %v2305_v50 = vshll.u32 %v2304_v11, 16  ;;  %v17467_v53 = vld [vmem:[#allocation63_spill] sm:$0xff] }
 0x332   :  { %v11487_v61 = vpop.xlane.xlu1 %2969  ;;  %v11497_v55 = vsel %vm16511_vm10, 1.0, %v17282_v30  ;;  %v2346_v56 = vcvt.f32.s32 %v17462_v22  ;;  %v2039_v22 = vshll.u32 %v2038_v42, 16  ;;  %v3344_v28 = vshra.s32 %v11500_v27, 16  ;;  %v17468_v27 = vld [vmem:[#allocation189_spill] sm:$0xff] }
 0x333   :  { %17456 = vst [vmem:[#allocation172_spill] sm:$0xff] %v11487_v61  ;;  %17458 = vst [vmem:[#allocation50_spill] sm:$0xff] %v11497_v55  ;;  %v11503_v10 = vadd.s32 %v2319_v24, %v2317_v36  ;;  %2777 = vmin.xlane.f32.xlu0 %v10835_v25  ;;  %vm3621_vm5 = vcmp.eq.s32.totalorder %v9073_v44, %v11481_v23  ;;  %v17463_v24 = vld [vmem:[#allocation94_spill] sm:$0xff]  ;;  %v2937_v42 = vand.u32 65535, %v17467_v53  ;;  %v2332_v41 = vcvt.f32.s32 %v17468_v27  ;;  %v17472_v27 = vld [vmem:[#allocation169_spill] sm:$0xff] }
 0x334   :  { %4874 = vst [vmem:[#allocation2 + $0x100] sm:$0xff] %v11497_v55  ;;  %v6475_v31 = vsel %vm3621_vm5, 1.0, %v17282_v30  ;;  %7549 = vmatprep.mubr.msk.f32.mxu1 %vm3621_vm5, %v17322_v12  ;;  %v2302_v25 = vpop.xlane.xlu0 %2301  ;;  %vm1671_vm4 = vcmp.eq.f32.partialorder %v17463_v24, %v10785_v35  ;;  %v11564_v53 = vcvt.s32.f32 %v3344_v28  ;;  %v17486_v55 = vld [vmem:[#allocation128_spill] sm:$0xff] }
 0x335   :  { %17460 = vst [vmem:[#allocation204_spill] sm:$0xff] %v11503_v10  ;;  %4854 = vst [vmem:[#allocation2 + $0x60] sm:$0xff] %v6475_v31  ;;  %v5507_v36 = vadd.f32 %v6475_v31, %v11414_v43  ;;  %v2303_v11 = vcvt.f32.s32 %v2302_v25  ;;  %7550 = vmatmul.mubr.msk.f32.gmra.mxu1 %vm3622_vm1, %v17322_v12  ;;  %3319 = vmin.xlane.f32.xlu1 %v11489_v19  ;;  %vm16521_vm10 = vcmp.eq.s32.totalorder %v9073_v44, %v11503_v10 }
 0x336   :  { %v2036_v57 = vpop.xlane.xlu1 %2035  ;;  %v11535_v43 = vsel %vm16521_vm10, 1.0, %v17282_v30  ;;  %17475 = vst [vmem:[#allocation175_spill] sm:$0xff] %v11564_v53  ;;  %v2333_v28 = vshll.u32 %v2332_v41, 16  ;;  %v17480_v41 = vld [vmem:[#allocation100_spill] sm:$0xff] }
 0x337   :  { %17464 = vst [vmem:[#allocation202_spill] sm:$0xff] %v11535_v43  ;;  %v11537_v31 = vadd.s32 %v2305_v50, %v2303_v11  ;;  %v11539_v25 = vadd.f32 %v6476_v62, %v5507_v36  ;;  %v2037_v19 = vcvt.f32.s32 %v2036_v57  ;;  %2819 = vmin.xlane.f32.xlu0 %v10875_v17  ;;  %4877 = vst [vmem:[#allocation2 + $0x118] sm:$0xff] %v11535_v43  ;;  %v11553_v62 = vsel %vm1671_vm4, %v9073_v44, 2147483647  ;;  %v17473_v11 = vld [vmem:[#allocation112_spill] sm:$0xff] }
 0x338   :  { %17471 = vst [vmem:[#allocation147_spill] sm:$0xff] %v11553_v62  ;;  %v2344_v57 = vpop.xlane.xlu0 %2343  ;;  %v2347_v50 = vshll.u32 %v2346_v56, 16  ;;  %v2965_v36 = vand.u32 65535, %v17472_v27  ;;  %v2024_v32 = vcvt.f32.s32 %v17473_v11  ;;  %v3358_v56 = vshra.s32 %v11553_v62, 16  ;;  %v17479_v11 = vld [vmem:[#allocation87_spill] sm:$0xff] }
 0x339   :  { %17465 = vst [vmem:[#allocation176_spill] sm:$0xff] %v11537_v31  ;;  %v11555_v17 = vadd.s32 %v2039_v22, %v2037_v19  ;;  %v2345_v16 = vcvt.f32.s32 %v2344_v57  ;;  %3333 = vmin.xlane.f32.xlu1 %v11542_v33  ;;  %vm16523_vm10 = vcmp.eq.s32.totalorder %v9073_v44, %v11537_v31  ;;  %v11573_v19 = vsel %vm1672_vm13, %v9073_v44, 2147483647 }
 0x33a   :  { %v11562_v47 = vpop.xlane.xlu1 %3011  ;;  %v11570_v35 = vsel %vm16523_vm10, 1.0, %v17282_v30  ;;  %17477 = vst [vmem:[#allocation56_spill] sm:$0xff] %v11573_v19  ;;  %vm1673_vm13 = vcmp.eq.f32.partialorder %v17480_v41, %v17479_v11  ;;  %v11610_v33 = vcvt.s32.f32 %v2965_v36  ;;  %v17484_v36 = vld [vmem:[#allocation193_spill] sm:$0xff] }
 0x33b   :  { %17474 = vst [vmem:[#allocation206_spill] sm:$0xff] %v11562_v47  ;;  %17476 = vst [vmem:[#allocation25_spill] sm:$0xff] %v11570_v35  ;;  %v11576_v24 = vadd.s32 %v2347_v50, %v2345_v16  ;;  %2805 = vmin.xlane.f32.xlu0 %v10917_v15  ;;  %vm3624_vm4 = vcmp.eq.s32.totalorder %v9073_v44, %v11555_v17  ;;  %v11592_v50 = vcvt.s32.f32 %v3007_v63  ;;  %v11594_v15 = vcvt.s32.f32 %v3035_v46  ;;  %v17478_v16 = vld [vmem:[#allocation174_spill] sm:$0xff] }
 0x33c   :  { %4876 = vst [vmem:[#allocation2 + $0x110] sm:$0xff] %v11570_v35  ;;  %v11586_v22 = vsel %vm3624_vm4, 1.0, %v17282_v30  ;;  %7124 = vmatpush3.msk.msra.mxu0 %vm3624_vm4, %v17322_v12  ;;  %v2330_v57 = vpop.xlane.xlu0 %2329  ;;  %v2374_v27 = vcvt.f32.s32 %v17478_v16  ;;  %v3372_v63 = vshra.s32 %v11573_v19, 16  ;;  %v11608_v16 = vcvt.s32.f32 %v2937_v42  ;;  %v17483_v42 = vld [vmem:[#allocation64_spill] sm:$0xff] }
 0x33d   :  { %4857 = vst [vmem:[#allocation2 + $0x78] sm:$0xff] %v11586_v22  ;;  %v2331_v62 = vcvt.f32.s32 %v2330_v57  ;;  %3347 = vmin.xlane.f32.xlu1 %v11564_v53  ;;  %7125 = vmatprep.subr.msk.mxu0 %vm16536_vm12, %v17322_v12  ;;  %vm16537_vm10 = vcmp.eq.s32.totalorder %v9073_v44, %v11576_v24  ;;  %v2025_v53 = vshll.u32 %v2024_v32, 16  ;;  %v11621_v35 = vcvt.s32.f32 %v3358_v56 }
 0x33e   :  { %v2022_v46 = vpop.xlane.xlu1 %2021  ;;  %v11616_v57 = vsel %vm16537_vm10, 1.0, %v17282_v30  ;;  %v2993_v19 = vand.u32 65535, %v17483_v42  ;;  %v2360_v31 = vcvt.f32.s32 %v17484_v36  ;;  %vm1674_vm12 = vcmp.eq.f32.partialorder %v17486_v55, %v17485_v58  ;;  %v17489_v36 = vld [vmem:[#allocation186_spill] sm:$0xff] }
 0x33f   :  { %17481 = vst [vmem:[#allocation154_spill] sm:$0xff] %v11616_v57  ;;  %v11618_v43 = vadd.s32 %v2333_v28, %v2331_v62  ;;  %v2023_v10 = vcvt.f32.s32 %v2022_v46  ;;  %2847 = vmin.xlane.f32.xlu0 %v10946_v39  ;;  %17482 = vst [vmem:[#allocation165_spill] sm:$0xff] %v11621_v35  ;;  %v11632_v62 = vsel %vm1673_vm13, %v9073_v44, 2147483647  ;;  %v2375_v28 = vshll.u32 %v2374_v27, 16  ;;  %v17488_v46 = vld [vmem:[#allocation178_spill] sm:$0xff] }
 0x340   :  { %4879 = vst [vmem:[#allocation2 + $0x128] sm:$0xff] %v11616_v57  ;;  %17487 = vst [vmem:[#allocation41_spill] sm:$0xff] %v11632_v62  ;;  %v2372_v32 = vpop.xlane.xlu0 %2371  ;;  %v3021_v42 = vand.u32 65535, %v17488_v46  ;;  %v2066_v57 = vcvt.f32.s32 %v17489_v36  ;;  %v11641_v55 = vcvt.s32.f32 %v3372_v63  ;;  %v2361_v41 = vshll.u32 %v2360_v31, 16  ;;  %v17494_v63 = vld [vmem:[#allocation42_spill] sm:$0xff] }
 0x341   :  { %v2026_v39 = vadd.s32 %v2025_v53, %v2023_v10  ;;  %v2373_v56 = vcvt.f32.s32 %v2372_v32  ;;  %3361 = vmin.xlane.f32.xlu1 %v11621_v35  ;;  %vm16587_vm10 = vcmp.eq.s32.totalorder %v9073_v44, %v11618_v43  ;;  %v11650_v10 = vsel %vm1674_vm12, %v9073_v44, 2147483647 }
 0x342   :  { %v11639_v58 = vpop.xlane.xlu1 %2997  ;;  %17491 = vst [vmem:[#allocation86_spill] sm:$0xff] %v11641_v55  ;;  %v11647_v27 = vsel %vm16587_vm10, 1.0, %v17282_v30  ;;  %17492 = vst [vmem:[#allocation27_spill] sm:$0xff] %v11650_v10  ;;  %v3386_v53 = vshra.s32 %v11632_v62, 16  ;;  %v2402_v32 = vcvt.f32.s32 %v17494_v63  ;;  %v11662_v35 = vcvt.s32.f32 %v2993_v19 }
 0x343   :  { %17490 = vst [vmem:[#allocation85_spill] sm:$0xff] %v11639_v58  ;;  %v11653_v11 = vadd.s32 %v2375_v28, %v2373_v56  ;;  %2833 = vmin.xlane.f32.xlu0 %v10993_v8  ;;  %vm3623_vm13 = vcmp.eq.s32.totalorder %v9073_v44, %v2026_v39  ;;  %4878 = vst [vmem:[#allocation2 + $0x120] sm:$0xff] %v11647_v27  ;;  %v17495_v28 = vld [vmem:[#allocation185_spill] sm:$0xff]  ;;  %v2067_v31 = vshll.u32 %v2066_v57, 16  ;;  %v3400_v19 = vshra.s32 %v11650_v10, 16  ;;  %v17499_v10 = vld [vmem:[#allocation195_spill] sm:$0xff] }
 0x344   :  { %v6477_v46 = vsel %vm3623_vm13, 1.0, %v17282_v30  ;;  %7552 = vmatprep.mubr.msk.f32.mxu1 %vm3623_vm13, %v17322_v12  ;;  %7126 = vmatpush3.msk.msra.mxu0 %vm3623_vm13, %v17322_v12  ;;  %v2358_v36 = vpop.xlane.xlu0 %2357  ;;  %vm1675_vm12 = vcmp.eq.f32.partialorder %v17495_v28, %v10844_v0  ;;  %v11679_v56 = vcvt.s32.f32 %v3021_v42  ;;  %v11697_v42 = vcvt.s32.f32 %v3386_v53  ;;  %v17503_v0 = vld [vmem:[#allocation26_spill] sm:$0xff] }
 0x345   :  { %17493 = vst [vmem:[#allocation66_spill] sm:$0xff] %v11653_v11  ;;  %4856 = vst [vmem:[#allocation2 + $0x70] sm:$0xff] %v6477_v46  ;;  %v5509_v8 = vadd.f32 %v6477_v46, %v11539_v25  ;;  %v2359_v39 = vcvt.f32.s32 %v2358_v36  ;;  %7553 = vmatmul.mubr.msk.f32.gmra.mxu1 %vm3624_vm4, %v17322_v12  ;;  %3375 = vmin.xlane.f32.xlu1 %v11641_v55  ;;  %vm16571_vm13 = vcmp.eq.s32.totalorder %v9073_v44, %v11653_v11 }
 0x346   :  { %7127 = vmatprep.subr.msk.mxu0 %vm3638_vm15, %v17322_v12  ;;  %v2064_v25 = vpop.xlane.xlu1 %2063  ;;  %v11685_v17 = vsel %vm16571_vm13, 1.0, %v17282_v30  ;;  %17498 = vst [vmem:[#allocation90_spill] sm:$0xff] %v11697_v42  ;;  %v2388_v55 = vcvt.f32.s32 %v17499_v10  ;;  %v2403_v37 = vshll.u32 %v2402_v32, 16  ;;  %v2052_v28 = vcvt.f32.s32 %v17503_v0 }
 0x347   :  { %17496 = vst [vmem:[#allocation55_spill] sm:$0xff] %v11685_v17  ;;  %v11688_v63 = vadd.f32 %v11586_v22, %v5509_v8  ;;  %v11690_v57 = vadd.s32 %v2361_v41, %v2359_v39  ;;  %v2065_v46 = vcvt.f32.s32 %v2064_v25  ;;  %7128 = vmatpush3.msk.msra.mxu0 %vm3622_vm1, %v17322_v12  ;;  %2875 = vmin.xlane.f32.xlu0 %v11034_v7  ;;  %4881 = vst [vmem:[#allocation2 + $0x138] sm:$0xff] %v11685_v17  ;;  %v17500_v22 = vld [vmem:[#allocation59_spill] sm:$0xff]  ;;  %v17501_v8 = vld [vmem:[#allocation137_spill] sm:$0xff] }
 0x348   :  { %vm1676_vm4 = vcmp.eq.f32.partialorder %v17501_v8, %v17500_v22  ;;  %v11708_v41 = vsel %vm1675_vm12, %v9073_v44, 2147483647  ;;  %7129 = vmatprep.subr.msk.mxu0 %vm3637_vm11, %v17322_v12  ;;  %v2400_v7 = vpop.xlane.xlu0 %2399  ;;  %v2094_v39 = vcvt.f32.s32 %v10373_v2  ;;  %v2080_v22 = vcvt.f32.s32 %v10415_v29  ;;  %v17509_v8 = vld [vmem:[#allocation89_spill] sm:$0xff] }
 0x349   :  { %17497 = vst [vmem:[#allocation43_spill] sm:$0xff] %v11690_v57  ;;  %17502 = vst [vmem:[#allocation177_spill] sm:$0xff] %v11708_v41  ;;  %v11714_v53 = vadd.s32 %v2067_v31, %v2065_v46  ;;  %7130 = vmatpush3.msk.msra.mxu0 %vm3621_vm5, %v17322_v12  ;;  %v2401_v10 = vcvt.f32.s32 %v2400_v7  ;;  %3389 = vmin.xlane.f32.xlu1 %v11697_v42  ;;  %vm16578_vm1 = vcmp.eq.s32.totalorder %v9073_v44, %v11690_v57  ;;  %v17510_v7 = vld [vmem:[#allocation23_spill] sm:$0xff]  ;;  %v17514_v42 = vld [vmem:[#allocation198_spill] sm:$0xff] }
 0x34a   :  { %7131 = vmatprep.subr.msk.mxu0 %vm3636_vm14, %v17322_v12  ;;  %v11729_v32 = vpop.xlane.xlu1 %3039  ;;  %v11731_v31 = vcvt.s32.f32 %v3400_v19  ;;  %v11737_v23 = vsel %vm16578_vm1, 1.0, %v17282_v30  ;;  %v11743_v2 = vsel %vm1676_vm4, %v9073_v44, 2147483647  ;;  %v3414_v25 = vshra.s32 %v11708_v41, 16 }
 0x34b   :  { %17504 = vst [vmem:[#allocation162_spill] sm:$0xff] %v11729_v32  ;;  %17506 = vst [vmem:[#allocation60_spill] sm:$0xff] %v11737_v23  ;;  %v11746_v46 = vadd.s32 %v2403_v37, %v2401_v10  ;;  %7132 = vmatpush3.msk.msra.mxu0 %vm3620_vm9, %v17322_v12  ;;  %2861 = vmin.xlane.f32.xlu0 %v11085_v40  ;;  %vm16595_vm5 = vcmp.eq.s32.totalorder %v9073_v44, %v11714_v53  ;;  %v2389_v19 = vshll.u32 %v2388_v55, 16  ;;  %v17511_v37 = vld [vmem:[#allocation54_spill] sm:$0xff]  ;;  %v17512_v10 = vld [vmem:[#allocation144_spill] sm:$0xff] }
 0x34c   :  { %17505 = vst [vmem:[#allocation179_spill] sm:$0xff] %v11731_v31  ;;  %17507 = vst [vmem:[#allocation171_spill] sm:$0xff] %v11743_v2  ;;  %vm1677_vm12 = vcmp.eq.f32.partialorder %v17510_v7, %v17509_v8  ;;  %7133 = vmatprep.subr.msk.mxu0 %vm3635_vm6, %v17322_v12  ;;  %v2386_v54 = vpop.xlane.xlu0 %2385  ;;  %v6480_v40 = vsel %vm16595_vm5, 1.0, %v17282_v30  ;;  %vm1678_vm9 = vcmp.eq.f32.partialorder %v17512_v10, %v17511_v37  ;;  %v17513_v55 = vld [vmem:[#allocation88_spill] sm:$0xff]  ;;  %v2053_v36 = vshll.u32 %v2052_v28, 16  ;;  %v17519_v8 = vld [vmem:[#allocation30_spill] sm:$0xff] }
 0x34d   :  { %17508 = vst [vmem:[#allocation45_spill] sm:$0xff] %v11746_v46  ;;  %4880 = vst [vmem:[#allocation2 + $0x130] sm:$0xff] %v11737_v23  ;;  %v2430_v0 = vcvt.f32.s32 %v17513_v55  ;;  %7134 = vmatpush3.msk.msra.mxu0 %vm3619_vm0, %v17322_v12  ;;  %v2387_v29 = vcvt.f32.s32 %v2386_v54  ;;  %3403 = vmin.xlane.f32.xlu1 %v11731_v31  ;;  %vm16553_vm4 = vcmp.eq.s32.totalorder %v9073_v44, %v11746_v46  ;;  %v3428_v41 = vshra.s32 %v11743_v2, 16  ;;  %v17524_v10 = vld [vmem:[#allocation67_spill] sm:$0xff] }
 0x34e   :  { %4859 = vst [vmem:[#allocation2 + $0x88] sm:$0xff] %v6480_v40  ;;  %v2416_v62 = vcvt.f32.s32 %v17514_v42  ;;  %7135 = vmatprep.subr.msk.mxu0 %vm3634_vm7, %v17322_v12  ;;  %v2050_v55 = vpop.xlane.xlu1 %2049  ;;  %v11787_v49 = vsel %vm16553_vm4, 1.0, %v17282_v30  ;;  %v11793_v28 = vsel %vm1677_vm12, %v9073_v44, 2147483647  ;;  %v11802_v2 = vcvt.s32.f32 %v3414_v25 }
 0x34f   :  { %17515 = vst [vmem:[#allocation97_spill] sm:$0xff] %v11787_v49  ;;  %17516 = vst [vmem:[#allocation92_spill] sm:$0xff] %v11793_v28  ;;  %v11795_v54 = vadd.s32 %v2389_v19, %v2387_v29  ;;  %v2051_v42 = vcvt.f32.s32 %v2050_v55  ;;  %7136 = vmatpush3.msk.msra.mxu0 %vm3618_vm8, %v17322_v12  ;;  %2903 = vmin.xlane.f32.xlu0 %v11129_v1  ;;  %v2095_v31 = vshll.u32 %v2094_v39, 16  ;;  %v11805_v46 = vshll.u32 %v2080_v22, 16 }
 0x350   :  { %17518 = vst [vmem:[#allocation173_spill] sm:$0xff] %v11802_v2  ;;  %4883 = vst [vmem:[#allocation2 + $0x148] sm:$0xff] %v11787_v49  ;;  %v2122_v7 = vcvt.f32.s32 %v17519_v8  ;;  %v11812_v19 = vsel %vm1678_vm9, %v9073_v44, 2147483647  ;;  %v2428_v29 = vpop.xlane.xlu0 %2427  ;;  %v2431_v6 = vshll.u32 %v2430_v0, 16  ;;  %v2417_v39 = vshll.u32 %v2416_v62, 16 }
 0x351   :  { %17517 = vst [vmem:[#allocation95_spill] sm:$0xff] %v11795_v54  ;;  %17520 = vst [vmem:[#allocation181_spill] sm:$0xff] %v11812_v19  ;;  %v11814_v55 = vadd.s32 %v2053_v36, %v2051_v42  ;;  %v2429_v1 = vcvt.f32.s32 %v2428_v29  ;;  %3417 = vmin.xlane.f32.xlu1 %v11802_v2  ;;  %vm16567_vm8 = vcmp.eq.s32.totalorder %v9073_v44, %v11795_v54  ;;  %v3442_v25 = vshra.s32 %v11793_v28, 16  ;;  %v17525_v0 = vld [vmem:[#allocation149_spill] sm:$0xff]  ;;  %v17527_v62 = vld [vmem:[#allocation32_spill] sm:$0xff] }
 0x352   :  { %v11820_v22 = vpop.xlane.xlu1 %3025  ;;  %v11822_v8 = vcvt.s32.f32 %v3428_v41  ;;  %v11828_v37 = vsel %vm16567_vm8, 1.0, %v17282_v30  ;;  %v3456_v36 = vshra.s32 %v11812_v19, 16  ;;  %vm1680_vm0 = vcmp.eq.f32.partialorder %v17525_v0, %v17524_v10  ;;  %v17528_v29 = vld [vmem:[#allocation201_spill] sm:$0xff]  ;;  %v17529_v2 = vld [vmem:[#allocation110_spill] sm:$0xff] }
 0x353   :  { %17521 = vst [vmem:[#allocation99_spill] sm:$0xff] %v11820_v22  ;;  %17523 = vst [vmem:[#allocation21_spill] sm:$0xff] %v11828_v37  ;;  %v11833_v42 = vadd.s32 %v2431_v6, %v2429_v1  ;;  %2889 = vmin.xlane.f32.xlu0 %v11172_v21  ;;  %vm16588_vm12 = vcmp.eq.s32.totalorder %v9073_v44, %v11814_v55  ;;  %v2108_v41 = vcvt.f32.s32 %v17527_v62  ;;  %v2444_v28 = vcvt.f32.s32 %v17528_v29  ;;  %v17530_v49 = vld [vmem:[#allocation190_spill] sm:$0xff]  ;;  %v17531_v1 = vld [vmem:[#allocation111_spill] sm:$0xff] }
 0x354   :  { %17522 = vst [vmem:[#allocation103_spill] sm:$0xff] %v11822_v8  ;;  %4882 = vst [vmem:[#allocation2 + $0x140] sm:$0xff] %v11828_v37  ;;  %vm1679_vm9 = vcmp.eq.f32.partialorder %v17530_v49, %v17529_v2  ;;  %v6479_v6 = vsel %vm16588_vm12, 1.0, %v17282_v30  ;;  %7555 = vmatprep.mubr.msk.f32.mxu1 %vm16588_vm12, %v17322_v12  ;;  %v2414_v21 = vpop.xlane.xlu0 %2413  ;;  %v2458_v19 = vcvt.f32.s32 %v17531_v1  ;;  %v11860_v37 = vshll.u32 %v2122_v7, 16 }
 0x355   :  { %17526 = vst [vmem:[#allocation82_spill] sm:$0xff] %v11833_v42  ;;  %4858 = vst [vmem:[#allocation2 + $0x80] sm:$0xff] %v6479_v6  ;;  %v5511_v62 = vadd.f32 %v6479_v6, %v11688_v63  ;;  %v2415_v29 = vcvt.f32.s32 %v2414_v21  ;;  %7556 = vmatmul.mubr.msk.f32.gmra.mxu1 %vm16595_vm5, %v17322_v12  ;;  %3431 = vmin.xlane.f32.xlu1 %v11822_v8  ;;  %vm16566_vm4 = vcmp.eq.s32.totalorder %v9073_v44, %v11833_v42  ;;  %v17535_v42 = vld [vmem:[#allocation134_spill] sm:$0xff] }
 0x356   :  { %v11866_v1 = vsel %vm1680_vm0, %v9073_v44, 2147483647  ;;  %v2092_v63 = vpop.xlane.xlu1 %2091  ;;  %v11868_v6 = vcvt.s32.f32 %v3442_v25  ;;  %v11874_v21 = vsel %vm16566_vm4, 1.0, %v17282_v30  ;;  %v11880_v7 = vsel %vm1679_vm9, %v9073_v44, 2147483647 }
 0x357   :  { %17532 = vst [vmem:[#allocation184_spill] sm:$0xff] %v11866_v1  ;;  %17534 = vst [vmem:[#allocation107_spill] sm:$0xff] %v11880_v7  ;;  %v11882_v8 = vadd.s32 %v2417_v39, %v2415_v29  ;;  %v5512_v10 = vadd.f32 %v6480_v40, %v5511_v62  ;;  %v2093_v0 = vcvt.f32.s32 %v2092_v63  ;;  %2931 = vmin.xlane.f32.xlu0 %v11224_v52  ;;  %v11886_v25 = vshll.u32 %v2108_v41, 16  ;;  %v17537_v40 = vld [vmem:[#allocation57_spill] sm:$0xff]  ;;  %v17538_v39 = vld [vmem:[#allocation156_spill] sm:$0xff] }
 0x358   :  { %17533 = vst [vmem:[#allocation47_spill] sm:$0xff] %v11868_v6  ;;  %4885 = vst [vmem:[#allocation2 + $0x158] sm:$0xff] %v11874_v21  ;;  %v2445_v54 = vshll.u32 %v2444_v28, 16  ;;  %v2150_v17 = vcvt.f32.s32 %v17535_v42  ;;  %v2456_v11 = vpop.xlane.xlu0 %2455  ;;  %v11889_v23 = vcvt.s32.f32 %v3456_v36  ;;  %v2459_v57 = vshll.u32 %v2458_v19, 16  ;;  %v17539_v36 = vld [vmem:[#allocation15_spill] sm:$0xff]  ;;  %v17540_v62 = vld [vmem:[#allocation205_spill] sm:$0xff] }
 0x359   :  { %v11891_v2 = vadd.s32 %v2095_v31, %v2093_v0  ;;  %v2457_v49 = vcvt.f32.s32 %v2456_v11  ;;  %3445 = vmin.xlane.f32.xlu1 %v11868_v6  ;;  %vm16568_vm0 = vcmp.eq.s32.totalorder %v9073_v44, %v11882_v8  ;;  %v3484_v52 = vshra.s32 %v11866_v1, 16  ;;  %v17541_v63 = vld [vmem:[#allocation124_spill] sm:$0xff]  ;;  %v17542_v0 = vld [vmem:[#allocation126_spill] sm:$0xff]  ;;  %v17554_v6 = vld [vmem:[#allocation135_spill] sm:$0xff] }
 0x35a   :  { %17536 = vst [vmem:[#allocation22_spill] sm:$0xff] %v11889_v23  ;;  %vm1682_vm9 = vcmp.eq.f32.partialorder %v17538_v39, %v17537_v40  ;;  %v3470_v28 = vshra.s32 %v11880_v7, 16  ;;  %v2078_v42 = vpop.xlane.xlu1 %2077  ;;  %v11904_v31 = vsel %vm16568_vm0, 1.0, %v17282_v30  ;;  %vm2943_vm4 = vcmp.eq.f32.partialorder %v17539_v36, %v11367_v3  ;;  %v17553_v3 = vld [vmem:[#allocation101_spill] sm:$0xff] }
 0x35b   :  { %v11906_v11 = vadd.s32 %v2459_v57, %v2457_v49  ;;  %v2079_v19 = vcvt.f32.s32 %v2078_v42  ;;  %2917 = vmin.xlane.f32.xlu0 %v11270_v4  ;;  %vm16603_vm8 = vcmp.eq.s32.totalorder %v9073_v44, %v11891_v2  ;;  %4884 = vst [vmem:[#allocation2 + $0x150] sm:$0xff] %v11904_v31  ;;  %v11914_v41 = vshll.u32 %v2150_v17, 16  ;;  %v17543_v49 = vld [vmem:[#allocation96_spill] sm:$0xff] }
 0x35c   :  { %v2472_v29 = vcvt.f32.s32 %v17540_v62  ;;  %vm1681_vm0 = vcmp.eq.f32.partialorder %v17542_v0, %v17541_v63  ;;  %v2442_v57 = vpop.xlane.xlu0 %2441  ;;  %v6482_v4 = vsel %vm16603_vm8, 1.0, %v17282_v30  ;;  %v2486_v42 = vcvt.f32.s32 %v17543_v49  ;;  %v17552_v49 = vld [vmem:[#allocation158_spill] sm:$0xff] }
 0x35d   :  { %v11925_v1 = vadd.s32 %v11805_v46, %v2079_v19  ;;  %v2443_v7 = vcvt.f32.s32 %v2442_v57  ;;  %3459 = vmin.xlane.f32.xlu1 %v11889_v23  ;;  %4861 = vst [vmem:[#allocation2 + $0x98] sm:$0xff] %v6482_v4  ;;  %vm16575_vm13 = vcmp.eq.s32.totalorder %v9073_v44, %v11906_v11  ;;  %v11934_v17 = vsel %vm1682_vm9, %v9073_v44, 2147483647  ;;  %v17551_v57 = vld [vmem:[#allocation75_spill] sm:$0xff] }
 0x35e   :  { %17544 = vst [vmem:[#allocation180_spill] sm:$0xff] %v11934_v17  ;;  %v11936_v62 = vpop.xlane.xlu1 %3053  ;;  %v2944_v46 = vsel %vm2943_vm4, %v11608_v16, inf  ;;  %v11942_v19 = vcvt.s32.f32 %v3484_v52  ;;  %v11948_v63 = vsel %vm16575_vm13, 1.0, %v17282_v30  ;;  %v11951_v0 = vsel %vm1681_vm0, %v9073_v44, 2147483647  ;;  %v17550_v52 = vld [vmem:[#allocation153_spill] sm:$0xff] }
 0x35f   :  { %17545 = vst [vmem:[#allocation65_spill] sm:$0xff] %v11936_v62  ;;  %17547 = vst [vmem:[#allocation48_spill] sm:$0xff] %v11948_v63  ;;  %v11953_v40 = vadd.s32 %v2445_v54, %v2443_v7  ;;  %2945 = vmin.xlane.f32.xlu0 %v2944_v46  ;;  %vm16602_vm9 = vcmp.eq.s32.totalorder %v9073_v44, %v11925_v1  ;;  %v11957_v39 = vcvt.s32.f32 %v3470_v28  ;;  %v2473_v16 = vshll.u32 %v2472_v29, 16 }
 0x360   :  { %17546 = vst [vmem:[#allocation106_spill] sm:$0xff] %v11942_v19  ;;  %17548 = vst [vmem:[#allocation113_spill] sm:$0xff] %v11951_v0  ;;  %v2136_v36 = vcvt.f32.s32 %v17550_v52  ;;  %vm1684_vm4 = vcmp.eq.f32.partialorder %v17552_v49, %v17551_v57  ;;  %v6481_v54 = vsel %vm16602_vm9, 1.0, %v17282_v30  ;;  %7558 = vmatprep.mubr.msk.f32.mxu1 %vm16602_vm9, %v17322_v12  ;;  %v2484_v7 = vpop.xlane.xlu0 %2483  ;;  %v2487_v28 = vshll.u32 %v2486_v42, 16 }
 0x361   :  { %17549 = vst [vmem:[#allocation105_spill] sm:$0xff] %v11957_v39  ;;  %4887 = vst [vmem:[#allocation2 + $0x168] sm:$0xff] %v11948_v63  ;;  %v5513_v46 = vadd.f32 %v6481_v54, %v5512_v10  ;;  %v2485_v29 = vcvt.f32.s32 %v2484_v7  ;;  %7559 = vmatmul.mubr.msk.f32.gmra.mxu1 %vm16603_vm8, %v17322_v12  ;;  %3473 = vmin.xlane.f32.xlu1 %v11957_v39  ;;  %vm16581_vm0 = vcmp.eq.s32.totalorder %v9073_v44, %v11953_v40 }
 0x362   :  { %4860 = vst [vmem:[#allocation2 + $0x90] sm:$0xff] %v6481_v54  ;;  %v3512_v52 = vshra.s32 %v11934_v17, 16  ;;  %v3498_v23 = vshra.s32 %v11951_v0, 16  ;;  %vm1683_vm13 = vcmp.eq.f32.partialorder %v17554_v6, %v17553_v3  ;;  %v2120_v42 = vpop.xlane.xlu1 %2119  ;;  %v11986_v10 = vsel %vm16581_vm0, 1.0, %v17282_v30  ;;  %v17556_v17 = vld [vmem:[#allocation93_spill] sm:$0xff] }
 0x363   :  { %v11988_v54 = vadd.s32 %v2487_v28, %v2485_v29  ;;  %v5514_v7 = vadd.f32 %v6482_v4, %v5513_v46  ;;  %v2121_v39 = vcvt.f32.s32 %v2120_v42  ;;  %2959 = vmin.xlane.f32.xlu0 %v11334_v5  ;;  %vm2971_vm1 = vcmp.eq.f32.partialorder %v17556_v17, %v11487_v61  ;;  %4886 = vst [vmem:[#allocation2 + $0x160] sm:$0xff] %v11986_v10  ;;  %v17557_v3 = vld [vmem:[#allocation49_spill] sm:$0xff]  ;;  %v17559_v28 = vld [vmem:[#allocation98_spill] sm:$0xff] }
 0x364   :  { %v11994_v0 = vshll.u32 %v2136_v36, 16  ;;  %v2500_v6 = vcvt.f32.s32 %v17557_v3  ;;  %v12001_v63 = vsel %vm1684_vm4, %v9073_v44, 2147483647  ;;  %v2514_v4 = vcvt.f32.s32 %v17559_v28  ;;  %v2470_v46 = vpop.xlane.xlu0 %2469  ;;  %v17564_v28 = vld [vmem:[#allocation16_spill] sm:$0xff] }
 0x365   :  { %17555 = vst [vmem:[#allocation38_spill] sm:$0xff] %v11988_v54  ;;  %17558 = vst [vmem:[#allocation77_spill] sm:$0xff] %v12001_v63  ;;  %v12005_v5 = vsel %vm1683_vm13, %v9073_v44, 2147483647  ;;  %v12008_v17 = vadd.s32 %v11860_v37, %v2121_v39  ;;  %v2471_v29 = vcvt.f32.s32 %v2470_v46  ;;  %3487 = vmin.xlane.f32.xlu1 %v11942_v19  ;;  %vm16585_vm0 = vcmp.eq.s32.totalorder %v9073_v44, %v11988_v54  ;;  %v17567_v19 = vld [vmem:[#allocation159_spill] sm:$0xff] }
 0x366   :  { %17560 = vst [vmem:[#allocation94_spill] sm:$0xff] %v12005_v5  ;;  %v2106_v36 = vpop.xlane.xlu1 %2105  ;;  %v2972_v57 = vsel %vm2971_vm1, %v11610_v33, inf  ;;  %v12014_v49 = vcvt.s32.f32 %v3498_v23  ;;  %v12016_v42 = vcvt.s32.f32 %v3512_v52  ;;  %v12022_v3 = vsel %vm16585_vm0, 1.0, %v17282_v30 }
 0x367   :  { %17563 = vst [vmem:[#allocation51_spill] sm:$0xff] %v12022_v3  ;;  %v12024_v37 = vadd.s32 %v2473_v16, %v2471_v29  ;;  %v2107_v39 = vcvt.f32.s32 %v2106_v36  ;;  %2973 = vmin.xlane.f32.xlu0 %v2972_v57  ;;  %vm2985_vm13 = vcmp.eq.f32.partialorder %v17564_v28, %v11434_v20  ;;  %vm3630_vm1 = vcmp.eq.s32.totalorder %v9073_v44, %v12008_v17  ;;  %v17570_v28 = vld [vmem:[#allocation164_spill] sm:$0xff] }
 0x368   :  { %17561 = vst [vmem:[#allocation63_spill] sm:$0xff] %v12014_v49  ;;  %17562 = vst [vmem:[#allocation189_spill] sm:$0xff] %v12016_v42  ;;  %v2501_v33 = vshll.u32 %v2500_v6, 16  ;;  %v3540_v23 = vshra.s32 %v12001_v63, 16  ;;  %v3526_v52 = vshra.s32 %v12005_v5, 16  ;;  %v2512_v46 = vpop.xlane.xlu0 %2511  ;;  %v6484_v16 = vsel %vm3630_vm1, 1.0, %v17282_v30 }
 0x369   :  { %4889 = vst [vmem:[#allocation2 + $0x178] sm:$0xff] %v12022_v3  ;;  %v2515_v29 = vshll.u32 %v2514_v4, 16  ;;  %v12038_v36 = vadd.s32 %v11886_v25, %v2107_v39  ;;  %v2513_v57 = vcvt.f32.s32 %v2512_v46  ;;  %3501 = vmin.xlane.f32.xlu1 %v12014_v49  ;;  %4863 = vst [vmem:[#allocation2 + $0xa8] sm:$0xff] %v6484_v16  ;;  %vm16594_vm4 = vcmp.eq.s32.totalorder %v9073_v44, %v12024_v37  ;;  %v17565_v6 = vld [vmem:[#allocation207_spill] sm:$0xff]  ;;  %v17566_v5 = vld [vmem:[#allocation160_spill] sm:$0xff] }
 0x36a   :  { %v2164_v63 = vcvt.f32.s32 %v17565_v6  ;;  %vm1685_vm0 = vcmp.eq.f32.partialorder %v17567_v19, %v17566_v5  ;;  %v2148_v61 = vpop.xlane.xlu1 %2147  ;;  %v2986_v4 = vsel %vm2985_vm13, %v11491_v38, inf  ;;  %v12054_v25 = vsel %vm16594_vm4, 1.0, %v17282_v30  ;;  %v17569_v6 = vld [vmem:[#allocation83_spill] sm:$0xff]  ;;  %v17571_v38 = vld [vmem:[#allocation161_spill] sm:$0xff]  ;;  %v17572_v49 = vld [vmem:[#allocation122_spill] sm:$0xff] }
 0x36b   :  { %v12056_v39 = vadd.s32 %v2515_v29, %v2513_v57  ;;  %v2149_v46 = vcvt.f32.s32 %v2148_v61  ;;  %2987 = vmin.xlane.f32.xlu0 %v2986_v4  ;;  %vm3629_vm10 = vcmp.eq.s32.totalorder %v9073_v44, %v12038_v36  ;;  %vm2999_vm12 = vcmp.eq.f32.partialorder %v17569_v6, %v11639_v58  ;;  %4888 = vst [vmem:[#allocation2 + $0x170] sm:$0xff] %v12054_v25  ;;  %v17577_v6 = vld [vmem:[#allocation208_spill] sm:$0xff] }
 0x36c   :  { %vm1686_vm13 = vcmp.eq.f32.partialorder %v17571_v38, %v17570_v28  ;;  %v2542_v20 = vcvt.f32.s32 %v17572_v49  ;;  %v6483_v29 = vsel %vm3629_vm10, 1.0, %v17282_v30  ;;  %7561 = vmatprep.mubr.msk.f32.mxu1 %vm3629_vm10, %v17322_v12  ;;  %v2498_v61 = vpop.xlane.xlu0 %2497  ;;  %v12074_v57 = vcvt.s32.f32 %v3526_v52  ;;  %v17575_v52 = vld [vmem:[#allocation168_spill] sm:$0xff]  ;;  %v17580_v28 = vld [vmem:[#allocation91_spill] sm:$0xff] }
 0x36d   :  { %17568 = vst [vmem:[#allocation121_spill] sm:$0xff] %v12056_v39  ;;  %v12077_v4 = vadd.s32 %v11914_v41, %v2149_v46  ;;  %4862 = vst [vmem:[#allocation2 + $0xa0] sm:$0xff] %v6483_v29  ;;  %v5515_v3 = vadd.f32 %v6483_v29, %v5514_v7  ;;  %v2499_v54 = vcvt.f32.s32 %v2498_v61  ;;  %7562 = vmatmul.mubr.msk.f32.gmra.mxu1 %vm3630_vm1, %v17322_v12  ;;  %3515 = vmin.xlane.f32.xlu1 %v12016_v42 }
 0x36e   :  { %17573 = vst [vmem:[#allocation169_spill] sm:$0xff] %v12074_v57  ;;  %vm16600_vm4 = vcmp.eq.s32.totalorder %v9073_v44, %v12056_v39  ;;  %v12090_v49 = vsel %vm1685_vm0, %v9073_v44, 2147483647  ;;  %v2134_v41 = vpop.xlane.xlu1 %2133  ;;  %v3000_v7 = vsel %vm2999_vm12, %v11662_v35, inf  ;;  %vm3013_vm5 = vcmp.eq.f32.partialorder %v17575_v52, %v11562_v47  ;;  %v17582_v52 = vld [vmem:[#allocation34_spill] sm:$0xff] }
 0x36f   :  { %17574 = vst [vmem:[#allocation112_spill] sm:$0xff] %v12090_v49  ;;  %v12102_v46 = vsel %vm16600_vm4, 1.0, %v17282_v30  ;;  %v12104_v29 = vadd.s32 %v2501_v33, %v2499_v54  ;;  %v5516_v19 = vadd.f32 %v6484_v16, %v5515_v3  ;;  %v2135_v5 = vcvt.f32.s32 %v2134_v41  ;;  %3001 = vmin.xlane.f32.xlu0 %v3000_v7 }
 0x370   :  { %vm3632_vm0 = vcmp.eq.s32.totalorder %v9073_v44, %v12077_v4  ;;  %4891 = vst [vmem:[#allocation2 + $0x188] sm:$0xff] %v12102_v46  ;;  %v2165_v35 = vshll.u32 %v2164_v63, 16  ;;  %v2528_v61 = vcvt.f32.s32 %v17577_v6  ;;  %v2540_v42 = vpop.xlane.xlu0 %2539  ;;  %v12114_v39 = vcvt.s32.f32 %v3540_v23 }
 0x371   :  { %17576 = vst [vmem:[#allocation174_spill] sm:$0xff] %v12104_v29  ;;  %v6486_v58 = vsel %vm3632_vm0, 1.0, %v17282_v30  ;;  %v2543_v54 = vshll.u32 %v2542_v20, 16  ;;  %v12117_v3 = vadd.s32 %v11994_v0, %v2135_v5  ;;  %v2541_v33 = vcvt.f32.s32 %v2540_v42  ;;  %3529 = vmin.xlane.f32.xlu1 %v12074_v57  ;;  %v17685_v57 = vld [vmem:[#allocation127_spill] sm:$0xff] }
 0x372   :  { %17578 = vst [vmem:[#allocation87_spill] sm:$0xff] %v12114_v39  ;;  %4865 = vst [vmem:[#allocation2 + $0xb8] sm:$0xff] %v6486_v58  ;;  %vm16601_vm12 = vcmp.eq.s32.totalorder %v9073_v44, %v12104_v29  ;;  %v12126_v63 = vsel %vm1686_vm13, %v9073_v44, 2147483647  ;;  %v3554_v23 = vshra.s32 %v12090_v49, 16  ;;  %v2162_v16 = vpop.xlane.xlu1 %2161  ;;  %v3014_v20 = vsel %vm3013_vm5, %v11592_v50, inf }
 0x373   :  { %17579 = vst [vmem:[#allocation100_spill] sm:$0xff] %v12126_v63  ;;  %v12137_v0 = vsel %vm16601_vm12, 1.0, %v17282_v30  ;;  %v12139_v42 = vadd.s32 %v2543_v54, %v2541_v33  ;;  %v2163_v41 = vcvt.f32.s32 %v2162_v16  ;;  %3015 = vmin.xlane.f32.xlu0 %v3014_v20  ;;  %vm3631_vm13 = vcmp.eq.s32.totalorder %v9073_v44, %v12117_v3  ;;  %v17581_v50 = vld [vmem:[#allocation138_spill] sm:$0xff] }
 0x374   :  { %vm3027_vm4 = vcmp.eq.f32.partialorder %v17580_v28, %v11820_v22  ;;  %4890 = vst [vmem:[#allocation2 + $0x180] sm:$0xff] %v12137_v0  ;;  %v2529_v38 = vshll.u32 %v2528_v61, 16  ;;  %v2570_v7 = vcvt.f32.s32 %v17581_v50  ;;  %vm1687_vm5 = vcmp.eq.f32.partialorder %v17582_v52, %v11099_v51  ;;  %7564 = vmatprep.mubr.msk.f32.mxu1 %vm3631_vm13, %v17322_v12  ;;  %v2526_v6 = vpop.xlane.xlu0 %2525  ;;  %v17587_v28 = vld [vmem:[#allocation163_spill] sm:$0xff]  ;;  %v17590_v51 = vld [vmem:[#allocation104_spill] sm:$0xff] }
 0x375   :  { %v6485_v5 = vsel %vm3631_vm13, 1.0, %v17282_v30  ;;  %v2166_v54 = vadd.s32 %v2165_v35, %v2163_v41  ;;  %v2527_v61 = vcvt.f32.s32 %v2526_v6  ;;  %7565 = vmatmul.mubr.msk.f32.gmra.mxu1 %vm3632_vm0, %v17322_v12  ;;  %3543 = vmin.xlane.f32.xlu1 %v12114_v39  ;;  %vm3660_vm12 = vcmp.eq.s32.totalorder %v9073_v44, %v12139_v42  ;;  %v17585_v6 = vld [vmem:[#allocation19_spill] sm:$0xff]  ;;  %v17754_v42 = vld [vmem:[#allocation204_spill] sm:$0xff] }
 0x376   :  { %4864 = vst [vmem:[#allocation2 + $0xb0] sm:$0xff] %v6485_v5  ;;  %v5517_v33 = vadd.f32 %v6485_v5, %v5516_v19  ;;  %v3568_v16 = vshra.s32 %v12126_v63, 16  ;;  %v12165_v20 = vpop.xlane.xlu1 %3067  ;;  %v3028_v19 = vsel %vm3027_vm4, %v11679_v56, inf  ;;  %v12171_v35 = vcvt.s32.f32 %v3554_v23  ;;  %v17586_v56 = vld [vmem:[#allocation58_spill] sm:$0xff]  ;;  %v17588_v63 = vld [vmem:[#allocation33_spill] sm:$0xff] }
 0x377   :  { %17583 = vst [vmem:[#allocation64_spill] sm:$0xff] %v12165_v20  ;;  %v12177_v41 = vsel %vm3660_vm12, 1.0, %v17282_v30  ;;  %v12179_v50 = vadd.s32 %v2529_v38, %v2527_v61  ;;  %3029 = vmin.xlane.f32.xlu0 %v3028_v19  ;;  %vm3633_vm9 = vcmp.eq.s32.totalorder %v9073_v44, %v2166_v54  ;;  %vm3041_vm8 = vcmp.eq.f32.partialorder %v17585_v6, %v11729_v32 }
 0x378   :  { %17584 = vst [vmem:[#allocation193_spill] sm:$0xff] %v12171_v35  ;;  %v5518_v5 = vadd.f32 %v6486_v58, %v5517_v33  ;;  %4893 = vst [vmem:[#allocation2 + $0x198] sm:$0xff] %v12177_v41  ;;  %v2556_v23 = vcvt.f32.s32 %v17586_v56  ;;  %vm1688_vm4 = vcmp.eq.f32.partialorder %v17588_v63, %v17587_v28  ;;  %v12192_v38 = vsel %vm1687_vm5, %v9073_v44, 2147483647  ;;  %7567 = vmatprep.mubr.msk.f32.mxu1 %vm3633_vm9, %v17322_v12  ;;  %v2568_v54 = vpop.xlane.xlu0 %2567 }
 0x379   :  { %17589 = vst [vmem:[#allocation12_spill] sm:$0xff] %v12192_v38  ;;  %v6487_v58 = vsel %vm3633_vm9, 1.0, %v17282_v30  ;;  %7137 = vmatprep.subr.msk.mxu0 %vm3633_vm9, %v17322_v12  ;;  %v2571_v33 = vshll.u32 %v2570_v7, 16  ;;  %v2569_v19 = vcvt.f32.s32 %v2568_v54  ;;  %3557 = vmin.xlane.f32.xlu1 %v12171_v35  ;;  %v3063_v52 = vand.u32 65535, %v17590_v51 }
 0x37a   :  { %4866 = vst [vmem:[#allocation2 + $0xc0] sm:$0xff] %v6487_v58  ;;  %v5519_v61 = vadd.f32 %v6487_v58, %v5518_v5  ;;  %7568 = vmatmul.mubr.msk.f32.gmra.mxu1 %vm3634_vm7, %v17322_v12  ;;  %7138 = vmatpush3.msk.msra.mxu0 %vm3617_vm2, %v17322_v12  ;;  %v12207_v56 = vpop.xlane.xlu1 %3081  ;;  %v3042_v34 = vsel %vm3041_vm8, %v11594_v15, inf  ;;  %v12217_v7 = vcvt.s32.f32 %v3568_v16  ;;  %vm3659_vm7 = vcmp.eq.s32.totalorder %v9073_v44, %v12179_v50  ;;  %v7977_v16 = vld [vmem:[#allocation2 + $0xd8] sm:$0xff] }
 0x37b   :  { %17591 = vst [vmem:[#allocation128_spill] sm:$0xff] %v12207_v56  ;;  %7570 = vmatprep.mubr.msk.f32.mxu1 %vm3635_vm6, %v17322_v12  ;;  %v12225_v9 = vsel %vm1688_vm4, %v9073_v44, 2147483647  ;;  %v3582_v5 = vshra.s32 %v12192_v38, 16  ;;  %v12228_v54 = vadd.s32 %v2571_v33, %v2569_v19  ;;  %7139 = vmatprep.subr.msk.mxu0 %vm3632_vm0, %v17322_v12  ;;  %v2557_v15 = vshll.u32 %v2556_v23, 16  ;;  %v17597_v33 = vld [vmem:[#allocation24_spill] sm:$0xff] }
 0x37c   :  { %17592 = vst [vmem:[#allocation178_spill] sm:$0xff] %v12217_v7  ;;  %17593 = vst [vmem:[#allocation186_spill] sm:$0xff] %v12225_v9  ;;  %v5520_v58 = vadd.f32 %v7975_v48, %v5519_v61  ;;  %3043 = vmin.xlane.f32.xlu0 %v3042_v34  ;;  %7140 = vmatpush3.msk.msra.mxu0 %vm3616_vm3, %v17322_v12  ;;  %v2554_v63 = vpop.xlane.xlu0 %2553  ;;  %v17595_v6 = vand.u32 65535, %v10861_v45  ;;  %v17596_v61 = vld [vmem:[#allocation44_spill] sm:$0xff]  ;;  %v12246_v4 = vsel %vm3659_vm7, 1.0, %v17282_v30  ;;  %v2598_v23 = vcvt.f32.s32 %v17597_v33  ;;  %v7976_v19 = vld [vmem:[#allocation2 + $0xd0] sm:$0xff] }
 0x37d   :  { %vm3055_vm2 = vcmp.eq.f32.partialorder %v17596_v61, %v11936_v62  ;;  %7141 = vmatprep.subr.msk.mxu0 %vm3631_vm13, %v17322_v12  ;;  %v2555_v45 = vcvt.f32.s32 %v2554_v63  ;;  %3571 = vmin.xlane.f32.xlu1 %v12217_v7  ;;  %4892 = vst [vmem:[#allocation2 + $0x190] sm:$0xff] %v12246_v4  ;;  %vm3662_vm3 = vcmp.eq.s32.totalorder %v9073_v44, %v12228_v54  ;;  %v3596_v34 = vshra.s32 %v12225_v9, 16  ;;  %v17598_v48 = vld [vmem:[#allocation71_spill] sm:$0xff]  ;;  %v17749_v54 = vld [vmem:[#allocation148_spill] sm:$0xff] }
 0x37e   :  { %v3051_v28 = vcvt.s32.f32 %v17595_v6  ;;  %v5521_v51 = vadd.f32 %v7976_v19, %v5520_v58  ;;  %7571 = vmatmul.mubr.msk.f32.gmra.mxu1 %vm3636_vm14, %v17322_v12  ;;  %vm17599_vm6 = vcmp.eq.s32.totalorder %v9073_v44, %v17598_v48  ;;  %v12266_v3 = vpop.xlane.xlu1 %3095  ;;  %v12272_v58 = vsel %vm3662_vm3, 1.0, %v17282_v30  ;;  %v17664_v62 = vld [vmem:[#allocation123_spill] sm:$0xff] }
 0x37f   :  { %7142 = vmatpush3.msk.msra.mxu0 %vm17599_vm6, %v17322_v12  ;;  %17600 = vst [vmem:[#allocation42_spill] sm:$0xff] %v12266_v3  ;;  %v12274_v6 = vadd.s32 %v2557_v15, %v2555_v45  ;;  %7573 = vmatprep.mubr.msk.f32.mxu1 %vm3637_vm11, %v17322_v12  ;;  %v12287_v33 = vcvt.s32.f32 %v3582_v5  ;;  %4895 = vst [vmem:[#allocation2 + $0x1a8] sm:$0xff] %v12272_v58  ;;  %v17602_v15 = vld [vmem:[#allocation183_spill] sm:$0xff]  ;;  %vm17605_vm11 = vcmp.eq.s32.totalorder %v9073_v44, %v17604_v60 }
 0x380   :  { %v5522_v63 = vadd.f32 %v7977_v16, %v5521_v51  ;;  %7143 = vmatprep.subr.msk.mxu0 %vm3630_vm1, %v17322_v12  ;;  %v3056_v26 = vsel %vm3055_vm2, %v3051_v28, inf  ;;  %v3077_v19 = vand.u32 65535, %v17602_v15  ;;  %v17603_v51 = vld [vmem:[#allocation84_spill] sm:$0xff]  ;;  %v2596_v17 = vpop.xlane.xlu0 %2595  ;;  %v3065_v48 = vcvt.s32.f32 %v3063_v52  ;;  %v17606_v16 = vld [vmem:[#allocation130_spill] sm:$0xff]  ;;  %v17671_v38 = vld [vmem:[#allocation95_spill] sm:$0xff] }
 0x381   :  { %17601 = vst [vmem:[#allocation185_spill] sm:$0xff] %v12287_v33  ;;  %v2584_v45 = vcvt.f32.s32 %v17603_v51  ;;  %7144 = vmatpush3.msk.msra.mxu0 %vm17605_vm11, %v17322_v12  ;;  %3057 = vmin.xlane.f32.xlu0 %v3056_v26  ;;  %vm3069_vm14 = vcmp.eq.f32.partialorder %v17606_v16, %v12165_v20  ;;  %v2599_v28 = vshll.u32 %v2598_v23, 16  ;;  %v7978_v5 = vld [vmem:[#allocation2 + $0xe0] sm:$0xff]  ;;  %v2597_v15 = vcvt.f32.s32 %v2596_v17  ;;  %v17607_v26 = vld [vmem:[#allocation13_spill] sm:$0xff] }
 0x382   :  { %v5523_v61 = vadd.f32 %v7978_v5, %v5522_v63  ;;  %7145 = vmatprep.subr.msk.mxu0 %vm3629_vm10, %v17322_v12  ;;  %3585 = vmin.xlane.f32.xlu1 %v12287_v33  ;;  %vm3661_vm8 = vcmp.eq.s32.totalorder %v9073_v44, %v12274_v6  ;;  %v3091_v51 = vand.u32 65535, %v17607_v26  ;;  %v17608_v52 = vld [vmem:[#allocation140_spill] sm:$0xff]  ;;  %v17609_v23 = vld [vmem:[#allocation115_spill] sm:$0xff]  ;;  %v12315_v36 = vpop.xlane.xlu1 %3109  ;;  %vm17613_vm10 = vcmp.eq.s32.totalorder %v9073_v44, %v11891_v2  ;;  %v7980_v16 = vld [vmem:[#allocation2 + $0xf0] sm:$0xff] }
 0x383   :  { %v3119_v60 = vand.u32 65535, %v17608_v52  ;;  %7574 = vmatmul.mubr.msk.f32.gmra.mxu1 %vm3638_vm15, %v17322_v12  ;;  %vm17610_vm9 = vcmp.eq.s32.totalorder %v9073_v44, %v17609_v23  ;;  %17611 = vst [vmem:[#allocation195_spill] sm:$0xff] %v12315_v36  ;;  %v12321_v63 = vsel %vm3661_vm8, 1.0, %v17282_v30  ;;  %v7979_v17 = vld [vmem:[#allocation2 + $0xe8] sm:$0xff]  ;;  %v12323_v26 = vadd.s32 %v2599_v28, %v2597_v15  ;;  %v17618_v23 = vld [vmem:[#allocation150_spill] sm:$0xff] }
 0x384   :  { %7146 = vmatpush3.msk.msra.mxu0 %vm17610_vm9, %v17322_v12  ;;  %v5524_v5 = vadd.f32 %v7979_v17, %v5523_v61  ;;  %vm17612_vm15 = vcmp.eq.s32.totalorder %v9073_v44, %v11412_v18  ;;  %v3070_v13 = vsel %vm3069_vm14, %v3065_v48, inf  ;;  %v12336_v52 = vcvt.s32.f32 %v3596_v34  ;;  %4894 = vst [vmem:[#allocation2 + $0x1a0] sm:$0xff] %v12321_v63  ;;  %v17615_v61 = vld [vmem:[#allocation117_spill] sm:$0xff]  ;;  %v2582_v18 = vpop.xlane.xlu0 %2581  ;;  %v17617_v2 = vld [vmem:[#allocation108_spill] sm:$0xff] }
 0x385   :  { %7576 = vmatprep.mubr.msk.f32.mxu1 %vm17612_vm15, %v17322_v12  ;;  %7147 = vmatprep.subr.msk.mxu0 %vm17613_vm10, %v17322_v12  ;;  %v2585_v28 = vshll.u32 %v2584_v45, 16  ;;  %vm17616_vm1 = vcmp.eq.s32.totalorder %v9073_v44, %v17615_v61  ;;  %v3079_v15 = vcvt.s32.f32 %v3077_v19  ;;  %vm3083_vm0 = vcmp.eq.f32.partialorder %v17617_v2, %v12207_v56  ;;  %v17621_v19 = vld [vmem:[#allocation155_spill] sm:$0xff]  ;;  %v17752_v6 = vld [vmem:[#allocation53_spill] sm:$0xff] }
 0x386   :  { %17614 = vst [vmem:[#allocation59_spill] sm:$0xff] %v12336_v52  ;;  %7148 = vmatpush3.msk.msra.mxu0 %vm17616_vm1, %v17322_v12  ;;  %3071 = vmin.xlane.f32.xlu0 %v3070_v13  ;;  %v2626_v17 = vcvt.f32.s32 %v17618_v23  ;;  %v5525_v48 = vadd.f32 %v7980_v16, %v5524_v5  ;;  %vm17619_vm13 = vcmp.eq.s32.totalorder %v9073_v44, %v11925_v1  ;;  %v2583_v34 = vcvt.f32.s32 %v2582_v18  ;;  %v12361_v45 = vpop.xlane.xlu1 %3123  ;;  %v7981_v61 = vld [vmem:[#allocation2 + $0xf8] sm:$0xff] }
 0x387   :  { %7149 = vmatprep.subr.msk.mxu0 %vm17619_vm13, %v17322_v12  ;;  %3599 = vmin.xlane.f32.xlu1 %v12336_v52  ;;  %vm3664_vm5 = vcmp.eq.s32.totalorder %v9073_v44, %v12323_v26  ;;  %vm17620_vm4 = vcmp.eq.s32.totalorder %v9073_v44, %v11379_v59  ;;  %vm17622_vm2 = vcmp.eq.s32.totalorder %v9073_v44, %v17621_v19  ;;  %v3121_v1 = vcvt.s32.f32 %v3119_v60  ;;  %v17627_v60 = vld [vmem:[#allocation133_spill] sm:$0xff]  ;;  %v17628_v16 = vld [vmem:[#allocation167_spill] sm:$0xff] }
 0x388   :  { %7577 = vmatmul.mubr.msk.f32.gmra.mxu1 %vm17620_vm4, %v17322_v12  ;;  %7150 = vmatpush3.msk.msra.mxu0 %vm17622_vm2, %v17322_v12  ;;  %17623 = vst [vmem:[#allocation137_spill] sm:$0xff] %v12361_v45  ;;  %v3093_v5 = vcvt.s32.f32 %v3091_v51  ;;  %v12367_v13 = vsel %vm3664_vm5, 1.0, %v17282_v30  ;;  %v5526_v18 = vadd.f32 %v7981_v61, %v5525_v48  ;;  %v12369_v23 = vadd.s32 %v2585_v28, %v2583_v34  ;;  %v17626_v51 = vld [vmem:[#allocation191_spill] sm:$0xff]  ;;  %v17632_v61 = vld [vmem:[#allocation50_spill] sm:$0xff] }
 0x389   :  { %vm17624_vm6 = vcmp.eq.s32.totalorder %v9073_v44, %v11467_v14  ;;  %vm17625_vm11 = vcmp.eq.s32.totalorder %v9073_v44, %v11714_v53  ;;  %v3084_v59 = vsel %vm3083_vm0, %v3079_v15, inf  ;;  %vm3125_vm14 = vcmp.eq.f32.partialorder %v17626_v51, %v12361_v45  ;;  %4897 = vst [vmem:[#allocation2 + $0x1b8] sm:$0xff] %v12367_v13  ;;  %v17629_v34 = vld [vmem:[#allocation35_spill] sm:$0xff]  ;;  %v2624_v53 = vpop.xlane.xlu0 %2623 }
 0x38a   :  { %7579 = vmatprep.mubr.msk.f32.mxu1 %vm17624_vm6, %v17322_v12  ;;  %7151 = vmatprep.subr.msk.mxu0 %vm17625_vm11, %v17322_v12  ;;  %v3105_v28 = vand.u32 65535, %v17627_v60  ;;  %v2612_v48 = vcvt.f32.s32 %v17628_v16  ;;  %vm17630_vm9 = vcmp.eq.s32.totalorder %v9073_v44, %v17629_v34  ;;  %v3126_v19 = vsel %vm3125_vm14, %v3121_v1, inf  ;;  %v17631_v2 = vld [vmem:[#allocation139_spill] sm:$0xff]  ;;  %v17635_v34 = vld [vmem:[#allocation146_spill] sm:$0xff] }
 0x38b   :  { %7152 = vmatpush3.msk.msra.mxu0 %vm17630_vm9, %v17322_v12  ;;  %3085 = vmin.xlane.f32.xlu0 %v3084_v59  ;;  %vm3097_vm15 = vcmp.eq.f32.partialorder %v17631_v2, %v12266_v3  ;;  %v2627_v15 = vshll.u32 %v2626_v17, 16  ;;  %v5527_v51 = vadd.f32 %v17632_v61, %v5526_v18  ;;  %vm17633_vm10 = vcmp.eq.s32.totalorder %v9073_v44, %v11814_v55  ;;  %v17634_v16 = vld [vmem:[#allocation119_spill] sm:$0xff]  ;;  %v17638_v17 = vld [vmem:[#allocation20_spill] sm:$0xff]  ;;  %v12410_v55 = vpop.xlane.xlu1 %3137 }
 0x38c   :  { %7153 = vmatprep.subr.msk.mxu0 %vm17633_vm10, %v17322_v12  ;;  %v2625_v60 = vcvt.f32.s32 %v2624_v53  ;;  %3127 = vmin.xlane.f32.xlu1 %v3126_v19  ;;  %vm3663_vm1 = vcmp.eq.s32.totalorder %v9073_v44, %v12369_v23  ;;  %v3147_v59 = vand.u32 65535, %v17634_v16  ;;  %v3133_v1 = vand.u32 65535, %v17635_v34  ;;  %v17636_v52 = vld [vmem:[#allocation131_spill] sm:$0xff]  ;;  %17640 = vst [vmem:[#allocation26_spill] sm:$0xff] %v12410_v55  ;;  %v7982_v19 = vld [vmem:[#allocation2 + $0x108] sm:$0xff] }
 0x38d   :  { %vm17637_vm0 = vcmp.eq.s32.totalorder %v9073_v44, %v17636_v52  ;;  %vm17639_vm13 = vcmp.eq.s32.totalorder %v9073_v44, %v17638_v17  ;;  %v12416_v18 = vsel %vm3663_vm1, 1.0, %v17282_v30  ;;  %v5528_v61 = vadd.f32 %v7982_v19, %v5527_v51  ;;  %v17641_v16 = vld [vmem:[#allocation176_spill] sm:$0xff]  ;;  %v2610_v45 = vpop.xlane.xlu0 %2609  ;;  %v17645_v19 = vld [vmem:[#allocation25_spill] sm:$0xff]  ;;  %v17741_v26 = vld [vmem:[#allocation39_spill] sm:$0xff] }
 0x38e   :  { %7580 = vmatmul.mubr.msk.f32.gmra.mxu1 %vm17637_vm0, %v17322_v12  ;;  %7154 = vmatpush3.msk.msra.mxu0 %vm17639_vm13, %v17322_v12  ;;  %v12418_v53 = vadd.s32 %v2627_v15, %v2625_v60  ;;  %vm17642_vm4 = vcmp.eq.s32.totalorder %v9073_v44, %v17641_v16  ;;  %v3098_v34 = vsel %vm3097_vm15, %v3093_v5, inf  ;;  %4896 = vst [vmem:[#allocation2 + $0x1b0] sm:$0xff] %v12416_v18  ;;  %v2613_v17 = vshll.u32 %v2612_v48, 16  ;;  %v17643_v15 = vld [vmem:[#allocation188_spill] sm:$0xff]  ;;  %v17644_v60 = vld [vmem:[#allocation118_spill] sm:$0xff] }
 0x38f   :  { %7582 = vmatprep.mubr.msk.f32.mxu1 %vm17642_vm4, %v17322_v12  ;;  %3099 = vmin.xlane.f32.xlu0 %v3098_v34  ;;  %v3107_v56 = vcvt.s32.f32 %v3105_v28  ;;  %vm3111_vm2 = vcmp.eq.f32.partialorder %v17643_v15, %v12315_v36  ;;  %v2654_v51 = vcvt.f32.s32 %v17644_v60  ;;  %v5529_v33 = vadd.f32 %v17645_v19, %v5528_v61  ;;  %v17646_v5 = vld [vmem:[#allocation204_spill] sm:$0xff]  ;;  %v12438_v48 = vpop.xlane.xlu1 %3151  ;;  %v17651_v19 = vld [vmem:[#allocation78_spill] sm:$0xff]  ;;  %v17653_v36 = vld [vmem:[#allocation31_spill] sm:$0xff] }
 0x390   :  { %v2611_v20 = vcvt.f32.s32 %v2610_v45  ;;  %vm3666_vm6 = vcmp.eq.s32.totalorder %v9073_v44, %v12418_v53  ;;  %vm17647_vm11 = vcmp.eq.s32.totalorder %v9073_v44, %v17646_v5  ;;  %17648 = vst [vmem:[#allocation89_spill] sm:$0xff] %v12438_v48  ;;  %v3149_v2 = vcvt.s32.f32 %v3147_v59  ;;  %v17649_v45 = vld [vmem:[#allocation202_spill] sm:$0xff]  ;;  %v17652_v59 = vld [vmem:[#allocation192_spill] sm:$0xff] }
 0x391   :  { %v3135_v28 = vcvt.s32.f32 %v3133_v1  ;;  %v12444_v34 = vsel %vm3666_vm6, 1.0, %v17282_v30  ;;  %v5530_v15 = vadd.f32 %v17649_v45, %v5529_v33  ;;  %vm17650_vm14 = vcmp.eq.s32.totalorder %v9073_v44, %v11618_v43  ;;  %v17654_v33 = vld [vmem:[#allocation151_spill] sm:$0xff]  ;;  %v17699_v16 = vld [vmem:[#allocation136_spill] sm:$0xff] }
 0x392   :  { %7583 = vmatmul.mubr.msk.f32.gmra.mxu1 %vm17647_vm11, %v17322_v12  ;;  %v12446_v61 = vadd.s32 %v2613_v17, %v2611_v20  ;;  %v3112_v60 = vsel %vm3111_vm2, %v3107_v56, inf  ;;  %vm3153_vm9 = vcmp.eq.f32.partialorder %v17651_v19, %v12438_v48  ;;  %4899 = vst [vmem:[#allocation2 + $0x1c8] sm:$0xff] %v12444_v34  ;;  %v3161_v1 = vand.u32 65535, %v17652_v59  ;;  %v2652_v20 = vpop.xlane.xlu0 %2651  ;;  %v17655_v56 = vld [vmem:[#allocation70_spill] sm:$0xff] }
 0x393   :  { %7585 = vmatprep.mubr.msk.f32.mxu1 %vm17650_vm14, %v17322_v12  ;;  %v2640_v3 = vcvt.f32.s32 %v17653_v36  ;;  %3113 = vmin.xlane.f32.xlu0 %v3112_v60  ;;  %v3154_v17 = vsel %vm3153_vm9, %v3149_v2, inf  ;;  %vm3139_vm15 = vcmp.eq.f32.partialorder %v17654_v33, %v12410_v55  ;;  %v2655_v45 = vshll.u32 %v2654_v51, 16  ;;  %v12468_v36 = vpop.xlane.xlu1 %3165  ;;  %v17658_v2 = vld [vmem:[#allocation154_spill] sm:$0xff]  ;;  %v17659_v60 = vld [vmem:[#allocation43_spill] sm:$0xff] }
 0x394   :  { %v5531_v9 = vadd.f32 %v11647_v27, %v5530_v15  ;;  %v2653_v7 = vcvt.f32.s32 %v2652_v20  ;;  %3155 = vmin.xlane.f32.xlu1 %v3154_v17  ;;  %vm3665_vm10 = vcmp.eq.s32.totalorder %v9073_v44, %v12446_v61  ;;  %v3175_v19 = vand.u32 65535, %v17655_v56  ;;  %17657 = vst [vmem:[#allocation23_spill] sm:$0xff] %v12468_v36  ;;  %v17661_v20 = vld [vmem:[#allocation62_spill] sm:$0xff] }
 0x395   :  { %vm17656_vm0 = vcmp.eq.s32.totalorder %v9073_v44, %v11576_v24  ;;  %v12474_v51 = vsel %vm3665_vm10, 1.0, %v17282_v30  ;;  %vm17660_vm13 = vcmp.eq.s32.totalorder %v9073_v44, %v17659_v60  ;;  %v3140_v59 = vsel %vm3139_vm15, %v3135_v28, inf  ;;  %v17662_v55 = vld [vmem:[#allocation166_spill] sm:$0xff] }
 0x396   :  { %7586 = vmatmul.mubr.msk.f32.gmra.mxu1 %vm17656_vm0, %v17322_v12  ;;  %v12476_v27 = vadd.s32 %v2655_v45, %v2653_v7  ;;  %v5532_v15 = vadd.f32 %v17658_v2, %v5531_v9  ;;  %4898 = vst [vmem:[#allocation2 + $0x1c0] sm:$0xff] %v12474_v51  ;;  %v2682_v17 = vcvt.f32.s32 %v17661_v20  ;;  %v2638_v33 = vpop.xlane.xlu0 %2637  ;;  %v3163_v56 = vcvt.s32.f32 %v3161_v1  ;;  %v17663_v45 = vld [vmem:[#allocation60_spill] sm:$0xff]  ;;  %v7533_v2 = vpop.f32.mrf.mxu1  ;;  %v17666_v1 = vld [vmem:[#allocation66_spill] sm:$0xff]  ;;  %v17669_v20 = vld [vmem:[#allocation55_spill] sm:$0xff] }
 0x397   :  { %7588 = vmatprep.mubr.msk.f32.mxu1 %vm17660_vm13, %v17322_v12  ;;  %3141 = vmin.xlane.f32.xlu0 %v3140_v59  ;;  %vm3167_vm4 = vcmp.eq.f32.partialorder %v17662_v55, %v12468_v36  ;;  %v2641_v7 = vshll.u32 %v2640_v3, 16  ;;  %v2639_v9 = vcvt.f32.s32 %v2638_v33  ;;  %v3189_v28 = vand.u32 65535, %v17664_v62  ;;  %v12499_v3 = vpop.xlane.xlu1 %3179  ;;  %v17676_v55 = vld [vmem:[#allocation132_spill] sm:$0xff] }
 0x398   :  { %v5533_v48 = vadd.f32 %v17663_v45, %v5532_v15  ;;  %vm3668_vm2 = vcmp.eq.s32.totalorder %v9073_v44, %v12476_v27  ;;  %vm17665_vm11 = vcmask 261120   ;;  %vm17667_vm14 = vcmp.eq.s32.totalorder %v9073_v44, %v17666_v1  ;;  %17668 = vst [vmem:[#allocation54_spill] sm:$0xff] %v12499_v3  ;;  %v17670_v45 = vld [vmem:[#allocation28_spill] sm:$0xff]  ;;  %v4075_v35 = vpop.f32.mrf.mxu1 }
 0x399   :  { %4715 = vst.msk [vmem:[%s16086_s4 + $0x8] sm:$0xff] %vm17665_vm11, %v7533_v2  ;;  %v3177_v15 = vcvt.s32.f32 %v3175_v19  ;;  %v12505_v59 = vsel %vm3668_vm2, 1.0, %v17282_v30  ;;  %v12507_v62 = vadd.s32 %v2641_v7, %v2639_v9  ;;  %vm3181_vm9 = vcmp.eq.f32.partialorder %v17670_v45, %v12499_v3  ;;  %vm17673_vm0 = vmmov %vm17665_vm11  ;;  %v17674_v9 = vld [vmem:[#allocation36_spill] sm:$0xff]  ;;  %v17675_v45 = vld [vmem:[#allocation21_spill] sm:$0xff] }
 0x39a   :  { %7589 = vmatmul.mubr.msk.f32.gmra.mxu1 %vm17667_vm14, %v17322_v12  ;;  %v5534_v33 = vadd.f32 %v17669_v20, %v5533_v48  ;;  %vm17672_vm15 = vcmp.eq.s32.totalorder %v9073_v44, %v17671_v38  ;;  %v3168_v19 = vsel %vm3167_vm4, %v3163_v56, inf  ;;  %4901 = vst [vmem:[#allocation2 + $0x1d8] sm:$0xff] %v12505_v59  ;;  %v2683_v32 = vshll.u32 %v2682_v17, 16  ;;  %4714 = vst.msk [vmem:[%s16086_s4] sm:$0xff] %vm17673_vm0, %v4075_v35  ;;  %v2680_v48 = vpop.xlane.xlu0 %2679  ;;  %v17677_v17 = vld [vmem:[#allocation45_spill] sm:$0xff]  ;;  %v17750_v27 = vld [vmem:[#allocation116_spill] sm:$0xff] }
 0x39b   :  { %7591 = vmatprep.mubr.msk.f32.mxu1 %vm17672_vm15, %v17322_v12  ;;  %3169 = vmin.xlane.f32.xlu0 %v3168_v19  ;;  %v3182_v7 = vsel %vm3181_vm9, %v3177_v15, inf  ;;  %v2668_v20 = vcvt.f32.s32 %v17674_v9  ;;  %v2681_v39 = vcvt.f32.s32 %v2680_v48  ;;  %vm3667_vm13 = vcmp.eq.s32.totalorder %v9073_v44, %v12507_v62  ;;  %v12533_v36 = vpop.xlane.xlu1 %3193  ;;  %v17680_v48 = vld [vmem:[#allocation97_spill] sm:$0xff] }
 0x39c   :  { %v5535_v3 = vadd.f32 %v17675_v45, %v5534_v33  ;;  %3183 = vmin.xlane.f32.xlu1 %v3182_v7  ;;  %v3203_v56 = vand.u32 65535, %v17676_v55  ;;  %vm17678_vm4 = vcmp.eq.s32.totalorder %v9073_v44, %v17677_v17  ;;  %17679 = vst [vmem:[#allocation144_spill] sm:$0xff] %v12533_v36  ;;  %v3191_v19 = vcvt.s32.f32 %v3189_v28  ;;  %v17681_v9 = vld [vmem:[#allocation29_spill] sm:$0xff] }
 0x39d   :  { %v12539_v15 = vsel %vm3667_vm13, 1.0, %v17282_v30  ;;  %v12541_v33 = vadd.s32 %v2683_v32, %v2681_v39  ;;  %vm3195_vm11 = vcmp.eq.f32.partialorder %v17681_v9, %v12533_v36  ;;  %vm17682_vm14 = vcmp.eq.s32.totalorder %v9073_v44, %v11882_v8  ;;  %v17683_v28 = vld [vmem:[#allocation73_spill] sm:$0xff]  ;;  %v17686_v36 = vld [vmem:[#allocation82_spill] sm:$0xff] }
 0x39e   :  { %7592 = vmatmul.mubr.msk.f32.gmra.mxu1 %vm17678_vm4, %v17322_v12  ;;  %v5536_v7 = vadd.f32 %v17680_v48, %v5535_v3  ;;  %4900 = vst [vmem:[#allocation2 + $0x1d0] sm:$0xff] %v12539_v15  ;;  %v2710_v45 = vcvt.f32.s32 %v17683_v28  ;;  %v2666_v55 = vpop.xlane.xlu0 %2665  ;;  %v3196_v49 = vsel %vm3195_vm11, %v3191_v19, inf  ;;  %v2669_v22 = vshll.u32 %v2668_v20, 16  ;;  %v17684_v3 = vld [vmem:[#allocation194_spill] sm:$0xff]  ;;  %v17689_v19 = vld [vmem:[#allocation72_spill] sm:$0xff] }
 0x39f   :  { %7594 = vmatprep.mubr.msk.f32.mxu1 %vm17682_vm14, %v17322_v12  ;;  %v2667_v39 = vcvt.f32.s32 %v2666_v55  ;;  %3197 = vmin.xlane.f32.xlu0 %v3196_v49  ;;  %v3231_v48 = vand.u32 65535, %v17684_v3  ;;  %v3217_v9 = vand.u32 65535, %v17685_v57  ;;  %vm17687_vm9 = vcmp.eq.s32.totalorder %v9073_v44, %v17686_v36  ;;  %v12559_v47 = vpop.xlane.xlu1 %3207 }
 0x3a0   :  { %v5537_v32 = vadd.f32 %v11904_v31, %v5536_v7  ;;  %17688 = vst [vmem:[#allocation88_spill] sm:$0xff] %v12559_v47  ;;  %v3205_v14 = vcvt.s32.f32 %v3203_v56  ;;  %vm3670_vm15 = vcmp.eq.s32.totalorder %v9073_v44, %v12541_v33  ;;  %v7983_v31 = vld [vmem:[%s16082_s0] sm:$0xff]  ;;  %vm3209_vm0 = vcmp.eq.f32.partialorder %v17689_v19, %v12559_v47  ;;  %v17691_v7 = vld [vmem:[#allocation17_spill] sm:$0xff] }
 0x3a1   :  { %v4970_v49 = vsub.f32 %v4075_v35, %v7983_v31  ;;  %v12566_v20 = vadd.s32 %v2669_v22, %v2667_v39  ;;  %vm17690_vm4 = vcmp.eq.s32.totalorder %v9073_v44, %v11953_v40  ;;  %v2711_v56 = vshll.u32 %v2710_v45, 16  ;;  %v17756_v33 = vld [vmem:[#allocation80_spill] sm:$0xff] }
 0x3a2   :  { %7595 = vmatmul.mubr.msk.f32.gmra.mxu1 %vm17687_vm9, %v17322_v12  ;;  %v5538_v57 = vadd.f32 %v11874_v21, %v5537_v32  ;;  %v2696_v28 = vcvt.f32.s32 %v17691_v7  ;;  %v2708_v55 = vpop.xlane.xlu0 %2707  ;;  %v3210_v3 = vsel %vm3209_vm0, %v3205_v14, inf  ;;  %v12580_v22 = vsel %vm3670_vm15, 1.0, %v17282_v30  ;;  %v7984_v21 = vld [vmem:[%s16082_s0 + $0x8] sm:$0xff]  ;;  %v17692_v14 = vld [vmem:[#allocation14_spill] sm:$0xff] }
 0x3a3   :  { %7597 = vmatprep.mubr.msk.f32.mxu1 %vm17690_vm4, %v17322_v12  ;;  %v4971_v35 = vsub.f32 %v7533_v2, %v7984_v21  ;;  %v2709_v39 = vcvt.f32.s32 %v2708_v55  ;;  %3211 = vmin.xlane.f32.xlu1 %v3210_v3  ;;  %4903 = vst [vmem:[#allocation2 + $0x1e8] sm:$0xff] %v12580_v22  ;;  %vm3669_vm11 = vcmp.eq.s32.totalorder %v9073_v44, %v12566_v20  ;;  %v3245_v45 = vand.u32 65535, %v17692_v14  ;;  %v12594_v31 = vpop.xlane.xlu1 %3221  ;;  %v17695_v7 = vld [vmem:[#allocation48_spill] sm:$0xff]  ;;  %v17697_v3 = vld [vmem:[#allocation69_spill] sm:$0xff]  ;;  %v17698_v21 = vld [vmem:[#allocation18_spill] sm:$0xff] }
 0x3a4   :  { %v5539_v32 = vadd.f32 %v11986_v10, %v5538_v57  ;;  %vm17693_vm14 = vcmp.eq.s32.totalorder %v9073_v44, %v11906_v11  ;;  %17694 = vst [vmem:[#allocation198_spill] sm:$0xff] %v12594_v31  ;;  %v3219_v19 = vcvt.s32.f32 %v3217_v9  ;;  %v12600_v10 = vsel %vm3669_vm11, 1.0, %v17282_v30 }
 0x3a5   :  { %v5099_v2 = vmul.f32 %v4970_v49, %v4970_v49  ;;  %v12602_v57 = vadd.s32 %v2711_v56, %v2709_v39  ;;  %vm17696_vm9 = vcmp.eq.s32.totalorder %v9073_v44, %v12024_v37  ;;  %vm3223_vm0 = vcmp.eq.f32.partialorder %v17697_v3, %v12594_v31  ;;  %4902 = vst [vmem:[#allocation2 + $0x1e0] sm:$0xff] %v12600_v10 }
 0x3a6   :  { %7598 = vmatmul.mubr.msk.f32.gmra.mxu1 %vm17693_vm14, %v17322_v12  ;;  %v5540_v55 = vadd.f32 %v17695_v7, %v5539_v32  ;;  %v2697_v9 = vshll.u32 %v2696_v28, 16  ;;  %v2738_v14 = vcvt.f32.s32 %v17698_v21  ;;  %v2694_v47 = vpop.xlane.xlu0 %2693  ;;  %v3224_v52 = vsel %vm3223_vm0, %v3219_v19, inf  ;;  %v7536_v7 = vpop.f32.mrf.mxu1  ;;  %v17706_v21 = vld [vmem:[#allocation143_spill] sm:$0xff] }
 0x3a7   :  { %7600 = vmatprep.mubr.msk.f32.mxu1 %vm17696_vm9, %v17322_v12  ;;  %v3233_v49 = vcvt.s32.f32 %v3231_v48  ;;  %v5100_v56 = vmul.f32 %v4971_v35, %v4971_v35  ;;  %v2695_v32 = vcvt.f32.s32 %v2694_v47  ;;  %3225 = vmin.xlane.f32.xlu0 %v3224_v52  ;;  %vm16630_vm4 = vcmp.eq.s32.totalorder %v9073_v44, %v12602_v57  ;;  %v7985_v48 = vld [vmem:[%s16082_s0 + $0x18] sm:$0xff] }
 0x3a8   :  { %v5541_v39 = vadd.f32 %v12054_v25, %v5540_v55  ;;  %v3259_v5 = vand.u32 65535, %v17699_v16  ;;  %vm17700_vm14 = vcmask 261120   ;;  %v4973_v28 = vsub.f32 %v7536_v7, %v7985_v48  ;;  %v17701_v47 = vld [vmem:[#allocation38_spill] sm:$0xff]  ;;  %v12628_v25 = vpop.xlane.xlu1 %3235  ;;  %7167 = vmatprep.subr.msk.mxu1 %vm16630_vm4, %v17322_v12  ;;  %v17705_v55 = vld [vmem:[#allocation51_spill] sm:$0xff] }
 0x3a9   :  { %4717 = vst.msk [vmem:[%s16086_s4 + $0x18] sm:$0xff] %vm17700_vm14, %v7536_v7  ;;  %vm17702_vm9 = vcmp.eq.s32.totalorder %v9073_v44, %v17701_v47  ;;  %17703 = vst [vmem:[#allocation30_spill] sm:$0xff] %v12628_v25  ;;  %v12634_v52 = vsel %vm16630_vm4, 1.0, %v17282_v30  ;;  %v3247_v16 = vcvt.s32.f32 %v3245_v45  ;;  %v12641_v19 = vadd.s32 %v2697_v9, %v2695_v32  ;;  %v4085_v7 = vpop.f32.mrf.mxu1 }
 0x3aa   :  { %7601 = vmatmul.mubr.msk.f32.gmra.mxu1 %vm17702_vm9, %v17322_v12  ;;  %vm17704_vm0 = vmmov %vm17700_vm14  ;;  %v5542_v3 = vadd.f32 %v17705_v55, %v5541_v39  ;;  %vm3237_vm14 = vcmp.eq.f32.partialorder %v17706_v21, %v12628_v25  ;;  %vm17707_vm9 = vcmp.eq.s32.totalorder %v9073_v44, %v12104_v29  ;;  %4905 = vst [vmem:[#allocation2 + $0x1f8] sm:$0xff] %v12634_v52  ;;  %v2739_v45 = vshll.u32 %v2738_v14, 16  ;;  %v7986_v39 = vld [vmem:[%s16082_s0 + $0x10] sm:$0xff]  ;;  %v2736_v48 = vpop.xlane.xlu0 %2735 }
 0x3ab   :  { %v5227_v35 = vsel %vm17704_vm0, %v5099_v2, 0.0  ;;  %7603 = vmatprep.mubr.msk.f32.mxu1 %vm17707_vm9, %v17322_v12  ;;  %vm17708_vm4 = vcmp.eq.s32.totalorder %v9073_v44, %v17701_v47  ;;  %v17709_v2 = vld [vmem:[#allocation40_spill] sm:$0xff]  ;;  %4716 = vst.msk [vmem:[%s16086_s4 + $0x10] sm:$0xff] %vm17704_vm0, %v4085_v7  ;;  %v4972_v32 = vsub.f32 %v4085_v7, %v7986_v39  ;;  %v3238_v55 = vsel %vm3237_vm14, %v3233_v49, inf  ;;  %vm17710_vm9 = vmmov %vm17704_vm0  ;;  %v17711_v29 = vld [vmem:[#allocation121_spill] sm:$0xff] }
 0x3ac   :  { %7168 = vmatpush3.msk.msra.mxu1 %vm17708_vm4, %v17322_v12  ;;  %v2724_v9 = vcvt.f32.s32 %v17709_v2  ;;  %v5228_v21 = vsel %vm17710_vm9, %v5100_v56, 0.0  ;;  %v5543_v47 = vadd.f32 %v12137_v0, %v5542_v3  ;;  %v2737_v25 = vcvt.f32.s32 %v2736_v48  ;;  %3239 = vmin.xlane.f32.xlu1 %v3238_v55  ;;  %v12671_v7 = vpop.xlane.xlu1 %3249 }
 0x3ad   :  { %vm3671_vm4 = vcmp.eq.s32.totalorder %v9073_v44, %v12641_v19  ;;  %v5229_v14 = vadd.f32 %v5228_v21, %v5227_v35  ;;  %v5102_v2 = vmul.f32 %v4973_v28, %v4973_v28  ;;  %v5101_v31 = vmul.f32 %v4972_v32, %v4972_v32  ;;  %v17714_v28 = vld [vmem:[#allocation196_spill] sm:$0xff] }
 0x3ae   :  { %vm17712_vm0 = vcmp.eq.s32.totalorder %v9073_v44, %v17711_v29  ;;  %v12677_v0 = vsel %vm3671_vm4, 1.0, %v17282_v30  ;;  %7169 = vmatprep.subr.msk.mxu1 %vm3671_vm4, %v17322_v12  ;;  %v12683_v49 = vadd.s32 %v2739_v45, %v2737_v25  ;;  %v5544_v56 = vadd.f32 %v12102_v46, %v5543_v47  ;;  %v2722_v46 = vpop.xlane.xlu0 %2721  ;;  %v17717_v45 = vld [vmem:[#allocation81_spill] sm:$0xff] }
 0x3af   :  { %7604 = vmatmul.mubr.msk.f32.gmra.mxu1 %vm17712_vm0, %v17322_v12  ;;  %vm3251_vm14 = vcmp.eq.f32.partialorder %v17714_v28, %v12671_v7  ;;  %4904 = vst [vmem:[#allocation2 + $0x1f0] sm:$0xff] %v12677_v0  ;;  %vm17715_vm9 = vcmp.eq.s32.totalorder %v9073_v44, %v12024_v37  ;;  %v2725_v35 = vshll.u32 %v2724_v9, 16  ;;  %vm17716_vm0 = vcmask 261120   ;;  %v17719_v37 = vld [vmem:[#allocation197_spill] sm:$0xff] }
 0x3b0   :  { %17713 = vst [vmem:[#allocation67_spill] sm:$0xff] %v12683_v49  ;;  %7606 = vmatprep.mubr.msk.f32.mxu1 %vm3659_vm7, %v17322_v12  ;;  %7170 = vmatpush3.msk.msra.mxu1 %vm17715_vm9, %v17322_v12  ;;  %v5230_v25 = vsel %vm17716_vm0, %v5101_v31, 0.0  ;;  %v3252_v3 = vsel %vm3251_vm14, %v3247_v16, inf  ;;  %v2766_v39 = vcvt.f32.s32 %v17717_v45  ;;  %v5545_v48 = vadd.f32 %v12246_v4, %v5544_v56  ;;  %v12714_v16 = vpop.xlane.xlu1 %3263 }
 0x3b1   :  { %7171 = vmatprep.subr.msk.mxu1 %vm3670_vm15, %v17322_v12  ;;  %v5231_v32 = vadd.f32 %v5230_v25, %v5229_v14  ;;  %v2723_v55 = vcvt.f32.s32 %v2722_v46  ;;  %3253 = vmin.xlane.f32.xlu0 %v3252_v3  ;;  %vm17718_vm9 = vcmp.eq.s32.totalorder %v9073_v44, %v11906_v11  ;;  %v3273_v31 = vand.u32 65535, %v17719_v37  ;;  %v17721_v14 = vld [vmem:[#allocation74_spill] sm:$0xff] }
 0x3b2   :  { %7172 = vmatpush3.msk.msra.mxu1 %vm17718_vm9, %v17322_v12  ;;  %v5232_v9 = vsel %vm17716_vm0, %v5102_v2, 0.0  ;;  %v3261_v4 = vcvt.s32.f32 %v3259_v5  ;;  %vm16634_vm14 = vcmp.eq.s32.totalorder %v9073_v44, %v12683_v49  ;;  %v5546_v47 = vadd.f32 %v12177_v41, %v5545_v48  ;;  %v17722_v2 = vld [vmem:[#allocation102_spill] sm:$0xff]  ;;  %v2764_v5 = vpop.xlane.xlu0 %2763 }
 0x3b3   :  { %7607 = vmatmul.mubr.msk.f32.gmra.mxu1 %vm3660_vm12, %v17322_v12  ;;  %7173 = vmatprep.subr.msk.mxu1 %vm3669_vm11, %v17322_v12  ;;  %v12722_v11 = vadd.f32 %v5232_v9, %v5231_v32  ;;  %v12724_v21 = vadd.s32 %v2725_v35, %v2723_v55  ;;  %vm3265_vm9 = vcmp.eq.f32.partialorder %v17721_v14, %v12714_v16  ;;  %v2752_v56 = vcvt.f32.s32 %v17722_v2  ;;  %v17727_v55 = vld [vmem:[#allocation170_spill] sm:$0xff] }
 0x3b4   :  { %7609 = vmatprep.mubr.msk.f32.mxu1 %vm3661_vm8, %v17322_v12  ;;  %vm17723_vm0 = vcmp.eq.s32.totalorder %v9073_v44, %v11953_v40  ;;  %v3266_v28 = vsel %vm3265_vm9, %v3261_v4, inf  ;;  %v12742_v41 = vsel %vm16634_vm14, 1.0, %v17282_v30  ;;  %v2767_v35 = vshll.u32 %v2766_v39, 16  ;;  %v17724_v40 = vld [vmem:[#allocation76_spill] sm:$0xff]  ;;  %v17730_v2 = vld [vmem:[#allocation142_spill] sm:$0xff] }
 0x3b5   :  { %17720 = vst [vmem:[#allocation149_spill] sm:$0xff] %v12724_v21  ;;  %7174 = vmatpush3.msk.msra.mxu1 %vm17723_vm0, %v17322_v12  ;;  %v5547_v25 = vadd.f32 %v12321_v63, %v5546_v47  ;;  %v2765_v46 = vcvt.f32.s32 %v2764_v5  ;;  %3267 = vmin.xlane.f32.xlu1 %v3266_v28  ;;  %vm16635_vm0 = vcmp.eq.s32.totalorder %v9073_v44, %v12724_v21  ;;  %4907 = vst [vmem:[#allocation2 + $0x208] sm:$0xff] %v12742_v41  ;;  %v12757_v63 = vpop.xlane.xlu1 %3277  ;;  %v7539_v14 = vpop.f32.mrf.mxu1 }
 0x3b6   :  { %7175 = vmatprep.subr.msk.mxu1 %vm3668_vm2, %v17322_v12  ;;  %v3287_v3 = vand.u32 65535, %v17724_v40  ;;  %v3275_v45 = vcvt.s32.f32 %v3273_v31  ;;  %v12763_v39 = vsel %vm16635_vm0, 1.0, %v17282_v30  ;;  %vm17726_vm9 = vcmp.eq.s32.totalorder %v9073_v44, %v17686_v36  ;;  %v17728_v36 = vld [vmem:[#allocation109_spill] sm:$0xff]  ;;  %v17734_v40 = vld [vmem:[#allocation152_spill] sm:$0xff] }
 0x3b7   :  { %7610 = vmatmul.mubr.msk.f32.gmra.mxu1 %vm3662_vm3, %v17322_v12  ;;  %v12765_v32 = vadd.s32 %v2767_v35, %v2765_v46  ;;  %v5548_v48 = vadd.f32 %v12272_v58, %v5547_v25  ;;  %vm3279_vm14 = vcmp.eq.f32.partialorder %v17727_v55, %v12757_v63  ;;  %4906 = vst [vmem:[#allocation2 + $0x200] sm:$0xff] %v12763_v39  ;;  %v2753_v37 = vshll.u32 %v2752_v56, 16  ;;  %v2750_v58 = vpop.xlane.xlu0 %2749  ;;  %v17736_v55 = vld [vmem:[#allocation114_spill] sm:$0xff] }
 0x3b8   :  { %7176 = vmatpush3.msk.msra.mxu1 %vm17726_vm9, %v17322_v12  ;;  %7612 = vmatprep.mubr.msk.f32.mxu1 %vm3663_vm1, %v17322_v12  ;;  %v3280_v31 = vsel %vm3279_vm14, %v3275_v45, inf  ;;  %v2794_v9 = vcvt.f32.s32 %v17728_v36  ;;  %vm17729_vm9 = vcmp.eq.s32.totalorder %v9073_v44, %v11882_v8  ;;  %v2751_v47 = vcvt.f32.s32 %v2750_v58  ;;  %v7987_v8 = vld [vmem:[%s16082_s0 + $0x28] sm:$0xff]  ;;  %v17735_v45 = vld [vmem:[#allocation199_spill] sm:$0xff] }
 0x3b9   :  { %17725 = vst [vmem:[#allocation32_spill] sm:$0xff] %v12765_v32  ;;  %7177 = vmatprep.subr.msk.mxu1 %vm3667_vm13, %v17322_v12  ;;  %v5549_v4 = vadd.f32 %v12416_v18, %v5548_v48  ;;  %3281 = vmin.xlane.f32.xlu0 %v3280_v31  ;;  %vm16636_vm0 = vcmp.eq.s32.totalorder %v9073_v44, %v12765_v32  ;;  %v3301_v56 = vand.u32 65535, %v17730_v2  ;;  %vm17731_vm14 = vcmask 261120   ;;  %v12807_v5 = vpop.xlane.xlu1 %3291 }
 0x3ba   :  { %7178 = vmatpush3.msk.msra.mxu1 %vm17729_vm9, %v17322_v12  ;;  %4719 = vst.msk [vmem:[%s16086_s4 + $0x28] sm:$0xff] %vm17731_vm14, %v7539_v14  ;;  %v4975_v18 = vsub.f32 %v7539_v14, %v7987_v8  ;;  %v3289_v28 = vcvt.s32.f32 %v3287_v3  ;;  %v12813_v35 = vsel %vm16636_vm0, 1.0, %v17282_v30  ;;  %v12815_v25 = vadd.s32 %v2753_v37, %v2751_v47  ;;  %v4095_v3 = vpop.f32.mrf.mxu1 }
 0x3bb   :  { %7179 = vmatprep.subr.msk.mxu1 %vm3666_vm6, %v17322_v12  ;;  %7613 = vmatmul.mubr.msk.f32.gmra.mxu1 %vm3664_vm5, %v17322_v12  ;;  %v5550_v46 = vadd.f32 %v12367_v13, %v5549_v4  ;;  %vm17733_vm9 = vcmp.eq.s32.totalorder %v9073_v44, %v17677_v17  ;;  %vm3293_vm14 = vcmp.eq.f32.partialorder %v17734_v40, %v12807_v5  ;;  %v3315_v48 = vand.u32 65535, %v17735_v45  ;;  %v7988_v17 = vld [vmem:[%s16082_s0 + $0x20] sm:$0xff]  ;;  %v2792_v58 = vpop.xlane.xlu0 %2791 }
 0x3bc   :  { %17732 = vst [vmem:[#allocation201_spill] sm:$0xff] %v12815_v25  ;;  %7180 = vmatpush3.msk.msra.mxu1 %vm17733_vm9, %v17322_v12  ;;  %7615 = vmatprep.mubr.msk.f32.mxu1 %vm3665_vm10, %v17322_v12  ;;  %4909 = vst [vmem:[#allocation2 + $0x218] sm:$0xff] %v12813_v35  ;;  %v2780_v13 = vcvt.f32.s32 %v17736_v55  ;;  %vm17737_vm9 = vcmask 261120   ;;  %v4974_v37 = vsub.f32 %v4095_v3, %v7988_v17  ;;  %v3294_v31 = vsel %vm3293_vm14, %v3289_v28, inf }
 0x3bd   :  { %7181 = vmatprep.subr.msk.mxu1 %vm3665_vm10, %v17322_v12  ;;  %4718 = vst.msk [vmem:[%s16086_s4 + $0x20] sm:$0xff] %vm17737_vm9, %v4095_v3  ;;  %v2795_v36 = vshll.u32 %v2794_v9, 16  ;;  %v5551_v4 = vadd.f32 %v12474_v51, %v5550_v46  ;;  %vm17738_vm0 = vcmp.eq.s32.totalorder %v9073_v44, %v17671_v38  ;;  %v2793_v61 = vcvt.f32.s32 %v2792_v58  ;;  %3295 = vmin.xlane.f32.xlu1 %v3294_v31  ;;  %v12857_v51 = vpop.xlane.xlu1 %3305  ;;  %v17745_v3 = vld [vmem:[#allocation79_spill] sm:$0xff] }
 0x3be   :  { %7182 = vmatpush3.msk.msra.mxu1 %vm17738_vm0, %v17322_v12  ;;  %vm16637_vm10 = vcmp.eq.s32.totalorder %v9073_v44, %v12815_v25  ;;  %v5104_v47 = vmul.f32 %v4975_v18, %v4975_v18  ;;  %v5103_v14 = vmul.f32 %v4974_v37, %v4974_v37  ;;  %v3303_v38 = vcvt.s32.f32 %v3301_v56  ;;  %vm17742_vm0 = vmmov %vm17737_vm9  ;;  %v17743_v18 = vld [vmem:[#allocation68_spill] sm:$0xff] }
 0x3bf   :  { %7183 = vmatprep.subr.msk.mxu1 %vm3664_vm5, %v17322_v12  ;;  %7616 = vmatmul.mubr.msk.f32.gmra.mxu1 %vm3666_vm6, %v17322_v12  ;;  %v12863_v9 = vsel %vm16637_vm10, 1.0, %v17282_v30  ;;  %v5552_v2 = vadd.f32 %v12444_v34, %v5551_v4  ;;  %v12866_v8 = vadd.s32 %v2795_v36, %v2793_v61  ;;  %vm17740_vm5 = vcmp.eq.s32.totalorder %v9073_v44, %v17666_v1  ;;  %v2778_v1 = vpop.xlane.xlu0 %2777  ;;  %vm17746_vm14 = vmmov %vm17742_vm0 }
 0x3c0   :  { %7184 = vmatpush3.msk.msra.mxu1 %vm17740_vm5, %v17322_v12  ;;  %vm3307_vm6 = vcmp.eq.f32.partialorder %v17741_v26, %v12857_v51  ;;  %7618 = vmatprep.mubr.msk.f32.mxu1 %vm3667_vm13, %v17322_v12  ;;  %4908 = vst [vmem:[#allocation2 + $0x210] sm:$0xff] %v12863_v9  ;;  %v2781_v53 = vshll.u32 %v2780_v13, 16  ;;  %v5234_v34 = vsel %vm17742_vm0, %v5103_v14, 0.0  ;;  %v2822_v28 = vcvt.f32.s32 %v17743_v18  ;;  %vm17762_vm5 = vmmov %vm17742_vm0 }
 0x3c1   :  { %17739 = vst [vmem:[#allocation110_spill] sm:$0xff] %v12866_v8  ;;  %7185 = vmatprep.subr.msk.mxu1 %vm3663_vm1, %v17322_v12  ;;  %v3308_v56 = vsel %vm3307_vm6, %v3303_v38, inf  ;;  %v5553_v46 = vadd.f32 %v12539_v15, %v5552_v2  ;;  %v5235_v40 = vadd.f32 %v5234_v34, %v12722_v11  ;;  %vm17744_vm13 = vcmp.eq.s32.totalorder %v9073_v44, %v17659_v60  ;;  %v12901_v15 = vpop.xlane.xlu1 %3319  ;;  %v17757_v38 = vld [vmem:[#allocation182_spill] sm:$0xff] }
 0x3c2   :  { %7186 = vmatpush3.msk.msra.mxu1 %vm17744_vm13, %v17322_v12  ;;  %v2779_v62 = vcvt.f32.s32 %v2778_v1  ;;  %3309 = vmin.xlane.f32.xlu0 %v3308_v56  ;;  %v3329_v45 = vand.u32 65535, %v17745_v3  ;;  %v5236_v23 = vsel %vm17746_vm14, %v5104_v47, 0.0  ;;  %v3317_v60 = vcvt.s32.f32 %v3315_v48  ;;  %v17760_v1 = vld [vmem:[#allocation147_spill] sm:$0xff] }
 0x3c3   :  { %7187 = vmatprep.subr.msk.mxu1 %vm3662_vm3, %v17322_v12  ;;  %7619 = vmatmul.mubr.msk.f32.gmra.mxu1 %vm3668_vm2, %v17322_v12  ;;  %vm16657_vm1 = vcmp.eq.s32.totalorder %v9073_v44, %v12866_v8  ;;  %v5554_v11 = vadd.f32 %v12505_v59, %v5553_v46  ;;  %v12906_v55 = vadd.f32 %v5236_v23, %v5235_v40  ;;  %v2808_v17 = vcvt.f32.s32 %v17750_v27  ;;  %v2820_v59 = vpop.xlane.xlu0 %2819  ;;  %v17770_v23 = vld [vmem:[#allocation46_spill] sm:$0xff] }
 0x3c4   :  { %v12908_v13 = vadd.s32 %v2781_v53, %v2779_v62  ;;  %vm17748_vm3 = vcmp.eq.s32.totalorder %v9073_v44, %v11576_v24  ;;  %vm3321_vm2 = vcmp.eq.f32.partialorder %v17749_v54, %v12901_v15  ;;  %7621 = vmatprep.mubr.msk.f32.mxu1 %vm3669_vm11, %v17322_v12  ;;  %v12929_v24 = vsel %vm16657_vm1, 1.0, %v17282_v30  ;;  %v17758_v53 = vld [vmem:[#allocation176_spill] sm:$0xff]  ;;  %v17765_v62 = vld [vmem:[#allocation131_spill] sm:$0xff]  ;;  %v7990_v54 = vld [vmem:[%s16082_s0 + $0x30] sm:$0xff] }
 0x3c5   :  { %7188 = vmatpush3.msk.msra.mxu1 %vm17748_vm3, %v17322_v12  ;;  %v3322_v48 = vsel %vm3321_vm2, %v3317_v60, inf  ;;  %v2823_v37 = vshll.u32 %v2822_v28, 16  ;;  %v5555_v58 = vadd.f32 %v12600_v10, %v5554_v11  ;;  %vm17751_vm11 = vcmp.eq.s32.totalorder %v9073_v44, %v11618_v43  ;;  %4911 = vst [vmem:[#allocation2 + $0x228] sm:$0xff] %v12929_v24  ;;  %v12948_v43 = vpop.xlane.xlu1 %3333  ;;  %v7542_v34 = vpop.f32.mrf.mxu1  ;;  %v17771_v11 = vld [vmem:[#allocation174_spill] sm:$0xff]  ;;  %vm17773_vm2 = vmmov %vm17762_vm5 }
 0x3c6   :  { %17747 = vst [vmem:[#allocation190_spill] sm:$0xff] %v12908_v13  ;;  %7189 = vmatprep.subr.msk.mxu1 %vm3661_vm8, %v17322_v12  ;;  %v2821_v20 = vcvt.f32.s32 %v2820_v59  ;;  %3323 = vmin.xlane.f32.xlu1 %v3322_v48  ;;  %vm16650_vm8 = vcmp.eq.s32.totalorder %v9073_v44, %v12908_v13  ;;  %v3343_v31 = vand.u32 65535, %v17752_v6  ;;  %v3331_v10 = vcvt.s32.f32 %v3329_v45  ;;  %4721 = vst.msk [vmem:[%s16086_s4 + $0x38] sm:$0xff] %vm17762_vm5, %v7542_v34  ;;  %v17769_v45 = vld [vmem:[#allocation56_spill] sm:$0xff] }
 0x3c7   :  { %7190 = vmatpush3.msk.msra.mxu1 %vm17751_vm11, %v17322_v12  ;;  %v12954_v36 = vsel %vm16650_vm8, 1.0, %v17282_v30  ;;  %v5556_v4 = vadd.f32 %v12580_v22, %v5555_v58  ;;  %v2809_v47 = vshll.u32 %v2808_v17, 16  ;;  %v2806_v22 = vpop.xlane.xlu0 %2805  ;;  %v2850_v2 = vcvt.f32.s32 %v17757_v38  ;;  %v4105_v3 = vpop.f32.mrf.mxu1  ;;  %v17774_v58 = vld [vmem:[#allocation200_spill] sm:$0xff]  ;;  %vm17782_vm5 = vmmov %vm17773_vm2 }
 0x3c8   :  { %7191 = vmatprep.subr.msk.mxu1 %vm3660_vm12, %v17322_v12  ;;  %7622 = vmatmul.mubr.msk.f32.gmra.mxu1 %vm3670_vm15, %v17322_v12  ;;  %v12957_v61 = vadd.s32 %v2823_v37, %v2821_v20  ;;  %vm17755_vm12 = vcmp.eq.s32.totalorder %v9073_v44, %v17754_v42  ;;  %vm3335_vm15 = vcmp.eq.f32.partialorder %v17756_v33, %v12948_v43  ;;  %v2807_v19 = vcvt.f32.s32 %v2806_v22 }
 0x3c9   :  { %7192 = vmatpush3.msk.msra.mxu1 %vm17755_vm12, %v17322_v12  ;;  %7624 = vmatprep.mubr.msk.f32.mxu1 %vm3671_vm4, %v17322_v12  ;;  %4910 = vst [vmem:[#allocation2 + $0x220] sm:$0xff] %v12954_v36  ;;  %v3336_v14 = vsel %vm3335_vm15, %v3331_v10, inf  ;;  %v5557_v26 = vadd.f32 %v12677_v0, %v5556_v4  ;;  %vm17759_vm9 = vcmp.eq.s32.totalorder %v9073_v44, %v17758_v53  ;;  %v3357_v50 = vand.u32 65535, %v17760_v1  ;;  %v7989_v0 = vld [vmem:[%s16082_s0 + $0x38] sm:$0xff]  ;;  %v12998_v18 = vpop.xlane.xlu1 %3347  ;;  %v17781_v1 = vld [vmem:[#allocation41_spill] sm:$0xff] }
 0x3ca   :  { %17753 = vst [vmem:[#allocation111_spill] sm:$0xff] %v12957_v61  ;;  %7193 = vmatprep.subr.msk.mxu1 %vm3659_vm7, %v17322_v12  ;;  %3337 = vmin.xlane.f32.xlu0 %v3336_v14  ;;  %vm16669_vm4 = vcmp.eq.s32.totalorder %v9073_v44, %v12957_v61  ;;  %vm17761_vm7 = vcmp.eq.s32.totalorder %v9073_v44, %v17711_v29  ;;  %v3345_v28 = vcvt.s32.f32 %v3343_v31  ;;  %v2836_v60 = vcvt.f32.s32 %v17770_v23 }
 0x3cb   :  { %7194 = vmatpush3.msk.msra.mxu1 %vm17759_vm9, %v17322_v12  ;;  %v4977_v56 = vsub.f32 %v7542_v34, %v7989_v0  ;;  %vm17763_vm6 = vcmp.eq.s32.totalorder %v9073_v44, %v12602_v57  ;;  %v13004_v29 = vsel %vm16669_vm4, 1.0, %v17282_v30  ;;  %v5558_v46 = vadd.f32 %v12634_v52, %v5557_v26  ;;  %v17767_v57 = vld [vmem:[#allocation175_spill] sm:$0xff]  ;;  %4720 = vst.msk [vmem:[%s16086_s4 + $0x30] sm:$0xff] %vm17773_vm2, %v4105_v3  ;;  %v2848_v17 = vpop.xlane.xlu0 %2847  ;;  %v17780_v26 = vld [vmem:[#allocation129_spill] sm:$0xff] }
 0x3cc   :  { %7195 = vmatprep.subr.msk.mxu1 %vm17761_vm7, %v17322_v12  ;;  %7625 = vmatmul.mubr.msk.f32.gmra.mxu1 %vm17763_vm6, %v17322_v12  ;;  %v13007_v40 = vadd.s32 %v2809_v47, %v2807_v19  ;;  %vm17766_vm0 = vcmp.eq.s32.totalorder %v9073_v44, %v17765_v62  ;;  %vm3349_vm13 = vcmp.eq.f32.partialorder %v17767_v57, %v12998_v18  ;;  %v3371_v52 = vand.u32 65535, %v17769_v45  ;;  %v17778_v47 = vld [vmem:[#allocation165_spill] sm:$0xff]  ;;  %vm17779_vm7 = vmmov %vm17773_vm2  ;;  %v17785_v62 = vld [vmem:[#allocation86_spill] sm:$0xff] }
 0x3cd   :  { %7196 = vmatpush3.msk.msra.mxu1 %vm17766_vm0, %v17322_v12  ;;  %vm17768_vm14 = vcmp.eq.s32.totalorder %v9073_v44, %v12724_v21  ;;  %4913 = vst [vmem:[#allocation2 + $0x238] sm:$0xff] %v13004_v29  ;;  %vm17772_vm3 = vcmp.eq.s32.totalorder %v9073_v44, %v17771_v11  ;;  %v4976_v27 = vsub.f32 %v4105_v3, %v7990_v54  ;;  %v3350_v59 = vsel %vm3349_vm13, %v3345_v28, inf  ;;  %v13044_v10 = vpop.xlane.xlu1 %3361  ;;  %v17786_v57 = vld [vmem:[#allocation187_spill] sm:$0xff] }
 0x3ce   :  { %17764 = vst [vmem:[#allocation134_spill] sm:$0xff] %v13007_v40  ;;  %7627 = vmatprep.mubr.msk.f32.mxu1 %vm17768_vm14, %v17322_v12  ;;  %7197 = vmatprep.subr.msk.mxu1 %vm17772_vm3, %v17322_v12  ;;  %v2851_v48 = vshll.u32 %v2850_v2, 16  ;;  %v5559_v37 = vadd.f32 %v12763_v39, %v5558_v46  ;;  %vm17775_vm11 = vcmp.eq.s32.totalorder %v9073_v44, %v17774_v58  ;;  %v2849_v20 = vcvt.f32.s32 %v2848_v17  ;;  %v17787_v54 = vld [vmem:[#allocation27_spill] sm:$0xff]  ;;  %v17789_v58 = vld [vmem:[#allocation90_spill] sm:$0xff] }
 0x3cf   :  { %7198 = vmatpush3.msk.msra.mxu1 %vm17775_vm11, %v17322_v12  ;;  %3351 = vmin.xlane.f32.xlu1 %v3350_v59  ;;  %vm16662_vm12 = vcmp.eq.s32.totalorder %v9073_v44, %v13007_v40  ;;  %v5106_v6 = vmul.f32 %v4977_v56, %v4977_v56  ;;  %v5105_v31 = vmul.f32 %v4976_v27, %v4976_v27  ;;  %v3359_v39 = vcvt.s32.f32 %v3357_v50  ;;  %v2834_v38 = vpop.xlane.xlu0 %2833  ;;  %vm17792_vm11 = vmmov %vm17782_vm5 }
 0x3d0   :  { %vm17776_vm15 = vcmp.eq.s32.totalorder %v9073_v44, %v12683_v49  ;;  %v6533_v4 = vsel %vm16662_vm12, 1.0, %v17282_v30  ;;  %v13050_v42 = vadd.s32 %v2851_v48, %v2849_v20  ;;  %v5560_v33 = vadd.f32 %v12742_v41, %v5559_v37 }
 0x3d1   :  { %7628 = vmatmul.mubr.msk.f32.gmra.mxu1 %vm17776_vm15, %v17322_v12  ;;  %vm3363_vm9 = vcmp.eq.f32.partialorder %v17778_v47, %v13044_v10  ;;  %4912 = vst [vmem:[#allocation2 + $0x230] sm:$0xff] %v6533_v4  ;;  %v2837_v22 = vshll.u32 %v2836_v60, 16  ;;  %v5238_v14 = vsel %vm17779_vm7, %v5105_v31, 0.0  ;;  %v2878_v53 = vcvt.f32.s32 %v17780_v26  ;;  %v13069_v56 = vpop.xlane.xlu1 %3375 }
 0x3d2   :  { %17777 = vst [vmem:[#allocation57_spill] sm:$0xff] %v13050_v42  ;;  %7630 = vmatprep.mubr.msk.f32.mxu1 %vm16637_vm10, %v17322_v12  ;;  %v3364_v2 = vsel %vm3363_vm9, %v3359_v39, inf  ;;  %v5239_v19 = vadd.f32 %v5238_v14, %v12906_v55  ;;  %v5561_v41 = vadd.f32 %v12863_v9, %v5560_v33  ;;  %v2835_v34 = vcvt.f32.s32 %v2834_v38  ;;  %v17790_v39 = vld [vmem:[#allocation61_spill] sm:$0xff]  ;;  %vm17797_vm9 = vmmov %vm17782_vm5 }
 0x3d3   :  { %3365 = vmin.xlane.f32.xlu0 %v3364_v2  ;;  %v3385_v50 = vand.u32 65535, %v17781_v1  ;;  %v5240_v0 = vsel %vm17782_vm5, %v5106_v6, 0.0  ;;  %vm17783_vm6 = vcmp.eq.s32.totalorder %v9073_v44, %v12765_v32  ;;  %v3373_v28 = vcvt.s32.f32 %v3371_v52  ;;  %v2876_v45 = vpop.xlane.xlu0 %2875  ;;  %v7991_v2 = vld [vmem:[%s16082_s0 + $0x48] sm:$0xff]  ;;  %v17794_v1 = vld [vmem:[#allocation179_spill] sm:$0xff] }
 0x3d4   :  { %vm16735_vm0 = vcmp.eq.s32.totalorder %v9073_v44, %v13050_v42  ;;  %v13073_v55 = vadd.f32 %v5240_v0, %v5239_v19  ;;  %v13075_v9 = vadd.s32 %v2837_v22, %v2835_v34  ;;  %v5562_v46 = vadd.f32 %v12813_v35, %v5561_v41  ;;  %v17795_v0 = vld [vmem:[#allocation171_spill] sm:$0xff] }
 0x3d5   :  { %7631 = vmatmul.mubr.msk.f32.gmra.mxu1 %vm17783_vm6, %v17322_v12  ;;  %vm3377_vm13 = vcmp.eq.f32.partialorder %v17785_v62, %v13069_v56  ;;  %v2864_v3 = vcvt.f32.s32 %v17786_v57  ;;  %v6536_v23 = vsel %vm16735_vm0, 1.0, %v17282_v30  ;;  %v2879_v60 = vshll.u32 %v2878_v53, 16  ;;  %v13097_v17 = vpop.xlane.xlu1 %3389  ;;  %v7545_v14 = vpop.f32.mrf.mxu1  ;;  %vm17800_vm6 = vmmov %vm17797_vm9 }
 0x3d6   :  { %17784 = vst [vmem:[#allocation156_spill] sm:$0xff] %v13075_v9  ;;  %7633 = vmatprep.mubr.msk.f32.mxu1 %vm16650_vm8, %v17322_v12  ;;  %v3378_v52 = vsel %vm3377_vm13, %v3373_v28, inf  ;;  %v5563_v35 = vadd.f32 %v12954_v36, %v5562_v46  ;;  %v2877_v11 = vcvt.f32.s32 %v2876_v45  ;;  %vm16675_vm14 = vcmp.eq.s32.totalorder %v9073_v44, %v13075_v9  ;;  %4915 = vst [vmem:[#allocation2 + $0x248] sm:$0xff] %v6536_v23  ;;  %v17796_v46 = vld [vmem:[#allocation157_spill] sm:$0xff] }
 0x3d7   :  { %3379 = vmin.xlane.f32.xlu1 %v3378_v52  ;;  %v3399_v27 = vand.u32 65535, %v17787_v54  ;;  %v3387_v59 = vcvt.s32.f32 %v3385_v50  ;;  %v6535_v36 = vsel %vm16675_vm14, 1.0, %v17282_v30  ;;  %vm3391_vm3 = vcmp.eq.f32.partialorder %v17789_v58, %v13097_v17  ;;  %v2862_v6 = vpop.xlane.xlu0 %2861  ;;  %4723 = vst.msk [vmem:[%s16086_s4 + $0x48] sm:$0xff] %vm17792_vm11, %v7545_v14  ;;  %v4115_v50 = vpop.f32.mrf.mxu1  ;;  %vm17803_vm13 = vmmov %vm17800_vm6 }
 0x3d8   :  { %v13103_v48 = vadd.s32 %v2879_v60, %v2877_v11  ;;  %v5564_v37 = vadd.f32 %v12929_v24, %v5563_v35  ;;  %4914 = vst [vmem:[#allocation2 + $0x240] sm:$0xff] %v6535_v36  ;;  %v2865_v20 = vshll.u32 %v2864_v3, 16  ;;  %v2906_v33 = vcvt.f32.s32 %v17790_v39  ;;  %v17791_v24 = vld [vmem:[#allocation177_spill] sm:$0xff]  ;;  %4722 = vst.msk [vmem:[%s16086_s4 + $0x40] sm:$0xff] %vm17797_vm9, %v4115_v50 }
 0x3d9   :  { %7634 = vmatmul.mubr.msk.f32.gmra.mxu1 %vm16657_vm1, %v17322_v12  ;;  %v3392_v31 = vsel %vm3391_vm3, %v3387_v59, inf  ;;  %v2863_v22 = vcvt.f32.s32 %v2862_v6  ;;  %v3413_v38 = vand.u32 65535, %v17791_v24  ;;  %v4979_v26 = vsub.f32 %v7545_v14, %v7991_v2 }
 0x3da   :  { %17788 = vst [vmem:[#allocation15_spill] sm:$0xff] %v13103_v48  ;;  %7636 = vmatprep.mubr.msk.f32.mxu1 %vm16662_vm12, %v17322_v12  ;;  %v5565_v47 = vadd.f32 %v6533_v4, %v5564_v37  ;;  %3393 = vmin.xlane.f32.xlu0 %v3392_v31  ;;  %vm3684_vm2 = vcmp.eq.s32.totalorder %v9073_v44, %v13103_v48  ;;  %v13127_v4 = vpop.xlane.xlu1 %3403  ;;  %v3401_v53 = vcvt.s32.f32 %v3399_v27  ;;  %v3427_v28 = vand.u32 65535, %v17795_v0  ;;  %v17805_v0 = vld [vmem:[#allocation103_spill] sm:$0xff] }
 0x3db   :  { %v6538_v19 = vsel %vm3684_vm2, 1.0, %v17282_v30  ;;  %v13133_v41 = vadd.s32 %v2865_v20, %v2863_v22  ;;  %vm3405_vm15 = vcmp.eq.f32.partialorder %v17794_v1, %v13127_v4  ;;  %v2892_v62 = vcvt.f32.s32 %v17796_v46  ;;  %v2904_v3 = vpop.xlane.xlu0 %2903  ;;  %v17799_v20 = vld [vmem:[#allocation173_spill] sm:$0xff] }
 0x3dc   :  { %v5566_v34 = vadd.f32 %v13004_v29, %v5565_v47  ;;  %4917 = vst [vmem:[#allocation2 + $0x258] sm:$0xff] %v6538_v19  ;;  %v7992_v29 = vld [vmem:[%s16082_s0 + $0x40] sm:$0xff]  ;;  %v3406_v45 = vsel %vm3405_vm15, %v3401_v53, inf  ;;  %v2907_v52 = vshll.u32 %v2906_v33, 16  ;;  %v2905_v35 = vcvt.f32.s32 %v2904_v3  ;;  %v17806_v46 = vld [vmem:[#allocation37_spill] sm:$0xff] }
 0x3dd   :  { %7637 = vmatmul.mubr.msk.f32.gmra.mxu1 %vm16669_vm4, %v17322_v12  ;;  %17793 = vst [vmem:[#allocation205_spill] sm:$0xff] %v13133_v41  ;;  %v4978_v57 = vsub.f32 %v4115_v50, %v7992_v29  ;;  %3407 = vmin.xlane.f32.xlu1 %v3406_v45  ;;  %vm3683_vm7 = vcmp.eq.s32.totalorder %v9073_v44, %v13133_v41  ;;  %v2893_v6 = vshll.u32 %v2892_v62, 16  ;;  %v17801_v47 = vld [vmem:[#allocation52_spill] sm:$0xff]  ;;  %v2920_v62 = vcvt.f32.s32 %v17806_v46 }
 0x3de   :  { %7639 = vmatprep.mubr.msk.f32.mxu1 %vm16675_vm14, %v17322_v12  ;;  %v5567_v60 = vadd.f32 %v6535_v36, %v5566_v34  ;;  %v5108_v11 = vmul.f32 %v4979_v26, %v4979_v26  ;;  %v13157_v27 = vpop.xlane.xlu1 %3417  ;;  %v6537_v59 = vsel %vm3683_vm7, 1.0, %v17282_v30  ;;  %v3415_v36 = vcvt.s32.f32 %v3413_v38  ;;  %v17802_v38 = vld [vmem:[#allocation92_spill] sm:$0xff] }
 0x3df   :  { %v5107_v54 = vmul.f32 %v4978_v57, %v4978_v57  ;;  %v13163_v37 = vadd.s32 %v2907_v52, %v2905_v35  ;;  %vm3419_vm5 = vcmp.eq.f32.partialorder %v17799_v20, %v13157_v27  ;;  %4916 = vst [vmem:[#allocation2 + $0x250] sm:$0xff] %v6537_v59  ;;  %v2890_v39 = vpop.xlane.xlu0 %2889  ;;  %v2934_v22 = vcvt.f32.s32 %v17801_v47 }
 0x3e0   :  { %v5568_v58 = vadd.f32 %v6536_v23, %v5567_v60  ;;  %v3420_v33 = vsel %vm3419_vm5, %v3415_v36, inf  ;;  %v2891_v23 = vcvt.f32.s32 %v2890_v39  ;;  %v3441_v2 = vand.u32 65535, %v17802_v38 }
 0x3e1   :  { %7640 = vmatmul.mubr.msk.f32.gmra.mxu1 %vm16735_vm0, %v17322_v12  ;;  %17798 = vst [vmem:[#allocation124_spill] sm:$0xff] %v13163_v37  ;;  %v5242_v31 = vsel %vm17800_vm6, %v5107_v54, 0.0  ;;  %3421 = vmin.xlane.f32.xlu0 %v3420_v33  ;;  %v5244_v26 = vsel %vm17803_vm13, %v5108_v11, 0.0  ;;  %v3429_v34 = vcvt.s32.f32 %v3427_v28  ;;  %vm3686_vm3 = vcmp.eq.s32.totalorder %v9073_v44, %v13163_v37 }
 0x3e2   :  { %7642 = vmatprep.mubr.msk.f32.mxu1 %vm3683_vm7, %v17322_v12  ;;  %v5243_v14 = vadd.f32 %v5242_v31, %v13073_v55  ;;  %v5569_v24 = vadd.f32 %v6537_v59, %v5568_v58  ;;  %v13180_v53 = vpop.xlane.xlu1 %3431  ;;  %v13186_v55 = vadd.s32 %v2893_v6, %v2891_v23  ;;  %v6540_v28 = vsel %vm3686_vm3, 1.0, %v17282_v30  ;;  %v17809_v59 = vld [vmem:[#allocation47_spill] sm:$0xff]  ;;  %v17810_v31 = vld [vmem:[#allocation125_spill] sm:$0xff] }
 0x3e3   :  { %vm3433_vm11 = vcmp.eq.f32.partialorder %v17805_v0, %v13180_v53  ;;  %v2932_v29 = vpop.xlane.xlu0 %2931  ;;  %v2935_v3 = vshll.u32 %v2934_v22, 16  ;;  %4919 = vst [vmem:[#allocation2 + $0x268] sm:$0xff] %v6540_v28  ;;  %v3443_v11 = vcvt.s32.f32 %v3441_v2  ;;  %v2921_v58 = vshll.u32 %v2920_v62, 16  ;;  %v7993_v23 = vld [vmem:[%s16082_s0 + $0x58] sm:$0xff]  ;;  %v17814_v62 = vld [vmem:[#allocation141_spill] sm:$0xff] }
 0x3e4   :  { %v13184_v1 = vadd.f32 %v5244_v26, %v5243_v14  ;;  %17804 = vst [vmem:[#allocation126_spill] sm:$0xff] %v13186_v55  ;;  %v5570_v50 = vadd.f32 %v6538_v19, %v5569_v24  ;;  %v3434_v57 = vsel %vm3433_vm11, %v3429_v34, inf  ;;  %v2933_v45 = vcvt.f32.s32 %v2932_v29  ;;  %v17807_v19 = vld [vmem:[#allocation181_spill] sm:$0xff]  ;;  %v17811_v14 = vld [vmem:[#allocation107_spill] sm:$0xff]  ;;  %v17813_v0 = vld [vmem:[#allocation22_spill] sm:$0xff] }
 0x3e5   :  { %7643 = vmatmul.mubr.msk.f32.gmra.mxu1 %vm3684_vm2, %v17322_v12  ;;  %3435 = vmin.xlane.f32.xlu1 %v3434_v57  ;;  %vm3685_vm15 = vcmp.eq.s32.totalorder %v9073_v44, %v13186_v55  ;;  %v3455_v52 = vand.u32 65535, %v17807_v19  ;;  %v2948_v39 = vcvt.f32.s32 %v17810_v31  ;;  %v7548_v22 = vpop.f32.mrf.mxu1  ;;  %v3469_v24 = vand.u32 65535, %v17811_v14  ;;  %vm17815_vm11 = vmmov %vm17800_vm6  ;;  %v13245_v57 = vld [vmem:[%s16082_s0 + $0x50] sm:$0xff]  ;;  %v17816_v19 = vld [vmem:[#allocation184_spill] sm:$0xff] }
 0x3e6   :  { %v13198_v60 = vpop.xlane.xlu1 %3445  ;;  %v6539_v35 = vsel %vm3685_vm15, 1.0, %v17282_v30  ;;  %7645 = vmatprep.mubr.msk.f32.mxu1 %vm3685_vm15, %v17322_v12  ;;  %v13208_v54 = vadd.s32 %v2935_v3, %v2933_v45  ;;  %4725 = vst.msk [vmem:[%s16086_s4 + $0x58] sm:$0xff] %vm17800_vm6, %v7548_v22  ;;  %v4981_v38 = vsub.f32 %v7548_v22, %v7993_v23  ;;  %v2962_v29 = vcvt.f32.s32 %v17814_v62 }
 0x3e7   :  { %vm3447_vm9 = vcmp.eq.f32.partialorder %v17809_v59, %v13198_v60  ;;  %4918 = vst [vmem:[#allocation2 + $0x260] sm:$0xff] %v6539_v35  ;;  %v5571_v36 = vadd.f32 %v6539_v35, %v5570_v50  ;;  %v2918_v20 = vpop.xlane.xlu0 %2917  ;;  %v3457_v26 = vcvt.s32.f32 %v3455_v52  ;;  %v4125_v46 = vpop.f32.mrf.mxu1  ;;  %v3483_v52 = vand.u32 65535, %v17816_v19 }
 0x3e8   :  { %17808 = vst [vmem:[#allocation96_spill] sm:$0xff] %v13208_v54  ;;  %v3448_v6 = vsel %vm3447_vm9, %v3443_v11, inf  ;;  %v2919_v47 = vcvt.f32.s32 %v2918_v20  ;;  %vm3688_vm5 = vcmp.eq.s32.totalorder %v9073_v44, %v13208_v54  ;;  %4724 = vst.msk [vmem:[%s16086_s4 + $0x50] sm:$0xff] %vm17815_vm11, %v4125_v46  ;;  %v2949_v35 = vshll.u32 %v2948_v39, 16  ;;  %v17818_v39 = vld [vmem:[#allocation105_spill] sm:$0xff] }
 0x3e9   :  { %7646 = vmatmul.mubr.msk.f32.gmra.mxu1 %vm3686_vm3, %v17322_v12  ;;  %v5572_v33 = vadd.f32 %v6540_v28, %v5571_v36  ;;  %3449 = vmin.xlane.f32.xlu0 %v3448_v6  ;;  %v6542_v34 = vsel %vm3688_vm5, 1.0, %v17282_v30  ;;  %v4980_v28 = vsub.f32 %v4125_v46, %v13245_v57  ;;  %v5110_v59 = vmul.f32 %v4981_v38, %v4981_v38 }
 0x3ea   :  { %v13227_v2 = vpop.xlane.xlu1 %3459  ;;  %v13233_v50 = vadd.s32 %v2921_v58, %v2919_v47  ;;  %4921 = vst [vmem:[#allocation2 + $0x278] sm:$0xff] %v6542_v34  ;;  %v3471_v6 = vcvt.s32.f32 %v3469_v24  ;;  %v2963_v22 = vshll.u32 %v2962_v29, 16  ;;  %v3485_v29 = vcvt.s32.f32 %v3483_v52 }
 0x3eb   :  { %vm3461_vm13 = vcmp.eq.f32.partialorder %v17813_v0, %v13227_v2  ;;  %v2946_v3 = vpop.xlane.xlu0 %2945  ;;  %v5109_v36 = vmul.f32 %v4980_v28, %v4980_v28  ;;  %v17821_v28 = vld [vmem:[#allocation113_spill] sm:$0xff]  ;;  %vm17854_vm8 = vcmask 261120   ;;  %vm17877_vm12 = vcmask 261120  }
 0x3ec   :  { %17812 = vst [vmem:[#allocation153_spill] sm:$0xff] %v13233_v50  ;;  %v3462_v45 = vsel %vm3461_vm13, %v3457_v26, inf  ;;  %v2947_v11 = vcvt.f32.s32 %v2946_v3  ;;  %vm3687_vm9 = vcmp.eq.s32.totalorder %v9073_v44, %v13233_v50  ;;  %vm17819_vm13 = vmmov %vm17815_vm11  ;;  %v17820_v26 = vld [vmem:[#allocation172_spill] sm:$0xff]  ;;  %v3497_v3 = vand.u32 65535, %v17821_v28 }
 0x3ed   :  { %3463 = vmin.xlane.f32.xlu1 %v3462_v45  ;;  %v6541_v20 = vsel %vm3687_vm9, 1.0, %v17282_v30  ;;  %7648 = vmatprep.mubr.msk.f32.mxu1 %vm3687_vm9, %v17322_v12  ;;  %v5246_v14 = vsel %vm17819_vm13, %v5109_v36, 0.0  ;;  %v2976_v0 = vcvt.f32.s32 %v17820_v26 }
 0x3ee   :  { %v13251_v58 = vpop.xlane.xlu1 %3473  ;;  %v13261_v31 = vadd.s32 %v2949_v35, %v2947_v11  ;;  %4920 = vst [vmem:[#allocation2 + $0x270] sm:$0xff] %v6541_v20  ;;  %v5573_v47 = vadd.f32 %v6541_v20, %v5572_v33  ;;  %7649 = vmatmul.mubr.msk.f32.gmra.mxu1 %vm3688_vm5, %v17322_v12  ;;  %v5247_v24 = vadd.f32 %v5246_v14, %v13184_v1  ;;  %v5248_v33 = vsel %vm17815_vm11, %v5110_v59, 0.0  ;;  %v17823_v11 = vld [vmem:[#allocation106_spill] sm:$0xff]  ;;  %v17824_v1 = vld [vmem:[#allocation203_spill] sm:$0xff] }
 0x3ef   :  { %vm3475_vm6 = vcmp.eq.f32.partialorder %v17818_v39, %v13251_v58  ;;  %v2960_v23 = vpop.xlane.xlu0 %2959  ;;  %v2977_v20 = vshll.u32 %v2976_v0, 16  ;;  %v17828_v0 = vld [vmem:[#allocation63_spill] sm:$0xff] }
 0x3f0   :  { %17817 = vst [vmem:[#allocation75_spill] sm:$0xff] %v13261_v31  ;;  %v3476_v38 = vsel %vm3475_vm6, %v3471_v6, inf  ;;  %v5574_v46 = vadd.f32 %v6542_v34, %v5573_v47  ;;  %v2961_v62 = vcvt.f32.s32 %v2960_v23  ;;  %vm16638_vm10 = vcmp.eq.s32.totalorder %v9073_v44, %v13261_v31  ;;  %v17825_v47 = vld [vmem:[#allocation180_spill] sm:$0xff]  ;;  %v17841_v31 = vld [vmem:[#allocation99_spill] sm:$0xff] }
 0x3f1   :  { %3477 = vmin.xlane.f32.xlu0 %v3476_v38  ;;  %v13278_v19 = vadd.f32 %v5248_v33, %v5247_v24  ;;  %7651 = vmatprep.mubr.msk.f32.mxu1 %vm16638_vm10, %v17322_v12  ;;  %v2990_v34 = vcvt.f32.s32 %v17824_v1  ;;  %v6543_v59 = vsel %vm16638_vm10, 1.0, %v17282_v30  ;;  %v3499_v38 = vcvt.s32.f32 %v3497_v3  ;;  %v17829_v33 = vld [vmem:[#allocation85_spill] sm:$0xff] }
 0x3f2   :  { %v13274_v45 = vpop.xlane.xlu1 %3487  ;;  %v13280_v35 = vadd.s32 %v2963_v22, %v2961_v62  ;;  %4922 = vst [vmem:[#allocation2 + $0x280] sm:$0xff] %v6543_v59  ;;  %v5575_v6 = vadd.f32 %v6543_v59, %v5574_v46  ;;  %v3511_v22 = vand.u32 65535, %v17825_v47  ;;  %v17830_v59 = vld [vmem:[#allocation94_spill] sm:$0xff]  ;;  %vm17831_vm10 = vcmask 261120   ;;  %v17834_v47 = vld [vmem:[#allocation189_spill] sm:$0xff] }
 0x3f3   :  { %vm3489_vm6 = vcmp.eq.f32.partialorder %v17823_v11, %v13274_v45  ;;  %v2974_v52 = vpop.xlane.xlu0 %2973  ;;  %v2991_v28 = vshll.u32 %v2990_v34, 16  ;;  %v3525_v3 = vand.u32 65535, %v17830_v59  ;;  %v3032_v49 = vcvt.f32.s32 %v17841_v31 }
 0x3f4   :  { %17822 = vst [vmem:[#allocation158_spill] sm:$0xff] %v13280_v35  ;;  %v3490_v36 = vsel %vm3489_vm6, %v3485_v29, inf  ;;  %v2975_v39 = vcvt.f32.s32 %v2974_v52  ;;  %vm16639_vm13 = vcmp.eq.s32.totalorder %v9073_v44, %v13280_v35  ;;  %v3004_v29 = vcvt.f32.s32 %v17829_v33  ;;  %v13321_v52 = vld [vmem:[%s16082_s0 + $0x68] sm:$0xff] }
 0x3f5   :  { %3491 = vmin.xlane.f32.xlu1 %v3490_v36  ;;  %v6544_v23 = vsel %vm16639_vm13, 1.0, %v17282_v30  ;;  %7652 = vmatmul.mubr.msk.f32.gmra.mxu1 %vm16639_vm13, %v17322_v12  ;;  %v7551_v1 = vpop.f32.mrf.mxu1 }
 0x3f6   :  { %v13296_v14 = vpop.xlane.xlu1 %3501  ;;  %v13306_v26 = vadd.s32 %v2977_v20, %v2975_v39  ;;  %4923 = vst [vmem:[#allocation2 + $0x288] sm:$0xff] %v6544_v23  ;;  %v5576_v24 = vadd.f32 %v6544_v23, %v5575_v6  ;;  %4727 = vst.msk [vmem:[%s16086_s4 + $0x68] sm:$0xff] %vm17831_vm10, %v7551_v1  ;;  %v4983_v34 = vsub.f32 %v7551_v1, %v13321_v52  ;;  %v3513_v6 = vcvt.s32.f32 %v3511_v22 }
 0x3f7   :  { %17826 = vst [vmem:[#allocation101_spill] sm:$0xff] %v13296_v14  ;;  %vm3503_vm11 = vcmp.eq.f32.partialorder %v17828_v0, %v13296_v14  ;;  %v2988_v46 = vpop.xlane.xlu0 %2987  ;;  %v17835_v0 = vld [vmem:[#allocation206_spill] sm:$0xff]  ;;  %v13927_v14 = vld [vmem:[%s16082_s0 + $0x1a0] sm:$0xff] }
 0x3f8   :  { %17827 = vst [vmem:[#allocation135_spill] sm:$0xff] %v13306_v26  ;;  %v3504_v62 = vsel %vm3503_vm11, %v3499_v38, inf  ;;  %v2989_v11 = vcvt.f32.s32 %v2988_v46  ;;  %vm16645_vm6 = vcmp.eq.s32.totalorder %v9073_v44, %v13306_v26  ;;  %v4135_v38 = vpop.f32.mrf.mxu1  ;;  %v3018_v46 = vcvt.f32.s32 %v17835_v0 }
 0x3f9   :  { %3505 = vmin.xlane.f32.xlu0 %v3504_v62  ;;  %v6545_v20 = vsel %vm16645_vm6, 1.0, %v17282_v30  ;;  %7654 = vmatprep.mubr.msk.f32.mxu1 %vm16645_vm6, %v17322_v12  ;;  %vm17836_vm11 = vcmask 261120   ;;  %v13346_v62 = vld [vmem:[%s16082_s0 + $0x60] sm:$0xff] }
 0x3fa   :  { %v13324_v36 = vpop.xlane.xlu1 %3515  ;;  %v13334_v39 = vadd.s32 %v2991_v28, %v2989_v11  ;;  %4924 = vst [vmem:[#allocation2 + $0x290] sm:$0xff] %v6545_v20  ;;  %v5577_v23 = vadd.f32 %v6545_v20, %v5576_v24  ;;  %4726 = vst.msk [vmem:[%s16086_s4 + $0x60] sm:$0xff] %vm17836_vm11, %v4135_v38  ;;  %v4982_v22 = vsub.f32 %v4135_v38, %v13346_v62  ;;  %v17837_v11 = vld [vmem:[#allocation77_spill] sm:$0xff]  ;;  %v3005_v24 = vshll.u32 %v3004_v29, 16 }
 0x3fb   :  { %17832 = vst [vmem:[#allocation93_spill] sm:$0xff] %v13324_v36  ;;  %vm3517_vm10 = vcmp.eq.f32.partialorder %v17834_v47, %v13324_v36  ;;  %v3002_v28 = vpop.xlane.xlu0 %3001  ;;  %v3539_v1 = vand.u32 65535, %v17837_v11  ;;  %v5112_v20 = vmul.f32 %v4983_v34, %v4983_v34  ;;  %v3527_v29 = vcvt.s32.f32 %v3525_v3  ;;  %v17840_v38 = vld [vmem:[#allocation169_spill] sm:$0xff]  ;;  %v17842_v3 = vld [vmem:[#allocation112_spill] sm:$0xff] }
 0x3fc   :  { %17833 = vst [vmem:[#allocation49_spill] sm:$0xff] %v13334_v39  ;;  %v3518_v33 = vsel %vm3517_vm10, %v3513_v6, inf  ;;  %v3003_v59 = vcvt.f32.s32 %v3002_v28  ;;  %vm16646_vm13 = vcmp.eq.s32.totalorder %v9073_v44, %v13334_v39  ;;  %v5111_v47 = vmul.f32 %v4982_v22, %v4982_v22 }
 0x3fd   :  { %3519 = vmin.xlane.f32.xlu1 %v3518_v33  ;;  %v6546_v21 = vsel %vm16646_vm13, 1.0, %v17282_v30  ;;  %7655 = vmatmul.mubr.msk.f32.gmra.mxu1 %vm16646_vm13, %v17322_v12  ;;  %v3019_v22 = vshll.u32 %v3018_v46, 16  ;;  %vm17843_vm13 = vmmov %vm17836_vm11  ;;  %v3541_v31 = vcvt.s32.f32 %v3539_v1  ;;  %v17846_v46 = vld [vmem:[#allocation87_spill] sm:$0xff]  ;;  %v17848_v1 = vld [vmem:[#allocation100_spill] sm:$0xff] }
 0x3fe   :  { %v13352_v0 = vpop.xlane.xlu1 %3529  ;;  %v13362_v6 = vadd.s32 %v3005_v24, %v3003_v59  ;;  %4925 = vst [vmem:[#allocation2 + $0x298] sm:$0xff] %v6546_v21  ;;  %v5578_v34 = vadd.f32 %v6546_v21, %v5577_v23  ;;  %v5250_v28 = vsel %vm17836_vm11, %v5111_v47, 0.0  ;;  %v3553_v24 = vand.u32 65535, %v17842_v3 }
 0x3ff   :  { %17838 = vst [vmem:[#allocation98_spill] sm:$0xff] %v13352_v0  ;;  %vm3531_vm10 = vcmp.eq.f32.partialorder %v17840_v38, %v13352_v0  ;;  %v3016_v33 = vpop.xlane.xlu0 %3015  ;;  %v5251_v35 = vadd.f32 %v5250_v28, %v13278_v19  ;;  %v5252_v59 = vsel %vm17843_vm13, %v5112_v20, 0.0  ;;  %v17847_v28 = vld [vmem:[#allocation162_spill] sm:$0xff] }
 0x400   :  { %17839 = vst [vmem:[#allocation16_spill] sm:$0xff] %v13362_v6  ;;  %v3532_v11 = vsel %vm3531_vm10, %v3527_v29, inf  ;;  %v3017_v25 = vcvt.f32.s32 %v3016_v33  ;;  %vm16651_vm6 = vcmp.eq.s32.totalorder %v9073_v44, %v13362_v6  ;;  %v3046_v33 = vcvt.f32.s32 %v17847_v28 }
 0x401   :  { %3533 = vmin.xlane.f32.xlu0 %v3532_v11  ;;  %v6547_v21 = vsel %vm16651_vm6, 1.0, %v17282_v30  ;;  %7657 = vmatprep.mubr.msk.f32.mxu1 %vm16651_vm6, %v17322_v12  ;;  %v13383_v19 = vadd.f32 %v5252_v59, %v5251_v35  ;;  %v3033_v11 = vshll.u32 %v3032_v49, 16  ;;  %v3567_v35 = vand.u32 65535, %v17848_v1  ;;  %v17853_v1 = vld [vmem:[#allocation65_spill] sm:$0xff] }
 0x402   :  { %v13373_v38 = vpop.xlane.xlu1 %3543  ;;  %v13385_v23 = vadd.s32 %v3019_v22, %v3017_v25  ;;  %4926 = vst [vmem:[#allocation2 + $0x2a0] sm:$0xff] %v6547_v21  ;;  %v5579_v20 = vadd.f32 %v6547_v21, %v5578_v34  ;;  %v3555_v49 = vcvt.s32.f32 %v3553_v24  ;;  %v17851_v22 = vld [vmem:[#allocation193_spill] sm:$0xff]  ;;  %v3047_v28 = vshll.u32 %v3046_v33, 16  ;;  %v7997_v24 = vld [vmem:[%s16082_s0 + $0x78] sm:$0xff] }
 0x403   :  { %17844 = vst [vmem:[#allocation207_spill] sm:$0xff] %v13373_v38  ;;  %vm3545_vm13 = vcmp.eq.f32.partialorder %v17846_v46, %v13373_v38  ;;  %v3030_v47 = vpop.xlane.xlu0 %3029  ;;  %v3060_v26 = vcvt.f32.s32 %v17853_v1  ;;  %v17861_v1 = vld [vmem:[#allocation64_spill] sm:$0xff] }
 0x404   :  { %17845 = vst [vmem:[#allocation160_spill] sm:$0xff] %v13385_v23  ;;  %v3546_v29 = vsel %vm3545_vm13, %v3541_v31, inf  ;;  %v3031_v3 = vcvt.f32.s32 %v3030_v47  ;;  %vm16661_vm10 = vcmp.eq.s32.totalorder %v9073_v44, %v13385_v23  ;;  %v17852_v31 = vld [vmem:[#allocation12_spill] sm:$0xff] }
 0x405   :  { %3547 = vmin.xlane.f32.xlu1 %v3546_v29  ;;  %v6548_v25 = vsel %vm16661_vm10, 1.0, %v17282_v30  ;;  %7658 = vmatmul.mubr.msk.f32.gmra.mxu1 %vm16661_vm10, %v17322_v12  ;;  %v3581_v46 = vand.u32 65535, %v17852_v31  ;;  %v7554_v39 = vpop.f32.mrf.mxu1  ;;  %v17858_v31 = vld [vmem:[#allocation186_spill] sm:$0xff]  ;;  %v17865_v23 = vld [vmem:[#allocation128_spill] sm:$0xff] }
 0x406   :  { %v13393_v59 = vpop.xlane.xlu1 %3557  ;;  %v13403_v34 = vadd.s32 %v3033_v11, %v3031_v3  ;;  %4927 = vst [vmem:[#allocation2 + $0x2a8] sm:$0xff] %v6548_v25  ;;  %v5580_v21 = vadd.f32 %v6548_v25, %v5579_v20  ;;  %4729 = vst.msk [vmem:[%s16086_s4 + $0x78] sm:$0xff] %vm17854_vm8, %v7554_v39  ;;  %v4985_v20 = vsub.f32 %v7554_v39, %v7997_v24  ;;  %v3569_v3 = vcvt.s32.f32 %v3567_v35 }
 0x407   :  { %17849 = vst [vmem:[#allocation159_spill] sm:$0xff] %v13393_v59  ;;  %vm3559_vm11 = vcmp.eq.f32.partialorder %v17851_v22, %v13393_v59  ;;  %v3044_v47 = vpop.xlane.xlu0 %3043  ;;  %v4145_v22 = vpop.f32.mrf.mxu1  ;;  %v3074_v24 = vcvt.f32.s32 %v17861_v1  ;;  %v3088_v40 = vcvt.f32.s32 %v17865_v23 }
 0x408   :  { %17850 = vst [vmem:[#allocation83_spill] sm:$0xff] %v13403_v34  ;;  %v3560_v29 = vsel %vm3559_vm11, %v3555_v49, inf  ;;  %v3045_v32 = vcvt.f32.s32 %v3044_v47  ;;  %vm16666_vm13 = vcmp.eq.s32.totalorder %v9073_v44, %v13403_v34  ;;  %v17857_v49 = vld [vmem:[#allocation178_spill] sm:$0xff]  ;;  %v3595_v47 = vand.u32 65535, %v17858_v31 }
 0x409   :  { %3561 = vmin.xlane.f32.xlu0 %v3560_v29  ;;  %v6549_v33 = vsel %vm16666_vm13, 1.0, %v17282_v30  ;;  %7660 = vmatprep.mubr.msk.f32.mxu1 %vm16666_vm13, %v17322_v12  ;;  %vm17859_vm11 = vcmask 261120   ;;  %v13440_v29 = vld [vmem:[%s16082_s0 + $0x70] sm:$0xff]  ;;  %vm17879_vm13 = vcmask 261120  }
 0x40a   :  { %v13418_v11 = vpop.xlane.xlu1 %3571  ;;  %v13428_v25 = vadd.s32 %v3047_v28, %v3045_v32  ;;  %4928 = vst [vmem:[#allocation2 + $0x2b0] sm:$0xff] %v6549_v33  ;;  %v5581_v39 = vadd.f32 %v6549_v33, %v5580_v21  ;;  %4728 = vst.msk [vmem:[%s16086_s4 + $0x70] sm:$0xff] %vm17859_vm11, %v4145_v22  ;;  %v4984_v32 = vsub.f32 %v4145_v22, %v13440_v29  ;;  %v3061_v28 = vshll.u32 %v3060_v26, 16  ;;  %v17863_v26 = vld [vmem:[#allocation185_spill] sm:$0xff] }
 0x40b   :  { %17855 = vst [vmem:[#allocation164_spill] sm:$0xff] %v13418_v11  ;;  %vm3573_vm8 = vcmp.eq.f32.partialorder %v17857_v49, %v13418_v11  ;;  %17860 = vst [vmem:[#allocation122_spill] sm:$0xff] %v13440_v29  ;;  %v3058_v21 = vpop.xlane.xlu0 %3057  ;;  %v3583_v33 = vcvt.s32.f32 %v3581_v46  ;;  %v5114_v49 = vmul.f32 %v4985_v20, %v4985_v20  ;;  %v3597_v8 = vcvt.s32.f32 %v3595_v47  ;;  %v13848_v11 = vld [vmem:[%s16082_s0 + $0x190] sm:$0xff] }
 0x40c   :  { %17856 = vst [vmem:[#allocation161_spill] sm:$0xff] %v13428_v25  ;;  %v3574_v35 = vsel %vm3573_vm8, %v3569_v3, inf  ;;  %vm16673_vm6 = vcmp.eq.s32.totalorder %v9073_v44, %v13428_v25  ;;  %v5113_v31 = vmul.f32 %v4984_v32, %v4984_v32  ;;  %v3059_v13 = vcvt.f32.s32 %v3058_v21  ;;  %vm17866_vm1 = vmmov %vm17859_vm11 }
 0x40d   :  { %3575 = vmin.xlane.f32.xlu1 %v3574_v35  ;;  %v6550_v22 = vsel %vm16673_vm6, 1.0, %v17282_v30  ;;  %7661 = vmatmul.mubr.msk.f32.gmra.mxu1 %vm16673_vm6, %v17322_v12  ;;  %v3075_v35 = vshll.u32 %v3074_v24, 16  ;;  %v5256_v34 = vsel %vm17866_vm1, %v5114_v49, 0.0  ;;  %v17869_v24 = vld [vmem:[#allocation59_spill] sm:$0xff]  ;;  %vm17882_vm4 = vmmov %vm17879_vm13 }
 0x40e   :  { %v13446_v6 = vpop.xlane.xlu1 %3585  ;;  %4929 = vst [vmem:[#allocation2 + $0x2b8] sm:$0xff] %v6550_v22  ;;  %v5582_v46 = vadd.f32 %v6550_v22, %v5581_v39  ;;  %v5254_v20 = vsel %vm17859_vm11, %v5113_v31, 0.0  ;;  %v13459_v3 = vadd.s32 %v3061_v28, %v3059_v13  ;;  %v17868_v39 = vld [vmem:[#allocation137_spill] sm:$0xff]  ;;  %v17871_v31 = vld [vmem:[#allocation42_spill] sm:$0xff] }
 0x40f   :  { %17862 = vst [vmem:[#allocation168_spill] sm:$0xff] %v13446_v6  ;;  %vm3587_vm8 = vcmp.eq.f32.partialorder %v17863_v26, %v13446_v6  ;;  %v5255_v1 = vadd.f32 %v5254_v20, %v13383_v19  ;;  %v3072_v21 = vpop.xlane.xlu0 %3071  ;;  %v3130_v13 = vcvt.f32.s32 %v17868_v39  ;;  %v3102_v22 = vcvt.f32.s32 %v17871_v31 }
 0x410   :  { %17864 = vst [vmem:[#allocation208_spill] sm:$0xff] %v13459_v3  ;;  %v3588_v32 = vsel %vm3587_vm8, %v3583_v33, inf  ;;  %v3073_v61 = vcvt.f32.s32 %v3072_v21  ;;  %vm16676_vm10 = vcmp.eq.s32.totalorder %v9073_v44, %v13459_v3 }
 0x411   :  { %3589 = vmin.xlane.f32.xlu0 %v3588_v32  ;;  %v5257_v28 = vadd.f32 %v5256_v34, %v5255_v1  ;;  %v6551_v19 = vsel %vm16676_vm10, 1.0, %v17282_v30  ;;  %7663 = vmatprep.mubr.msk.f32.mxu1 %vm16676_vm10, %v17322_v12  ;;  %v3089_v34 = vshll.u32 %v3088_v40, 16  ;;  %v3131_v32 = vshll.u32 %v3130_v13, 16 }
 0x412   :  { %v13464_v25 = vpop.xlane.xlu1 %3599  ;;  %v13479_v23 = vadd.s32 %v3075_v35, %v3073_v61  ;;  %4930 = vst [vmem:[#allocation2 + $0x2c0] sm:$0xff] %v6551_v19  ;;  %v5583_v47 = vadd.f32 %v6551_v19, %v5582_v46  ;;  %v17873_v46 = vld [vmem:[#allocation195_spill] sm:$0xff]  ;;  %vm17889_vm10 = vcmask 261120  }
 0x413   :  { %17867 = vst [vmem:[#allocation91_spill] sm:$0xff] %v13464_v25  ;;  %vm3601_vm8 = vcmp.eq.f32.partialorder %v17869_v24, %v13464_v25  ;;  %v3116_v35 = vcvt.f32.s32 %v17873_v46  ;;  %v3103_v24 = vshll.u32 %v3102_v22, 16  ;;  %v13813_v25 = vld [vmem:[%s16082_s0 + $0xb0] sm:$0xff] }
 0x414   :  { %17870 = vst [vmem:[#allocation138_spill] sm:$0xff] %v13479_v23  ;;  %v3602_v33 = vsel %vm3601_vm8, %v3597_v8, inf  ;;  %v3086_v49 = vpop.xlane.xlu0 %3085  ;;  %vm16753_vm1 = vcmp.eq.s32.totalorder %v9073_v44, %v13479_v23 }
 0x415   :  { %3603 = vmin.xlane.f32.xlu1 %v3602_v33  ;;  %v3087_v26 = vcvt.f32.s32 %v3086_v49  ;;  %v6552_v61 = vsel %vm16753_vm1, 1.0, %v17282_v30  ;;  %7664 = vmatmul.mubr.msk.f32.gmra.mxu1 %vm16753_vm1, %v17322_v12  ;;  %v7557_v13 = vpop.f32.mrf.mxu1  ;;  %v13504_v33 = vld [vmem:[%s16082_s0 + $0x88] sm:$0xff] }
 0x416   :  { %v3128_v20 = vpop.xlane.xlu1 %3127  ;;  %4931 = vst [vmem:[#allocation2 + $0x2c8] sm:$0xff] %v6552_v61  ;;  %v5584_v40 = vadd.f32 %v6552_v61, %v5583_v47  ;;  %4731 = vst.msk [vmem:[%s16086_s4 + $0x88] sm:$0xff] %vm17859_vm11, %v7557_v13  ;;  %v4987_v47 = vsub.f32 %v7557_v13, %v13504_v33  ;;  %v17875_v49 = vld [vmem:[#allocation89_spill] sm:$0xff]  ;;  %v17878_v61 = vld [vmem:[#allocation26_spill] sm:$0xff] }
 0x417   :  { %v3129_v1 = vcvt.f32.s32 %v3128_v20  ;;  %v13492_v8 = vadd.s32 %v3089_v34, %v3087_v26  ;;  %v3158_v34 = vcvt.f32.s32 %v17875_v49  ;;  %v4155_v22 = vpop.f32.mrf.mxu1  ;;  %v13529_v20 = vld [vmem:[%s16082_s0 + $0x80] sm:$0xff]  ;;  %v3144_v46 = vcvt.f32.s32 %v17878_v61 }
 0x418   :  { %v3100_v39 = vpop.xlane.xlu0 %3099  ;;  %4730 = vst.msk [vmem:[%s16086_s4 + $0x80] sm:$0xff] %vm17877_vm12, %v4155_v22 }
 0x419   :  { %17872 = vst [vmem:[#allocation34_spill] sm:$0xff] %v13492_v8  ;;  %v13495_v21 = vadd.s32 %v3131_v32, %v3129_v1  ;;  %v3101_v19 = vcvt.f32.s32 %v3100_v39  ;;  %vm3699_vm8 = vcmp.eq.s32.totalorder %v9073_v44, %v13492_v8  ;;  %v4986_v32 = vsub.f32 %v4155_v22, %v13529_v20 }
 0x41a   :  { %v6553_v31 = vsel %vm3699_vm8, 1.0, %v17282_v30  ;;  %7666 = vmatprep.mubr.msk.f32.mxu1 %vm3699_vm8, %v17322_v12  ;;  %v3117_v1 = vshll.u32 %v3116_v35, 16  ;;  %v3159_v3 = vshll.u32 %v3158_v34, 16  ;;  %v3145_v61 = vshll.u32 %v3144_v46, 16 }
 0x41b   :  { %17874 = vst [vmem:[#allocation19_spill] sm:$0xff] %v13495_v21  ;;  %vm3702_vm11 = vcmp.eq.s32.totalorder %v9073_v44, %v13495_v21  ;;  %v13520_v26 = vadd.s32 %v3103_v24, %v3101_v19  ;;  %4932 = vst [vmem:[#allocation2 + $0x2d0] sm:$0xff] %v6553_v31  ;;  %v5116_v24 = vmul.f32 %v4987_v47, %v4987_v47 }
 0x41c   :  { %v3114_v39 = vpop.xlane.xlu0 %3113  ;;  %v6556_v13 = vsel %vm3702_vm11, 1.0, %v17282_v30  ;;  %v5115_v19 = vmul.f32 %v4986_v32, %v4986_v32  ;;  %v5585_v47 = vadd.f32 %v6553_v31, %v5584_v40 }
 0x41d   :  { %17876 = vst [vmem:[#allocation58_spill] sm:$0xff] %v13520_v26  ;;  %v3115_v49 = vcvt.f32.s32 %v3114_v39  ;;  %v3156_v9 = vpop.xlane.xlu1 %3155  ;;  %vm3700_vm12 = vcmp.eq.s32.totalorder %v9073_v44, %v13520_v26  ;;  %4935 = vst [vmem:[#allocation2 + $0x2e8] sm:$0xff] %v6556_v13  ;;  %v17881_v39 = vld [vmem:[#allocation23_spill] sm:$0xff]  ;;  %v5260_v8 = vsel %vm17882_vm4, %v5116_v24, 0.0  ;;  %v17883_v26 = vld [vmem:[#allocation54_spill] sm:$0xff] }
 0x41e   :  { %v3157_v42 = vcvt.f32.s32 %v3156_v9  ;;  %v6554_v35 = vsel %vm3700_vm12, 1.0, %v17282_v30  ;;  %7667 = vmatmul.mubr.msk.f32.gmra.mxu1 %vm3700_vm12, %v17322_v12  ;;  %v5258_v22 = vsel %vm17879_vm13, %v5115_v19, 0.0  ;;  %v3172_v34 = vcvt.f32.s32 %v17881_v39 }
 0x41f   :  { %v13548_v32 = vadd.s32 %v3117_v1, %v3115_v49  ;;  %4933 = vst [vmem:[#allocation2 + $0x2d8] sm:$0xff] %v6554_v35  ;;  %v5259_v9 = vadd.f32 %v5258_v22, %v5257_v28  ;;  %v5586_v48 = vadd.f32 %v6554_v35, %v5585_v47  ;;  %v3186_v40 = vcvt.f32.s32 %v17883_v26  ;;  %v17885_v35 = vld [vmem:[#allocation144_spill] sm:$0xff] }
 0x420   :  { %v3160_v23 = vadd.s32 %v3159_v3, %v3157_v42  ;;  %v3142_v41 = vpop.xlane.xlu0 %3141  ;;  %v3173_v28 = vshll.u32 %v3172_v34, 16 }
 0x421   :  { %17880 = vst [vmem:[#allocation163_spill] sm:$0xff] %v13548_v32  ;;  %v3143_v55 = vcvt.f32.s32 %v3142_v41  ;;  %vm3701_vm6 = vcmp.eq.s32.totalorder %v9073_v44, %v13548_v32  ;;  %v5261_v31 = vadd.f32 %v5260_v8, %v5259_v9  ;;  %v3187_v49 = vshll.u32 %v3186_v40, 16  ;;  %v13606_v9 = vld [vmem:[%s16082_s0 + $0x90] sm:$0xff] }
 0x422   :  { %v6555_v1 = vsel %vm3701_vm6, 1.0, %v17282_v30  ;;  %7669 = vmatprep.mubr.msk.f32.mxu1 %vm3701_vm6, %v17322_v12  ;;  %vm3704_vm4 = vcmp.eq.s32.totalorder %v9073_v44, %v3160_v23 }
 0x423   :  { %v13564_v42 = vadd.s32 %v3145_v61, %v3143_v55  ;;  %4934 = vst [vmem:[#allocation2 + $0x2e0] sm:$0xff] %v6555_v1  ;;  %v5587_v41 = vadd.f32 %v6555_v1, %v5586_v48  ;;  %7670 = vmatmul.mubr.msk.f32.gmra.mxu1 %vm3702_vm11, %v17322_v12  ;;  %v6558_v3 = vsel %vm3704_vm4, 1.0, %v17282_v30  ;;  %7211 = vmatprep.subr.msk.mxu0 %vm3704_vm4, %v17322_v12  ;;  %v7560_v55 = vpop.f32.mrf.mxu1  ;;  %v13583_v48 = vld [vmem:[%s16082_s0 + $0x98] sm:$0xff]  ;;  %v17887_v1 = vld [vmem:[#allocation88_spill] sm:$0xff] }
 0x424   :  { %4937 = vst [vmem:[#allocation2 + $0x2f8] sm:$0xff] %v6558_v3  ;;  %v3170_v8 = vpop.xlane.xlu0 %3169  ;;  %4733 = vst.msk [vmem:[%s16086_s4 + $0x98] sm:$0xff] %vm17879_vm13, %v7560_v55  ;;  %v4989_v24 = vsub.f32 %v7560_v55, %v13583_v48 }
 0x425   :  { %17884 = vst [vmem:[#allocation33_spill] sm:$0xff] %v13564_v42  ;;  %v5588_v26 = vadd.f32 %v6556_v13, %v5587_v41  ;;  %v3171_v46 = vcvt.f32.s32 %v3170_v8  ;;  %v3184_v19 = vpop.xlane.xlu1 %3183  ;;  %vm3703_vm14 = vcmp.eq.s32.totalorder %v9073_v44, %v13564_v42  ;;  %v3200_v13 = vcvt.f32.s32 %v17885_v35  ;;  %v4165_v61 = vpop.f32.mrf.mxu1 }
 0x426   :  { %v3185_v47 = vcvt.f32.s32 %v3184_v19  ;;  %v6557_v22 = vsel %vm3703_vm14, 1.0, %v17282_v30  ;;  %7672 = vmatprep.mubr.msk.f32.mxu1 %vm3703_vm14, %v17322_v12  ;;  %4732 = vst.msk [vmem:[%s16086_s4 + $0x90] sm:$0xff] %vm17879_vm13, %v4165_v61  ;;  %v4988_v40 = vsub.f32 %v4165_v61, %v13606_v9  ;;  %v3214_v41 = vcvt.f32.s32 %v17887_v1 }
 0x427   :  { %v13597_v39 = vadd.s32 %v3173_v28, %v3171_v46  ;;  %4936 = vst [vmem:[#allocation2 + $0x2f0] sm:$0xff] %v6557_v22  ;;  %v5589_v34 = vadd.f32 %v6557_v22, %v5588_v26  ;;  %7673 = vmatmul.mubr.msk.f32.gmra.mxu1 %vm3704_vm4, %v17322_v12  ;;  %v5118_v8 = vmul.f32 %v4989_v24, %v4989_v24  ;;  %v3201_v19 = vshll.u32 %v3200_v13, 16  ;;  %v17891_v22 = vld [vmem:[#allocation198_spill] sm:$0xff] }
 0x428   :  { %v13613_v28 = vadd.s32 %v3187_v49, %v3185_v47  ;;  %v5117_v26 = vmul.f32 %v4988_v40, %v4988_v40  ;;  %v3198_v46 = vpop.xlane.xlu0 %3197  ;;  %v3215_v47 = vshll.u32 %v3214_v41, 16  ;;  %v3228_v61 = vcvt.f32.s32 %v17891_v22 }
 0x429   :  { %17886 = vst [vmem:[#allocation104_spill] sm:$0xff] %v13597_v39  ;;  %v13615_v55 = vadd.f32 %v6558_v3, %v5589_v34  ;;  %vm16680_vm13 = vcmp.eq.s32.totalorder %v9073_v44, %v13597_v39  ;;  %v3199_v23 = vcvt.f32.s32 %v3198_v46  ;;  %v17892_v34 = vld [vmem:[#allocation30_spill] sm:$0xff]  ;;  %v5264_v1 = vsel %vm17889_vm10, %v5118_v8, 0.0 }
 0x42a   :  { %17888 = vst [vmem:[#allocation145_spill] sm:$0xff] %v13613_v28  ;;  %v13623_v35 = vsel %vm16680_vm13, 1.0, %v17282_v30  ;;  %7675 = vmatprep.mubr.msk.f32.mxu1 %vm16680_vm13, %v17322_v12  ;;  %vm16681_vm4 = vcmp.eq.s32.totalorder %v9073_v44, %v13613_v28  ;;  %v5262_v3 = vsel %vm17889_vm10, %v5117_v26, 0.0  ;;  %v3242_v40 = vcvt.f32.s32 %v17892_v34 }
 0x42b   :  { %4938 = vst [vmem:[#allocation2 + $0x300] sm:$0xff] %v13623_v35  ;;  %v13637_v24 = vsel %vm16681_vm4, 1.0, %v17282_v30  ;;  %7676 = vmatmul.mubr.msk.f32.gmra.mxu1 %vm16681_vm4, %v17322_v12  ;;  %v5263_v49 = vadd.f32 %v5262_v3, %v5261_v31  ;;  %v13643_v13 = vadd.s32 %v3201_v19, %v3199_v23  ;;  %v3256_v46 = vcvt.f32.s32 %v12671_v7 }
 0x42c   :  { %4939 = vst [vmem:[#allocation2 + $0x308] sm:$0xff] %v13637_v24  ;;  %v3212_v26 = vpop.xlane.xlu1 %3211  ;;  %v3270_v31 = vcvt.f32.s32 %v12714_v16  ;;  %v3284_v19 = vcvt.f32.s32 %v12757_v63  ;;  %v3298_v7 = vcvt.f32.s32 %v12807_v5  ;;  %v3229_v23 = vshll.u32 %v3228_v61, 16 }
 0x42d   :  { %17890 = vst [vmem:[#allocation44_spill] sm:$0xff] %v13643_v13  ;;  %v5265_v39 = vadd.f32 %v5264_v1, %v5263_v49  ;;  %v3213_v32 = vcvt.f32.s32 %v3212_v26  ;;  %vm16688_vm13 = vcmp.eq.s32.totalorder %v9073_v44, %v13643_v13  ;;  %v7563_v16 = vpop.f32.mrf.mxu1  ;;  %v3243_v63 = vshll.u32 %v3242_v40, 16  ;;  %v13676_v49 = vld [vmem:[%s16082_s0 + $0xa8] sm:$0xff]  ;;  %v13695_v1 = vld [vmem:[%s16082_s0 + $0xa0] sm:$0xff] }
 0x42e   :  { %v13658_v41 = vsel %vm16688_vm13, 1.0, %v17282_v30  ;;  %7678 = vmatprep.mubr.msk.f32.mxu1 %vm16688_vm13, %v17322_v12  ;;  %v3312_v3 = vcvt.f32.s32 %v12857_v51  ;;  %4735 = vst.msk [vmem:[%s16086_s4 + $0xa8] sm:$0xff] %vm17889_vm10, %v7563_v16  ;;  %v4991_v5 = vsub.f32 %v7563_v16, %v13676_v49  ;;  %v3326_v22 = vcvt.f32.s32 %v12901_v15  ;;  %v13717_v16 = vld [vmem:[%s16082_s0] sm:$0xff] }
 0x42f   :  { %v13665_v8 = vadd.s32 %v3215_v47, %v3213_v32  ;;  %4940 = vst [vmem:[#allocation2 + $0x310] sm:$0xff] %v13658_v41  ;;  %v13679_v47 = vshll.u32 %v3256_v46, 16  ;;  %v4175_v34 = vpop.f32.mrf.mxu1  ;;  %v13684_v51 = vshll.u32 %v3270_v31, 16  ;;  %v13686_v40 = vshll.u32 %v3284_v19, 16 }
 0x430   :  { %v3226_v32 = vpop.xlane.xlu0 %3225  ;;  %4734 = vst.msk [vmem:[%s16086_s4 + $0xa0] sm:$0xff] %vm17889_vm10, %v4175_v34  ;;  %v4990_v15 = vsub.f32 %v4175_v34, %v13695_v1  ;;  %v13708_v46 = vshll.u32 %v3298_v7, 16  ;;  %v3340_v31 = vcvt.f32.s32 %v12948_v43  ;;  %v13721_v34 = vshll.u32 %v3312_v3, 16  ;;  %v13726_v43 = vld [vmem:[%s16082_s0 + $0x8] sm:$0xff] }
 0x431   :  { %17893 = vst [vmem:[#allocation24_spill] sm:$0xff] %v13665_v8  ;;  %v3227_v61 = vcvt.f32.s32 %v3226_v32  ;;  %vm16693_vm4 = vcmp.eq.s32.totalorder %v9073_v44, %v13665_v8  ;;  %v7765_v32 = vpack.i.bf16 %v13717_v16, %v13529_v20  ;;  %v5120_v28 = vmul.f32 %v4991_v5, %v4991_v5  ;;  %v13737_v20 = vld [vmem:[%s16082_s0 + $0x10] sm:$0xff]  ;;  %v13756_v16 = vld [vmem:[%s16082_s0 + $0x100] sm:$0xff] }
 0x432   :  { %v13702_v26 = vsel %vm16693_vm4, 1.0, %v17282_v30  ;;  %7679 = vmatmul.mubr.msk.f32.gmra.mxu1 %vm16693_vm4, %v17322_v12  ;;  %v5119_v13 = vmul.f32 %v4990_v15, %v4990_v15  ;;  %v3354_v5 = vcvt.f32.s32 %v12998_v18  ;;  %vm17896_vm13 = vcmask 261120   ;;  %v13761_v18 = vld [vmem:[%s16082_s0 + $0x180] sm:$0xff] }
 0x433   :  { %17894 = vst [vmem:[#allocation71_spill] sm:$0xff] %v13702_v26  ;;  %v13711_v19 = vadd.s32 %v3229_v23, %v3227_v61  ;;  %4941 = vst [vmem:[#allocation2 + $0x318] sm:$0xff] %v13702_v26  ;;  %v13730_v61 = vshll.u32 %v3326_v22, 16  ;;  %v3368_v3 = vcvt.f32.s32 %v13044_v10  ;;  %v5268_v21 = vsel %vm17896_vm13, %v5120_v28, 0.0  ;;  %v14002_v26 = vld [vmem:[%s16082_s0 + $0x40] sm:$0xff] }
 0x434   :  { %v5266_v15 = vsel %vm17896_vm13, %v5119_v13, 0.0  ;;  %17898 = vst [vmem:[#allocation120_spill] sm:$0xff] %v13761_v18  ;;  %vm17900_vm4 = vmmov %vm17896_vm13  ;;  %v3382_v13 = vcvt.f32.s32 %v13069_v56  ;;  %v13804_v28 = vshll.u32 %v3354_v5, 16 }
 0x435   :  { %17895 = vst [vmem:[#allocation183_spill] sm:$0xff] %v13711_v19  ;;  %v3240_v7 = vpop.xlane.xlu1 %3239  ;;  %vm16705_vm10 = vcmp.eq.s32.totalorder %v9073_v44, %v13711_v19  ;;  %v5267_v23 = vadd.f32 %v5266_v15, %v5265_v39  ;;  %v7566_v37 = vpop.f32.mrf.mxu1  ;;  %v13797_v15 = vld [vmem:[%s16082_s0 + $0x188] sm:$0xff]  ;;  %17919 = vst [vmem:[#allocation139_spill] sm:$0xff] %v14002_v26 }
 0x436   :  { %v3241_v8 = vcvt.f32.s32 %v3240_v7  ;;  %v13747_v22 = vsel %vm16705_vm10, 1.0, %v17282_v30  ;;  %7681 = vmatprep.mubr.msk.f32.mxu1 %vm16705_vm10, %v17322_v12  ;;  %v13765_v7 = vshll.u32 %v3340_v31, 16  ;;  %4737 = vst.msk [vmem:[%s16086_s4 + $0xb8] sm:$0xff] %vm17900_vm4, %v7566_v37  ;;  %v13779_v31 = vld [vmem:[%s16082_s0 + $0xb8] sm:$0xff]  ;;  %vm17905_vm10 = vcmask 261120  }
 0x437   :  { %17897 = vst [vmem:[#allocation84_spill] sm:$0xff] %v13747_v22  ;;  %4942 = vst [vmem:[#allocation2 + $0x320] sm:$0xff] %v13747_v22  ;;  %v4993_v10 = vsub.f32 %v7566_v37, %v13779_v31  ;;  %v5269_v50 = vadd.f32 %v5268_v21, %v5267_v23  ;;  %v4185_v54 = vpop.f32.mrf.mxu1  ;;  %v13829_v23 = vld [vmem:[%s16082_s0 + $0x20] sm:$0xff] }
 0x438   :  { %v13768_v19 = vadd.s32 %v3243_v63, %v3241_v8  ;;  %v13785_v8 = vld [vmem:[%s16082_s0 + $0x18] sm:$0xff]  ;;  %v13792_v63 = vld [vmem:[%s16082_s0 + $0x108] sm:$0xff]  ;;  %4736 = vst.msk [vmem:[%s16086_s4 + $0xb0] sm:$0xff] %vm17896_vm13, %v4185_v54  ;;  %v4992_v56 = vsub.f32 %v4185_v54, %v13813_v25  ;;  %v13833_v54 = vshll.u32 %v3368_v3, 16 }
 0x439   :  { %v13865_v3 = vld [vmem:[%s16082_s0 + $0x28] sm:$0xff] }
 0x43a   :  { %17899 = vst [vmem:[#allocation130_spill] sm:$0xff] %v13768_v19  ;;  %v3254_v39 = vpop.xlane.xlu0 %3253  ;;  %vm16706_vm4 = vcmp.eq.s32.totalorder %v9073_v44, %v13768_v19  ;;  %17902 = vst [vmem:[#allocation140_spill] sm:$0xff] %v13833_v54  ;;  %v7569_v6 = vpop.f32.mrf.mxu1  ;;  %v13843_v19 = vld [vmem:[%s16082_s0 + $0x110] sm:$0xff]  ;;  %v5121_v5 = vmul.f32 %v4992_v56, %v4992_v56  ;;  %v13869_v56 = vshll.u32 %v3382_v13, 16 }
 0x43b   :  { %v3255_v42 = vcvt.f32.s32 %v3254_v39  ;;  %v13820_v21 = vsel %vm16706_vm4, 1.0, %v17282_v30  ;;  %7682 = vmatmul.mubr.msk.f32.gmra.mxu1 %vm16706_vm4, %v17322_v12  ;;  %v3396_v39 = vcvt.f32.s32 %v13097_v17  ;;  %v5122_v17 = vmul.f32 %v4993_v10, %v4993_v10  ;;  %4739 = vst.msk [vmem:[%s16086_s4 + $0xc8] sm:$0xff] %vm17896_vm13, %v7569_v6  ;;  %vm17906_vm4 = vmmov %vm17905_vm10 }
 0x43c   :  { %17901 = vst [vmem:[#allocation13_spill] sm:$0xff] %v13820_v21  ;;  %4943 = vst [vmem:[#allocation2 + $0x328] sm:$0xff] %v13820_v21  ;;  %v4195_v0 = vpop.f32.mrf.mxu1  ;;  %v5270_v13 = vsel %vm17905_vm10, %v5121_v5, 0.0  ;;  %v13909_v5 = vld [vmem:[%s16082_s0 + $0x30] sm:$0xff] }
 0x43d   :  { %v13837_v37 = vadd.s32 %v13679_v47, %v3255_v42  ;;  %v13859_v42 = vld [vmem:[%s16082_s0 + $0xc8] sm:$0xff]  ;;  %17904 = vst [vmem:[#allocation117_spill] sm:$0xff] %v13869_v56  ;;  %4738 = vst.msk [vmem:[%s16086_s4 + $0xc0] sm:$0xff] %vm17906_vm4, %v4195_v0  ;;  %v5271_v56 = vadd.f32 %v5270_v13, %v5269_v50  ;;  %v3410_v50 = vcvt.f32.s32 %v13127_v4  ;;  %v13943_v4 = vld [vmem:[%s16082_s0 + $0xd8] sm:$0xff] }
 0x43e   :  { %v4995_v47 = vsub.f32 %v7569_v6, %v13859_v42  ;;  %v3268_v59 = vpop.xlane.xlu1 %3267  ;;  %7766 = vxpose.xlu0.b32.start [1/16] (narrow) %v7765_v32, 32  ;;  %v13876_v6 = vld [vmem:[%s16082_s0 + $0x118] sm:$0xff]  ;;  %vm17911_vm10 = vmmov %vm17906_vm4  ;;  %v7572_v10 = vpop.f32.mrf.mxu1 }
 0x43f   :  { %17903 = vst [vmem:[#allocation115_spill] sm:$0xff] %v13837_v37  ;;  %v3269_v38 = vcvt.f32.s32 %v3268_v59  ;;  %vm16716_vm13 = vcmp.eq.s32.totalorder %v9073_v44, %v13837_v37  ;;  %v13881_v32 = vld [vmem:[%s16082_s0 + $0x198] sm:$0xff]  ;;  %v13893_v59 = vld [vmem:[%s16082_s0 + $0xc0] sm:$0xff]  ;;  %4741 = vst.msk [vmem:[%s16086_s4 + $0xd8] sm:$0xff] %vm17906_vm4, %v7572_v10 }
 0x440   :  { %17907 = vst [vmem:[#allocation108_spill] sm:$0xff] %v13893_v59  ;;  %v4994_v36 = vsub.f32 %v4195_v0, %v13893_v59  ;;  %v13900_v29 = vsel %vm16716_vm13, 1.0, %v17282_v30  ;;  %7684 = vmatprep.mubr.msk.f32.mxu1 %vm16716_vm13, %v17322_v12  ;;  %v13913_v0 = vshll.u32 %v3396_v39, 16  ;;  %v13922_v37 = vld [vmem:[%s16082_s0 + $0x120] sm:$0xff]  ;;  %vm17913_vm13 = vmmov %vm17906_vm4 }
 0x441   :  { %17908 = vst [vmem:[#allocation150_spill] sm:$0xff] %v13900_v29  ;;  %v13916_v21 = vadd.s32 %v13684_v51, %v3269_v38  ;;  %4944 = vst [vmem:[#allocation2 + $0x330] sm:$0xff] %v13900_v29  ;;  %v5272_v38 = vsel %vm17911_vm10, %v5122_v17, 0.0  ;;  %v5124_v51 = vmul.f32 %v4995_v47, %v4995_v47  ;;  %v4997_v17 = vsub.f32 %v7572_v10, %v13943_v4  ;;  %v4205_v47 = vpop.f32.mrf.mxu1 }
 0x442   :  { %17909 = vst [vmem:[#allocation155_spill] sm:$0xff] %v13913_v0  ;;  %v5123_v13 = vmul.f32 %v4994_v36, %v4994_v36  ;;  %v17912_v0 = vpack.i.bf16 %v13726_v43, %v13504_v33  ;;  %v3282_v29 = vpop.xlane.xlu0 %3281  ;;  %v5273_v22 = vadd.f32 %v5272_v38, %v5271_v56  ;;  %v3424_v33 = vcvt.f32.s32 %v13157_v27  ;;  %v13977_v38 = vld [vmem:[%s16082_s0 + $0xd0] sm:$0xff] }
 0x443   :  { %17910 = vst [vmem:[#allocation191_spill] sm:$0xff] %v13916_v21  ;;  %v3283_v36 = vcvt.f32.s32 %v3282_v29  ;;  %vm16721_vm10 = vcmp.eq.s32.totalorder %v9073_v44, %v13916_v21  ;;  %v13963_v29 = vld [vmem:[%s16082_s0 + $0x38] sm:$0xff]  ;;  %v5276_v27 = vsel %vm17906_vm4, %v5124_v51, 0.0  ;;  %v7575_v39 = vpop.f32.mrf.mxu1  ;;  %v14019_v51 = vld [vmem:[%s16082_s0 + $0x130] sm:$0xff] }
 0x444   :  { %7768 = vxpose.xlu0.b32.cont [2/16] (narrow) %v17912_v0, 32  ;;  %v5274_v43 = vsel %vm17913_vm13, %v5123_v13, 0.0  ;;  %v13954_v56 = vsel %vm16721_vm10, 1.0, %v17282_v30  ;;  %7685 = vmatmul.mubr.msk.f32.gmra.mxu1 %vm16721_vm10, %v17322_v12  ;;  %vm17916_vm13 = vmmov %vm17906_vm4  ;;  %v4996_v13 = vsub.f32 %v4205_v47, %v13977_v38  ;;  %17921 = vst [vmem:[#allocation50_spill] sm:$0xff] %v14019_v51 }
 0x445   :  { %17914 = vst [vmem:[#allocation133_spill] sm:$0xff] %v13954_v56  ;;  %v5275_v10 = vadd.f32 %v5274_v43, %v5273_v22  ;;  %v13968_v0 = vadd.s32 %v13686_v40, %v3283_v36  ;;  %4740 = vst.msk [vmem:[%s16086_s4 + $0xd0] sm:$0xff] %vm17916_vm13, %v4205_v47  ;;  %v13984_v22 = vld [vmem:[%s16082_s0 + $0x128] sm:$0xff]  ;;  %v13993_v43 = vshll.u32 %v3410_v50, 16  ;;  %v5126_v47 = vmul.f32 %v4997_v17, %v4997_v17  ;;  %v14024_v17 = vld [vmem:[%s16082_s0 + $0x1b0] sm:$0xff]  ;;  %v4215_v54 = vpop.f32.mrf.mxu1 }
 0x446   :  { %4945 = vst [vmem:[#allocation2 + $0x338] sm:$0xff] %v13954_v56  ;;  %v13989_v40 = vld [vmem:[%s16082_s0 + $0x1a8] sm:$0xff]  ;;  %v3296_v21 = vpop.xlane.xlu1 %3295  ;;  %v17918_v56 = vpack.i.bf16 %v13737_v20, %v13606_v9  ;;  %v5125_v50 = vmul.f32 %v4996_v13, %v4996_v13  ;;  %vm17920_vm13 = vmmov %vm17906_vm4 }
 0x447   :  { %17915 = vst [vmem:[#allocation167_spill] sm:$0xff] %v13968_v0  ;;  %17917 = vst [vmem:[#allocation35_spill] sm:$0xff] %v13993_v43  ;;  %v5277_v36 = vadd.f32 %v5276_v27, %v5275_v10  ;;  %v14013_v9 = vld [vmem:[%s16082_s0 + $0xe8] sm:$0xff]  ;;  %v14028_v27 = vshll.u32 %v3424_v33, 16  ;;  %v3438_v10 = vcvt.f32.s32 %v13180_v53  ;;  %v3297_v13 = vcvt.f32.s32 %v3296_v21  ;;  %v14044_v53 = vld [vmem:[%s16082_s0 + $0xe0] sm:$0xff] }
 0x448   :  { %7770 = vxpose.xlu0.b32.cont [3/16] (narrow) %v17918_v56, 32  ;;  %4743 = vst.msk [vmem:[%s16086_s4 + $0xe8] sm:$0xff] %vm17920_vm13, %v7575_v39  ;;  %v4999_v20 = vsub.f32 %v7575_v39, %v14013_v9  ;;  %17922 = vst [vmem:[#allocation119_spill] sm:$0xff] %v14024_v17  ;;  %v17924_v39 = vpack.i.bf16 %v13756_v16, %v13761_v18  ;;  %vm16731_vm4 = vcmp.eq.s32.totalorder %v9073_v44, %v13968_v0  ;;  %v7578_v0 = vpop.f32.mrf.mxu1 }
 0x449   :  { %17923 = vst [vmem:[#allocation146_spill] sm:$0xff] %v14028_v27  ;;  %v5278_v43 = vsel %vm17920_vm13, %v5125_v50, 0.0  ;;  %vm17925_vm10 = vmmov %vm17920_vm13  ;;  %v4998_v21 = vsub.f32 %v4215_v54, %v14044_v53  ;;  %v14051_v33 = vsel %vm16731_vm4, 1.0, %v17282_v30  ;;  %7687 = vmatprep.mubr.msk.f32.mxu1 %vm16731_vm4, %v17322_v12  ;;  %v14060_v50 = vld [vmem:[%s16082_s0 + $0x48] sm:$0xff]  ;;  %v14067_v27 = vadd.s32 %v13708_v46, %v3297_v13 }
 0x44a   :  { %7818 = vxpose.xlu1.b32.start [1/16] (narrow) %v17924_v39, 32  ;;  %4742 = vst.msk [vmem:[%s16086_s4 + $0xe0] sm:$0xff] %vm17925_vm10, %v4215_v54  ;;  %v3452_v54 = vcvt.f32.s32 %v13198_v60  ;;  %v5280_v56 = vsel %vm17925_vm10, %v5126_v47, 0.0  ;;  %v5279_v18 = vadd.f32 %v5278_v43, %v5277_v36  ;;  %4946 = vst [vmem:[#allocation2 + $0x340] sm:$0xff] %v14051_v33  ;;  %v17927_v17 = vpack.i.bf16 %v13785_v8, %v13583_v48  ;;  %v14080_v60 = vld [vmem:[%s16082_s0 + $0xf8] sm:$0xff]  ;;  %v4225_v8 = vpop.f32.mrf.mxu1 }
 0x44b   :  { %17926 = vst [vmem:[#allocation20_spill] sm:$0xff] %v14067_v27  ;;  %v3310_v59 = vpop.xlane.xlu0 %3309  ;;  %v5128_v26 = vmul.f32 %v4999_v20, %v4999_v20  ;;  %v5127_v51 = vmul.f32 %v4998_v21, %v4998_v21  ;;  %vm17928_vm13 = vmmov %vm17925_vm10  ;;  %v5001_v46 = vsub.f32 %v7578_v0, %v14080_v60  ;;  %v14083_v43 = vshll.u32 %v3438_v10, 16  ;;  %v14093_v20 = vld [vmem:[%s16082_s0 + $0x138] sm:$0xff] }
 0x44c   :  { %7772 = vxpose.xlu0.b32.cont [4/16] (narrow) %v17927_v17, 32  ;;  %4745 = vst.msk [vmem:[%s16086_s4 + $0xf8] sm:$0xff] %vm17928_vm13, %v7578_v0  ;;  %v3311_v36 = vcvt.f32.s32 %v3310_v59  ;;  %v5281_v48 = vadd.f32 %v5280_v56, %v5279_v18  ;;  %v17930_v47 = vpack.i.bf16 %v13792_v63, %v13797_v15  ;;  %vm16734_vm10 = vcmp.eq.s32.totalorder %v9073_v44, %v14067_v27  ;;  %v14098_v59 = vld [vmem:[%s16082_s0 + $0x1b8] sm:$0xff]  ;;  %vm17932_vm4 = vmmov %vm17928_vm13  ;;  %v14113_v56 = vld [vmem:[%s16082_s0 + $0xf0] sm:$0xff] }
 0x44d   :  { %17929 = vst [vmem:[#allocation188_spill] sm:$0xff] %v14083_v43  ;;  %v5282_v0 = vsel %vm17928_vm13, %v5127_v51, 0.0  ;;  %4744 = vst.msk [vmem:[%s16086_s4 + $0xf0] sm:$0xff] %vm17932_vm4, %v4225_v8  ;;  %v5000_v10 = vsub.f32 %v4225_v8, %v14113_v56  ;;  %7688 = vmatmul.mubr.msk.f32.gmra.mxu1 %vm16734_vm10, %v17322_v12  ;;  %v5130_v13 = vmul.f32 %v5001_v46, %v5001_v46  ;;  %v14126_v21 = vsel %vm16734_vm10, 1.0, %v17282_v30  ;;  %v14134_v18 = vld [vmem:[%s16082_s0 + $0x140] sm:$0xff] }
 0x44e   :  { %7820 = vxpose.xlu1.b32.cont [2/16] (narrow) %v17930_v47, 32  ;;  %v14104_v17 = vadd.s32 %v13721_v34, %v3311_v36  ;;  %v5283_v51 = vadd.f32 %v5282_v0, %v5281_v48  ;;  %v7581_v36 = vpop.f32.mrf.mxu1  ;;  %v17933_v8 = vpack.i.bf16 %v13829_v23, %v13695_v1  ;;  %v14139_v46 = vld [vmem:[%s16082_s0 + $0x1c0] sm:$0xff]  ;;  %v14143_v0 = vshll.u32 %v3452_v54, 16  ;;  %4947 = vst [vmem:[#allocation2 + $0x348] sm:$0xff] %v14126_v21  ;;  %vm17934_vm13 = vmmov %vm17932_vm4 }
 0x44f   :  { %v3324_v47 = vpop.xlane.xlu1 %3323  ;;  %v5284_v34 = vsel %vm17932_vm4, %v5128_v26, 0.0  ;;  %v5129_v39 = vmul.f32 %v5000_v10, %v5000_v10  ;;  %4747 = vst.msk [vmem:[%s16086_s4 + $0x108] sm:$0xff] %vm17934_vm13, %v7581_v36  ;;  %v5003_v1 = vsub.f32 %v7581_v36, %v13792_v63  ;;  %v3466_v23 = vcvt.f32.s32 %v13227_v2  ;;  %vm17936_vm10 = vmmov %vm17934_vm13 }
 0x450   :  { %17931 = vst [vmem:[#allocation118_spill] sm:$0xff] %v14104_v17  ;;  %7774 = vxpose.xlu0.b32.cont [5/16] (narrow) %v17933_v8, 32  ;;  %v5285_v8 = vadd.f32 %v5284_v34, %v5283_v51  ;;  %v3325_v27 = vcvt.f32.s32 %v3324_v47  ;;  %v4235_v43 = vpop.f32.mrf.mxu1  ;;  %v17935_v54 = vpack.i.bf16 %v13843_v19, %v13848_v11  ;;  %vm16738_vm4 = vcmp.eq.s32.totalorder %v9073_v44, %v14104_v17  ;;  %vm17937_vm0 = vmmov %vm17936_vm10 }
 0x451   :  { %v5286_v26 = vsel %vm17936_vm10, %v5129_v39, 0.0  ;;  %4746 = vst.msk [vmem:[%s16086_s4 + $0x100] sm:$0xff] %vm17937_vm0, %v4235_v43  ;;  %v5002_v63 = vsub.f32 %v4235_v43, %v13756_v16  ;;  %v14168_v2 = vsel %vm16738_vm4, 1.0, %v17282_v30  ;;  %7690 = vmatprep.mubr.msk.f32.mxu1 %vm16738_vm4, %v17322_v12  ;;  %v14177_v39 = vld [vmem:[%s16082_s0 + $0x58] sm:$0xff]  ;;  %v5288_v16 = vsel %vm17937_vm0, %v5130_v13, 0.0  ;;  %v14197_v13 = vld [vmem:[%s16082_s0 + $0x1c8] sm:$0xff]  ;;  %vm17940_vm10 = vmmov %vm17937_vm0 }
 0x452   :  { %7822 = vxpose.xlu1.b32.cont [3/16] (narrow) %v17935_v54, 32  ;;  %v5287_v43 = vadd.f32 %v5286_v26, %v5285_v8  ;;  %v14183_v34 = vadd.s32 %v13730_v61, %v3325_v27  ;;  %4948 = vst [vmem:[#allocation2 + $0x350] sm:$0xff] %v14168_v2  ;;  %v7584_v51 = vpop.f32.mrf.mxu1  ;;  %v17939_v36 = vpack.i.bf16 %v13865_v3, %v13676_v49  ;;  %v14192_v54 = vld [vmem:[%s16082_s0 + $0x148] sm:$0xff]  ;;  %v14206_v26 = vshll.u32 %v3466_v23, 16 }
 0x453   :  { %v3338_v47 = vpop.xlane.xlu0 %3337  ;;  %v5132_v27 = vmul.f32 %v5003_v1, %v5003_v1  ;;  %v5131_v8 = vmul.f32 %v5002_v63, %v5002_v63  ;;  %4749 = vst.msk [vmem:[%s16086_s4 + $0x118] sm:$0xff] %vm17940_vm10, %v7584_v51  ;;  %v5005_v49 = vsub.f32 %v7584_v51, %v13876_v6  ;;  %v17941_v17 = vpack.i.bf16 %v13876_v6, %v13881_v32  ;;  %vm17943_vm10 = vmmov %vm17937_vm0 }
 0x454   :  { %17938 = vst [vmem:[#allocation25_spill] sm:$0xff] %v14183_v34  ;;  %7776 = vxpose.xlu0.b32.cont [6/16] (narrow) %v17939_v36, 32  ;;  %v3339_v3 = vcvt.f32.s32 %v3338_v47  ;;  %v3480_v36 = vcvt.f32.s32 %v13251_v58  ;;  %v5289_v10 = vadd.f32 %v5288_v16, %v5287_v43  ;;  %v4245_v48 = vpop.f32.mrf.mxu1  ;;  %vm16739_vm13 = vcmp.eq.s32.totalorder %v9073_v44, %v14183_v34 }
 0x455   :  { %v5290_v1 = vsel %vm17937_vm0, %v5131_v8, 0.0  ;;  %4748 = vst.msk [vmem:[%s16086_s4 + $0x110] sm:$0xff] %vm17943_vm10, %v4245_v48  ;;  %v5004_v58 = vsub.f32 %v4245_v48, %v13843_v19  ;;  %7691 = vmatmul.mubr.msk.f32.gmra.mxu1 %vm16739_vm13, %v17322_v12  ;;  %v5134_v23 = vmul.f32 %v5005_v49, %v5005_v49  ;;  %v14235_v16 = vsel %vm16739_vm13, 1.0, %v17282_v30  ;;  %vm17945_vm10 = vmmov %vm17937_vm0 }
 0x456   :  { %7824 = vxpose.xlu1.b32.cont [4/16] (narrow) %v17941_v17, 32  ;;  %v14216_v63 = vadd.s32 %v13765_v7, %v3339_v3  ;;  %v5591_v17 = vadd.f32 %v13623_v35, %v13615_v55  ;;  %v5291_v7 = vadd.f32 %v5290_v1, %v5289_v10  ;;  %v7587_v19 = vpop.f32.mrf.mxu1  ;;  %v17944_v43 = vpack.i.bf16 %v13909_v5, %v13813_v25  ;;  %v14250_v35 = vld [vmem:[%s16082_s0 + $0x150] sm:$0xff]  ;;  %vm17947_vm4 = vmmov %vm17945_vm10 }
 0x457   :  { %v5292_v51 = vsel %vm17937_vm0, %v5132_v27, 0.0  ;;  %v5133_v47 = vmul.f32 %v5004_v58, %v5004_v58  ;;  %4949 = vst [vmem:[#allocation2 + $0x358] sm:$0xff] %v14235_v16  ;;  %4751 = vst.msk [vmem:[%s16086_s4 + $0x128] sm:$0xff] %vm17945_vm10, %v7587_v19  ;;  %v5007_v55 = vsub.f32 %v7587_v19, %v13984_v22  ;;  %v14255_v25 = vld [vmem:[%s16082_s0 + $0x1d0] sm:$0xff]  ;;  %v14259_v10 = vshll.u32 %v3480_v36, 16 }
 0x458   :  { %17942 = vst [vmem:[#allocation202_spill] sm:$0xff] %v14216_v63  ;;  %v3352_v48 = vpop.xlane.xlu1 %3351  ;;  %7778 = vxpose.xlu0.b32.cont [7/16] (narrow) %v17944_v43, 32  ;;  %v5293_v27 = vadd.f32 %v5292_v51, %v5291_v7  ;;  %v4255_v49 = vpop.f32.mrf.mxu1  ;;  %v17946_v3 = vpack.i.bf16 %v13922_v37, %v13927_v14  ;;  %vm16740_vm0 = vcmp.eq.s32.totalorder %v9073_v44, %v14216_v63  ;;  %v3494_v1 = vcvt.f32.s32 %v13274_v45  ;;  %vm17951_vm13 = vmmov %vm17947_vm4 }
 0x459   :  { %v3353_v8 = vcvt.f32.s32 %v3352_v48  ;;  %v5294_v58 = vsel %vm17945_vm10, %v5133_v47, 0.0  ;;  %4750 = vst.msk [vmem:[%s16086_s4 + $0x120] sm:$0xff] %vm17947_vm4, %v4255_v49  ;;  %v5006_v36 = vsub.f32 %v4255_v49, %v13922_v37  ;;  %v14277_v7 = vsel %vm16740_vm0, 1.0, %v17282_v30  ;;  %7693 = vmatprep.mubr.msk.f32.mxu1 %vm16740_vm0, %v17322_v12  ;;  %vm17948_vm10 = vmmov %vm17947_vm4 }
 0x45a   :  { %7826 = vxpose.xlu1.b32.cont [5/16] (narrow) %v17946_v3, 32  ;;  %v5592_v45 = vadd.f32 %v13637_v24, %v5591_v17  ;;  %v5296_v19 = vsel %vm17948_vm10, %v5134_v23, 0.0  ;;  %v5295_v48 = vadd.f32 %v5294_v58, %v5293_v27  ;;  %4950 = vst [vmem:[#allocation2 + $0x360] sm:$0xff] %v14277_v7  ;;  %v7590_v37 = vpop.f32.mrf.mxu1  ;;  %v17949_v51 = vpack.i.bf16 %v13963_v29, %v13779_v31  ;;  %vm17963_vm0 = vmmov %vm17947_vm4 }
 0x45b   :  { %v14286_v43 = vadd.s32 %v13804_v28, %v3353_v8  ;;  %v5136_v49 = vmul.f32 %v5007_v55, %v5007_v55  ;;  %v5135_v3 = vmul.f32 %v5006_v36, %v5006_v36  ;;  %4753 = vst.msk [vmem:[%s16086_s4 + $0x138] sm:$0xff] %vm17947_vm4, %v7590_v37  ;;  %v5009_v24 = vsub.f32 %v7590_v37, %v14093_v20  ;;  %v17952_v55 = vld [vmem:[#allocation140_spill] sm:$0xff] }
 0x45c   :  { %7780 = vxpose.xlu0.b32.cont [8/16] (narrow) %v17949_v51, 32  ;;  %v3366_v47 = vpop.xlane.xlu0 %3365  ;;  %v5593_v28 = vadd.f32 %v13658_v41, %v5592_v45  ;;  %v5297_v23 = vadd.f32 %v5296_v19, %v5295_v48  ;;  %v4265_v27 = vpop.f32.mrf.mxu1  ;;  %v17950_v8 = vpack.i.bf16 %v13984_v22, %v13989_v40  ;;  %v17953_v41 = vld [vmem:[#allocation50_spill] sm:$0xff]  ;;  %v17954_v48 = vld [vmem:[#allocation71_spill] sm:$0xff]  ;;  %v14340_v5 = vshll.u32 %v3494_v1, 16 }
 0x45d   :  { %v3367_v17 = vcvt.f32.s32 %v3366_v47  ;;  %vm16741_vm10 = vcmp.eq.s32.totalorder %v9073_v44, %v14286_v43  ;;  %v5298_v29 = vsel %vm17951_vm13, %v5135_v3, 0.0  ;;  %4752 = vst.msk [vmem:[%s16086_s4 + $0x130] sm:$0xff] %vm17947_vm4, %v4265_v27  ;;  %v5008_v36 = vsub.f32 %v4265_v27, %v17953_v41  ;;  %v14321_v22 = vld [vmem:[%s16082_s0 + $0x158] sm:$0xff]  ;;  %vm17958_vm13 = vmmov %vm17947_vm4 }
 0x45e   :  { %7828 = vxpose.xlu1.b32.cont [6/16] (narrow) %v17950_v8, 32  ;;  %7694 = vmatmul.mubr.msk.f32.gmra.mxu1 %vm16741_vm10, %v17322_v12  ;;  %v14326_v45 = vld [vmem:[%s16082_s0 + $0x1d8] sm:$0xff]  ;;  %v5594_v37 = vadd.f32 %v17954_v48, %v5593_v28  ;;  %v5299_v51 = vadd.f32 %v5298_v29, %v5297_v23  ;;  %v5138_v47 = vmul.f32 %v5009_v24, %v5009_v24  ;;  %v14335_v3 = vsel %vm16741_vm10, 1.0, %v17282_v30  ;;  %v17959_v28 = vld [vmem:[#allocation84_spill] sm:$0xff]  ;;  %vm17964_vm10 = vmmov %vm17963_vm0 }
 0x45f   :  { %v14307_v58 = vadd.s32 %v17952_v55, %v3367_v17  ;;  %v7593_v17 = vpop.f32.mrf.mxu1  ;;  %v17955_v8 = vld [vmem:[#allocation139_spill] sm:$0xff]  ;;  %v17956_v55 = vld [vmem:[#allocation108_spill] sm:$0xff]  ;;  %v5300_v19 = vsel %vm17958_vm13, %v5136_v49, 0.0  ;;  %v5137_v6 = vmul.f32 %v5008_v36, %v5008_v36  ;;  %4951 = vst [vmem:[#allocation2 + $0x368] sm:$0xff] %v14335_v3  ;;  %v17962_v49 = vld [vmem:[#allocation101_spill] sm:$0xff] }
 0x460   :  { %v3380_v27 = vpop.xlane.xlu1 %3379  ;;  %v17957_v31 = vpack.i.bf16 %v17955_v8, %v17956_v55  ;;  %4755 = vst.msk [vmem:[%s16086_s4 + $0x148] sm:$0xff] %vm17947_vm4, %v7593_v17  ;;  %v5011_v24 = vsub.f32 %v7593_v17, %v14192_v54  ;;  %v5595_v23 = vadd.f32 %v17959_v28, %v5594_v37  ;;  %v5301_v29 = vadd.f32 %v5300_v19, %v5299_v51  ;;  %v17960_v1 = vld [vmem:[#allocation119_spill] sm:$0xff]  ;;  %v17965_v37 = vld [vmem:[#allocation13_spill] sm:$0xff] }
 0x461   :  { %v3381_v48 = vcvt.f32.s32 %v3380_v27  ;;  %v4275_v8 = vpop.f32.mrf.mxu1  ;;  %vm16746_vm13 = vcmp.eq.s32.totalorder %v9073_v44, %v14307_v58  ;;  %v3508_v36 = vcvt.f32.s32 %v17962_v49  ;;  %v5302_v55 = vsel %vm17963_vm0, %v5137_v6, 0.0  ;;  %v17966_v27 = vld [vmem:[#allocation117_spill] sm:$0xff] }
 0x462   :  { %7782 = vxpose.xlu0.b32.cont [9/16] (narrow) %v17957_v31, 32  ;;  %v17961_v31 = vpack.i.bf16 %v17953_v41, %v17960_v1  ;;  %4754 = vst.msk [vmem:[%s16086_s4 + $0x140] sm:$0xff] %vm17964_vm10, %v4275_v8  ;;  %v5010_v19 = vsub.f32 %v4275_v8, %v14134_v18  ;;  %v14366_v41 = vsel %vm16746_vm13, 1.0, %v17282_v30  ;;  %7696 = vmatprep.mubr.msk.f32.mxu1 %vm16746_vm13, %v17322_v12  ;;  %v5304_v51 = vsel %vm17963_vm0, %v5138_v47, 0.0  ;;  %vm17968_vm10 = vmmov %vm17963_vm0 }
 0x463   :  { %v5596_v6 = vadd.f32 %v17965_v37, %v5595_v23  ;;  %v5303_v17 = vadd.f32 %v5302_v55, %v5301_v29  ;;  %v14375_v28 = vadd.s32 %v17966_v27, %v3381_v48  ;;  %4952 = vst [vmem:[#allocation2 + $0x370] sm:$0xff] %v14366_v41  ;;  %v7596_v8 = vpop.f32.mrf.mxu1  ;;  %v3394_v49 = vpop.xlane.xlu0 %3393  ;;  %v5140_v61 = vmul.f32 %v5011_v24, %v5011_v24  ;;  %v17969_v29 = vld [vmem:[#allocation150_spill] sm:$0xff] }
 0x464   :  { %7830 = vxpose.xlu1.b32.cont [7/16] (narrow) %v17961_v31, 32  ;;  %v17967_v31 = vpack.i.bf16 %v14060_v50, %v13859_v42  ;;  %v5139_v34 = vmul.f32 %v5010_v19, %v5010_v19  ;;  %4757 = vst.msk [vmem:[%s16086_s4 + $0x158] sm:$0xff] %vm17968_vm10, %v7596_v8  ;;  %v5013_v47 = vsub.f32 %v7596_v8, %v14321_v22  ;;  %v3395_v23 = vcvt.f32.s32 %v3394_v49  ;;  %v17971_v42 = vld [vmem:[#allocation122_spill] sm:$0xff]  ;;  %v17972_v19 = vld [vmem:[#allocation155_spill] sm:$0xff]  ;;  %vm17974_vm10 = vmmov %vm17963_vm0 }
 0x465   :  { %v5597_v48 = vadd.f32 %v17969_v29, %v5596_v6  ;;  %v5305_v55 = vadd.f32 %v5304_v51, %v5303_v17  ;;  %v4285_v37 = vpop.f32.mrf.mxu1  ;;  %v17970_v27 = vpack.i.bf16 %v14093_v20, %v14098_v59  ;;  %vm3720_vm4 = vcmp.eq.s32.totalorder %v9073_v44, %v14375_v28  ;;  %v14410_v20 = vld [vmem:[%s16082_s0 + $0x160] sm:$0xff]  ;;  %v17975_v17 = vld [vmem:[#allocation133_spill] sm:$0xff] }
 0x466   :  { %7784 = vxpose.xlu0.b32.cont [10/16] (narrow) %v17967_v31, 32  ;;  %v5306_v24 = vsel %vm17963_vm0, %v5139_v34, 0.0  ;;  %v14396_v31 = vadd.s32 %v17972_v19, %v3395_v23  ;;  %4756 = vst.msk [vmem:[%s16086_s4 + $0x150] sm:$0xff] %vm17974_vm10, %v4285_v37  ;;  %v5012_v6 = vsub.f32 %v4285_v37, %v14250_v35  ;;  %7697 = vmatmul.mubr.msk.f32.gmra.mxu1 %vm3720_vm4, %v17322_v12  ;;  %v14415_v34 = vld [vmem:[%s16082_s0 + $0x1e0] sm:$0xff]  ;;  %v14424_v29 = vsel %vm3720_vm4, 1.0, %v17282_v30  ;;  %vm17977_vm10 = vmmov %vm17963_vm0 }
 0x467   :  { %v5598_v8 = vadd.f32 %v17975_v17, %v5597_v48  ;;  %v5307_v49 = vadd.f32 %v5306_v24, %v5305_v55  ;;  %v5142_v23 = vmul.f32 %v5013_v47, %v5013_v47  ;;  %v7599_v37 = vpop.f32.mrf.mxu1  ;;  %v17976_v19 = vpack.i.bf16 %v13245_v57, %v13977_v38  ;;  %4953 = vst [vmem:[#allocation2 + $0x378] sm:$0xff] %v14424_v29  ;;  %v14440_v47 = vld [vmem:[%s16082_s0 + $0x168] sm:$0xff]  ;;  %vm17979_vm13 = vmmov %vm17977_vm10 }
 0x468   :  { %7832 = vxpose.xlu1.b32.cont [8/16] (narrow) %v17970_v27, 32  ;;  %17973 = vst [vmem:[#allocation78_spill] sm:$0xff] %v14396_v31  ;;  %v3408_v27 = vpop.xlane.xlu1 %3407  ;;  %v14429_v50 = vshll.u32 %v3508_v36, 16  ;;  %v5308_v51 = vsel %vm17963_vm0, %v5140_v61, 0.0  ;;  %v5141_v63 = vmul.f32 %v5012_v6, %v5012_v6  ;;  %4759 = vst.msk [vmem:[%s16086_s4 + $0x168] sm:$0xff] %vm17977_vm10, %v7599_v37  ;;  %v5015_v57 = vsub.f32 %v7599_v37, %v14440_v47 }
 0x469   :  { %v5599_v38 = vadd.f32 %v14051_v33, %v5598_v8  ;;  %v5309_v36 = vadd.f32 %v5308_v51, %v5307_v49  ;;  %v3409_v48 = vcvt.f32.s32 %v3408_v27  ;;  %v4295_v61 = vpop.f32.mrf.mxu1  ;;  %v17978_v55 = vpack.i.bf16 %v14134_v18, %v14139_v46  ;;  %v14468_v18 = vld [vmem:[%s16082_s0 + $0x78] sm:$0xff] }
 0x46a   :  { %7786 = vxpose.xlu0.b32.cont [11/16] (narrow) %v17976_v19, 32  ;;  %vm16749_vm0 = vcmp.eq.s32.totalorder %v9073_v44, %v14396_v31  ;;  %v5310_v24 = vsel %vm17977_vm10, %v5141_v63, 0.0  ;;  %4758 = vst.msk [vmem:[%s16086_s4 + $0x160] sm:$0xff] %vm17979_vm13, %v4295_v61  ;;  %v5014_v6 = vsub.f32 %v4295_v61, %v14410_v20  ;;  %vm17980_vm13 = vmmov %vm17977_vm10  ;;  %v17981_v49 = vld [vmem:[#allocation35_spill] sm:$0xff]  ;;  %v17982_v19 = vpack.i.bf16 %v14177_v39, %v13943_v4  ;;  %v3422_v61 = vpop.xlane.xlu0 %3421 }
 0x46b   :  { %v14459_v33 = vsel %vm16749_vm0, 1.0, %v17282_v30  ;;  %7699 = vmatprep.mubr.msk.f32.mxu1 %vm16749_vm0, %v17322_v12  ;;  %v5600_v51 = vadd.f32 %v14126_v21, %v5599_v38  ;;  %v5312_v17 = vsel %vm17980_vm13, %v5142_v23, 0.0  ;;  %v5311_v8 = vadd.f32 %v5310_v24, %v5309_v36  ;;  %v7602_v27 = vpop.f32.mrf.mxu1  ;;  %v14488_v21 = vld [vmem:[%s16082_s0 + $0x178] sm:$0xff]  ;;  %v17983_v36 = vld [vmem:[#allocation93_spill] sm:$0xff]  ;;  %vm17986_vm0 = vmmov %vm17977_vm10 }
 0x46c   :  { %7834 = vxpose.xlu1.b32.cont [9/16] (narrow) %v17978_v55, 32  ;;  %v14475_v37 = vadd.s32 %v17981_v49, %v3409_v48  ;;  %4954 = vst [vmem:[#allocation2 + $0x380] sm:$0xff] %v14459_v33  ;;  %v5144_v55 = vmul.f32 %v5015_v57, %v5015_v57  ;;  %v5143_v31 = vmul.f32 %v5014_v6, %v5014_v6  ;;  %4761 = vst.msk [vmem:[%s16086_s4 + $0x178] sm:$0xff] %vm17977_vm10, %v7602_v27 }
 0x46d   :  { %v5017_v23 = vsub.f32 %v7602_v27, %v14488_v21  ;;  %v3423_v38 = vcvt.f32.s32 %v3422_v61  ;;  %v3522_v48 = vcvt.f32.s32 %v17983_v36  ;;  %v5601_v4 = vadd.f32 %v14168_v2, %v5600_v51  ;;  %v4305_v57 = vpop.f32.mrf.mxu1  ;;  %v17985_v27 = vld [vmem:[#allocation146_spill] sm:$0xff]  ;;  %v14519_v2 = vld [vmem:[%s16082_s0 + $0x1e8] sm:$0xff] }
 0x46e   :  { %7788 = vxpose.xlu0.b32.cont [12/16] (narrow) %v17982_v19, 32  ;;  %v5313_v39 = vadd.f32 %v5312_v17, %v5311_v8  ;;  %vm16750_vm13 = vcmp.eq.s32.totalorder %v9073_v44, %v14475_v37  ;;  %v17984_v24 = vpack.i.bf16 %v14192_v54, %v14197_v13  ;;  %v5314_v49 = vsel %vm17977_vm10, %v5143_v31, 0.0  ;;  %4760 = vst.msk [vmem:[%s16086_s4 + $0x170] sm:$0xff] %vm17986_vm0, %v4305_v57  ;;  %v17987_v31 = vld [vmem:[#allocation98_spill] sm:$0xff]  ;;  %vm17989_vm10 = vmmov %vm17986_vm0 }
 0x46f   :  { %v14502_v6 = vsel %vm16750_vm13, 1.0, %v17282_v30  ;;  %v14506_v19 = vadd.s32 %v17985_v27, %v3423_v38  ;;  %7700 = vmatmul.mubr.msk.f32.gmra.mxu1 %vm16750_vm13, %v17322_v12  ;;  %v3536_v51 = vcvt.f32.s32 %v17987_v31  ;;  %v5602_v17 = vadd.f32 %v14235_v16, %v5601_v4  ;;  %v14529_v61 = vld [vmem:[%s16082_s0 + $0x170] sm:$0xff]  ;;  %v7605_v36 = vpop.f32.mrf.mxu1 }
 0x470   :  { %7836 = vxpose.xlu1.b32.cont [10/16] (narrow) %v17984_v24, 32  ;;  %4955 = vst [vmem:[#allocation2 + $0x388] sm:$0xff] %v14502_v6  ;;  %v5315_v8 = vadd.f32 %v5314_v49, %v5313_v39  ;;  %v5016_v38 = vsub.f32 %v4305_v57, %v14529_v61  ;;  %v3436_v24 = vpop.xlane.xlu1 %3435  ;;  %v17988_v27 = vpack.i.bf16 %v13346_v62, %v14044_v53  ;;  %v5316_v31 = vsel %vm17986_vm0, %v5144_v55, 0.0 }
 0x471   :  { %v5146_v54 = vmul.f32 %v5017_v23, %v5017_v23  ;;  %4763 = vst.msk [vmem:[%s16086_s4 + $0x188] sm:$0xff] %vm17989_vm10, %v7605_v36  ;;  %v3437_v16 = vcvt.f32.s32 %v3436_v24  ;;  %vm16751_vm13 = vcmp.eq.s32.totalorder %v9073_v44, %v14506_v19  ;;  %v5019_v57 = vsub.f32 %v7605_v36, %v13797_v15  ;;  %v4315_v49 = vpop.f32.mrf.mxu1  ;;  %v17991_v23 = vld [vmem:[#allocation188_spill] sm:$0xff]  ;;  %vm17993_vm10 = vmmov %vm17986_vm0 }
 0x472   :  { %7790 = vxpose.xlu0.b32.cont [13/16] (narrow) %v17988_v27, 32  ;;  %v5317_v4 = vadd.f32 %v5316_v31, %v5315_v8  ;;  %v5145_v39 = vmul.f32 %v5016_v38, %v5016_v38  ;;  %v17990_v62 = vpack.i.bf16 %v14250_v35, %v14255_v25  ;;  %v14550_v53 = vsel %vm16751_vm13, 1.0, %v17282_v30  ;;  %7702 = vmatprep.mubr.msk.f32.mxu1 %vm16751_vm13, %v17322_v12  ;;  %v17992_v35 = vld [vmem:[#allocation120_spill] sm:$0xff]  ;;  %vm17995_vm13 = vmmov %vm17986_vm0 }
 0x473   :  { %v14556_v55 = vshll.u32 %v3522_v48, 16  ;;  %v14559_v15 = vadd.s32 %v17991_v23, %v3437_v16  ;;  %4762 = vst.msk [vmem:[%s16086_s4 + $0x180] sm:$0xff] %vm17986_vm0, %v4315_v49  ;;  %v5018_v8 = vsub.f32 %v4315_v49, %v17992_v35  ;;  %4956 = vst [vmem:[#allocation2 + $0x390] sm:$0xff] %v14550_v53  ;;  %v14570_v38 = vld [vmem:[%s16082_s0 + $0x200] sm:$0xff]  ;;  %v14579_v24 = vshll.u32 %v3536_v51, 16  ;;  %v7608_v16 = vpop.f32.mrf.mxu1  ;;  %v14589_v23 = vld [vmem:[%s16082_s0 + $0x1f0] sm:$0xff] }
 0x474   :  { %7838 = vxpose.xlu1.b32.cont [11/16] (narrow) %v17990_v62, 32  ;;  %v14575_v48 = vld [vmem:[%s16082_s0 + $0x280] sm:$0xff]  ;;  %v5603_v27 = vadd.f32 %v14277_v7, %v5602_v17  ;;  %v5318_v31 = vsel %vm17993_vm10, %v5145_v39, 0.0  ;;  %v17994_v49 = vpack.i.bf16 %v13321_v52, %v14013_v9  ;;  %v3450_v62 = vpop.xlane.xlu0 %3449  ;;  %v5320_v51 = vsel %vm17986_vm0, %v5146_v54, 0.0  ;;  %4765 = vst.msk [vmem:[%s16086_s4 + $0x198] sm:$0xff] %vm17995_vm13, %v7608_v16  ;;  %vm17997_vm13 = vmmov %vm17986_vm0 }
 0x475   :  { %v5319_v36 = vadd.f32 %v5318_v31, %v5317_v4  ;;  %vm16752_vm10 = vcmp.eq.s32.totalorder %v9073_v44, %v14559_v15  ;;  %v5147_v7 = vmul.f32 %v5018_v8, %v5018_v8  ;;  %v5148_v52 = vmul.f32 %v5019_v57, %v5019_v57  ;;  %v4325_v4 = vpop.f32.mrf.mxu1 }
 0x476   :  { %7792 = vxpose.xlu0.b32.cont [14/16] (narrow) %v17994_v49, 32  ;;  %v14604_v9 = vsel %vm16752_vm10, 1.0, %v17282_v30  ;;  %v5021_v17 = vsub.f32 %v7608_v16, %v13881_v32  ;;  %v3451_v54 = vcvt.f32.s32 %v3450_v62  ;;  %v17996_v39 = vpack.i.bf16 %v14321_v22, %v14326_v45  ;;  %7703 = vmatmul.mubr.msk.f32.gmra.mxu1 %vm16752_vm10, %v17322_v12  ;;  %4764 = vst.msk [vmem:[%s16086_s4 + $0x190] sm:$0xff] %vm17986_vm0, %v4325_v4  ;;  %v14624_v22 = vld [vmem:[%s16082_s0 + $0x208] sm:$0xff]  ;;  %v17998_v16 = vld [vmem:[#allocation207_spill] sm:$0xff] }
 0x477   :  { %v5321_v57 = vadd.f32 %v5320_v51, %v5319_v36  ;;  %4957 = vst [vmem:[#allocation2 + $0x398] sm:$0xff] %v14604_v9  ;;  %v5322_v8 = vsel %vm17997_vm13, %v5147_v7, 0.0  ;;  %v5020_v32 = vsub.f32 %v4325_v4, %v13848_v11  ;;  %v14629_v36 = vld [vmem:[%s16082_s0 + $0x288] sm:$0xff]  ;;  %v3550_v49 = vcvt.f32.s32 %v17998_v16  ;;  %v7611_v7 = vpop.f32.mrf.mxu1  ;;  %v3464_v4 = vpop.xlane.xlu1 %3463  ;;  %vm18000_vm13 = vmmov %vm17986_vm0 }
 0x478   :  { %7840 = vxpose.xlu1.b32.cont [12/16] (narrow) %v17996_v39, 32  ;;  %v7871_v31 = vpack.i.bf16 %v14624_v22, %v14629_v36  ;;  %v5604_v62 = vadd.f32 %v14335_v3, %v5603_v27  ;;  %v5150_v51 = vmul.f32 %v5021_v17, %v5021_v17  ;;  %v14636_v11 = vadd.s32 %v14143_v0, %v3451_v54 }
 0x479   :  { %v17999_v39 = vpack.i.bf16 %v17971_v42, %v14113_v56  ;;  %v5323_v35 = vadd.f32 %v5322_v8, %v5321_v57  ;;  %v5149_v63 = vmul.f32 %v5020_v32, %v5020_v32  ;;  %4767 = vst.msk [vmem:[%s16086_s4 + $0x1a8] sm:$0xff] %vm18000_vm13, %v7611_v7  ;;  %v5023_v16 = vsub.f32 %v7611_v7, %v13989_v40  ;;  %v4335_v17 = vpop.f32.mrf.mxu1  ;;  %v14656_v56 = vld [vmem:[%s16082_s0 + $0x1f8] sm:$0xff]  ;;  %vm18003_vm13 = vmmov %vm17986_vm0 }
 0x47a   :  { %v3465_v3 = vcvt.f32.s32 %v3464_v4  ;;  %v5605_v27 = vadd.f32 %v14366_v41, %v5604_v62  ;;  %v5324_v0 = vsel %vm17986_vm0, %v5148_v52, 0.0  ;;  %v18001_v54 = vpack.i.bf16 %v14410_v20, %v14415_v34  ;;  %v18002_v42 = vld [vmem:[#allocation159_spill] sm:$0xff]  ;;  %4766 = vst.msk [vmem:[%s16086_s4 + $0x1a0] sm:$0xff] %vm17986_vm0, %v4335_v17  ;;  %v3478_v7 = vpop.xlane.xlu0 %3477 }
 0x47b   :  { %7794 = vxpose.xlu0.b32.cont [15/16] (narrow) %v17999_v39, 32  ;;  %vm16754_vm10 = vcmp.eq.s32.totalorder %v9073_v44, %v14636_v11  ;;  %v7847_v40 = vpack.i.bf16 %v14488_v21, %v14656_v56  ;;  %v3564_v41 = vcvt.f32.s32 %v18002_v42  ;;  %v5325_v57 = vadd.f32 %v5324_v0, %v5323_v35  ;;  %v14724_v0 = vld [vmem:[%s16082_s0 + $0x290] sm:$0xff] }
 0x47c   :  { %7842 = vxpose.xlu1.b32.cont [13/16] (narrow) %v18001_v54, 32  ;;  %v5326_v52 = vsel %vm18003_vm13, %v5149_v63, 0.0  ;;  %v14663_v8 = vadd.s32 %v14206_v26, %v3465_v3  ;;  %7705 = vmatprep.mubr.msk.f32.mxu1 %vm16754_vm10, %v17322_v12  ;;  %v14673_v20 = vshll.u32 %v3550_v49, 16  ;;  %v5606_v32 = vadd.f32 %v14424_v29, %v5605_v27  ;;  %v7614_v63 = vpop.f32.mrf.mxu1  ;;  %vm18005_vm13 = vmmov %vm17986_vm0 }
 0x47d   :  { %v5022_v35 = vsub.f32 %v4335_v17, %v13927_v14  ;;  %v14681_v26 = vsel %vm16754_vm10, 1.0, %v17282_v30  ;;  %v18004_v62 = vpack.i.bf16 %v14468_v18, %v14080_v60  ;;  %v5328_v4 = vsel %vm18005_vm13, %v5150_v51, 0.0  ;;  %vm18006_vm1 = vmmov %vm18005_vm13 }
 0x47e   :  { %v5327_v49 = vadd.f32 %v5326_v52, %v5325_v57  ;;  %v5152_v39 = vmul.f32 %v5023_v16, %v5023_v16  ;;  %vm16755_vm0 = vcmp.eq.s32.totalorder %v9073_v44, %v14663_v8  ;;  %4958 = vst [vmem:[#allocation2 + $0x3a0] sm:$0xff] %v14681_v26  ;;  %4769 = vst.msk [vmem:[%s16086_s4 + $0x1b8] sm:$0xff] %vm18006_vm1, %v7614_v63  ;;  %v3479_v18 = vcvt.f32.s32 %v3478_v7  ;;  %v4345_v51 = vpop.f32.mrf.mxu1  ;;  %v3492_v52 = vpop.xlane.xlu1 %3491 }
 0x47f   :  { %7796 = vxpose.xlu0.b32.end [16/16] (narrow) %v18004_v62, 32  ;;  %v14698_v14 = vsel %vm16755_vm0, 1.0, %v17282_v30  ;;  %v5151_v60 = vmul.f32 %v5022_v35, %v5022_v35  ;;  %v5025_v29 = vsub.f32 %v7614_v63, %v14098_v59  ;;  %v18007_v16 = vpack.i.bf16 %v14440_v47, %v14519_v2  ;;  %7706 = vmatmul.mubr.msk.f32.gmra.mxu1 %vm16755_vm0, %v17322_v12  ;;  %v14719_v47 = vld [vmem:[%s16082_s0 + $0x210] sm:$0xff]  ;;  %vm18008_vm13 = vmmov %vm18006_vm1 }
 0x480   :  { %v14708_v3 = vshll.u32 %v3564_v41, 16  ;;  %v5329_v27 = vadd.f32 %v5328_v4, %v5327_v49  ;;  %4959 = vst [vmem:[#allocation2 + $0x3a8] sm:$0xff] %v14698_v14  ;;  %4768 = vst.msk [vmem:[%s16086_s4 + $0x1b0] sm:$0xff] %vm18006_vm1, %v4345_v51  ;;  %v5024_v59 = vsub.f32 %v4345_v51, %v17960_v1  ;;  %v7873_v17 = vpack.i.bf16 %v14719_v47, %v14724_v0  ;;  %v7617_v57 = vpop.f32.mrf.mxu1 }
 0x481   :  { %7844 = vxpose.xlu1.b32.cont [14/16] (narrow) %v18007_v16, 32  ;;  %v5607_v54 = vadd.f32 %v14459_v33, %v5606_v32  ;;  %v5330_v42 = vsel %vm18008_vm13, %v5151_v60, 0.0  ;;  %v5154_v41 = vmul.f32 %v5025_v29, %v5025_v29  ;;  %v14731_v1 = vadd.s32 %v14259_v10, %v3479_v18  ;;  %4771 = vst.msk [vmem:[%s16086_s4 + $0x1c8] sm:$0xff] %vm18006_vm1, %v7617_v57  ;;  %vm18010_vm13 = vmmov %vm18006_vm1  ;;  %v14751_v60 = vld [vmem:[%s16082_s0 + $0x218] sm:$0xff] }
 0x482   :  { %v18009_v35 = vpack.i.bf16 %v14570_v38, %v14575_v48  ;;  %v5331_v63 = vadd.f32 %v5330_v42, %v5329_v27  ;;  %v5153_v62 = vmul.f32 %v5024_v59, %v5024_v59  ;;  %v5027_v33 = vsub.f32 %v7617_v57, %v14197_v13  ;;  %v4355_v4 = vpop.f32.mrf.mxu1  ;;  %v14756_v13 = vld [vmem:[%s16082_s0 + $0x298] sm:$0xff]  ;;  %v14787_v42 = vld [vmem:[%s16082_s0 + $0x300] sm:$0xff]  ;;  %vm18014_vm0 = vmmov %vm18006_vm1 }
 0x483   :  { %v3493_v32 = vcvt.f32.s32 %v3492_v52  ;;  %v5608_v7 = vadd.f32 %v14502_v6, %v5607_v54  ;;  %v5332_v10 = vsel %vm18010_vm13, %v5152_v39, 0.0  ;;  %v18011_v49 = vpack.i.bf16 %v14529_v61, %v14589_v23  ;;  %v18012_v39 = vld [vmem:[#allocation164_spill] sm:$0xff]  ;;  %vm18013_vm13 = vmmov %vm18006_vm1  ;;  %v3506_v54 = vpop.xlane.xlu0 %3505 }
 0x484   :  { %7870 = vxpose.xlu0.b32.start [1/16] (narrow) %v18009_v35, 32  ;;  %vm16756_vm10 = vcmp.eq.s32.totalorder %v9073_v44, %v14731_v1  ;;  %v7875_v6 = vpack.i.bf16 %v14751_v60, %v14756_v13  ;;  %v3578_v29 = vcvt.f32.s32 %v18012_v39  ;;  %v5333_v61 = vadd.f32 %v5332_v10, %v5331_v63  ;;  %4770 = vst.msk [vmem:[%s16086_s4 + $0x1c0] sm:$0xff] %vm18013_vm13, %v4355_v4  ;;  %v7620_v59 = vpop.f32.mrf.mxu1 }
 0x485   :  { %7846 = vxpose.xlu1.b32.cont [15/16] (narrow) %v18011_v49, 32  ;;  %v5334_v18 = vsel %vm18006_vm1, %v5153_v62, 0.0  ;;  %v14763_v51 = vadd.s32 %v14340_v5, %v3493_v32  ;;  %7708 = vmatprep.mubr.msk.f32.mxu1 %vm16756_vm10, %v17322_v12  ;;  %v5609_v16 = vadd.f32 %v14550_v53, %v5608_v7  ;;  %v5026_v27 = vsub.f32 %v4355_v4, %v14139_v46  ;;  %v8068_v46 = vld [vmem:[%s16082_s0 + $0x380] sm:$0xff] }
 0x486   :  { %v14779_v5 = vsel %vm16756_vm10, 1.0, %v17282_v30  ;;  %v7921_v53 = vpack.i.bf16 %v14787_v42, %v8068_v46  ;;  %v5336_v57 = vsel %vm18006_vm1, %v5154_v41, 0.0  ;;  %v5335_v52 = vadd.f32 %v5334_v18, %v5333_v61  ;;  %4773 = vst.msk [vmem:[%s16086_s4 + $0x1d8] sm:$0xff] %vm18014_vm0, %v7620_v59  ;;  %v18015_v7 = vld [vmem:[#allocation168_spill] sm:$0xff]  ;;  %vm18016_vm1 = vmmov %vm18014_vm0  ;;  %v3520_v61 = vpop.xlane.xlu1 %3519 }
 0x487   :  { %v5156_v35 = vmul.f32 %v5027_v33, %v5027_v33  ;;  %vm16757_vm13 = vcmp.eq.s32.totalorder %v9073_v44, %v14763_v51  ;;  %4960 = vst [vmem:[#allocation2 + $0x3b0] sm:$0xff] %v14779_v5  ;;  %v5155_v63 = vmul.f32 %v5026_v27, %v5026_v27  ;;  %v5029_v41 = vsub.f32 %v7620_v59, %v14326_v45  ;;  %v4365_v33 = vpop.f32.mrf.mxu1  ;;  %vm18017_vm10 = vmmov %vm18014_vm0 }
 0x488   :  { %7872 = vxpose.xlu0.b32.cont [2/16] (narrow) %v7871_v31, 32  ;;  %v14805_v31 = vsel %vm16757_vm13, 1.0, %v17282_v30  ;;  %v3507_v62 = vcvt.f32.s32 %v3506_v54  ;;  %7709 = vmatmul.mubr.msk.f32.gmra.mxu1 %vm16757_vm13, %v17322_v12  ;;  %v14815_v32 = vshll.u32 %v3578_v29, 16  ;;  %v3592_v10 = vcvt.f32.s32 %v18015_v7  ;;  %4772 = vst.msk [vmem:[%s16086_s4 + $0x1d0] sm:$0xff] %vm18014_vm0, %v4365_v33  ;;  %v8073_v7 = vld [vmem:[%s16082_s0 + $0x310] sm:$0xff] }
 0x489   :  { %7848 = vxpose.xlu1.b32.end [16/16] (narrow) %v7847_v40, 32  ;;  %v5337_v4 = vadd.f32 %v5336_v57, %v5335_v52  ;;  %4961 = vst [vmem:[#allocation2 + $0x3b8] sm:$0xff] %v14805_v31  ;;  %v5028_v45 = vsub.f32 %v4365_v33, %v14255_v25  ;;  %v5610_v21 = vadd.f32 %v14604_v9, %v5609_v16  ;;  %v5338_v40 = vsel %vm18016_vm1, %v5155_v63, 0.0  ;;  %v7623_v29 = vpop.f32.mrf.mxu1 }
 0x48a   :  { %v5158_v49 = vmul.f32 %v5029_v41, %v5029_v41  ;;  %v14827_v39 = vadd.s32 %v14429_v50, %v3507_v62  ;;  %4775 = vst.msk [vmem:[%s16086_s4 + $0x1e8] sm:$0xff] %vm18017_vm10, %v7623_v29  ;;  %v5031_v25 = vsub.f32 %v7623_v29, %v14519_v2  ;;  %v3521_v59 = vcvt.f32.s32 %v3520_v61  ;;  %v14841_v50 = vld [vmem:[%s16082_s0 + $0x308] sm:$0xff]  ;;  %vm18018_vm10 = vmmov %vm18014_vm0  ;;  %v3534_v33 = vpop.xlane.xlu0 %3533 }
 0x48b   :  { %v5339_v18 = vadd.f32 %v5338_v40, %v5337_v4  ;;  %v5157_v27 = vmul.f32 %v5028_v45, %v5028_v45  ;;  %v5611_v9 = vadd.f32 %v14681_v26, %v5610_v21  ;;  %v5340_v16 = vsel %vm18014_vm0, %v5156_v35, 0.0  ;;  %v4375_v54 = vpop.f32.mrf.mxu1 }
 0x48c   :  { %7874 = vxpose.xlu0.b32.cont [3/16] (narrow) %v7873_v17, 32  ;;  %vm16758_vm1 = vcmp.eq.s32.totalorder %v9073_v44, %v14827_v39  ;;  %v8070_v17 = vld [vmem:[%s16082_s0 + $0x388] sm:$0xff]  ;;  %v14849_v57 = vadd.s32 %v14556_v55, %v3521_v59  ;;  %4774 = vst.msk [vmem:[%s16086_s4 + $0x1e0] sm:$0xff] %vm18014_vm0, %v4375_v54  ;;  %v14867_v55 = vld [vmem:[%s16082_s0 + $0x2a0] sm:$0xff]  ;;  %v5030_v63 = vsub.f32 %v4375_v54, %v14415_v34  ;;  %v3535_v29 = vcvt.f32.s32 %v3534_v33 }
 0x48d   :  { %7922 = vxpose.xlu1.b32.start [1/16] (narrow) %v7921_v53, 32  ;;  %v7923_v2 = vpack.i.bf16 %v14841_v50, %v8070_v17  ;;  %v5341_v46 = vadd.f32 %v5340_v16, %v5339_v18  ;;  %v5342_v26 = vsel %vm18018_vm10, %v5157_v27, 0.0  ;;  %7711 = vmatprep.mubr.msk.f32.mxu1 %vm16758_vm1, %v17322_v12  ;;  %v14862_v53 = vld [vmem:[%s16082_s0 + $0x220] sm:$0xff]  ;;  %v5612_v35 = vadd.f32 %v14698_v14, %v5611_v9  ;;  %v7626_v62 = vpop.f32.mrf.mxu1  ;;  %v8074_v14 = vld [vmem:[%s16082_s0 + $0x390] sm:$0xff]  ;;  %vm18019_vm10 = vmmov %vm18014_vm0 }
 0x48e   :  { %v7877_v52 = vpack.i.bf16 %v14862_v53, %v14867_v55  ;;  %v6583_v41 = vsel %vm16758_vm1, 1.0, %v17282_v30  ;;  %v7925_v34 = vpack.i.bf16 %v8073_v7, %v8074_v14  ;;  %v5344_v4 = vsel %vm18019_vm10, %v5158_v49, 0.0  ;;  %vm18020_vm13 = vmmov %vm18019_vm10 }
 0x48f   :  { %v5343_v45 = vadd.f32 %v5342_v26, %v5341_v46  ;;  %v5160_v21 = vmul.f32 %v5031_v25, %v5031_v25  ;;  %vm16759_vm0 = vcmp.eq.s32.totalorder %v9073_v44, %v14849_v57  ;;  %4962 = vst [vmem:[#allocation2 + $0x3c0] sm:$0xff] %v6583_v41  ;;  %4777 = vst.msk [vmem:[%s16086_s4 + $0x1f8] sm:$0xff] %vm18020_vm13, %v7626_v62  ;;  %v4385_v61 = vpop.f32.mrf.mxu1  ;;  %v14904_v18 = vshll.u32 %v3592_v10, 16  ;;  %v14915_v25 = vld [vmem:[%s16082_s0 + $0x228] sm:$0xff] }
 0x490   :  { %7876 = vxpose.xlu0.b32.cont [4/16] (narrow) %v7875_v6, 32  ;;  %v14897_v6 = vsel %vm16759_vm0, 1.0, %v17282_v30  ;;  %v5159_v40 = vmul.f32 %v5030_v63, %v5030_v63  ;;  %v5033_v49 = vsub.f32 %v7626_v62, %v14656_v56  ;;  %7712 = vmatmul.mubr.msk.f32.gmra.mxu1 %vm16759_vm0, %v17322_v12  ;;  %vm18021_vm13 = vmmov %vm18019_vm10  ;;  %v5032_v56 = vsub.f32 %v4385_v61, %v14589_v23  ;;  %v14920_v10 = vld [vmem:[%s16082_s0 + $0x2a8] sm:$0xff] }
 0x491   :  { %7924 = vxpose.xlu1.b32.cont [2/16] (narrow) %v7923_v2, 32  ;;  %v5345_v27 = vadd.f32 %v5344_v4, %v5343_v45  ;;  %4963 = vst [vmem:[#allocation2 + $0x3c8] sm:$0xff] %v14897_v6  ;;  %4776 = vst.msk [vmem:[%s16086_s4 + $0x1f0] sm:$0xff] %vm18021_vm13, %v4385_v61  ;;  %v7879_v59 = vpack.i.bf16 %v14915_v25, %v14920_v10  ;;  %v5613_v9 = vadd.f32 %v14779_v5, %v5612_v35  ;;  %v7629_v17 = vpop.f32.mrf.mxu1  ;;  %v3548_v2 = vpop.xlane.xlu1 %3547  ;;  %v14976_v61 = vld [vmem:[%s16082_s0 + $0x320] sm:$0xff] }
 0x492   :  { %v5346_v16 = vsel %vm18019_vm10, %v5159_v40, 0.0  ;;  %v5162_v54 = vmul.f32 %v5033_v49, %v5033_v49  ;;  %v14927_v23 = vadd.s32 %v14579_v24, %v3535_v29  ;;  %v5161_v26 = vmul.f32 %v5032_v56, %v5032_v56  ;;  %vm18022_vm13 = vmmov %vm18019_vm10  ;;  %v8077_v24 = vld [vmem:[%s16082_s0 + $0x318] sm:$0xff]  ;;  %v3562_v29 = vpop.xlane.xlu0 %3561 }
 0x493   :  { %v5347_v46 = vadd.f32 %v5346_v16, %v5345_v27  ;;  %4779 = vst.msk [vmem:[%s16086_s4 + $0x208] sm:$0xff] %vm18022_vm13, %v7629_v17  ;;  %v5035_v63 = vsub.f32 %v7629_v17, %v14624_v22  ;;  %v3549_v62 = vcvt.f32.s32 %v3548_v2  ;;  %vm18023_vm1 = vmmov %vm18019_vm10  ;;  %v5614_v35 = vadd.f32 %v14805_v31, %v5613_v9  ;;  %v4395_v33 = vpop.f32.mrf.mxu1  ;;  %v14959_v31 = vld [vmem:[%s16082_s0 + $0x230] sm:$0xff]  ;;  %v8082_v27 = vld [vmem:[%s16082_s0 + $0x3a0] sm:$0xff] }
 0x494   :  { %7878 = vxpose.xlu0.b32.cont [5/16] (narrow) %v7877_v52, 32  ;;  %v5348_v5 = vsel %vm18023_vm1, %v5160_v21, 0.0  ;;  %vm16760_vm10 = vcmp.eq.s32.totalorder %v9073_v44, %v14927_v23  ;;  %v8078_v52 = vld [vmem:[%s16082_s0 + $0x398] sm:$0xff]  ;;  %vm18024_vm13 = vmmov %vm18023_vm1  ;;  %4778 = vst.msk [vmem:[%s16086_s4 + $0x200] sm:$0xff] %vm18023_vm1, %v4395_v33  ;;  %v5034_v21 = vsub.f32 %v4395_v33, %v14570_v38 }
 0x495   :  { %7926 = vxpose.xlu1.b32.cont [3/16] (narrow) %v7925_v34, 32  ;;  %v7927_v7 = vpack.i.bf16 %v8077_v24, %v8078_v52  ;;  %v5349_v22 = vadd.f32 %v5348_v5, %v5347_v46  ;;  %v5350_v14 = vsel %vm18024_vm13, %v5161_v26, 0.0  ;;  %v14946_v4 = vadd.s32 %v14673_v20, %v3549_v62  ;;  %7714 = vmatprep.mubr.msk.f32.mxu1 %vm16760_vm10, %v17322_v12  ;;  %v14964_v20 = vld [vmem:[%s16082_s0 + $0x2b0] sm:$0xff]  ;;  %v7632_v49 = vpop.f32.mrf.mxu1  ;;  %vm18025_vm13 = vmmov %vm18023_vm1  ;;  %v18027_v46 = vld [vmem:[#allocation91_spill] sm:$0xff] }
 0x496   :  { %v7881_v34 = vpack.i.bf16 %v14959_v31, %v14964_v20  ;;  %v5615_v45 = vadd.f32 %v6583_v41, %v5614_v35  ;;  %v6585_v40 = vsel %vm16760_vm10, 1.0, %v17282_v30  ;;  %v7929_v41 = vpack.i.bf16 %v14976_v61, %v8082_v27  ;;  %vm18026_vm0 = vmmov %vm18025_vm13  ;;  %v15010_v5 = vld [vmem:[%s16082_s0 + $0x2b8] sm:$0xff] }
 0x497   :  { %v5352_v38 = vsel %vm18025_vm13, %v5162_v54, 0.0  ;;  %v5351_v56 = vadd.f32 %v5350_v14, %v5349_v22  ;;  %v5164_v9 = vmul.f32 %v5035_v63, %v5035_v63  ;;  %vm16761_vm1 = vcmp.eq.s32.totalorder %v9073_v44, %v14946_v4  ;;  %4964 = vst [vmem:[#allocation2 + $0x3d0] sm:$0xff] %v6585_v40  ;;  %4781 = vst.msk [vmem:[%s16086_s4 + $0x218] sm:$0xff] %vm18026_vm0, %v7632_v49  ;;  %v4405_v2 = vpop.f32.mrf.mxu1  ;;  %v3576_v22 = vpop.xlane.xlu1 %3575 }
 0x498   :  { %7880 = vxpose.xlu0.b32.cont [6/16] (narrow) %v7879_v59, 32  ;;  %v6586_v59 = vsel %vm16761_vm1, 1.0, %v17282_v30  ;;  %v5163_v16 = vmul.f32 %v5034_v21, %v5034_v21  ;;  %v5037_v17 = vsub.f32 %v7632_v49, %v14751_v60  ;;  %v3563_v54 = vcvt.f32.s32 %v3562_v29  ;;  %7715 = vmatmul.mubr.msk.f32.gmra.mxu1 %vm16761_vm1, %v17322_v12  ;;  %4780 = vst.msk [vmem:[%s16086_s4 + $0x210] sm:$0xff] %vm18026_vm0, %v4405_v2  ;;  %v8083_v60 = vld [vmem:[%s16082_s0 + $0x238] sm:$0xff]  ;;  %vm18028_vm13 = vmmov %vm18026_vm0 }
 0x499   :  { %7928 = vxpose.xlu1.b32.cont [4/16] (narrow) %v7927_v7, 32  ;;  %v3606_v26 = vcvt.f32.s32 %v18027_v46  ;;  %v5353_v63 = vadd.f32 %v5352_v38, %v5351_v56  ;;  %4965 = vst [vmem:[#allocation2 + $0x3d8] sm:$0xff] %v6586_v59  ;;  %v5036_v62 = vsub.f32 %v4405_v2, %v14719_v47  ;;  %v7883_v35 = vpack.i.bf16 %v8083_v60, %v15010_v5  ;;  %v7635_v47 = vpop.f32.mrf.mxu1  ;;  %vm18031_vm1 = vmmov %vm18026_vm0 }
 0x49a   :  { %v5354_v33 = vsel %vm18028_vm13, %v5163_v16, 0.0  ;;  %v5616_v24 = vadd.f32 %v14897_v6, %v5615_v45  ;;  %v5166_v52 = vmul.f32 %v5037_v17, %v5037_v17  ;;  %v15016_v7 = vadd.s32 %v14708_v3, %v3563_v54  ;;  %4783 = vst.msk [vmem:[%s16086_s4 + $0x228] sm:$0xff] %vm18026_vm0, %v7635_v47  ;;  %vm18029_vm13 = vmmov %vm18026_vm0  ;;  %v15029_v3 = vld [vmem:[%s16082_s0 + $0x328] sm:$0xff]  ;;  %v3590_v46 = vpop.xlane.xlu0 %3589 }
 0x49b   :  { %v5355_v14 = vadd.f32 %v5354_v33, %v5353_v63  ;;  %v5165_v21 = vmul.f32 %v5036_v62, %v5036_v62  ;;  %v5039_v49 = vsub.f32 %v7635_v47, %v14915_v25  ;;  %v3577_v29 = vcvt.f32.s32 %v3576_v22  ;;  %v4415_v45 = vpop.f32.mrf.mxu1  ;;  %v15064_v63 = vld [vmem:[%s16082_s0 + $0x330] sm:$0xff] }
 0x49c   :  { %7882 = vxpose.xlu0.b32.cont [7/16] (narrow) %v7881_v34, 32  ;;  %v5356_v27 = vsel %vm18029_vm13, %v5164_v9, 0.0  ;;  %v5617_v6 = vadd.f32 %v6585_v40, %v5616_v24  ;;  %vm16762_vm10 = vcmp.eq.s32.totalorder %v9073_v44, %v15016_v7  ;;  %v8086_v34 = vld [vmem:[%s16082_s0 + $0x3a8] sm:$0xff]  ;;  %vm18030_vm13 = vmmov %vm18026_vm0  ;;  %v15053_v9 = vld [vmem:[%s16082_s0 + $0x2c0] sm:$0xff]  ;;  %v5038_v16 = vsub.f32 %v4415_v45, %v14862_v53 }
 0x49d   :  { %7930 = vxpose.xlu1.b32.cont [5/16] (narrow) %v7929_v41, 32  ;;  %v7931_v25 = vpack.i.bf16 %v15029_v3, %v8086_v34  ;;  %v5357_v38 = vadd.f32 %v5356_v27, %v5355_v14  ;;  %v5358_v56 = vsel %vm18026_vm0, %v5165_v21, 0.0  ;;  %v15037_v40 = vadd.s32 %v14815_v32, %v3577_v29  ;;  %4782 = vst.msk [vmem:[%s16086_s4 + $0x220] sm:$0xff] %vm18030_vm13, %v4415_v45  ;;  %v8087_v41 = vld [vmem:[%s16082_s0 + $0x240] sm:$0xff]  ;;  %v7638_v2 = vpop.f32.mrf.mxu1  ;;  %v8090_v62 = vld [vmem:[%s16082_s0 + $0x3b0] sm:$0xff] }
 0x49e   :  { %7717 = vmatprep.mubr.msk.f32.mxu1 %vm16762_vm10, %v17322_v12  ;;  %v7885_v32 = vpack.i.bf16 %v8087_v41, %v15053_v9  ;;  %v6587_v17 = vsel %vm16762_vm10, 1.0, %v17282_v30  ;;  %v5618_v54 = vadd.f32 %v6586_v59, %v5617_v6  ;;  %v7933_v53 = vpack.i.bf16 %v15064_v63, %v8090_v62  ;;  %4785 = vst.msk [vmem:[%s16086_s4 + $0x238] sm:$0xff] %vm18031_vm1, %v7638_v2  ;;  %vm18032_vm1 = vmmov %vm18026_vm0  ;;  %v3604_v34 = vpop.xlane.xlu1 %3603 }
 0x49f   :  { %v5360_v33 = vsel %vm18026_vm0, %v5166_v52, 0.0  ;;  %v5359_v24 = vadd.f32 %v5358_v56, %v5357_v38  ;;  %v5168_v47 = vmul.f32 %v5039_v49, %v5039_v49  ;;  %vm16763_vm13 = vcmp.eq.s32.totalorder %v9073_v44, %v15037_v40  ;;  %4966 = vst [vmem:[#allocation2 + $0x3e0] sm:$0xff] %v6587_v17  ;;  %v4425_v52 = vpop.f32.mrf.mxu1 }
 0x4a0   :  { %7884 = vxpose.xlu0.b32.cont [8/16] (narrow) %v7883_v35, 32  ;;  %v6588_v59 = vsel %vm16763_vm13, 1.0, %v17282_v30  ;;  %v5167_v35 = vmul.f32 %v5038_v16, %v5038_v16  ;;  %v5041_v22 = vsub.f32 %v7638_v2, %v8083_v60  ;;  %v3591_v14 = vcvt.f32.s32 %v3590_v46  ;;  %7718 = vmatmul.mubr.msk.f32.gmra.mxu1 %vm16763_vm13, %v17322_v12  ;;  %4784 = vst.msk [vmem:[%s16086_s4 + $0x230] sm:$0xff] %vm18026_vm0, %v4425_v52  ;;  %v15113_v2 = vld [vmem:[%s16082_s0 + $0x338] sm:$0xff]  ;;  %vm18035_vm13 = vmmov %vm18026_vm0 }
 0x4a1   :  { %7932 = vxpose.xlu1.b32.cont [6/16] (narrow) %v7931_v25, 32  ;;  %v3607_v21 = vshll.u32 %v3606_v26, 16  ;;  %v5361_v49 = vadd.f32 %v5360_v33, %v5359_v24  ;;  %4967 = vst [vmem:[#allocation2 + $0x3e8] sm:$0xff] %v6588_v59  ;;  %v5040_v29 = vsub.f32 %v4425_v52, %v14959_v31  ;;  %v5619_v27 = vadd.f32 %v6587_v17, %v5618_v54  ;;  %v7641_v45 = vpop.f32.mrf.mxu1  ;;  %v8091_v26 = vld [vmem:[%s16082_s0 + $0x248] sm:$0xff]  ;;  %v8094_v46 = vld [vmem:[%s16082_s0 + $0x3b8] sm:$0xff]  ;;  %v8095_v52 = vld [vmem:[%s16082_s0 + $0x250] sm:$0xff] }
 0x4a2   :  { %v5362_v60 = vsel %vm18032_vm1, %v5167_v35, 0.0  ;;  %v15092_v6 = vadd.s32 %v14904_v18, %v3591_v14  ;;  %v15100_v25 = vld [vmem:[%s16082_s0 + $0x2c8] sm:$0xff]  ;;  %v5170_v56 = vmul.f32 %v5041_v22, %v5041_v22  ;;  %4787 = vst.msk [vmem:[%s16086_s4 + $0x248] sm:$0xff] %vm18026_vm0, %v7641_v45  ;;  %v3605_v18 = vcvt.f32.s32 %v3604_v34  ;;  %vm18033_vm1 = vmmov %vm18026_vm0  ;;  %v8097_v34 = vld [vmem:[%s16082_s0 + $0x258] sm:$0xff] }
 0x4a3   :  { %v7887_v31 = vpack.i.bf16 %v8091_v26, %v15100_v25  ;;  %v5363_v38 = vadd.f32 %v5362_v60, %v5361_v49  ;;  %v5169_v16 = vmul.f32 %v5040_v29, %v5040_v29  ;;  %v5043_v17 = vsub.f32 %v7641_v45, %v8091_v26  ;;  %v4435_v54 = vpop.f32.mrf.mxu1 }
 0x4a4   :  { %7886 = vxpose.xlu0.b32.cont [9/16] (narrow) %v7885_v32, 32  ;;  %v5364_v32 = vsel %vm18033_vm1, %v5168_v47, 0.0  ;;  %vm3735_vm10 = vcmp.eq.s32.totalorder %v9073_v44, %v15092_v6  ;;  %v7935_v62 = vpack.i.bf16 %v15113_v2, %v8094_v46  ;;  %v15120_v47 = vadd.s32 %v3607_v21, %v3605_v18  ;;  %vm18034_vm1 = vmmov %vm18026_vm0  ;;  %v15140_v21 = vld [vmem:[%s16082_s0 + $0x2d0] sm:$0xff]  ;;  %v15172_v18 = vld [vmem:[%s16082_s0 + $0x340] sm:$0xff] }
 0x4a5   :  { %7934 = vxpose.xlu1.b32.cont [7/16] (narrow) %v7933_v53, 32  ;;  %v5365_v33 = vadd.f32 %v5364_v32, %v5363_v38  ;;  %v5366_v24 = vsel %vm18026_vm0, %v5169_v16, 0.0  ;;  %4786 = vst.msk [vmem:[%s16086_s4 + $0x240] sm:$0xff] %vm18034_vm1, %v4435_v54  ;;  %7720 = vmatprep.mubr.msk.f32.mxu1 %vm3735_vm10, %v17322_v12  ;;  %v5620_v53 = vadd.f32 %v6588_v59, %v5619_v27  ;;  %v6589_v22 = vsel %vm3735_vm10, 1.0, %v17282_v30  ;;  %v7644_v14 = vpop.f32.mrf.mxu1  ;;  %v8099_v32 = vld [vmem:[%s16082_s0 + $0x3c0] sm:$0xff]  ;;  %v15182_v46 = vld [vmem:[%s16082_s0 + $0x2d8] sm:$0xff] }
 0x4a6   :  { %v5042_v35 = vsub.f32 %v4435_v54, %v8087_v41  ;;  %v7889_v49 = vpack.i.bf16 %v8095_v52, %v15140_v21  ;;  %v5368_v41 = vsel %vm18026_vm0, %v5170_v56, 0.0  ;;  %vm16764_vm1 = vcmp.eq.s32.totalorder %v9073_v44, %v15120_v47  ;;  %4968 = vst [vmem:[#allocation2 + $0x3f0] sm:$0xff] %v6589_v22  ;;  %4789 = vst.msk [vmem:[%s16086_s4 + $0x258] sm:$0xff] %vm18035_vm13, %v7644_v14 }
 0x4a7   :  { %v5367_v59 = vadd.f32 %v5366_v24, %v5365_v33  ;;  %v5621_v29 = vadd.f32 %v6589_v22, %v5620_v53  ;;  %v5172_v60 = vmul.f32 %v5043_v17, %v5043_v17  ;;  %v6590_v27 = vsel %vm16764_vm1, 1.0, %v17282_v30  ;;  %7721 = vmatmul.mubr.msk.f32.gmra.mxu1 %vm16764_vm1, %v17322_v12  ;;  %7723 = vmatprep.subr.msk.mxu1 %vm16764_vm1, %v17322_v12  ;;  %vm18036_vm13 = vmmov %vm18026_vm0 }
 0x4a8   :  { %7888 = vxpose.xlu0.b32.cont [10/16] (narrow) %v7887_v31, 32  ;;  %v5171_v45 = vmul.f32 %v5042_v35, %v5042_v35  ;;  %v5045_v26 = vsub.f32 %v7644_v14, %v8097_v34  ;;  %v4445_v31 = vpop.f32.mrf.mxu1  ;;  %4969 = vst [vmem:[#allocation2 + $0x3f8] sm:$0xff] %v6590_v27  ;;  %v7937_v17 = vpack.i.bf16 %v15172_v18, %v8099_v32  ;;  %vm18038_vm1 = vmmov %vm18026_vm0 }
 0x4a9   :  { %v5369_v38 = vadd.f32 %v5368_v41, %v5367_v59  ;;  %v5622_v56 = vadd.f32 %v6590_v27, %v5621_v29  ;;  %4788 = vst.msk [vmem:[%s16086_s4 + $0x250] sm:$0xff] %vm18036_vm13, %v4445_v31  ;;  %v5044_v16 = vsub.f32 %v4445_v31, %v8095_v52  ;;  %7936 = vxpose.xlu1.b32.cont [8/16] (narrow) %v7935_v62, 32  ;;  %vm18037_vm13 = vmmov %vm18026_vm0  ;;  %v8101_v52 = vld [vmem:[%s16082_s0 + $0x268] sm:$0xff] }
 0x4aa   :  { %v5370_v54 = vsel %vm18026_vm0, %v5171_v45, 0.0  ;;  %v7891_v62 = vpack.i.bf16 %v8097_v34, %v15182_v46  ;;  %v7647_v35 = vpop.f32.mrf.mxu1  ;;  %v5372_v22 = vsel %vm18037_vm13, %v5172_v60, 0.0  ;;  %v5174_v14 = vmul.f32 %v5045_v26, %v5045_v26  ;;  %v15197_v60 = vld [vmem:[%s16082_s0 + $0x348] sm:$0xff]  ;;  %v8104_v26 = vld [vmem:[%s16082_s0 + $0x260] sm:$0xff]  ;;  %vm18041_vm13 = vmmov %vm18026_vm0 }
 0x4ab   :  { %v5371_v33 = vadd.f32 %v5370_v54, %v5369_v38  ;;  %v5623_v24 = vrot.slane %v5622_v56, 4  ;;  %v5173_v53 = vmul.f32 %v5044_v16, %v5044_v16  ;;  %4791 = vst.msk [vmem:[%s16086_s4 + $0x268] sm:$0xff] %vm18038_vm1, %v7647_v35  ;;  %v15202_v27 = vld [vmem:[%s16082_s0 + $0x3c8] sm:$0xff]  ;;  %vm18040_vm1 = vmmov %vm18026_vm0  ;;  %v15216_v38 = vld [vmem:[%s16082_s0 + $0x2e0] sm:$0xff] }
 0x4ac   :  { %7890 = vxpose.xlu0.b32.cont [11/16] (narrow) %v7889_v49, 32  ;;  %v5047_v49 = vsub.f32 %v7647_v35, %v8101_v52  ;;  %v4455_v29 = vpop.f32.mrf.mxu1  ;;  %18039 = vst [vmem:[#allocation192_spill] sm:$0xff] %v15202_v27  ;;  %v7939_v45 = vpack.i.bf16 %v15197_v60, %v15202_v27  ;;  %v7893_v16 = vpack.i.bf16 %v8104_v26, %v15216_v38 }
 0x4ad   :  { %v5373_v41 = vadd.f32 %v5372_v22, %v5371_v33  ;;  %v5374_v59 = vsel %vm18026_vm0, %v5173_v53, 0.0  ;;  %7938 = vxpose.xlu1.b32.cont [9/16] (narrow) %v7937_v17, 32  ;;  %v5624_v34 = vadd.f32 %v5623_v24, %v5622_v56  ;;  %4790 = vst.msk [vmem:[%s16086_s4 + $0x260] sm:$0xff] %vm18040_vm1, %v4455_v29  ;;  %v5046_v31 = vsub.f32 %v4455_v29, %v8104_v26  ;;  %v15223_v53 = vld [vmem:[%s16082_s0 + $0x350] sm:$0xff]  ;;  %vm18043_vm1 = vmmov %vm18026_vm0 }
 0x4ae   :  { %v5376_v17 = vsel %vm18041_vm13, %v5174_v14, 0.0  ;;  %v5176_v54 = vmul.f32 %v5047_v49, %v5047_v49  ;;  %v15236_v49 = vld [vmem:[%s16082_s0 + $0x2e8] sm:$0xff]  ;;  %v7650_v29 = vpop.f32.mrf.mxu1  ;;  %vm18044_vm13 = vmmov %vm18026_vm0 }
 0x4af   :  { %v5375_v32 = vadd.f32 %v5374_v59, %v5373_v41  ;;  %v5625_v56 = vrot.slane %v5624_v34, 2  ;;  %v5175_v33 = vmul.f32 %v5046_v31, %v5046_v31  ;;  %v7895_v41 = vpack.i.bf16 %v8101_v52, %v15236_v49  ;;  %4793 = vst.msk [vmem:[%s16086_s4 + $0x278] sm:$0xff] %vm18044_vm13, %v7650_v29  ;;  %v15250_v52 = vld [vmem:[%s16082_s0 + $0x358] sm:$0xff]  ;;  %vm18048_vm13 = vmmov %vm18026_vm0 }
 0x4b0   :  { %7892 = vxpose.xlu0.b32.cont [12/16] (narrow) %v7891_v62, 32  ;;  %v15228_v62 = vld [vmem:[%s16082_s0 + $0x3d0] sm:$0xff]  ;;  %v5380_v26 = vsel %vm18043_vm1, %v5176_v54, 0.0  ;;  %vm18047_vm1 = vmmov %vm18026_vm0 }
 0x4b1   :  { %v5377_v24 = vadd.f32 %v5376_v17, %v5375_v32  ;;  %7940 = vxpose.xlu1.b32.cont [10/16] (narrow) %v7939_v45, 32  ;;  %18042 = vst [vmem:[#allocation31_spill] sm:$0xff] %v15228_v62  ;;  %v7941_v35 = vpack.i.bf16 %v15223_v53, %v15228_v62  ;;  %v5626_v22 = vadd.f32 %v5625_v56, %v5624_v34  ;;  %v5378_v14 = vsel %vm18026_vm0, %v5175_v33, 0.0  ;;  %v8109_v34 = vld [vmem:[%s16082_s0 + $0x278] sm:$0xff]  ;;  %v4465_v32 = vpop.f32.mrf.mxu1 }
 0x4b2   :  { %v5049_v31 = vsub.f32 %v7650_v29, %v8109_v34  ;;  %v15255_v17 = vld [vmem:[%s16082_s0 + $0x3d8] sm:$0xff]  ;;  %4792 = vst.msk [vmem:[%s16086_s4 + $0x270] sm:$0xff] %vm18026_vm0, %v4465_v32 }
 0x4b3   :  { %v5379_v59 = vadd.f32 %v5378_v14, %v5377_v24  ;;  %v5627_v45 = vrot.slane %v5626_v22, 1  ;;  %18045 = vst [vmem:[#allocation151_spill] sm:$0xff] %v15255_v17  ;;  %v7943_v54 = vpack.i.bf16 %v15250_v52, %v15255_v17  ;;  %v8112_v24 = vld [vmem:[%s16082_s0 + $0x270] sm:$0xff] }
 0x4b4   :  { %7894 = vxpose.xlu0.b32.cont [13/16] (narrow) %v7893_v16, 32  ;;  %v5495_v16 = vld [vmem:[#allocation6] sm:$0x1]  ;;  %v15269_v14 = vld [vmem:[%s16082_s0 + $0x2f0] sm:$0xff] }
 0x4b5   :  { %v5381_v56 = vadd.f32 %v5380_v26, %v5379_v59  ;;  %7942 = vxpose.xlu1.b32.cont [11/16] (narrow) %v7941_v35, 32  ;;  %v5628_v33 = vadd.f32 %v5627_v45, %v5626_v22  ;;  %v5048_v35 = vsub.f32 %v4465_v32, %v8112_v24  ;;  %v7897_v59 = vpack.i.bf16 %v8112_v24, %v15269_v14  ;;  %v15275_v26 = vld [vmem:[%s16082_s0 + $0x360] sm:$0xff] }
 0x4b6   :  { %v5178_v22 = vmul.f32 %v5049_v31, %v5049_v31  ;;  %v7653_v31 = vpop.f32.mrf.mxu1 }
 0x4b7   :  { %v5629_v29 = vadd.f32 %v5628_v33, %v5495_v16  ;;  %v5177_v45 = vmul.f32 %v5048_v35, %v5048_v35  ;;  %v15288_v16 = vld [vmem:[%s16082_s0 + $0x2f8] sm:$0xff]  ;;  %4795 = vst.msk [vmem:[%s16086_s4 + $0x288] sm:$0xff] %vm18048_vm13, %v7653_v31  ;;  %v5051_v35 = vsub.f32 %v7653_v31, %v14629_v36  ;;  %v15310_v36 = vld [vmem:[%s16082_s0 + $0x3e8] sm:$0xff]  ;;  %vm18051_vm13 = vmmov %vm18026_vm0 }
 0x4b8   :  { %7896 = vxpose.xlu0.b32.cont [14/16] (narrow) %v7895_v41, 32  ;;  %v15280_v41 = vld [vmem:[%s16082_s0 + $0x3e0] sm:$0xff]  ;;  %18050 = vst [vmem:[#allocation154_spill] sm:$0xff] %v15310_v36 }
 0x4b9   :  { %7944 = vxpose.xlu1.b32.cont [12/16] (narrow) %v7943_v54, 32  ;;  %18046 = vst [vmem:[#allocation70_spill] sm:$0xff] %v15280_v41  ;;  %v7945_v32 = vpack.i.bf16 %v15275_v26, %v15280_v41  ;;  %5630 = vst [vmem:[#allocation6] sm:$0x1] %v5629_v29  ;;  %v5382_v24 = vsel %vm18047_vm1, %v5177_v45, 0.0  ;;  %v7899_v54 = vpack.i.bf16 %v8109_v34, %v15288_v16  ;;  %v5384_v29 = vsel %vm18026_vm0, %v5178_v22, 0.0  ;;  %v4475_v45 = vpop.f32.mrf.mxu1 }
 0x4ba   :  { %v5383_v33 = vadd.f32 %v5382_v24, %v5381_v56  ;;  %vm18049_vm1 = vmmov %vm18026_vm0  ;;  %v15305_v34 = vld [vmem:[%s16082_s0 + $0x368] sm:$0xff]  ;;  %v5180_v22 = vmul.f32 %v5051_v35, %v5051_v35  ;;  %v15349_v41 = vld [vmem:[%s16082_s0 + $0x378] sm:$0xff] }
 0x4bb   :  { %4794 = vst.msk [vmem:[%s16086_s4 + $0x280] sm:$0xff] %vm18049_vm1, %v4475_v45  ;;  %v7947_v56 = vpack.i.bf16 %v15305_v34, %v15310_v36  ;;  %vm18053_vm1 = vmmov %vm18026_vm0 }
 0x4bc   :  { %7898 = vxpose.xlu0.b32.cont [15/16] (narrow) %v7897_v59, 32  ;;  %v5050_v59 = vsub.f32 %v4475_v45, %v14575_v48  ;;  %v5385_v30 = vadd.f32 %v5384_v29, %v5383_v33  ;;  %v15318_v29 = vld [vmem:[%s16082_s0 + $0x370] sm:$0xff]  ;;  %v5388_v35 = vsel %vm18026_vm0, %v5180_v22, 0.0 }
 0x4bd   :  { %7946 = vxpose.xlu1.b32.cont [13/16] (narrow) %v7945_v32, 32  ;;  %v15323_v45 = vld [vmem:[%s16082_s0 + $0x3f0] sm:$0xff] }
 0x4be   :  { %v5179_v31 = vmul.f32 %v5050_v59, %v5050_v59  ;;  %18052 = vst [vmem:[#allocation43_spill] sm:$0xff] %v15323_v45 }
 0x4bf   :  { %v7797_v24 = vpop.trf.xlu0 }
 0x4c0   :  { %7900 = vxpose.xlu0.b32.end [16/16] (narrow) %v7899_v54, 32  ;;  %v7801_v48 = vunpack.i.h.bf16 %v7797_v24  ;;  %v7798_v33 = vunpack.i.l.bf16 %v7797_v24  ;;  %v5386_v32 = vsel %vm18051_vm13, %v5179_v31, 0.0  ;;  %v7949_v54 = vpack.i.bf16 %v15318_v29, %v15323_v45  ;;  %v7656_v24 = vpop.f32.mrf.mxu1  ;;  %vm18056_vm13 = vmmov %vm18026_vm0 }
 0x4c1   :  { %7948 = vxpose.xlu1.b32.cont [14/16] (narrow) %v7947_v56, 32  ;;  %v5387_v59 = vadd.f32 %v5386_v32, %v5385_v30  ;;  %4797 = vst.msk [vmem:[%s16086_s4 + $0x298] sm:$0xff] %vm18053_vm1, %v7656_v24  ;;  %v5053_v56 = vsub.f32 %v7656_v24, %v14756_v13 }
 0x4c2   :  { %5955 = vmatprep.mubr.f32.mxu0 %v7798_v33  ;;  %v4485_v45 = vpop.f32.mrf.mxu1 }
 0x4c3   :  { %v7802_v31 = vpop.trf.xlu0  ;;  %5956 = vmatmul.mubr.f32.vlgmr.msra.gmra.mxu0 %v7801_v48  ;;  %v5389_v22 = vadd.f32 %v5388_v35, %v5387_v59  ;;  %4796 = vst.msk [vmem:[%s16086_s4 + $0x290] sm:$0xff] %vm18056_vm13, %v4485_v45  ;;  %v5052_v13 = vsub.f32 %v4485_v45, %v14724_v0  ;;  %v15354_v48 = vld [vmem:[%s16082_s0 + $0x3f8] sm:$0xff]  ;;  %v5182_v45 = vmul.f32 %v5053_v56, %v5053_v56 }
 0x4c4   :  { %v7806_v36 = vunpack.i.h.bf16 %v7802_v31  ;;  %7212 = vmatpush3.msk.msra.mxu0 %vm3688_vm5, %v17322_v12  ;;  %v7803_v30 = vunpack.i.l.bf16 %v7802_v31  ;;  %18057 = vst [vmem:[#allocation62_spill] sm:$0xff] %v15354_v48  ;;  %v7951_v32 = vpack.i.bf16 %v15349_v41, %v15354_v48  ;;  %vm18066_vm5 = vmmov %vm18026_vm0 }
 0x4c5   :  { %7213 = vmatprep.subr.msk.mxu0 %vm3703_vm14, %v17322_v12  ;;  %7950 = vxpose.xlu1.b32.cont [15/16] (narrow) %v7949_v54, 32  ;;  %v5181_v54 = vmul.f32 %v5052_v13, %v5052_v13  ;;  %vm18061_vm14 = vmmov %vm18026_vm0  ;;  %v7659_v59 = vpop.f32.mrf.mxu1 }
 0x4c6   :  { %7214 = vmatpush3.msk.msra.mxu0 %vm3687_vm9, %v17322_v12  ;;  %5960 = vmatprep.mubr.f32.mxu0 %v7803_v30  ;;  %4799 = vst.msk [vmem:[%s16086_s4 + $0x2a8] sm:$0xff] %vm18066_vm5, %v7659_v59  ;;  %vm18075_vm9 = vcmp.eq.s32.totalorder %v9073_v44, %v14307_v58 }
 0x4c7   :  { %v7807_v0 = vpop.trf.xlu0  ;;  %7215 = vmatprep.subr.msk.mxu0 %vm3702_vm11, %v17322_v12  ;;  %5961 = vmatmul.mubr.f32.gmra.mxu0 %v7806_v36  ;;  %v5390_v35 = vsel %vm18061_vm14, %v5181_v54, 0.0  ;;  %v18071_v36 = vld [vmem:[#allocation138_spill] sm:$0xff]  ;;  %vm18079_vm11 = vcmp.eq.s32.totalorder %v9073_v44, %v15037_v40  ;;  %v18080_v54 = vld [vmem:[#allocation156_spill] sm:$0xff]  ;;  %vm18085_vm14 = vcmp.eq.s32.totalorder %v9073_v44, %v15016_v7 }
 0x4c8   :  { %v7811_v24 = vunpack.i.h.bf16 %v7807_v0  ;;  %7216 = vmatpush3.msk.msra.mxu0 %vm3686_vm3, %v17322_v12  ;;  %v7808_v48 = vunpack.i.l.bf16 %v7807_v0  ;;  %v5391_v13 = vadd.f32 %v5390_v35, %v5389_v22  ;;  %vm18064_vm3 = vmmov %vm18026_vm0  ;;  %v5055_v22 = vsub.f32 %v7659_v59, %v14920_v10  ;;  %v18087_v35 = vld [vmem:[#allocation111_spill] sm:$0xff] }
 0x4c9   :  { %v7849_v33 = vpop.trf.xlu1  ;;  %7217 = vmatprep.subr.msk.mxu0 %vm3701_vm6, %v17322_v12  ;;  %7952 = vxpose.xlu1.b32.end [16/16] (narrow) %v7951_v32, 32  ;;  %v5392_v0 = vsel %vm18064_vm3, %v5182_v45, 0.0  ;;  %v4495_v32 = vpop.f32.mrf.mxu1  ;;  %vm18076_vm6 = vmmov %vm18026_vm0  ;;  %vm18088_vm5 = vcmp.eq.s32.totalorder %v9073_v44, %v18087_v35  ;;  %v18110_v35 = vld [vmem:[#allocation190_spill] sm:$0xff] }
 0x4ca   :  { %v7853_v30 = vunpack.i.h.bf16 %v7849_v33  ;;  %7218 = vmatpush3.msk.msra.mxu0 %vm3685_vm15, %v17322_v12  ;;  %v7850_v31 = vunpack.i.l.bf16 %v7849_v33  ;;  %5965 = vmatprep.mubr.f32.mxu0 %v7808_v48  ;;  %v5393_v45 = vadd.f32 %v5392_v0, %v5391_v13  ;;  %vm18069_vm15 = vmmov %vm18026_vm0  ;;  %v5054_v10 = vsub.f32 %v4495_v32, %v14867_v55  ;;  %v18073_v55 = vld [vmem:[#allocation57_spill] sm:$0xff] }
 0x4cb   :  { %v15379_v17 = vpop.trf.xlu0  ;;  %7219 = vmatprep.subr.msk.mxu0 %vm3700_vm12, %v17322_v12  ;;  %5966 = vmatmul.mubr.f32.gmra.mxu0 %v7811_v24  ;;  %4798 = vst.msk [vmem:[%s16086_s4 + $0x2a0] sm:$0xff] %vm18069_vm15, %v4495_v32  ;;  %v5184_v56 = vmul.f32 %v5055_v22, %v5055_v22  ;;  %vm18081_vm12 = vcmp.eq.s32.totalorder %v9073_v44, %v18080_v54  ;;  %v18083_v32 = vld [vmem:[#allocation161_spill] sm:$0xff]  ;;  %vm18086_vm3 = vmmov %vm18053_vm1  ;;  %v18099_v54 = vld [vmem:[#allocation160_spill] sm:$0xff] }
 0x4cc   :  { %7220 = vmatpush3.msk.msra.mxu0 %vm3684_vm2, %v17322_v12  ;;  %6040 = vmatprep.mubr.f32.mxu1 %v7850_v31  ;;  %v5183_v13 = vmul.f32 %v5054_v10, %v5054_v10  ;;  %vm18072_vm2 = vcmp.eq.s32.totalorder %v9073_v44, %v18071_v36  ;;  %v18077_v31 = vld [vmem:[#allocation208_spill] sm:$0xff]  ;;  %vm18082_vm0 = vcmp.eq.s32.totalorder %v9073_v44, %v14286_v43  ;;  %v18089_v10 = vld [vmem:[#allocation202_spill] sm:$0xff]  ;;  %v18091_v36 = vld [vmem:[#allocation83_spill] sm:$0xff] }
 0x4cd   :  { %v15395_v33 = vpop.trf.xlu1  ;;  %7221 = vmatprep.subr.msk.mxu0 %vm3699_vm8, %v17322_v12  ;;  %6041 = vmatmul.mubr.f32.vlgmr.msra.gmra.mxu1 %v7853_v30  ;;  %vm18078_vm8 = vcmp.eq.s32.totalorder %v9073_v44, %v18077_v31  ;;  %v7662_v22 = vpop.f32.mrf.mxu1  ;;  %v5396_v48 = vsel %vm18053_vm1, %v5184_v56, 0.0  ;;  %vm18084_vm13 = vcmp.eq.s32.totalorder %v9073_v44, %v18083_v32  ;;  %vm18090_vm15 = vcmp.eq.s32.totalorder %v9073_v44, %v18089_v10  ;;  %v18107_v32 = vld [vmem:[#allocation16_spill] sm:$0xff] }
 0x4ce   :  { %7222 = vmatpush3.msk.msra.mxu0 %vm3683_vm7, %v17322_v12  ;;  %7739 = vmatpush3.msk.msra.mxu1 %vm3720_vm4, %v17322_v12  ;;  %vm18074_vm7 = vcmp.eq.s32.totalorder %v9073_v44, %v18073_v55  ;;  %v5394_v59 = vsel %vm18076_vm6, %v5183_v13, 0.0  ;;  %4801 = vst.msk [vmem:[%s16086_s4 + $0x2b8] sm:$0xff] %vm18086_vm3, %v7662_v22  ;;  %v18095_v55 = vld [vmem:[#allocation134_spill] sm:$0xff] }
 0x4cf   :  { %7223 = vmatprep.subr.msk.mxu0 %vm18072_vm2, %v17322_v12  ;;  %7724 = vmatprep.subr.msk.mxu1 %vm3735_vm10, %v17322_v12  ;;  %v5395_v0 = vadd.f32 %v5394_v59, %v5393_v45  ;;  %v5057_v45 = vsub.f32 %v7662_v22, %v15010_v5  ;;  %v4505_v24 = vpop.f32.mrf.mxu1  ;;  %vm18092_vm2 = vcmp.eq.s32.totalorder %v9073_v44, %v18091_v36  ;;  %v18097_v59 = vld [vmem:[#allocation25_spill] sm:$0xff]  ;;  %v18104_v22 = vld [vmem:[#allocation118_spill] sm:$0xff] }
 0x4d0   :  { %7224 = vmatpush3.msk.msra.mxu0 %vm18074_vm7, %v17322_v12  ;;  %7740 = vmatpush3.msk.msra.mxu1 %vm18075_vm9, %v17322_v12  ;;  %vm18093_vm7 = vcmp.eq.s32.totalorder %v9073_v44, %v14946_v4  ;;  %vm18094_vm9 = vmmov %vm18053_vm1  ;;  %v5056_v5 = vsub.f32 %v4505_v24, %v14964_v20  ;;  %vm18096_vm6 = vcmp.eq.s32.totalorder %v9073_v44, %v18095_v55  ;;  %v18102_v20 = vld [vmem:[#allocation110_spill] sm:$0xff] }
 0x4d1   :  { %v15430_v30 = vpop.trf.xlu1  ;;  %7225 = vmatprep.subr.msk.mxu0 %vm18078_vm8, %v17322_v12  ;;  %7725 = vmatprep.subr.msk.mxu1 %vm18079_vm11, %v17322_v12  ;;  %v5397_v56 = vadd.f32 %v5396_v48, %v5395_v0  ;;  %4800 = vst.msk [vmem:[%s16086_s4 + $0x2b0] sm:$0xff] %vm18094_vm9, %v4505_v24  ;;  %vm18098_vm8 = vcmp.eq.s32.totalorder %v9073_v44, %v18097_v59  ;;  %v18112_v24 = vld [vmem:[#allocation20_spill] sm:$0xff] }
 0x4d2   :  { %7226 = vmatpush3.msk.msra.mxu0 %vm18081_vm12, %v17322_v12  ;;  %7741 = vmatpush3.msk.msra.mxu1 %vm18082_vm0, %v17322_v12  ;;  %v5186_v31 = vmul.f32 %v5057_v45, %v5057_v45  ;;  %v5185_v0 = vmul.f32 %v5056_v5, %v5056_v5  ;;  %vm18100_vm11 = vcmp.eq.s32.totalorder %v9073_v44, %v18099_v54  ;;  %v18115_v5 = vld [vmem:[#allocation49_spill] sm:$0xff] }
 0x4d3   :  { %7227 = vmatprep.subr.msk.mxu0 %vm18084_vm13, %v17322_v12  ;;  %7726 = vmatprep.subr.msk.mxu1 %vm18085_vm14, %v17322_v12  ;;  %vm18101_vm12 = vcmp.eq.s32.totalorder %v9073_v44, %v14927_v23  ;;  %vm18103_vm0 = vcmp.eq.s32.totalorder %v9073_v44, %v18102_v20  ;;  %vm18105_vm1 = vcmp.eq.s32.totalorder %v9073_v44, %v18104_v22  ;;  %vm18106_vm13 = vmmov %vm18086_vm3  ;;  %v18123_v20 = vld [vmem:[#allocation135_spill] sm:$0xff] }
 0x4d4   :  { %7228 = vmatpush3.msk.msra.mxu0 %vm18088_vm5, %v17322_v12  ;;  %7742 = vmatpush3.msk.msra.mxu1 %vm18090_vm15, %v17322_v12  ;;  %v5398_v48 = vsel %vm18106_vm13, %v5185_v0, 0.0  ;;  %vm18108_vm14 = vcmp.eq.s32.totalorder %v9073_v44, %v18107_v32  ;;  %vm18109_vm3 = vcmp.eq.s32.totalorder %v9073_v44, %v14849_v57  ;;  %vm18111_vm5 = vcmp.eq.s32.totalorder %v9073_v44, %v18110_v35  ;;  %v18121_v0 = vld [vmem:[#allocation167_spill] sm:$0xff]  ;;  %v18127_v32 = vld [vmem:[#allocation201_spill] sm:$0xff]  ;;  %v18131_v35 = vld [vmem:[#allocation158_spill] sm:$0xff] }
 0x4d5   :  { %v15471_v13 = vpop.trf.xlu1  ;;  %7229 = vmatprep.subr.msk.mxu0 %vm18092_vm2, %v17322_v12  ;;  %7727 = vmatprep.subr.msk.mxu1 %vm18093_vm7, %v17322_v12  ;;  %v5399_v45 = vadd.f32 %v5398_v48, %v5397_v56  ;;  %vm18113_vm15 = vcmp.eq.s32.totalorder %v9073_v44, %v18112_v24  ;;  %vm18114_vm2 = vmmov %vm18094_vm9  ;;  %vm18116_vm7 = vcmp.eq.s32.totalorder %v9073_v44, %v18115_v5  ;;  %v7665_v56 = vpop.f32.mrf.mxu1  ;;  %v18134_v5 = vld [vmem:[#allocation67_spill] sm:$0xff] }
 0x4d6   :  { %7230 = vmatpush3.msk.msra.mxu0 %vm18096_vm6, %v17322_v12  ;;  %7743 = vmatpush3.msk.msra.mxu1 %vm18098_vm8, %v17322_v12  ;;  %v5400_v36 = vsel %vm18114_vm2, %v5186_v31, 0.0  ;;  %vm18117_vm9 = vcmp.eq.s32.totalorder %v9073_v44, %v14827_v39  ;;  %vm18118_vm6 = vmmov %vm18114_vm2  ;;  %v5059_v55 = vsub.f32 %v7665_v56, %v15100_v25  ;;  %v18119_v31 = vld [vmem:[#allocation32_spill] sm:$0xff]  ;;  %vm18128_vm13 = vcmp.eq.s32.totalorder %v9073_v44, %v18127_v32  ;;  %v18144_v32 = vld [vmem:[#allocation130_spill] sm:$0xff] }
 0x4d7   :  { %7231 = vmatprep.subr.msk.mxu0 %vm18100_vm11, %v17322_v12  ;;  %7728 = vmatprep.subr.msk.mxu1 %vm18101_vm12, %v17322_v12  ;;  %4803 = vst.msk [vmem:[%s16086_s4 + $0x2c8] sm:$0xff] %vm18118_vm6, %v7665_v56  ;;  %vm18120_vm8 = vcmp.eq.s32.totalorder %v9073_v44, %v18119_v31  ;;  %vm18122_vm11 = vcmp.eq.s32.totalorder %v9073_v44, %v18121_v0  ;;  %v4515_v25 = vpop.f32.mrf.mxu1  ;;  %v18136_v56 = vld [vmem:[#allocation115_spill] sm:$0xff]  ;;  %v7813_v31 = vunpack.i.l.bf16 %v15379_v17 }
 0x4d8   :  { %7232 = vmatpush3.msk.msra.mxu0 %vm18103_vm0, %v17322_v12  ;;  %7744 = vmatpush3.msk.msra.mxu1 %vm18105_vm1, %v17322_v12  ;;  %v5401_v54 = vadd.f32 %v5400_v36, %v5399_v45  ;;  %vm18124_vm12 = vcmp.eq.s32.totalorder %v9073_v44, %v18123_v20  ;;  %vm18125_vm0 = vcmp.eq.s32.totalorder %v9073_v44, %v14763_v51  ;;  %vm18126_vm1 = vmmov %vm18114_vm2  ;;  %v18129_v45 = vld [vmem:[#allocation191_spill] sm:$0xff] }
 0x4d9   :  { %7233 = vmatprep.subr.msk.mxu0 %vm18108_vm14, %v17322_v12  ;;  %7729 = vmatprep.subr.msk.mxu1 %vm18109_vm3, %v17322_v12  ;;  %4802 = vst.msk [vmem:[%s16086_s4 + $0x2c0] sm:$0xff] %vm18126_vm1, %v4515_v25  ;;  %v5058_v48 = vsub.f32 %v4515_v25, %v15053_v9  ;;  %vm18130_vm14 = vcmp.eq.s32.totalorder %v9073_v44, %v18129_v45  ;;  %v18138_v20 = vld [vmem:[#allocation75_spill] sm:$0xff]  ;;  %vm18141_vm6 = vmmov %vm18126_vm1 }
 0x4da   :  { %7234 = vmatpush3.msk.msra.mxu0 %vm18111_vm5, %v17322_v12  ;;  %7745 = vmatpush3.msk.msra.mxu1 %vm18113_vm15, %v17322_v12  ;;  %vm18132_vm3 = vcmp.eq.s32.totalorder %v9073_v44, %v18131_v35  ;;  %vm18133_vm5 = vcmp.eq.s32.totalorder %v9073_v44, %v14731_v1  ;;  %v5188_v9 = vmul.f32 %v5059_v55, %v5059_v55  ;;  %v7816_v55 = vunpack.i.h.bf16 %v15379_v17 }
 0x4db   :  { %7235 = vmatprep.subr.msk.mxu0 %vm18116_vm7, %v17322_v12  ;;  %7730 = vmatprep.subr.msk.mxu1 %vm18117_vm9, %v17322_v12  ;;  %v5187_v36 = vmul.f32 %v5058_v48, %v5058_v48  ;;  %vm18135_vm15 = vcmp.eq.s32.totalorder %v9073_v44, %v18134_v5  ;;  %vm18137_vm2 = vcmp.eq.s32.totalorder %v9073_v44, %v18136_v56  ;;  %v18142_v48 = vld [vmem:[#allocation149_spill] sm:$0xff]  ;;  %v7855_v35 = vunpack.i.l.bf16 %v15395_v33 }
 0x4dc   :  { %7236 = vmatpush3.msk.msra.mxu0 %vm18120_vm8, %v17322_v12  ;;  %7746 = vmatpush3.msk.msra.mxu1 %vm18122_vm11, %v17322_v12  ;;  %vm18139_vm7 = vcmp.eq.s32.totalorder %v9073_v44, %v18138_v20  ;;  %vm18140_vm9 = vcmp.eq.s32.totalorder %v9073_v44, %v14663_v8  ;;  %vm18143_vm8 = vcmp.eq.s32.totalorder %v9073_v44, %v18142_v48  ;;  %v5404_v20 = vsel %vm18126_vm1, %v5188_v9, 0.0 }
 0x4dd   :  { %7237 = vmatprep.subr.msk.mxu0 %vm18124_vm12, %v17322_v12  ;;  %7731 = vmatprep.subr.msk.mxu1 %vm18125_vm0, %v17322_v12  ;;  %v5402_v25 = vsel %vm18141_vm6, %v5187_v36, 0.0  ;;  %vm18145_vm11 = vcmp.eq.s32.totalorder %v9073_v44, %v18144_v32  ;;  %vm18146_vm12 = vcmp.eq.s32.totalorder %v9073_v44, %v15120_v47  ;;  %vm18147_vm0 = vcmp.eq.s32.totalorder %v9073_v44, %v14636_v11  ;;  %v18149_v47 = vld [vmem:[#allocation183_spill] sm:$0xff] }
 0x4de   :  { %7238 = vmatpush3.msk.msra.mxu0 %vm18128_vm13, %v17322_v12  ;;  %7747 = vmatpush3.msk.msra.mxu1 %vm18130_vm14, %v17322_v12  ;;  %v5403_v5 = vadd.f32 %v5402_v25, %v5401_v54  ;;  %v7668_v17 = vpop.f32.mrf.mxu1  ;;  %v7858_v36 = vunpack.i.h.bf16 %v15395_v33  ;;  %vm18148_vm13 = vmmov %vm18126_vm1  ;;  %vm18150_vm14 = vcmp.eq.s32.totalorder %v9073_v44, %v18149_v47  ;;  %v7860_v25 = vunpack.i.l.bf16 %v15430_v30 }
 0x4df   :  { %7239 = vmatprep.subr.msk.mxu0 %vm18132_vm3, %v17322_v12  ;;  %7732 = vmatprep.subr.msk.mxu1 %vm18133_vm5, %v17322_v12  ;;  %4805 = vst.msk [vmem:[%s16086_s4 + $0x2d8] sm:$0xff] %vm18148_vm13, %v7668_v17  ;;  %v5061_v54 = vsub.f32 %v7668_v17, %v15182_v46  ;;  %vm18151_vm3 = vcmp.eq.s32.totalorder %v9073_v44, %v14559_v15  ;;  %vm18152_vm5 = vmmov %vm18126_vm1  ;;  %v18156_v17 = vld [vmem:[#allocation44_spill] sm:$0xff] }
 0x4e0   :  { %7240 = vmatpush3.msk.msra.mxu0 %vm18135_vm15, %v17322_v12  ;;  %7748 = vmatpush3.msk.msra.mxu1 %vm18137_vm2, %v17322_v12  ;;  %v4525_v33 = vpop.f32.mrf.mxu1  ;;  %v5405_v9 = vadd.f32 %v5404_v20, %v5403_v5  ;;  %vm18155_vm2 = vcmp.eq.s32.totalorder %v9073_v44, %v14506_v19  ;;  %v7865_v20 = vunpack.i.l.bf16 %v15471_v13  ;;  %vm18159_vm6 = vcmp.eq.s32.totalorder %v9073_v44, %v14475_v37 }
 0x4e1   :  { %7241 = vmatprep.subr.msk.mxu0 %vm18139_vm7, %v17322_v12  ;;  %7733 = vmatprep.subr.msk.mxu1 %vm18140_vm9, %v17322_v12  ;;  %4804 = vst.msk [vmem:[%s16086_s4 + $0x2d0] sm:$0xff] %vm18152_vm5, %v4525_v33  ;;  %v5060_v46 = vsub.f32 %v4525_v33, %v15140_v21  ;;  %v5190_v48 = vmul.f32 %v5061_v54, %v5061_v54  ;;  %vm18158_vm9 = vmmov %vm18126_vm1  ;;  %v18164_v33 = vld [vmem:[#allocation78_spill] sm:$0xff] }
 0x4e2   :  { %7242 = vmatpush3.msk.msra.mxu0 %vm18143_vm8, %v17322_v12  ;;  %7749 = vmatpush3.msk.msra.mxu1 %vm18145_vm11, %v17322_v12  ;;  %vm18157_vm7 = vcmp.eq.s32.totalorder %v9073_v44, %v18156_v17  ;;  %vm18160_vm8 = vmmov %vm18126_vm1 }
 0x4e3   :  { %7255 = vmatprep.subr.msk.mxu0 %vm18146_vm12, %v17322_v12  ;;  %7734 = vmatprep.subr.msk.mxu1 %vm18147_vm0, %v17322_v12  ;;  %v5189_v5 = vmul.f32 %v5060_v46, %v5060_v46  ;;  %v7671_v21 = vpop.f32.mrf.mxu1  ;;  %vm18163_vm12 = vmmov %vm18126_vm1  ;;  %vm18165_vm0 = vcmp.eq.s32.totalorder %v9073_v44, %v18164_v33  ;;  %v7868_v46 = vunpack.i.h.bf16 %v15471_v13 }
 0x4e4   :  { %7750 = vmatpush3.msk.msra.mxu1 %vm18150_vm14, %v17322_v12  ;;  %5970 = vmatprep.mubr.f32.mxu0 %v7813_v31  ;;  %v18153_v31 = vld [vmem:[#allocation24_spill] sm:$0xff]  ;;  %4807 = vst.msk [vmem:[%s16086_s4 + $0x2e8] sm:$0xff] %vm18158_vm9, %v7671_v21  ;;  %vm18168_vm14 = vmmov %vm18126_vm1 }
 0x4e5   :  { %7735 = vmatprep.subr.msk.mxu1 %vm18151_vm3, %v17322_v12  ;;  %5971 = vmatmul.mubr.f32.gmra.mxu0 %v7816_v55  ;;  %vm18154_vm15 = vcmp.eq.s32.totalorder %v9073_v44, %v18153_v31  ;;  %v7863_v55 = vunpack.i.h.bf16 %v15430_v30  ;;  %v5406_v30 = vsel %vm18160_vm8, %v5189_v5, 0.0  ;;  %v4535_v54 = vpop.f32.mrf.mxu1  ;;  %v5408_v5 = vsel %vm18126_vm1, %v5190_v48, 0.0  ;;  %vm18169_vm3 = vmmov %vm18126_vm1 }
 0x4e6   :  { %7751 = vmatpush3.msk.msra.mxu1 %vm18154_vm15, %v17322_v12  ;;  %6045 = vmatprep.mubr.f32.mxu1 %v7855_v35  ;;  %v5063_v35 = vsub.f32 %v7671_v21, %v15236_v49  ;;  %4806 = vst.msk [vmem:[%s16086_s4 + $0x2e0] sm:$0xff] %vm18163_vm12, %v4535_v54  ;;  %v5062_v49 = vsub.f32 %v4535_v54, %v15216_v38  ;;  %vm18170_vm5 = vmmov %vm18126_vm1 }
 0x4e7   :  { %7736 = vmatprep.subr.msk.mxu1 %vm18155_vm2, %v17322_v12  ;;  %6046 = vmatmul.mubr.f32.gmra.mxu1 %v7858_v36  ;;  %v18161_v36 = vld [vmem:[#allocation145_spill] sm:$0xff]  ;;  %v7674_v21 = vpop.f32.mrf.mxu1  ;;  %vm18171_vm15 = vmmov %vm18126_vm1 }
 0x4e8   :  { %7752 = vmatpush3.msk.msra.mxu1 %vm18157_vm7, %v17322_v12  ;;  %6050 = vmatprep.mubr.f32.mxu1 %v7860_v25  ;;  %vm18162_vm11 = vcmp.eq.s32.totalorder %v9073_v44, %v18161_v36  ;;  %v5407_v25 = vadd.f32 %v5406_v30, %v5405_v9  ;;  %v18166_v9 = vld [vmem:[#allocation104_spill] sm:$0xff]  ;;  %v5192_v30 = vmul.f32 %v5063_v35, %v5063_v35  ;;  %vm18172_vm2 = vmmov %vm18126_vm1 }
 0x4e9   :  { %7737 = vmatprep.subr.msk.mxu1 %vm18159_vm6, %v17322_v12  ;;  %vm18167_vm13 = vcmp.eq.s32.totalorder %v9073_v44, %v18166_v9  ;;  %v5191_v62 = vmul.f32 %v5062_v49, %v5062_v49  ;;  %4809 = vst.msk [vmem:[%s16086_s4 + $0x2f8] sm:$0xff] %vm18168_vm14, %v7674_v21  ;;  %v5065_v13 = vsub.f32 %v7674_v21, %v15288_v16  ;;  %vm18173_vm7 = vmmov %vm18126_vm1 }
 0x4ea   :  { %7753 = vmatpush3.msk.msra.mxu1 %vm18162_vm11, %v17322_v12  ;;  %v5409_v38 = vadd.f32 %v5408_v5, %v5407_v25  ;;  %v5412_v25 = vsel %vm18171_vm15, %v5192_v30, 0.0  ;;  %vm18174_vm9 = vmmov %vm18126_vm1  ;;  %vm18182_vm14 = vcmp.eq.s32.totalorder %v9073_v44, %v14307_v58  ;;  %vm18187_vm15 = vcmp.eq.s32.totalorder %v9073_v44, %v18089_v10 }
 0x4eb   :  { %7738 = vmatprep.subr.msk.mxu1 %vm18165_vm0, %v17322_v12  ;;  %6051 = vmatmul.mubr.f32.gmra.mxu1 %v7863_v55  ;;  %v4545_v55 = vpop.f32.mrf.mxu1  ;;  %v5410_v48 = vsel %vm18169_vm3, %v5191_v62, 0.0  ;;  %v5194_v49 = vmul.f32 %v5065_v13, %v5065_v13  ;;  %vm18175_vm6 = vmmov %vm18126_vm1  ;;  %vm18183_vm3 = vcmp.eq.s32.totalorder %v9073_v44, %v15037_v40 }
 0x4ec   :  { %7754 = vmatpush3.msk.msra.mxu1 %vm18167_vm13, %v17322_v12  ;;  %6055 = vmatprep.mubr.f32.mxu1 %v7865_v20  ;;  %4808 = vst.msk [vmem:[%s16086_s4 + $0x2f0] sm:$0xff] %vm18170_vm5, %v4545_v55  ;;  %v5064_v20 = vsub.f32 %v4545_v55, %v15269_v14  ;;  %v5411_v35 = vadd.f32 %v5410_v48, %v5409_v38  ;;  %vm18176_vm8 = vmmov %vm18126_vm1 }
 0x4ed   :  { %v7677_v54 = vpop.f32.mrf.mxu1  ;;  %v5416_v30 = vsel %vm18175_vm6, %v5194_v49, 0.0  ;;  %vm18177_vm11 = vmmov %vm18126_vm1  ;;  %vm18191_vm6 = vcmp.eq.s32.totalorder %v9073_v44, %v14927_v23  ;;  %v8123_v23 = vld [vmem:[%s16082_s0 + $0x310] sm:$0xff] }
 0x4ee   :  { %v5193_v5 = vmul.f32 %v5064_v20, %v5064_v20  ;;  %4811 = vst.msk [vmem:[%s16086_s4 + $0x308] sm:$0xff] %vm18172_vm2, %v7677_v54  ;;  %v5067_v62 = vsub.f32 %v7677_v54, %v14841_v50  ;;  %v5413_v16 = vadd.f32 %v5412_v25, %v5411_v35  ;;  %vm18178_vm12 = vmmov %vm18126_vm1  ;;  %vm18188_vm2 = vcmp.eq.s32.totalorder %v9073_v44, %v14946_v4 }
 0x4ef   :  { %6056 = vmatmul.mubr.f32.gmra.mxu1 %v7868_v46  ;;  %v4555_v21 = vpop.f32.mrf.mxu1  ;;  %vm18179_vm0 = vmmov %vm18126_vm1 }
 0x4f0   :  { %v5414_v27 = vsel %vm18173_vm7, %v5193_v5, 0.0  ;;  %4810 = vst.msk [vmem:[%s16086_s4 + $0x300] sm:$0xff] %vm18174_vm9, %v4555_v21  ;;  %v5066_v14 = vsub.f32 %v4555_v21, %v14787_v42  ;;  %v5196_v38 = vmul.f32 %v5067_v62, %v5067_v62  ;;  %vm18180_vm1 = vmmov %vm18179_vm0  ;;  %vm18190_vm9 = vcmp.eq.s32.totalorder %v9073_v44, %v18097_v59 }
 0x4f1   :  { %v5415_v46 = vadd.f32 %v5414_v27, %v5413_v16  ;;  %vm18181_vm13 = vmmov %vm18179_vm0 }
 0x4f2   :  { %v5195_v13 = vmul.f32 %v5066_v14, %v5066_v14  ;;  %v15703_v20 = vpop.f32.mrf.mxu1  ;;  %v5420_v35 = vsel %vm18177_vm11, %v5196_v38, 0.0  ;;  %vm18186_vm5 = vmmov %vm18179_vm0  ;;  %vm18193_vm11 = vcmp.eq.s32.totalorder %v9073_v44, %v14849_v57 }
 0x4f3   :  { %v5417_v55 = vadd.f32 %v5416_v30, %v5415_v46  ;;  %4813 = vst.msk [vmem:[%s16086_s4 + $0x318] sm:$0xff] %vm18178_vm12, %v15703_v20  ;;  %vm18189_vm7 = vmmov %vm18179_vm0  ;;  %vm18194_vm12 = vcmp.eq.s32.totalorder %v9073_v44, %v18112_v24 }
 0x4f4   :  { %v5418_v48 = vsel %vm18176_vm8, %v5195_v13, 0.0  ;;  %v4565_v42 = vpop.f32.mrf.mxu1  ;;  %vm18192_vm8 = vcmp.eq.s32.totalorder %v9073_v44, %v18104_v22 }
 0x4f5   :  { %v5419_v50 = vadd.f32 %v5418_v48, %v5417_v55  ;;  %4812 = vst.msk [vmem:[%s16086_s4 + $0x310] sm:$0xff] %vm18179_vm0, %v4565_v42  ;;  %v5068_v59 = vsub.f32 %v4565_v42, %v8123_v23  ;;  %vm18195_vm0 = vcmp.eq.s32.totalorder %v9073_v44, %v14827_v39 }
 0x4f7   :  { %v15711_v27 = vadd.f32 %v5420_v35, %v5419_v50 }
 0x4fb   :  { %v15717_v49 = vpop.f32.mrf.mxu1 }
 0x4fc   :  { %4815 = vst.msk [vmem:[%s16086_s4 + $0x328] sm:$0xff] %vm18180_vm1, %v15717_v49 }
 0x4fd   :  { %v15724_v62 = vpop.f32.mrf.mxu1 }
 0x4fe   :  { %4814 = vst.msk [vmem:[%s16086_s4 + $0x320] sm:$0xff] %vm18181_vm13, %v15724_v62  ;;  %vm18196_vm13 = vcmp.eq.s32.totalorder %v9073_v44, %v18121_v0  ;;  %v5197_v0 = vmul.f32 %v5068_v59, %v5068_v59  ;;  %v5070_v42 = vsub.f32 %v15724_v62, %v14976_v61 }
 0x500   :  { %v7901_v54 = vpop.trf.xlu0  ;;  %v5199_v61 = vmul.f32 %v5070_v42, %v5070_v42 }
 0x501   :  { %v7905_v25 = vunpack.i.h.bf16 %v7901_v54  ;;  %v7902_v5 = vunpack.i.l.bf16 %v7901_v54 }
 0x503   :  { %6125 = vmatprep.mubr.f32.mxu0 %v7902_v5 }
 0x504   :  { %v7906_v16 = vpop.trf.xlu0  ;;  %6126 = vmatmul.mubr.f32.vlgmr.msra.gmra.mxu0 %v7905_v25  ;;  %v15751_v6 = vpop.f32.mrf.mxu1 }
 0x505   :  { %v7910_v21 = vunpack.i.h.bf16 %v7906_v16  ;;  %7256 = vmatpush3.msk.msra.mxu0 %vm3720_vm4, %v17322_v12  ;;  %v7907_v14 = vunpack.i.l.bf16 %v7906_v16  ;;  %vm18184_vm4 = vcmp.eq.s32.totalorder %v9073_v44, %v14286_v43  ;;  %4817 = vst.msk [vmem:[%s16086_s4 + $0x338] sm:$0xff] %vm18186_vm5, %v15751_v6  ;;  %vm18201_vm5 = vcmp.eq.s32.totalorder %v9073_v44, %v18136_v56 }
 0x506   :  { %7257 = vmatprep.subr.msk.mxu0 %vm3735_vm10, %v17322_v12  ;;  %vm18185_vm10 = vcmp.eq.s32.totalorder %v9073_v44, %v15016_v7  ;;  %v15768_v43 = vpop.f32.mrf.mxu1 }
 0x507   :  { %7258 = vmatpush3.msk.msra.mxu0 %vm18182_vm14, %v17322_v12  ;;  %6130 = vmatprep.mubr.f32.mxu0 %v7907_v14  ;;  %4816 = vst.msk [vmem:[%s16086_s4 + $0x330] sm:$0xff] %vm18189_vm7, %v15768_v43  ;;  %vm18197_vm14 = vcmp.eq.s32.totalorder %v9073_v44, %v14763_v51  ;;  %vm18204_vm7 = vmmov %vm18180_vm1 }
 0x508   :  { %v7911_v46 = vpop.trf.xlu0  ;;  %7259 = vmatprep.subr.msk.mxu0 %vm18183_vm3, %v17322_v12  ;;  %6131 = vmatmul.mubr.f32.gmra.mxu0 %v7910_v21  ;;  %vm18198_vm3 = vmmov %vm18180_vm1  ;;  %v5422_v56 = vsel %vm18204_vm7, %v5197_v0, 0.0 }
 0x509   :  { %v7915_v28 = vunpack.i.h.bf16 %v7911_v46  ;;  %7260 = vmatpush3.msk.msra.mxu0 %vm18184_vm4, %v17322_v12  ;;  %v7912_v30 = vunpack.i.l.bf16 %v7911_v46  ;;  %v15762_v58 = vpop.trf.xlu1  ;;  %vm18199_vm4 = vcmp.eq.s32.totalorder %v9073_v44, %v18129_v45  ;;  %v8124_v45 = vld [vmem:[%s16082_s0 + $0x318] sm:$0xff]  ;;  %vm18219_vm7 = vmmov %vm18198_vm3 }
 0x50a   :  { %7261 = vmatprep.subr.msk.mxu0 %vm18185_vm10, %v17322_v12  ;;  %v7954_v38 = vunpack.i.l.bf16 %v15762_v58  ;;  %vm18200_vm10 = vcmp.eq.s32.totalorder %v9073_v44, %v14731_v1  ;;  %v5069_v35 = vsub.f32 %v15703_v20, %v8124_v45 }
 0x50b   :  { %7262 = vmatpush3.msk.msra.mxu0 %vm18187_vm15, %v17322_v12  ;;  %6135 = vmatprep.mubr.f32.mxu0 %v7912_v30  ;;  %vm18202_vm15 = vcmp.eq.s32.totalorder %v9073_v44, %v14663_v8 }
 0x50c   :  { %v7916_v40 = vpop.trf.xlu0  ;;  %7263 = vmatprep.subr.msk.mxu0 %vm18188_vm2, %v17322_v12  ;;  %6136 = vmatmul.mubr.f32.gmra.mxu0 %v7915_v28  ;;  %vm18203_vm2 = vcmp.eq.s32.totalorder %v9073_v44, %v18144_v32  ;;  %v5198_v8 = vmul.f32 %v5069_v35, %v5069_v35  ;;  %v5423_v32 = vadd.f32 %v5422_v56, %v15711_v27 }
 0x50d   :  { %v7920_v7 = vunpack.i.h.bf16 %v7916_v40  ;;  %7264 = vmatpush3.msk.msra.mxu0 %vm18190_vm9, %v17322_v12  ;;  %v7917_v10 = vunpack.i.l.bf16 %v7916_v40  ;;  %v7958_v4 = vpop.trf.xlu1  ;;  %v15807_v22 = vpop.f32.mrf.mxu1  ;;  %vm18205_vm9 = vcmp.eq.s32.totalorder %v9073_v44, %v14636_v11 }
 0x50e   :  { %7265 = vmatprep.subr.msk.mxu0 %vm18191_vm6, %v17322_v12  ;;  %v7962_v13 = vunpack.i.h.bf16 %v7958_v4  ;;  %v7959_v55 = vunpack.i.l.bf16 %v7958_v4  ;;  %4819 = vst.msk [vmem:[%s16086_s4 + $0x348] sm:$0xff] %vm18180_vm1, %v15807_v22  ;;  %vm18206_vm6 = vmmov %vm18180_vm1 }
 0x50f   :  { %7266 = vmatpush3.msk.msra.mxu0 %vm18192_vm8, %v17322_v12  ;;  %6140 = vmatprep.mubr.f32.mxu0 %v7917_v10  ;;  %v4595_v39 = vpop.f32.mrf.mxu1  ;;  %vm18207_vm8 = vcmp.eq.s32.totalorder %v9073_v44, %v18149_v47  ;;  %v5071_v47 = vsub.f32 %v15717_v49, %v15029_v3  ;;  %v7957_v3 = vunpack.i.h.bf16 %v15762_v58 }
 0x510   :  { %7267 = vmatprep.subr.msk.mxu0 %vm18193_vm11, %v17322_v12  ;;  %6141 = vmatmul.mubr.f32.gmra.mxu0 %v7920_v7  ;;  %4818 = vst.msk [vmem:[%s16086_s4 + $0x340] sm:$0xff] %vm18198_vm3, %v4595_v39  ;;  %vm18208_vm11 = vcmp.eq.s32.totalorder %v9073_v44, %v14559_v15  ;;  %v5072_v15 = vsub.f32 %v15768_v43, %v15064_v63 }
 0x511   :  { %7268 = vmatpush3.msk.msra.mxu0 %vm18194_vm12, %v17322_v12  ;;  %6210 = vmatprep.mubr.f32.mxu0 %v7954_v38  ;;  %v7963_v57 = vpop.trf.xlu1  ;;  %vm18209_vm12 = vmmov %vm18180_vm1  ;;  %vm18211_vm1 = vcmp.eq.s32.totalorder %v9073_v44, %v14506_v19  ;;  %v5200_v19 = vmul.f32 %v5071_v47, %v5071_v47 }
 0x512   :  { %7269 = vmatprep.subr.msk.mxu0 %vm18195_vm0, %v17322_v12  ;;  %6215 = vmatprep.mubr.f32.mxu1 %v7959_v55  ;;  %v7967_v24 = vunpack.i.h.bf16 %v7963_v57  ;;  %v7964_v48 = vunpack.i.l.bf16 %v7963_v57  ;;  %vm18210_vm0 = vcmp.eq.s32.totalorder %v9073_v44, %v18153_v31  ;;  %v5426_v31 = vsel %vm18198_vm3, %v5199_v61, 0.0  ;;  %v8127_v61 = vld [vmem:[%s16082_s0 + $0x390] sm:$0xff] }
 0x513   :  { %7270 = vmatpush3.msk.msra.mxu0 %vm18196_vm13, %v17322_v12  ;;  %6216 = vmatmul.mubr.f32.vlgmr.msra.gmra.mxu1 %v7962_v13  ;;  %vm18212_vm13 = vcmp.eq.s32.totalorder %v9073_v44, %v18156_v17  ;;  %v5201_v17 = vmul.f32 %v5072_v15, %v5072_v15 }
 0x514   :  { %7271 = vmatprep.subr.msk.mxu0 %vm18197_vm14, %v17322_v12  ;;  %6220 = vmatprep.mubr.f32.mxu1 %v7964_v48  ;;  %vm18213_vm14 = vmmov %vm18198_vm3 }
 0x515   :  { %7272 = vmatpush3.msk.msra.mxu0 %vm18199_vm4, %v17322_v12  ;;  %v7968_v51 = vpop.trf.xlu1  ;;  %v7692_v20 = vpop.f32.mrf.mxu1  ;;  %v5424_v27 = vsel %vm18213_vm14, %v5198_v8, 0.0  ;;  %vm18214_vm4 = vcmp.eq.s32.totalorder %v9073_v44, %v14475_v37  ;;  %v5073_v37 = vsub.f32 %v15751_v6, %v15113_v2  ;;  %v5075_v2 = vsub.f32 %v15807_v22, %v15197_v60 }
 0x516   :  { %7273 = vmatprep.subr.msk.mxu0 %vm18200_vm10, %v17322_v12  ;;  %v7972_v50 = vunpack.i.h.bf16 %v7968_v51  ;;  %v7969_v1 = vunpack.i.l.bf16 %v7968_v51  ;;  %4821 = vst.msk [vmem:[%s16086_s4 + $0x358] sm:$0xff] %vm18206_vm6, %v7692_v20  ;;  %v5425_v63 = vadd.f32 %v5424_v27, %v5423_v32  ;;  %vm18215_vm10 = vcmp.eq.s32.totalorder %v9073_v44, %v18161_v36  ;;  %vm18221_vm6 = vmmov %vm18198_vm3 }
 0x517   :  { %7274 = vmatpush3.msk.msra.mxu0 %vm18201_vm5, %v17322_v12  ;;  %6221 = vmatmul.mubr.f32.gmra.mxu1 %v7967_v24  ;;  %v4605_v11 = vpop.f32.mrf.mxu1  ;;  %vm18216_vm5 = vcmp.eq.s32.totalorder %v9073_v44, %v18164_v33  ;;  %v5074_v36 = vsub.f32 %v4595_v39, %v15172_v18  ;;  %v5430_v5 = vsel %vm18221_vm6, %v5201_v17, 0.0  ;;  %v5202_v16 = vmul.f32 %v5073_v37, %v5073_v37 }
 0x518   :  { %7275 = vmatprep.subr.msk.mxu0 %vm18202_vm15, %v17322_v12  ;;  %6225 = vmatprep.mubr.f32.mxu1 %v7969_v1  ;;  %4820 = vst.msk [vmem:[%s16086_s4 + $0x350] sm:$0xff] %vm18209_vm12, %v4605_v11  ;;  %v5427_v25 = vadd.f32 %v5426_v31, %v5425_v63  ;;  %vm18217_vm15 = vmmov %vm18198_vm3  ;;  %v5076_v18 = vsub.f32 %v4605_v11, %v15223_v53 }
 0x519   :  { %7276 = vmatpush3.msk.msra.mxu0 %vm18203_vm2, %v17322_v12  ;;  %vm18218_vm2 = vcmp.eq.s32.totalorder %v9073_v44, %v18166_v9  ;;  %v5203_v44 = vmul.f32 %v5074_v36, %v5074_v36  ;;  %vm18224_vm12 = vmmov %vm18198_vm3  ;;  %v5204_v60 = vmul.f32 %v5075_v2, %v5075_v2  ;;  %v5077_v30 = vsub.f32 %v7692_v20, %v15250_v52 }
 0x51a   :  { %7277 = vmatprep.subr.msk.mxu0 %vm18205_vm9, %v17322_v12  ;;  %vm18220_vm9 = vmmov %vm18198_vm3  ;;  %v5205_v6 = vmul.f32 %v5076_v18, %v5076_v18  ;;  %v8131_v18 = vld [vmem:[%s16082_s0 + $0x3b0] sm:$0xff] }
 0x51b   :  { %7278 = vmatpush3.msk.msra.mxu0 %vm18207_vm8, %v17322_v12  ;;  %6226 = vmatmul.mubr.f32.gmra.mxu1 %v7972_v50  ;;  %v5428_v33 = vsel %vm18220_vm9, %v5200_v19, 0.0  ;;  %vm18222_vm8 = vmmov %vm18198_vm3  ;;  %v5434_v14 = vsel %vm18224_vm12, %v5203_v44, 0.0  ;;  %v5206_v38 = vmul.f32 %v5077_v30, %v5077_v30  ;;  %v8128_v19 = vld [vmem:[%s16082_s0 + $0x398] sm:$0xff] }
 0x51c   :  { %7279 = vmatprep.subr.msk.mxu0 %vm18208_vm11, %v17322_v12  ;;  %v5429_v62 = vadd.f32 %v5428_v33, %v5427_v25  ;;  %vm18223_vm11 = vmmov %vm18198_vm3 }
 0x51d   :  { %7280 = vmatpush3.msk.msra.mxu0 %vm18210_vm0, %v17322_v12  ;;  %v5432_v21 = vsel %vm18223_vm11, %v5202_v16, 0.0  ;;  %vm18225_vm0 = vmmov %vm18198_vm3 }
 0x51e   :  { %7281 = vmatprep.subr.msk.mxu0 %vm18211_vm1, %v17322_v12  ;;  %v7695_v54 = vpop.f32.mrf.mxu1  ;;  %vm18226_vm1 = vmmov %vm18225_vm0 }
 0x51f   :  { %7282 = vmatpush3.msk.msra.mxu0 %vm18212_vm13, %v17322_v12  ;;  %4823 = vst.msk [vmem:[%s16086_s4 + $0x368] sm:$0xff] %vm18217_vm15, %v7695_v54  ;;  %v5436_v43 = vsel %vm18226_vm1, %v5204_v60, 0.0  ;;  %vm18227_vm13 = vmmov %vm18225_vm0  ;;  %v5079_v52 = vsub.f32 %v7695_v54, %v15305_v34  ;;  %v8125_v34 = vld [vmem:[%s16082_s0 + $0x380] sm:$0xff] }
 0x520   :  { %7283 = vmatprep.subr.msk.mxu0 %vm18214_vm4, %v17322_v12  ;;  %v4615_v49 = vpop.f32.mrf.mxu1  ;;  %v5438_v40 = vsel %vm18227_vm13, %v5205_v6, 0.0  ;;  %vm18228_vm14 = vmmov %vm18225_vm0  ;;  %v8129_v54 = vld [vmem:[%s16082_s0 + $0x3a0] sm:$0xff] }
 0x521   :  { %7284 = vmatpush3.msk.msra.mxu0 %vm18215_vm10, %v17322_v12  ;;  %4822 = vst.msk [vmem:[%s16086_s4 + $0x360] sm:$0xff] %vm18219_vm7, %v4615_v49  ;;  %v5078_v58 = vsub.f32 %v4615_v49, %v15275_v26  ;;  %vm18229_vm3 = vmmov %vm18225_vm0  ;;  %v5208_v24 = vmul.f32 %v5079_v52, %v5079_v52 }
 0x522   :  { %7285 = vmatprep.subr.msk.mxu0 %vm18216_vm5, %v17322_v12  ;;  %vm18230_vm4 = vmmov %vm18225_vm0 }
 0x523   :  { %7286 = vmatpush3.msk.msra.mxu0 %vm18218_vm2, %v17322_v12  ;;  %v5431_v12 = vadd.f32 %v5430_v5, %v5429_v62  ;;  %v5207_v4 = vmul.f32 %v5078_v58, %v5078_v58  ;;  %v5440_v23 = vsel %vm18230_vm4, %v5206_v38, 0.0  ;;  %vm18231_vm10 = vmmov %vm18225_vm0  ;;  %v8132_v58 = vld [vmem:[%s16082_s0 + $0x3b8] sm:$0xff] }
 0x524   :  { %6211 = vmatmul.mubr.f32.vlgmr.msra.gmra.mxu0 %v7957_v3  ;;  %vm18232_vm5 = vmmov %vm18225_vm0 }
 0x525   :  { %v5433_v28 = vadd.f32 %v5432_v21, %v5431_v12  ;;  %v5442_v59 = vsel %vm18231_vm10, %v5207_v4, 0.0  ;;  %vm18233_vm15 = vmmov %vm18225_vm0  ;;  %v8130_v12 = vld [vmem:[%s16082_s0 + $0x3a8] sm:$0xff] }
 0x526   :  { %v7698_v9 = vpop.f32.mrf.mxu1  ;;  %vm18234_vm2 = vmmov %vm18225_vm0 }
 0x527   :  { %4825 = vst.msk [vmem:[%s16086_s4 + $0x378] sm:$0xff] %vm18222_vm8, %v7698_v9  ;;  %v5435_v53 = vadd.f32 %v5434_v14, %v5433_v28  ;;  %v5081_v51 = vsub.f32 %v7698_v9, %v15349_v41  ;;  %v5444_v50 = vsel %vm18234_vm2, %v5208_v24, 0.0  ;;  %vm18235_vm7 = vmmov %vm18225_vm0  ;;  %v8126_v41 = vld [vmem:[%s16082_s0 + $0x388] sm:$0xff] }
 0x528   :  { %v4625_v46 = vpop.f32.mrf.mxu1  ;;  %vm18236_vm9 = vmmov %vm18225_vm0 }
 0x529   :  { %4824 = vst.msk [vmem:[%s16086_s4 + $0x370] sm:$0xff] %vm18225_vm0, %v4625_v46  ;;  %v5437_v10 = vadd.f32 %v5436_v43, %v5435_v53  ;;  %v5080_v26 = vsub.f32 %v4625_v46, %v15318_v29  ;;  %v5210_v42 = vmul.f32 %v5081_v51, %v5081_v51  ;;  %vm18237_vm6 = vmmov %vm18225_vm0 }
 0x52a   :  { %vm18238_vm8 = vmmov %vm18225_vm0 }
 0x52b   :  { %v5439_v55 = vadd.f32 %v5438_v40, %v5437_v10  ;;  %v5209_v39 = vmul.f32 %v5080_v26, %v5080_v26  ;;  %v5448_v47 = vsel %vm18237_vm6, %v5210_v42, 0.0  ;;  %vm18239_vm11 = vmmov %vm18225_vm0  ;;  %v8133_v40 = vld [vmem:[%s16082_s0 + $0x3c0] sm:$0xff] }
 0x52c   :  { %vm18240_vm12 = vmmov %vm18225_vm0 }
 0x52d   :  { %v5441_v22 = vadd.f32 %v5440_v23, %v5439_v55  ;;  %v5446_v45 = vsel %vm18235_vm7, %v5209_v39, 0.0  ;;  %vm18241_vm1 = vmmov %vm18225_vm0  ;;  %v18249_v23 = vld [vmem:[#allocation192_spill] sm:$0xff]  ;;  %v18254_v39 = vld [vmem:[#allocation31_spill] sm:$0xff] }
 0x52e   :  { %vm18242_vm13 = vmmov %vm18225_vm0 }
 0x52f   :  { %v7701_v7 = vpop.f32.mrf.mxu1  ;;  %v5443_v48 = vadd.f32 %v5442_v59, %v5441_v22  ;;  %vm18245_vm4 = vmmov %vm18225_vm0 }
 0x530   :  { %4827 = vst.msk [vmem:[%s16086_s4 + $0x388] sm:$0xff] %vm18228_vm14, %v7701_v7  ;;  %v5083_v8 = vsub.f32 %v7701_v7, %v8126_v41  ;;  %vm18243_vm14 = vmmov %vm18225_vm0 }
 0x531   :  { %v4635_v13 = vpop.f32.mrf.mxu1  ;;  %v5445_v35 = vadd.f32 %v5444_v50, %v5443_v48  ;;  %vm18246_vm10 = vmmov %vm18225_vm0  ;;  %v18255_v50 = vld [vmem:[#allocation151_spill] sm:$0xff] }
 0x532   :  { %4826 = vst.msk [vmem:[%s16086_s4 + $0x380] sm:$0xff] %vm18229_vm3, %v4635_v13  ;;  %v5082_v29 = vsub.f32 %v4635_v13, %v8125_v34  ;;  %v5212_v31 = vmul.f32 %v5083_v8, %v5083_v8  ;;  %vm18244_vm3 = vmmov %vm18225_vm0  ;;  %v18259_v8 = vld [vmem:[#allocation70_spill] sm:$0xff] }
 0x533   :  { %v5447_v56 = vadd.f32 %v5446_v45, %v5445_v35  ;;  %vm18250_vm2 = vmmov %vm18225_vm0 }
 0x534   :  { %v5211_v1 = vmul.f32 %v5082_v29, %v5082_v29  ;;  %v5452_v36 = vsel %vm18240_vm12, %v5212_v31, 0.0  ;;  %vm18251_vm7 = vmmov %vm18225_vm0 }
 0x535   :  { %v5449_v27 = vadd.f32 %v5448_v47, %v5447_v56  ;;  %vm18253_vm6 = vmmov %vm18225_vm0 }
 0x536   :  { %v7704_v57 = vpop.f32.mrf.mxu1  ;;  %v5450_v15 = vsel %vm18238_vm8, %v5211_v1, 0.0  ;;  %vm18256_vm8 = vmmov %vm18225_vm0 }
 0x537   :  { %4829 = vst.msk [vmem:[%s16086_s4 + $0x398] sm:$0xff] %vm18232_vm5, %v7704_v57  ;;  %v5451_v63 = vadd.f32 %v5450_v15, %v5449_v27  ;;  %v5085_v17 = vsub.f32 %v7704_v57, %v8128_v19  ;;  %vm18247_vm5 = vmmov %vm18225_vm0 }
 0x538   :  { %v4645_v0 = vpop.f32.mrf.mxu1  ;;  %vm18258_vm12 = vmmov %vm18225_vm0 }
 0x539   :  { %4828 = vst.msk [vmem:[%s16086_s4 + $0x390] sm:$0xff] %vm18233_vm15, %v4645_v0  ;;  %v5084_v11 = vsub.f32 %v4645_v0, %v8127_v61  ;;  %v5453_v33 = vadd.f32 %v5452_v36, %v5451_v63  ;;  %v5214_v62 = vmul.f32 %v5085_v17, %v5085_v17  ;;  %vm18248_vm15 = vmmov %vm18225_vm0  ;;  %v18264_v17 = vld [vmem:[#allocation62_spill] sm:$0xff]  ;;  %v18266_v36 = vld [vmem:[#allocation43_spill] sm:$0xff] }
 0x53b   :  { %v5213_v3 = vmul.f32 %v5084_v11, %v5084_v11  ;;  %v5456_v21 = vsel %vm18243_vm14, %v5214_v62, 0.0  ;;  %vm18263_vm14 = vmmov %vm18225_vm0 }
 0x53d   :  { %v5454_v49 = vsel %vm18225_vm0, %v5213_v3, 0.0 }
 0x53e   :  { %v5455_v44 = vadd.f32 %v5454_v49, %v5453_v33 }
 0x53f   :  { %v7707_v20 = vpop.f32.mrf.mxu1 }
 0x540   :  { %4831 = vst.msk [vmem:[%s16086_s4 + $0x3a8] sm:$0xff] %vm18236_vm9, %v7707_v20  ;;  %v5087_v2 = vsub.f32 %v7707_v20, %v8130_v12  ;;  %v5457_v46 = vadd.f32 %v5456_v21, %v5455_v44  ;;  %vm18252_vm9 = vmmov %vm18225_vm0 }
 0x541   :  { %v4655_v32 = vpop.f32.mrf.mxu1 }
 0x542   :  { %4830 = vst.msk [vmem:[%s16086_s4 + $0x3a0] sm:$0xff] %vm18239_vm11, %v4655_v32  ;;  %v5086_v25 = vsub.f32 %v4655_v32, %v8129_v54  ;;  %v5216_v60 = vmul.f32 %v5087_v2, %v5087_v2  ;;  %vm18257_vm11 = vmmov %vm18225_vm0  ;;  %v18260_v32 = vld [vmem:[#allocation154_spill] sm:$0xff] }
 0x544   :  { %v5215_v16 = vmul.f32 %v5086_v25, %v5086_v25  ;;  %v5460_v10 = vsel %vm18247_vm5, %v5216_v60, 0.0  ;;  %vm18269_vm5 = vmmov %vm18225_vm0 }
 0x546   :  { %v5458_v14 = vsel %vm18244_vm3, %v5215_v16, 0.0  ;;  %vm18265_vm3 = vmmov %vm18225_vm0 }
 0x547   :  { %v5459_v53 = vadd.f32 %v5458_v14, %v5457_v46 }
 0x548   :  { %v7710_v37 = vpop.f32.mrf.mxu1 }
 0x549   :  { %4833 = vst.msk [vmem:[%s16086_s4 + $0x3b8] sm:$0xff] %vm18241_vm1, %v7710_v37  ;;  %v5089_v43 = vsub.f32 %v7710_v37, %v8132_v58  ;;  %v5461_v4 = vadd.f32 %v5460_v10, %v5459_v53  ;;  %vm18261_vm1 = vmmov %vm18225_vm0 }
 0x54a   :  { %v4665_v5 = vpop.f32.mrf.mxu1 }
 0x54b   :  { %4832 = vst.msk [vmem:[%s16086_s4 + $0x3b0] sm:$0xff] %vm18242_vm13, %v4665_v5  ;;  %v5088_v9 = vsub.f32 %v4665_v5, %v8131_v18  ;;  %v5218_v13 = vmul.f32 %v5089_v43, %v5089_v43  ;;  %vm18262_vm13 = vmmov %vm18225_vm0 }
 0x54d   :  { %v5217_v6 = vmul.f32 %v5088_v9, %v5088_v9  ;;  %v5464_v57 = vsel %vm18251_vm7, %v5218_v13, 0.0  ;;  %v18270_v9 = vmov 0.0  }
 0x54f   :  { %v5462_v38 = vsel %vm18248_vm15, %v5217_v6, 0.0  ;;  %vm67_vm15 = vcmask 0  }
 0x550   :  { %v7713_v28 = vpop.f32.mrf.mxu1  ;;  %v5463_v52 = vadd.f32 %v5462_v38, %v5461_v4  ;;  %68 = vst.msk [vmem:[#allocation4] sm:$0x1] %vm67_vm15, %v18270_v9 }
 0x551   :  { %4835 = vst.msk [vmem:[%s16086_s4 + $0x3c8] sm:$0xff] %vm18245_vm4, %v7713_v28  ;;  %v5091_v59 = vsub.f32 %v7713_v28, %v18249_v23  ;;  %vm18267_vm4 = vmmov %vm18225_vm0 }
 0x552   :  { %v4675_v30 = vpop.f32.mrf.mxu1  ;;  %v5465_v0 = vadd.f32 %v5464_v57, %v5463_v52 }
 0x553   :  { %4834 = vst.msk [vmem:[%s16086_s4 + $0x3c0] sm:$0xff] %vm18246_vm10, %v4675_v30  ;;  %v5090_v7 = vsub.f32 %v4675_v30, %v8133_v40  ;;  %v5220_v51 = vmul.f32 %v5091_v59, %v5091_v59  ;;  %vm18268_vm10 = vmmov %vm18225_vm0 }
 0x555   :  { %v5219_v55 = vmul.f32 %v5090_v7, %v5090_v7  ;;  %v5468_v42 = vsel %vm18256_vm8, %v5220_v51, 0.0 }
 0x557   :  { %v5466_v24 = vsel %vm18252_vm9, %v5219_v55, 0.0 }
 0x558   :  { %v7716_v26 = vpop.f32.mrf.mxu1  ;;  %v5467_v29 = vadd.f32 %v5466_v24, %v5465_v0 }
 0x559   :  { %4837 = vst.msk [vmem:[%s16086_s4 + $0x3d8] sm:$0xff] %vm18250_vm2, %v7716_v26  ;;  %v5093_v45 = vsub.f32 %v7716_v26, %v18255_v50 }
 0x55a   :  { %v4685_v22 = vpop.f32.mrf.mxu1  ;;  %v5469_v56 = vadd.f32 %v5468_v42, %v5467_v29 }
 0x55b   :  { %4836 = vst.msk [vmem:[%s16086_s4 + $0x3d0] sm:$0xff] %vm18253_vm6, %v4685_v22  ;;  %v5092_v48 = vsub.f32 %v4685_v22, %v18254_v39  ;;  %v5222_v41 = vmul.f32 %v5093_v45, %v5093_v45 }
 0x55d   :  { %v5221_v34 = vmul.f32 %v5092_v48, %v5092_v48  ;;  %v5472_v27 = vsel %vm18261_vm1, %v5222_v41, 0.0 }
 0x55f   :  { %v5470_v1 = vsel %vm18257_vm11, %v5221_v34, 0.0 }
 0x560   :  { %v7719_v35 = vpop.f32.mrf.mxu1  ;;  %v5471_v11 = vadd.f32 %v5470_v1, %v5469_v56 }
 0x561   :  { %4839 = vst.msk [vmem:[%s16086_s4 + $0x3e8] sm:$0xff] %vm18258_vm12, %v7719_v35  ;;  %v5095_v47 = vsub.f32 %v7719_v35, %v18260_v32 }
 0x562   :  { %v4695_v20 = vpop.f32.mrf.mxu1  ;;  %v5473_v3 = vadd.f32 %v5472_v27, %v5471_v11 }
 0x563   :  { %4838 = vst.msk [vmem:[%s16086_s4 + $0x3e0] sm:$0xff] %vm18225_vm0, %v4695_v20  ;;  %v5094_v61 = vsub.f32 %v4695_v20, %v18259_v8  ;;  %v5224_v19 = vmul.f32 %v5095_v47, %v5095_v47 }
 0x565   :  { %v5223_v15 = vmul.f32 %v5094_v61, %v5094_v61  ;;  %v5476_v33 = vsel %vm18267_vm4, %v5224_v19, 0.0 }
 0x567   :  { %v5474_v31 = vsel %vm18262_vm13, %v5223_v15, 0.0  ;;  %v7722_v63 = vpop.f32.mrf.mxu1 }
 0x568   :  { %4841 = vst.msk [vmem:[%s16086_s4 + $0x3f8] sm:$0xff] %vm18263_vm14, %v7722_v63  ;;  %v5097_v54 = vsub.f32 %v7722_v63, %v18264_v17  ;;  %v5475_v25 = vadd.f32 %v5474_v31, %v5473_v3 }
 0x569   :  { %v4705_v37 = vpop.f32.mrf.mxu1 }
 0x56a   :  { %4840 = vst.msk [vmem:[%s16086_s4 + $0x3f0] sm:$0xff] %vm18265_vm3, %v4705_v37  ;;  %v5096_v49 = vsub.f32 %v4705_v37, %v18266_v36  ;;  %v5226_v5 = vmul.f32 %v5097_v54, %v5097_v54  ;;  %v5477_v16 = vadd.f32 %v5476_v33, %v5475_v25  ;;  %s8222_s4 = smov [#allocation2]  }
 0x56b   :  { %s6258_s13 = sshll.u32 %s8222_s4, 4  ;;  %s6259_s13 = int_to_ptr.vmem [resolvable:$true] %s6258_s13 }
 0x56c   :  { %v5225_v62 = vmul.f32 %v5096_v49, %v5096_v49  ;;  %v5480_v2 = vsel %vm18269_vm5, %v5226_v5, 0.0  ;;  %s8134_s14 = scalar_lea.vmem %s6259_s13, 16384  ;;  %p8139_p1 = scmp.lt.s32.totalorder %s6259_s13, %s6259_s13 }
 0x56d   :  { %p8135_p0 = scmp.ne.s32.totalorder %s6259_s13, %s8134_s14  ;;  %p8140_p2 = scmp.lt.s32.totalorder %s8134_s14, %s8134_s14 }
 0x56e   :  { %v5478_v44 = vsel %vm18268_vm10, %v5225_v62, 0.0 }
 0x56f   :  { %v5479_v12 = vadd.f32 %v5478_v44, %v5477_v16  ;;  %p8141_p3 = por %p8140_p2, %p8139_p1 }
 0x571   :  { %v5481_v18 = vadd.f32 %v5480_v2, %v5479_v12  ;;  %p8142_p4 = pnand %p8141_p3, %p8135_p0 }
 0x573   :  { %5482 = vadd.xlane.f32.xlu0 %v5481_v18 }
 0x583   :  { %v7155_v21 = vpop.f32.mrf.mxu0 }
 0x585   :  { %v7156_v14 = vpop.f32.mrf.mxu0 }
 0x587   :  { %v7158_v46 = vpop.f32.mrf.mxu0 }
 0x589   :  { %v7159_v28 = vpop.f32.mrf.mxu0 }
 0x58b   :  { %v7161_v60 = vpop.f32.mrf.mxu0 }
 0x58d   :  { %v7199_v6 = vpop.f32.mrf.mxu1  ;;  %v7162_v53 = vpop.f32.mrf.mxu0 }
 0x58f   :  { %v7200_v30 = vpop.f32.mrf.mxu1 }
 0x5a5   :  { %v7164_v43 = vpop.f32.mrf.mxu0 }
 0x5a7   :  { %v7202_v58 = vpop.f32.mrf.mxu1  ;;  %v7165_v7 = vpop.f32.mrf.mxu0 }
 0x5a9   :  { %v7203_v40 = vpop.f32.mrf.mxu1 }
 0x5ab   :  { %v7205_v10 = vpop.f32.mrf.mxu1 }
 0x5c4   :  { %v7243_v38 = vpop.f32.mrf.mxu0 }
 0x5c5   :  { %8145 = shalt.err (!%p8142_p4)
}
 0x5c6   :  { %s8223_s15 = smov 128   ;;  %s8224_s16 = smov 8   ;;  %v7244_v4 = vpop.f32.mrf.mxu0  ;;  %v7206_v13 = vpop.f32.mrf.mxu1  ;;  %v7160_v23 = vadd.f32 %v7159_v28, %v7158_v46  ;;  %v7204_v22 = vadd.f32 %v7203_v40, %v7202_v58  ;;  %v7163_v39 = vadd.f32 %v7162_v53, %v7161_v60  ;;  %v7166_v34 = vadd.f32 %v7165_v7, %v7164_v43 }
 0x5c7   :  { %6264 = dma.vmem_to_hbm [thread:$0]  %s6259_s13, 16384, %s16087_s5, [#allocation3], %s8223_s15, %s8223_s15, %s8224_s16   ;;  %v7207_v51 = vadd.f32 %v7206_v13, %v7205_v10  ;;  %v7157_v19 = vadd.f32 %v7156_v14, %v7155_v21  ;;  %v7201_v17 = vadd.f32 %v7200_v30, %v7199_v6  ;;  %v7245_v36 = vadd.f32 %v7244_v4, %v7243_v38 }
 0x5c8   :  { %v7246_v55 = vpop.f32.mrf.mxu0  ;;  %v7208_v26 = vpop.f32.mrf.mxu1  ;;  %v6048_v0 = vadd.f32 %v7204_v22, %v7160_v23  ;;  %s8225_s5 = smov [#allocation7]  }
 0x5c9   :  { %v6053_v35 = vadd.f32 %v7207_v51, %v7163_v39  ;;  %v6043_v49 = vadd.f32 %v7201_v17, %v7157_v19  ;;  %s6290_s19 = sshll.u32 %s8225_s5, 4  ;;  %s6291_s19 = int_to_ptr.vmem [resolvable:$true] %s6290_s19 }
 0x5ca   :  { %v7247_v52 = vpop.f32.mrf.mxu0  ;;  %v7209_v24 = vpop.f32.mrf.mxu1  ;;  %s8154_s20 = scalar_lea.vmem %s6291_s19, 512  ;;  %p8159_p6 = scmp.lt.s32.totalorder %s6291_s19, %s6291_s19 }
 0x5cb   :  { %v7248_v48 = vadd.f32 %v7247_v52, %v7246_v55  ;;  %v7210_v42 = vadd.f32 %v7209_v24, %v7208_v26  ;;  %v6128_v5 = vadd.f32 %v7245_v36, %v6043_v49  ;;  %p8155_p5 = scmp.ne.s32.totalorder %s6291_s19, %s8154_s20  ;;  %p8160_p7 = scmp.lt.s32.totalorder %s8154_s20, %s8154_s20 }
 0x5cc   :  { %v7249_v59 = vpop.f32.mrf.mxu0 }
 0x5cd   :  { %v6133_v1 = vadd.f32 %v7248_v48, %v6048_v0  ;;  %v6058_v11 = vadd.f32 %v7210_v42, %v7166_v34  ;;  %p8161_p8 = por %p8160_p7, %p8159_p6 }
 0x5ce   :  { %v7250_v57 = vpop.f32.mrf.mxu0 }
 0x5cf   :  { %v7251_v45 = vadd.f32 %v7250_v57, %v7249_v59  ;;  %p8162_p9 = pnand %p8161_p8, %p8155_p5 }
 0x5d0   :  { %v7252_v29 = vpop.f32.mrf.mxu0 }
 0x5d1   :  { %v6138_v47 = vadd.f32 %v7251_v45, %v6053_v35 }
 0x5d2   :  { %v7253_v41 = vpop.f32.mrf.mxu0 }
 0x5d3   :  { %v7290_v50 = vpop.f32.mrf.mxu1  ;;  %v7254_v61 = vadd.f32 %v7253_v41, %v7252_v29 }
 0x5d5   :  { %v7291_v56 = vpop.f32.mrf.mxu1  ;;  %v6143_v63 = vadd.f32 %v7254_v61, %v6058_v11 }
 0x5d6   :  { %v7292_v20 = vadd.f32 %v7291_v56, %v7290_v50 }
 0x5d7   :  { %v7293_v8 = vpop.f32.mrf.mxu1 }
 0x5d8   :  { %v6218_v32 = vadd.f32 %v7292_v20, %v6133_v1 }
 0x5d9   :  { %v7294_v15 = vpop.f32.mrf.mxu1 }
 0x5da   :  { %v7295_v27 = vadd.f32 %v7294_v15, %v7293_v8  ;;  %6236 = vst [vmem:[#allocation7 + $0x8] sm:$0xff] %v6218_v32 }
 0x5db   :  { %v7296_v31 = vpop.f32.mrf.mxu1 }
 0x5dc   :  { %v6223_v3 = vadd.f32 %v7295_v27, %v6138_v47 }
 0x5dd   :  { %v7297_v54 = vpop.f32.mrf.mxu1 }
 0x5de   :  { %v7298_v25 = vadd.f32 %v7297_v54, %v7296_v31  ;;  %6237 = vst [vmem:[#allocation7 + $0x10] sm:$0xff] %v6223_v3 }
 0x5e0   :  { %v6228_v37 = vadd.f32 %v7298_v25, %v6143_v63 }
 0x5e2   :  { %6238 = vst [vmem:[#allocation7 + $0x18] sm:$0xff] %v6228_v37 }
 0x5e4   :  { %v7287_v33 = vpop.f32.mrf.mxu0 }
 0x5e6   :  { %v7288_v62 = vpop.f32.mrf.mxu0 }
 0x5e7   :  { %v7289_v16 = vadd.f32 %v7288_v62, %v7287_v33 }
 0x5e9   :  { %v6213_v44 = vadd.f32 %v7289_v16, %v6128_v5 }
 0x5eb   :  { %6235 = vst [vmem:[#allocation7] sm:$0xff] %v6213_v44 }
 0x5ec   :  { %8165 = shalt.err (!%p8162_p9)
}
 0x5ed   :  { %6296 = dma.vmem_to_hbm [thread:$0]  %s6291_s19, 512, %s16090_s8, [#allocation8], %s8223_s15, %s8223_s15, %s8224_s16   ;;  %v5098_v28 = vld [vmem:[#allocation4] sm:$0x1] }
 0x5ee   :  { %s8226_s22 = smov [#allocation4]   ;;  %s8227_s25 = smov [#allocation6]  }
 0x5ef   :  { %s6271_s23 = sshll.u32 %s8226_s22, 4  ;;  %s6281_s26 = sshll.u32 %s8227_s25, 4  ;;  %s6272_s23 = int_to_ptr.vmem [resolvable:$true] %s6271_s23  ;;  %s6282_s26 = int_to_ptr.vmem [resolvable:$true] %s6281_s26 }
 0x5f0   :  { %s8174_s8 = scalar_lea.vmem %s6272_s23, 16  ;;  %s8178_s27 = scalar_lea.vmem %s6272_s23, 32 }
 0x5f1   :  { %p8175_p10 = scmp.ne.s32.totalorder %s6272_s23, %s8174_s8  ;;  %p8179_p11 = scmp.lt.s32.totalorder %s6272_s23, %s6272_s23 }
 0x5f2   :  { %p8180_p12 = scmp.lt.s32.totalorder %s8178_s27, %s8174_s8 }
 0x5f4   :  { %p8181_p13 = por %p8180_p12, %p8179_p11 }
 0x5f6   :  { %p8182_p0 = pnand %p8181_p13, %p8175_p10 }
 0x5fc   :  { %v5483_v12 = vpop.xlane.xlu0 %5482 }
 0x5fd   :  { %v5484_v2 = vrot.slane %v5483_v12, 4 }
 0x5ff   :  { %v5485_v18 = vadd.f32 %v5484_v2, %v5483_v12 }
 0x601   :  { %v5486_v9 = vrot.slane %v5485_v18, 2 }
 0x603   :  { %v5487_v21 = vadd.f32 %v5486_v9, %v5485_v18 }
 0x605   :  { %v5488_v14 = vrot.slane %v5487_v21, 1 }
 0x607   :  { %v5489_v46 = vadd.f32 %v5488_v14, %v5487_v21 }
 0x609   :  { %7755 = vpush %v5489_v46 }
 0x63a   :  { %s7756_s24 = spop %7755 }
 0x63b   :  { %v5491_v60 = vstv %s7756_s24 }
 0x63c   :  { %v5492_v6 = vadd.f32 %v5491_v60, %v5098_v28 }
 0x63e   :  { %5494 = vst.msk [vmem:[#allocation4] sm:$0x1] %vm67_vm15, %v5492_v6 }
 0x63f   :  { %8185 = shalt.err (!%p8182_p0)
}
 0x640   :  { %6274 = dma.vmem_to_hbm [thread:$0]  %s6272_s23, 16, %s16088_s6, [#allocation5]  }
 0x641   :  { %s8194_s29 = scalar_lea.vmem %s6282_s26, 16  ;;  %s8198_s1 = scalar_lea.vmem %s6282_s26, 32 }
 0x642   :  { %p8195_p1 = scmp.ne.s32.totalorder %s6282_s26, %s8194_s29  ;;  %p8199_p2 = scmp.lt.s32.totalorder %s6282_s26, %s6282_s26 }
 0x643   :  { %p8200_p3 = scmp.lt.s32.totalorder %s8198_s1, %s8194_s29 }
 0x645   :  { %p8201_p4 = por %p8200_p3, %p8199_p2 }
 0x647   :  { %p8202_p5 = pnand %p8201_p4, %p8195_p1 }
 0x649   :  { %8205 = shalt.err (!%p8202_p5)
}
 0x64a   :  { %6284 = dma.vmem_to_hbm [thread:$0]  %s6282_s26, 16, %s16089_s7, [#allocation5]  }
 0x64b   :  { %8214 = dma.done.wait [#allocation3], 16384  }
 0x64c   :  { %8215 = vsyncadd [#allocation3], 4294950912 }
 0x64d   :  { %8216 = dma.done.wait [#allocation5], 32  }
 0x64e   :  { %8217 = vsyncadd [#allocation5], 4294967264 }
 0x64f   :  { %8218 = dma.done.wait [#allocation8], 512  }
 0x650   :  { %8219 = vsyncadd [#allocation8], 4294966784 }
 0x651   :  { %6317 = vsyncpa [#allocation3], 1 }
 0x652   :  { %6318 = vsyncpa [#allocation5], 1 }
 0x653   :  { %6319 = vsyncpa [#allocation8], 1 }

</bundles_post_ra>
